<compile_context>
chip_gen: v7x
topology: tpu7x:2x2x1
jax: 0.10.0
libtpu: 0.0.40
codegen_flags: <defaults>
</compile_context>

<pallas_src>
import math
import numpy as np
import jax
import jax.numpy as jnp
from jax.experimental import pallas as pl
from jax.experimental.pallas import tpu as pltpu


# ---------------------------------------------------------------------------
# Host-side parameter construction: B-spline basis (bs / spline_factory).
# scipy.interpolate.splev is replaced by an equivalent NumPy Cox-de Boor
# evaluation (same clamped-knot construction).  Host-side setup, not kernel work.
# ---------------------------------------------------------------------------
def _cox_de_boor_basis(x, knots, degree):
    x = np.asarray(x, dtype=np.float64)
    t = np.asarray(knots, dtype=np.float64)
    n0 = len(t) - 1
    B = np.zeros((x.shape[0], n0), dtype=np.float64)
    for i in range(n0):
        if t[i] < t[i + 1]:
            B[:, i] = ((x >= t[i]) & (x < t[i + 1])).astype(np.float64)
    # splev convention: the right endpoint belongs to the last non-empty span.
    last_span = max(i for i in range(n0) if t[i] < t[i + 1])
    B[x == t[-1], last_span] = 1.0
    for k in range(1, degree + 1):
        nk = len(t) - k - 1
        Bn = np.zeros((x.shape[0], nk), dtype=np.float64)
        for i in range(nk):
            acc = np.zeros(x.shape[0], dtype=np.float64)
            d0 = t[i + k] - t[i]
            if d0 > 0:
                acc += (x - t[i]) / d0 * B[:, i]
            d1 = t[i + k + 1] - t[i + 1]
            if d1 > 0:
                acc += (t[i + k + 1] - x) / d1 * B[:, i + 1]
            Bn[:, i] = acc
        B = Bn
    return B


def bs(x, df=None, knots=None, degree=3, intercept=False):
    order = degree + 1
    inner_knots = []
    if df is not None and knots is None:
        n_inner_knots = df - order + (1 - int(intercept))
        if n_inner_knots < 0:
            n_inner_knots = 0
        if n_inner_knots > 0:
            inner_knots = np.percentile(
                x, 100 * np.linspace(0, 1, n_inner_knots + 2)[1:-1])
    elif knots is not None:
        inner_knots = knots
    all_knots = np.concatenate(([np.min(x), np.max(x)] * order, inner_knots))
    all_knots.sort()
    basis = _cox_de_boor_basis(np.asarray(x, dtype=np.float64), all_knots, degree)
    if not intercept:
        basis = basis[:, 1:]
    return basis


def spline_factory(n, df, log=False):
    if log:
        dist = np.array(np.arange(n) - n / 2.0)
        dist = np.log(np.abs(dist) + 1) * (2 * (dist > 0) - 1)
        n_knots = df - 4
        knots = np.linspace(np.min(dist), np.max(dist), n_knots + 2)[1:-1]
        return bs(dist, knots=knots, intercept=True).astype(np.float32)
    dist = np.arange(n)
    return bs(dist, df=df, intercept=True).astype(np.float32)


# ---------------------------------------------------------------------------
# Tiling / spec helpers
# ---------------------------------------------------------------------------
def _pick_batch_tile(B, target=256):
    """Generation-aware batch tile.

    Small batches (< 256) run as one block (splitting them only adds the
    ~0.35 us/step pipeline overhead).  Larger batches are split into >= 2
    multiple-of-8 tiles so dimension_semantics=("parallel",) can shard the
    grid across v7x's two TensorCores and pipeline the activation DMA.
    The grid uses pl.cdiv, so B need not be divisible by the tile.
    """
    if B < 2 * 128:
        return B
    t = min(target, max(128, (B + 1) // 2))
    return max(8, (t // 8) * 8)


def _resident_spec(shape, single_buffer):
    """Constant-index (weight/bias) block: resident in VMEM across the grid.

    When supported, request a single pipeline buffer (Buffered(1)) -- a
    constant index_map never needs a second buffer, halving resident-weight
    VMEM and avoiding per-step DMA descriptor work.
    """
    index_map = lambda i: (0,) * len(shape)
    if single_buffer and hasattr(pl, "Buffered"):
        try:
            return pl.BlockSpec(shape, index_map, pipeline_mode=pl.Buffered(1))
        except TypeError:  # older BlockSpec without pipeline_mode kwarg
            pass
    return pl.BlockSpec(shape, index_map)


def _pad_cols(a, mult=128):
    """Zero-pad the last dim up to a multiple of `mult` (lane-dense stores)."""
    pad = (-a.shape[-1]) % mult
    if pad:
        a = jnp.pad(a, ((0, 0), (0, pad)))
    return a


# ---------------------------------------------------------------------------
# Fused kernel: (folded spline+W1) -> ReLU -> W2 -> ReLU -> W3 -> ReLU
#               -> W4[bit] -> Softplus, all in one pass over a batch tile.
# Activations/weights are bf16 at the MXU inputs; accumulation, biases and
# elementwise math are f32.
# ---------------------------------------------------------------------------
def _fused_mlp_kernel(x_ref, w1_ref, b1_ref, w2_ref, b2_ref,
                      w3_ref, b3_ref, w4_ref, b4_ref, o_ref):
    h = jnp.dot(x_ref[...], w1_ref[...], preferred_element_type=jnp.float32)
    h = jnp.maximum(h + b1_ref[...], 0.0)
    h = jnp.dot(h.astype(jnp.bfloat16), w2_ref[...],
                preferred_element_type=jnp.float32)
    h = jnp.maximum(h + b2_ref[...], 0.0)
    h = jnp.dot(h.astype(jnp.bfloat16), w3_ref[...],
                preferred_element_type=jnp.float32)
    h = jnp.maximum(h + b3_ref[...], 0.0)
    z = jnp.dot(h.astype(jnp.bfloat16), w4_ref[...],
                preferred_element_type=jnp.float32) + b4_ref[...]
    # Numerically stable softplus: max(z, 0) + log(1 + exp(-|z|))
    o_ref[...] = (jnp.maximum(z, 0.0)
                  + jnp.log(1.0 + jnp.exp(-jnp.abs(z)))).astype(o_ref.dtype)


def mlp_head(x_flat, w1, b1, w2, b2, w3, b3, w4, b4, *,
             batch_tile=256, single_buffer_weights=True):
    B, Din = x_flat.shape
    Fp = w4.shape[1]                       # already padded to a multiple of 128
    tb = _pick_batch_tile(B, batch_tile)
    grid = (pl.cdiv(B, tb),)

    def resident(a):
        return _resident_spec(a.shape, single_buffer_weights)

    return pl.pallas_call(
        _fused_mlp_kernel,
        out_shape=jax.ShapeDtypeStruct((B, Fp), jnp.float32),
        grid_spec=pltpu.PrefetchScalarGridSpec(
            num_scalar_prefetch=0,
            grid=grid,
            in_specs=[
                pl.BlockSpec((tb, Din), lambda i: (i, 0)),   # batch tile (bf16)
                resident(w1), resident(b1),
                resident(w2), resident(b2),
                resident(w3), resident(b3),
                resident(w4), resident(b4),
            ],
            out_specs=pl.BlockSpec((tb, Fp), lambda i: (i, 0)),
        ),
        compiler_params=pltpu.CompilerParams(
            dimension_semantics=("parallel",),
            vmem_limit_bytes=32 * 1024 * 1024),
    )(x_flat, w1, b1, w2, b2, w3, b3, w4, b4)


# ---------------------------------------------------------------------------
# Module wrapper: parameters + host-side weight preparation + forward
# ---------------------------------------------------------------------------
def init_prediction_head_params(key, embed_dim, n_features, spatial_dim,
                                spline_bins=16):
    """Deterministic f32 parameters mirroring PredictionHead.__init__.
    Linear weights are stored as (fan_in, fan_out) (transposed vs torch)."""
    E = embed_dim
    d1, d2, d3 = 16 * E, 12 * E, 8 * E
    spline_tr = jnp.asarray(spline_factory(spatial_dim, spline_bins), jnp.float32)

    def linear(k, fan_in, fan_out):
        kw, kb = jax.random.split(k)
        bound = 1.0 / math.sqrt(fan_in)
        w = jax.random.uniform(kw, (fan_in, fan_out), jnp.float32, -bound, bound)
        b = jax.random.uniform(kb, (1, fan_out), jnp.float32, -bound, bound)
        return w, b

    keys = jax.random.split(key, 3 + len(n_features))
    w1, b1 = linear(keys[0], d1, d1)
    w2, b2 = linear(keys[1], d1, d2)
    w3, b3 = linear(keys[2], d2, d3)
    heads = tuple(linear(keys[3 + i], d3, f) for i, f in enumerate(n_features))
    return dict(spline_tr=spline_tr, w1=w1, b1=b1, w2=w2, b2=b2, w3=w3, b3=b3,
                heads=heads)


def prepare_fused_params(params):
    """One-time host-side prep:
      * fold spline_tr into W1:  W1_eff[e*S+s, :] = sum_k spline_tr[s,k] * W1[e*16+k, :]
      * cast all weight matrices to bf16 (MXU inputs); biases stay f32
      * zero-pad each head's output columns to a multiple of 128
    """
    spline_tr = params["spline_tr"]                 # (S, K) f32
    S, K = spline_tr.shape
    w1 = params["w1"]                               # (16E, 16E)
    d1 = w1.shape[0]
    E = d1 // K
    w1_3d = w1.reshape(E, K, d1)                    # rows ordered e-major, k-minor
    w1_eff = jnp.einsum("sk,ekj->esj", spline_tr, w1_3d).reshape(E * S, d1)

    heads = []
    for (w4, b4) in params["heads"]:
        F = w4.shape[1]
        heads.append((_pad_cols(w4).astype(jnp.bfloat16),
                      _pad_cols(b4).astype(jnp.float32),
                      F))
    return dict(
        w1_eff=w1_eff.astype(jnp.bfloat16), b1=params["b1"].astype(jnp.float32),
        w2=params["w2"].astype(jnp.bfloat16), b2=params["b2"].astype(jnp.float32),
        w3=params["w3"].astype(jnp.bfloat16), b3=params["b3"].astype(jnp.float32),
        heads=tuple(heads))


def prediction_head_forward(x, fused, bit=0):
    """x: (B, embed_dim, spatial) f32 -> (B, n_features[bit]) f32 (eval mode).
    # TODO(synk): nn.Dropout(p=0.4) is stochastic (training mode); this is the
    # deterministic eval-mode path (dropout = identity)."""
    B, E, S = x.shape
    x_flat = x.reshape(B, E * S).astype(jnp.bfloat16)   # spline folded into W1
    w4, b4, F = fused["heads"][bit]
    args = (x_flat, fused["w1_eff"], fused["b1"], fused["w2"], fused["b2"],
            fused["w3"], fused["b3"], w4, b4)
    try:
        out = mlp_head(*args, single_buffer_weights=True)
    except Exception:
        # Fallback for Pallas versions that reject single-buffered resident blocks.
        out = mlp_head(*args, single_buffer_weights=False)
    return out[:, :F]


# ---------------------------------------------------------------------------
# References
# ---------------------------------------------------------------------------
def prediction_head_ref(x, params, bit=0):
    """Literal f32 module forward (eval mode)."""
    spline_tr = params["spline_tr"]
    spline_out = jnp.einsum("bes,sk->bek", x, spline_tr)
    h = spline_out.reshape(x.shape[0], -1)
    h = jax.nn.relu(h @ params["w1"] + params["b1"])
    h = jax.nn.relu(h @ params["w2"] + params["b2"])
    h = jax.nn.relu(h @ params["w3"] + params["b3"])
    w4, b4 = params["heads"][bit]
    return jax.nn.softplus(h @ w4 + b4)


def prediction_head_precision_ref(x, fused, bit=0):
    """Pure-JAX reference using the SAME precision choices as the kernel
    (bf16 MXU inputs, f32 accumulation) -- validates the kernel exactly."""
    B, E, S = x.shape
    h = x.reshape(B, E * S).astype(jnp.bfloat16)

    def dense(h, w, b):
        return jnp.dot(h.astype(jnp.bfloat16), w,
                       preferred_element_type=jnp.float32) + b

    h = jax.nn.relu(dense(h, fused["w1_eff"], fused["b1"]))
    h = jax.nn.relu(dense(h, fused["w2"], fused["b2"]))
    h = jax.nn.relu(dense(h, fused["w3"], fused["b3"]))
    w4, b4, F = fused["heads"][bit]
    return jax.nn.softplus(dense(h, w4, b4))[:, :F]


if __name__ == "__main__":
    key = jax.random.PRNGKey(0)
    kx, kp = jax.random.split(key)

    # Small shapes consistent with the module's forward:
    #   input (batch, embed_dim, spatial) = (4, 32, 64), spline_bins = 16,
    #   hidden dims 16E=512 -> 12E=384 -> 8E=256, heads n_features = (128, 96).
    B, E, S = 4, 32, 64
    n_features = (128, 96)

    x = jax.random.normal(kx, (B, E, S), dtype=jnp.float32)
    params = init_prediction_head_params(kp, E, n_features, S)
    fused = prepare_fused_params(params)

    for bit in (0, 1):
        out = prediction_head_forward(x, fused, bit=bit)
        out = jax.block_until_ready(out)
        assert out.shape == (B, n_features[bit])

        # Tight check: kernel vs a precision-matched XLA reference (same bf16
        # MXU inputs / f32 accumulation) -- only accumulation order differs.
        ref_p = prediction_head_precision_ref(x, fused, bit=bit)
        assert jnp.allclose(out, ref_p, atol=1e-3, rtol=1e-3), \
            f"bit={bit}: mismatch vs precision-matched reference"

        # Semantic check: vs the literal f32 module forward.  Tolerance sized
        # for bf16 rounding of the MXU inputs through four stacked matmuls
        # (validated explicitly rather than widened further).
        ref = prediction_head_ref(x, params, bit=bit)
        assert jnp.allclose(out, ref, atol=2e-2, rtol=2e-2), \
            f"bit={bit}: mismatch vs f32 reference"

    print("KERNEL_OK")
</pallas_src>

<mosaic_0001>
module attributes {stable_mosaic.version = 11 : i64} {
  func.func @_fused_mlp_kernel(%arg0: i32, %arg1: memref<4x2048xbf16, #tpu.memory_space<vmem>>, %arg2: memref<2048x512xbf16, #tpu.memory_space<vmem>>, %arg3: memref<1x512xf32, #tpu.memory_space<vmem>>, %arg4: memref<512x384xbf16, #tpu.memory_space<vmem>>, %arg5: memref<1x384xf32, #tpu.memory_space<vmem>>, %arg6: memref<384x256xbf16, #tpu.memory_space<vmem>>, %arg7: memref<1x256xf32, #tpu.memory_space<vmem>>, %arg8: memref<256x128xbf16, #tpu.memory_space<vmem>>, %arg9: memref<1x128xf32, #tpu.memory_space<vmem>>, %arg10: memref<4x128xf32, #tpu.memory_space<vmem>>) attributes {dimension_semantics = [#tpu.dimension_semantics<parallel>], iteration_bounds = array<i64: 1>, scalar_prefetch = 0 : i64, scratch_operands = 0 : i64, tpu.core_type = #tpu.core_type<tc>, window_params = [{transform_indices = @transform_0, window_bounds = array<i64: 4, 2048>}, {pipeline_mode = #tpu.pipeline_mode<synchronous>, transform_indices = @transform_1, window_bounds = array<i64: 2048, 512>}, {pipeline_mode = #tpu.pipeline_mode<synchronous>, transform_indices = @transform_2, window_bounds = array<i64: 1, 512>}, {pipeline_mode = #tpu.pipeline_mode<synchronous>, transform_indices = @transform_3, window_bounds = array<i64: 512, 384>}, {pipeline_mode = #tpu.pipeline_mode<synchronous>, transform_indices = @transform_4, window_bounds = array<i64: 1, 384>}, {pipeline_mode = #tpu.pipeline_mode<synchronous>, transform_indices = @transform_5, window_bounds = array<i64: 384, 256>}, {pipeline_mode = #tpu.pipeline_mode<synchronous>, transform_indices = @transform_6, window_bounds = array<i64: 1, 256>}, {pipeline_mode = #tpu.pipeline_mode<synchronous>, transform_indices = @transform_7, window_bounds = array<i64: 256, 128>}, {pipeline_mode = #tpu.pipeline_mode<synchronous>, transform_indices = @transform_8, window_bounds = array<i64: 1, 128>}, {transform_indices = @transform_9, window_bounds = array<i64: 4, 128>}]} {
    %c0 = arith.constant 0 : index
    %c0_0 = arith.constant 0 : index
    %0 = vector.load %arg1[%c0, %c0_0] : memref<4x2048xbf16, #tpu.memory_space<vmem>>, vector<4x2048xbf16>
    %c0_1 = arith.constant 0 : index
    %c0_2 = arith.constant 0 : index
    %1 = vector.load %arg2[%c0_1, %c0_2] : memref<2048x512xbf16, #tpu.memory_space<vmem>>, vector<2048x512xbf16>
    %cst = arith.constant dense<0.000000e+00> : vector<4x512xf32>
    %2 = tpu.matmul %0, %1, %cst {dimension_numbers = #tpu.dot_dimension_numbers<[1], [0], [0], [1], [0, 0, 1, 1], [], []>} : vector<4x2048xbf16>, vector<2048x512xbf16>, vector<4x512xf32> -> vector<4x512xf32>
    %c0_3 = arith.constant 0 : index
    %c0_4 = arith.constant 0 : index
    %3 = vector.load %arg3[%c0_3, %c0_4] : memref<1x512xf32, #tpu.memory_space<vmem>>, vector<1x512xf32>
    %4 = vector.broadcast %3 : vector<1x512xf32> to vector<4x512xf32>
    %5 = arith.addf %2, %4 : vector<4x512xf32>
    %cst_5 = arith.constant 0.000000e+00 : f32
    %6 = vector.broadcast %cst_5 : f32 to vector<4x512xf32>
    %7 = arith.maximumf %5, %6 : vector<4x512xf32>
    %8 = arith.truncf %7 : vector<4x512xf32> to vector<4x512xbf16>
    %c0_6 = arith.constant 0 : index
    %c0_7 = arith.constant 0 : index
    %9 = vector.load %arg4[%c0_6, %c0_7] : memref<512x384xbf16, #tpu.memory_space<vmem>>, vector<512x384xbf16>
    %cst_8 = arith.constant dense<0.000000e+00> : vector<4x384xf32>
    %10 = tpu.matmul %8, %9, %cst_8 {dimension_numbers = #tpu.dot_dimension_numbers<[1], [0], [0], [1], [0, 0, 1, 1], [], []>} : vector<4x512xbf16>, vector<512x384xbf16>, vector<4x384xf32> -> vector<4x384xf32>
    %c0_9 = arith.constant 0 : index
    %c0_10 = arith.constant 0 : index
    %11 = vector.load %arg5[%c0_9, %c0_10] : memref<1x384xf32, #tpu.memory_space<vmem>>, vector<1x384xf32>
    %12 = vector.broadcast %11 : vector<1x384xf32> to vector<4x384xf32>
    %13 = arith.addf %10, %12 : vector<4x384xf32>
    %cst_11 = arith.constant 0.000000e+00 : f32
    %14 = vector.broadcast %cst_11 : f32 to vector<4x384xf32>
    %15 = arith.maximumf %13, %14 : vector<4x384xf32>
    %16 = arith.truncf %15 : vector<4x384xf32> to vector<4x384xbf16>
    %c0_12 = arith.constant 0 : index
    %c0_13 = arith.constant 0 : index
    %17 = vector.load %arg6[%c0_12, %c0_13] : memref<384x256xbf16, #tpu.memory_space<vmem>>, vector<384x256xbf16>
    %cst_14 = arith.constant dense<0.000000e+00> : vector<4x256xf32>
    %18 = tpu.matmul %16, %17, %cst_14 {dimension_numbers = #tpu.dot_dimension_numbers<[1], [0], [0], [1], [0, 0, 1, 1], [], []>} : vector<4x384xbf16>, vector<384x256xbf16>, vector<4x256xf32> -> vector<4x256xf32>
    %c0_15 = arith.constant 0 : index
    %c0_16 = arith.constant 0 : index
    %19 = vector.load %arg7[%c0_15, %c0_16] : memref<1x256xf32, #tpu.memory_space<vmem>>, vector<1x256xf32>
    %20 = vector.broadcast %19 : vector<1x256xf32> to vector<4x256xf32>
    %21 = arith.addf %18, %20 : vector<4x256xf32>
    %cst_17 = arith.constant 0.000000e+00 : f32
    %22 = vector.broadcast %cst_17 : f32 to vector<4x256xf32>
    %23 = arith.maximumf %21, %22 : vector<4x256xf32>
    %24 = arith.truncf %23 : vector<4x256xf32> to vector<4x256xbf16>
    %c0_18 = arith.constant 0 : index
    %c0_19 = arith.constant 0 : index
    %25 = vector.load %arg8[%c0_18, %c0_19] : memref<256x128xbf16, #tpu.memory_space<vmem>>, vector<256x128xbf16>
    %cst_20 = arith.constant dense<0.000000e+00> : vector<4x128xf32>
    %26 = tpu.matmul %24, %25, %cst_20 {dimension_numbers = #tpu.dot_dimension_numbers<[1], [0], [0], [1], [0, 0, 1, 1], [], []>} : vector<4x256xbf16>, vector<256x128xbf16>, vector<4x128xf32> -> vector<4x128xf32>
    %c0_21 = arith.constant 0 : index
    %c0_22 = arith.constant 0 : index
    %27 = vector.load %arg9[%c0_21, %c0_22] : memref<1x128xf32, #tpu.memory_space<vmem>>, vector<1x128xf32>
    %28 = vector.broadcast %27 : vector<1x128xf32> to vector<4x128xf32>
    %29 = arith.addf %26, %28 : vector<4x128xf32>
    %cst_23 = arith.constant 0.000000e+00 : f32
    %30 = vector.broadcast %cst_23 : f32 to vector<4x128xf32>
    %31 = arith.maximumf %29, %30 : vector<4x128xf32>
    %32 = math.absf %29 : vector<4x128xf32>
    %cst_24 = arith.constant 0.000000e+00 : f32
    %33 = vector.broadcast %cst_24 : f32 to vector<4x128xf32>
    %34 = arith.subf %33, %32 : vector<4x128xf32>
    %35 = math.exp %34 : vector<4x128xf32>
    %cst_25 = arith.constant 1.000000e+00 : f32
    %36 = vector.broadcast %cst_25 : f32 to vector<4x128xf32>
    %37 = arith.addf %36, %35 : vector<4x128xf32>
    %38 = math.log %37 : vector<4x128xf32>
    %39 = arith.addf %31, %38 : vector<4x128xf32>
    %c0_26 = arith.constant 0 : index
    %c0_27 = arith.constant 0 : index
    %40 = vector.load %arg10[%c0_26, %c0_27] : memref<4x128xf32, #tpu.memory_space<vmem>>, vector<4x128xf32>
    tpu.vector_store %arg10[%c0_26, %c0_27], %39 {strides = array<i32>} : memref<4x128xf32, #tpu.memory_space<vmem>>, vector<4x128xf32>,
    return
  }
  func.func @transform_0(%arg0: i32) -> (i32, i32) {
    %c0_i32 = arith.constant 0 : i32
    %c0_i32_0 = arith.constant 0 : i32
    return %arg0, %c0_i32 : i32, i32
  }
  func.func @transform_1(%arg0: i32) -> (i32, i32) {
    %c0_i32 = arith.constant 0 : i32
    %c0_i32_0 = arith.constant 0 : i32
    %c0_i32_1 = arith.constant 0 : i32
    return %c0_i32, %c0_i32_0 : i32, i32
  }
  func.func @transform_2(%arg0: i32) -> (i32, i32) {
    %c0_i32 = arith.constant 0 : i32
    %c0_i32_0 = arith.constant 0 : i32
    %c0_i32_1 = arith.constant 0 : i32
    return %c0_i32, %c0_i32_0 : i32, i32
  }
  func.func @transform_3(%arg0: i32) -> (i32, i32) {
    %c0_i32 = arith.constant 0 : i32
    %c0_i32_0 = arith.constant 0 : i32
    %c0_i32_1 = arith.constant 0 : i32
    return %c0_i32, %c0_i32_0 : i32, i32
  }
  func.func @transform_4(%arg0: i32) -> (i32, i32) {
    %c0_i32 = arith.constant 0 : i32
    %c0_i32_0 = arith.constant 0 : i32
    %c0_i32_1 = arith.constant 0 : i32
    return %c0_i32, %c0_i32_0 : i32, i32
  }
  func.func @transform_5(%arg0: i32) -> (i32, i32) {
    %c0_i32 = arith.constant 0 : i32
    %c0_i32_0 = arith.constant 0 : i32
    %c0_i32_1 = arith.constant 0 : i32
    return %c0_i32, %c0_i32_0 : i32, i32
  }
  func.func @transform_6(%arg0: i32) -> (i32, i32) {
    %c0_i32 = arith.constant 0 : i32
    %c0_i32_0 = arith.constant 0 : i32
    %c0_i32_1 = arith.constant 0 : i32
    return %c0_i32, %c0_i32_0 : i32, i32
  }
  func.func @transform_7(%arg0: i32) -> (i32, i32) {
    %c0_i32 = arith.constant 0 : i32
    %c0_i32_0 = arith.constant 0 : i32
    %c0_i32_1 = arith.constant 0 : i32
    return %c0_i32, %c0_i32_0 : i32, i32
  }
  func.func @transform_8(%arg0: i32) -> (i32, i32) {
    %c0_i32 = arith.constant 0 : i32
    %c0_i32_0 = arith.constant 0 : i32
    %c0_i32_1 = arith.constant 0 : i32
    return %c0_i32, %c0_i32_0 : i32, i32
  }
  func.func @transform_9(%arg0: i32) -> (i32, i32) {
    %c0_i32 = arith.constant 0 : i32
    %c0_i32_0 = arith.constant 0 : i32
    return %arg0, %c0_i32 : i32, i32
  }
}

module attributes {stable_mosaic.version = 11 : i64} {
  func.func @_fused_mlp_kernel(%arg0: i32, %arg1: memref<4x2048xbf16, #tpu.memory_space<vmem>>, %arg2: memref<2048x512xbf16, #tpu.memory_space<vmem>>, %arg3: memref<1x512xf32, #tpu.memory_space<vmem>>, %arg4: memref<512x384xbf16, #tpu.memory_space<vmem>>, %arg5: memref<1x384xf32, #tpu.memory_space<vmem>>, %arg6: memref<384x256xbf16, #tpu.memory_space<vmem>>, %arg7: memref<1x256xf32, #tpu.memory_space<vmem>>, %arg8: memref<256x128xbf16, #tpu.memory_space<vmem>>, %arg9: memref<1x128xf32, #tpu.memory_space<vmem>>, %arg10: memref<4x128xf32, #tpu.memory_space<vmem>>) attributes {dimension_semantics = [#tpu.dimension_semantics<parallel>], iteration_bounds = array<i64: 1>, scalar_prefetch = 0 : i64, scratch_operands = 0 : i64, tpu.core_type = #tpu.core_type<tc>, window_params = [{transform_indices = @transform_0, window_bounds = array<i64: 4, 2048>}, {pipeline_mode = #tpu.pipeline_mode<synchronous>, transform_indices = @transform_1, window_bounds = array<i64: 2048, 512>}, {pipeline_mode = #tpu.pipeline_mode<synchronous>, transform_indices = @transform_2, window_bounds = array<i64: 1, 512>}, {pipeline_mode = #tpu.pipeline_mode<synchronous>, transform_indices = @transform_3, window_bounds = array<i64: 512, 384>}, {pipeline_mode = #tpu.pipeline_mode<synchronous>, transform_indices = @transform_4, window_bounds = array<i64: 1, 384>}, {pipeline_mode = #tpu.pipeline_mode<synchronous>, transform_indices = @transform_5, window_bounds = array<i64: 384, 256>}, {pipeline_mode = #tpu.pipeline_mode<synchronous>, transform_indices = @transform_6, window_bounds = array<i64: 1, 256>}, {pipeline_mode = #tpu.pipeline_mode<synchronous>, transform_indices = @transform_7, window_bounds = array<i64: 256, 128>}, {pipeline_mode = #tpu.pipeline_mode<synchronous>, transform_indices = @transform_8, window_bounds = array<i64: 1, 128>}, {transform_indices = @transform_9, window_bounds = array<i64: 4, 128>}]} {
    %c0 = arith.constant 0 : index
    %c0_0 = arith.constant 0 : index
    %0 = vector.load %arg1[%c0, %c0_0] : memref<4x2048xbf16, #tpu.memory_space<vmem>>, vector<4x2048xbf16>
    %c0_1 = arith.constant 0 : index
    %c0_2 = arith.constant 0 : index
    %1 = vector.load %arg2[%c0_1, %c0_2] : memref<2048x512xbf16, #tpu.memory_space<vmem>>, vector<2048x512xbf16>
    %cst = arith.constant dense<0.000000e+00> : vector<4x512xf32>
    %2 = tpu.matmul %0, %1, %cst {dimension_numbers = #tpu.dot_dimension_numbers<[1], [0], [0], [1], [0, 0, 1, 1], [], []>} : vector<4x2048xbf16>, vector<2048x512xbf16>, vector<4x512xf32> -> vector<4x512xf32>
    %c0_3 = arith.constant 0 : index
    %c0_4 = arith.constant 0 : index
    %3 = vector.load %arg3[%c0_3, %c0_4] : memref<1x512xf32, #tpu.memory_space<vmem>>, vector<1x512xf32>
    %4 = vector.broadcast %3 : vector<1x512xf32> to vector<4x512xf32>
    %5 = arith.addf %2, %4 : vector<4x512xf32>
    %cst_5 = arith.constant 0.000000e+00 : f32
    %6 = vector.broadcast %cst_5 : f32 to vector<4x512xf32>
    %7 = arith.maximumf %5, %6 : vector<4x512xf32>
    %8 = arith.truncf %7 : vector<4x512xf32> to vector<4x512xbf16>
    %c0_6 = arith.constant 0 : index
    %c0_7 = arith.constant 0 : index
    %9 = vector.load %arg4[%c0_6, %c0_7] : memref<512x384xbf16, #tpu.memory_space<vmem>>, vector<512x384xbf16>
    %cst_8 = arith.constant dense<0.000000e+00> : vector<4x384xf32>
    %10 = tpu.matmul %8, %9, %cst_8 {dimension_numbers = #tpu.dot_dimension_numbers<[1], [0], [0], [1], [0, 0, 1, 1], [], []>} : vector<4x512xbf16>, vector<512x384xbf16>, vector<4x384xf32> -> vector<4x384xf32>
    %c0_9 = arith.constant 0 : index
    %c0_10 = arith.constant 0 : index
    %11 = vector.load %arg5[%c0_9, %c0_10] : memref<1x384xf32, #tpu.memory_space<vmem>>, vector<1x384xf32>
    %12 = vector.broadcast %11 : vector<1x384xf32> to vector<4x384xf32>
    %13 = arith.addf %10, %12 : vector<4x384xf32>
    %cst_11 = arith.constant 0.000000e+00 : f32
    %14 = vector.broadcast %cst_11 : f32 to vector<4x384xf32>
    %15 = arith.maximumf %13, %14 : vector<4x384xf32>
    %16 = arith.truncf %15 : vector<4x384xf32> to vector<4x384xbf16>
    %c0_12 = arith.constant 0 : index
    %c0_13 = arith.constant 0 : index
    %17 = vector.load %arg6[%c0_12, %c0_13] : memref<384x256xbf16, #tpu.memory_space<vmem>>, vector<384x256xbf16>
    %cst_14 = arith.constant dense<0.000000e+00> : vector<4x256xf32>
    %18 = tpu.matmul %16, %17, %cst_14 {dimension_numbers = #tpu.dot_dimension_numbers<[1], [0], [0], [1], [0, 0, 1, 1], [], []>} : vector<4x384xbf16>, vector<384x256xbf16>, vector<4x256xf32> -> vector<4x256xf32>
    %c0_15 = arith.constant 0 : index
    %c0_16 = arith.constant 0 : index
    %19 = vector.load %arg7[%c0_15, %c0_16] : memref<1x256xf32, #tpu.memory_space<vmem>>, vector<1x256xf32>
    %20 = vector.broadcast %19 : vector<1x256xf32> to vector<4x256xf32>
    %21 = arith.addf %18, %20 : vector<4x256xf32>
    %cst_17 = arith.constant 0.000000e+00 : f32
    %22 = vector.broadcast %cst_17 : f32 to vector<4x256xf32>
    %23 = arith.maximumf %21, %22 : vector<4x256xf32>
    %24 = arith.truncf %23 : vector<4x256xf32> to vector<4x256xbf16>
    %c0_18 = arith.constant 0 : index
    %c0_19 = arith.constant 0 : index
    %25 = vector.load %arg8[%c0_18, %c0_19] : memref<256x128xbf16, #tpu.memory_space<vmem>>, vector<256x128xbf16>
    %cst_20 = arith.constant dense<0.000000e+00> : vector<4x128xf32>
    %26 = tpu.matmul %24, %25, %cst_20 {dimension_numbers = #tpu.dot_dimension_numbers<[1], [0], [0], [1], [0, 0, 1, 1], [], []>} : vector<4x256xbf16>, vector<256x128xbf16>, vector<4x128xf32> -> vector<4x128xf32>
    %c0_21 = arith.constant 0 : index
    %c0_22 = arith.constant 0 : index
    %27 = vector.load %arg9[%c0_21, %c0_22] : memref<1x128xf32, #tpu.memory_space<vmem>>, vector<1x128xf32>
    %28 = vector.broadcast %27 : vector<1x128xf32> to vector<4x128xf32>
    %29 = arith.addf %26, %28 : vector<4x128xf32>
    %cst_23 = arith.constant 0.000000e+00 : f32
    %30 = vector.broadcast %cst_23 : f32 to vector<4x128xf32>
    %31 = arith.maximumf %29, %30 : vector<4x128xf32>
    %32 = math.absf %29 : vector<4x128xf32>
    %cst_24 = arith.constant 0.000000e+00 : f32
    %33 = vector.broadcast %cst_24 : f32 to vector<4x128xf32>
    %34 = arith.subf %33, %32 : vector<4x128xf32>
    %35 = math.exp %34 : vector<4x128xf32>
    %cst_25 = arith.constant 1.000000e+00 : f32
    %36 = vector.broadcast %cst_25 : f32 to vector<4x128xf32>
    %37 = arith.addf %36, %35 : vector<4x128xf32>
    %38 = math.log %37 : vector<4x128xf32>
    %39 = arith.addf %31, %38 : vector<4x128xf32>
    %c0_26 = arith.constant 0 : index
    %c0_27 = arith.constant 0 : index
    %40 = vector.load %arg10[%c0_26, %c0_27] : memref<4x128xf32, #tpu.memory_space<vmem>>, vector<4x128xf32>
    tpu.vector_store %arg10[%c0_26, %c0_27], %39 {strides = array<i32>} : memref<4x128xf32, #tpu.memory_space<vmem>>, vector<4x128xf32>,
    return
  }
  func.func @transform_0(%arg0: i32) -> (i32, i32) {
    %c0_i32 = arith.constant 0 : i32
    %c0_i32_0 = arith.constant 0 : i32
    return %arg0, %c0_i32 : i32, i32
  }
  func.func @transform_1(%arg0: i32) -> (i32, i32) {
    %c0_i32 = arith.constant 0 : i32
    %c0_i32_0 = arith.constant 0 : i32
    %c0_i32_1 = arith.constant 0 : i32
    return %c0_i32, %c0_i32_0 : i32, i32
  }
  func.func @transform_2(%arg0: i32) -> (i32, i32) {
    %c0_i32 = arith.constant 0 : i32
    %c0_i32_0 = arith.constant 0 : i32
    %c0_i32_1 = arith.constant 0 : i32
    return %c0_i32, %c0_i32_0 : i32, i32
  }
  func.func @transform_3(%arg0: i32) -> (i32, i32) {
    %c0_i32 = arith.constant 0 : i32
    %c0_i32_0 = arith.constant 0 : i32
    %c0_i32_1 = arith.constant 0 : i32
    return %c0_i32, %c0_i32_0 : i32, i32
  }
  func.func @transform_4(%arg0: i32) -> (i32, i32) {
    %c0_i32 = arith.constant 0 : i32
    %c0_i32_0 = arith.constant 0 : i32
    %c0_i32_1 = arith.constant 0 : i32
    return %c0_i32, %c0_i32_0 : i32, i32
  }
  func.func @transform_5(%arg0: i32) -> (i32, i32) {
    %c0_i32 = arith.constant 0 : i32
    %c0_i32_0 = arith.constant 0 : i32
    %c0_i32_1 = arith.constant 0 : i32
    return %c0_i32, %c0_i32_0 : i32, i32
  }
  func.func @transform_6(%arg0: i32) -> (i32, i32) {
    %c0_i32 = arith.constant 0 : i32
    %c0_i32_0 = arith.constant 0 : i32
    %c0_i32_1 = arith.constant 0 : i32
    return %c0_i32, %c0_i32_0 : i32, i32
  }
  func.func @transform_7(%arg0: i32) -> (i32, i32) {
    %c0_i32 = arith.constant 0 : i32
    %c0_i32_0 = arith.constant 0 : i32
    %c0_i32_1 = arith.constant 0 : i32
    return %c0_i32, %c0_i32_0 : i32, i32
  }
  func.func @transform_8(%arg0: i32) -> (i32, i32) {
    %c0_i32 = arith.constant 0 : i32
    %c0_i32_0 = arith.constant 0 : i32
    %c0_i32_1 = arith.constant 0 : i32
    return %c0_i32, %c0_i32_0 : i32, i32
  }
  func.func @transform_9(%arg0: i32) -> (i32, i32) {
    %c0_i32 = arith.constant 0 : i32
    %c0_i32_0 = arith.constant 0 : i32
    return %arg0, %c0_i32 : i32, i32
  }
}

</mosaic_0001>

<bundles_post_ra>
// kernel: tpu_custom_call.1
= control target key start
LH: loop header
LB: loop body
LE: loop exit
PB: predicated region body
PF: predicated region fallthrough
CT: control target
= control target key end

     0   :  { %14 = vsyncpa [#allocation3], 0  ;;  %s7753_s0 = inlined_call_operand.hbm [shape: bf16[4,2048], index: 0, kind: input, shape index: {}]   ;;  %s7754_s1 = inlined_call_operand.hbm [shape: bf16[2048,512], index: 1, kind: input, shape index: {}]   ;;  %s7755_s2 = inlined_call_operand.hbm [shape: f32[1,512], index: 2, kind: input, shape index: {}]   ;;  %s7756_s3 = inlined_call_operand.hbm [shape: bf16[512,384], index: 3, kind: input, shape index: {}]   ;;  %s7757_s4 = inlined_call_operand.hbm [shape: f32[1,384], index: 4, kind: input, shape index: {}]   ;;  %s7758_s5 = inlined_call_operand.hbm [shape: bf16[384,256], index: 5, kind: input, shape index: {}]   ;;  %s7759_s6 = inlined_call_operand.hbm [shape: f32[1,256], index: 6, kind: input, shape index: {}]   ;;  %s7760_s7 = inlined_call_operand.hbm [shape: bf16[256,128], index: 7, kind: input, shape index: {}]   ;;  %s7761_s8 = inlined_call_operand.hbm [shape: f32[1,128], index: 8, kind: input, shape index: {}]   ;;  %s7762_s9 = inlined_call_operand.hbm [shape: f32[4,128], index: 9, kind: output, shape index: {}]  }
   0x1   :  { %15 = vsyncpa [#allocation6], 0 }
   0x2   :  { %16 = vsyncpa [#allocation9], 0 }
   0x3   :  { %17 = vsyncpa [#allocation12], 0 }
   0x4   :  { %18 = vsyncpa [#allocation15], 0 }
   0x5   :  { %19 = vsyncpa [#allocation4], 0  ;;  %s7466_s30 = smov [#allocation5]   ;;  %s7234_s13 = scalar_lea.hbm %s7754_s1, 65536 }
   0x6   :  { %s35_s10 = sshll.u32 %s7466_s30, 4  ;;  %p7235_p0 = scmp.ne.s32.totalorder %s7754_s1, %s7234_s13  ;;  %s36_s10 = int_to_ptr.vmem [resolvable:$true] %s35_s10 }
   0x7   :  { %p7238_p1 = scmp.lt.u32.totalorder %s7234_s13, %s7754_s1 }
   0x9   :  { %p7240_p2 = pnand %p7238_p1, %p7235_p0 }
   0xb   :  { %7243 = shalt.err (!%p7240_p2)
}
   0xc   :  { %s7244_s18 = scalar_lea.vmem %s36_s10, 65536  ;;  %p7249_p4 = scmp.lt.s32.totalorder %s36_s10, %s36_s10 }
   0xd   :  { %p7245_p3 = scmp.ne.s32.totalorder %s36_s10, %s7244_s18  ;;  %p7250_p5 = scmp.lt.s32.totalorder %s7244_s18, %s7244_s18 }
   0xf   :  { %p7251_p6 = por %p7250_p5, %p7249_p4 }
  0x11   :  { %p7252_p7 = pnand %p7251_p6, %p7245_p3 }
  0x13   :  { %7255 = shalt.err (!%p7252_p7)
}
  0x14   :  { %s7467_s19 = smov 256   ;;  %s7468_s20 = smov 16  }
  0x15   :  { %41 = dma.hbm_to_vmem [thread:$0]  %s7754_s1, 65536, %s36_s10, [#allocation6], %s7467_s19, %s7467_s19, %s7468_s20  }
  0x16   :  { %s7469_s23 = smov [#allocation8]   ;;  %s7256_s27 = scalar_lea.hbm %s7756_s3, 12288 }
  0x17   :  { %s57_s24 = sshll.u32 %s7469_s23, 4  ;;  %p7257_p8 = scmp.ne.s32.totalorder %s7756_s3, %s7256_s27  ;;  %s58_s24 = int_to_ptr.vmem [resolvable:$true] %s57_s24 }
  0x18   :  { %p7260_p9 = scmp.lt.u32.totalorder %s7256_s27, %s7756_s3 }
  0x1a   :  { %p7262_p10 = pnand %p7260_p9, %p7257_p8 }
  0x1c   :  { %7265 = shalt.err (!%p7262_p10)
}
  0x1d   :  { %s7266_s12 = scalar_lea.vmem %s58_s24, 12288  ;;  %p7271_p12 = scmp.lt.s32.totalorder %s58_s24, %s58_s24 }
  0x1e   :  { %p7267_p11 = scmp.ne.s32.totalorder %s58_s24, %s7266_s12  ;;  %p7272_p13 = scmp.lt.s32.totalorder %s7266_s12, %s7266_s12 }
  0x20   :  { %p7273_p0 = por %p7272_p13, %p7271_p12 }
  0x22   :  { %p7274_p1 = pnand %p7273_p0, %p7267_p11 }
  0x24   :  { %7277 = shalt.err (!%p7274_p1)
}
  0x25   :  { %s7470_s1 = smov 192   ;;  %s7471_s10 = smov 12  }
  0x26   :  { %63 = dma.hbm_to_vmem [thread:$0]  %s7756_s3, 12288, %s58_s24, [#allocation9], %s7470_s1, %s7470_s1, %s7471_s10  }
  0x27   :  { %s7472_s15 = smov [#allocation11]   ;;  %s7278_s19 = scalar_lea.hbm %s7758_s5, 6144 }
  0x28   :  { %s79_s16 = sshll.u32 %s7472_s15, 4  ;;  %p7279_p2 = scmp.ne.s32.totalorder %s7758_s5, %s7278_s19  ;;  %s80_s16 = int_to_ptr.vmem [resolvable:$true] %s79_s16 }
  0x29   :  { %p7282_p3 = scmp.lt.u32.totalorder %s7278_s19, %s7758_s5 }
  0x2b   :  { %p7284_p4 = pnand %p7282_p3, %p7279_p2 }
  0x2d   :  { %7287 = shalt.err (!%p7284_p4)
}
  0x2e   :  { %s7288_s25 = scalar_lea.vmem %s80_s16, 6144  ;;  %p7293_p6 = scmp.lt.s32.totalorder %s80_s16, %s80_s16 }
  0x2f   :  { %p7289_p5 = scmp.ne.s32.totalorder %s80_s16, %s7288_s25  ;;  %p7294_p7 = scmp.lt.s32.totalorder %s7288_s25, %s7288_s25 }
  0x31   :  { %p7295_p8 = por %p7294_p7, %p7293_p6 }
  0x33   :  { %p7296_p9 = pnand %p7295_p8, %p7289_p5 }
  0x35   :  { %7299 = shalt.err (!%p7296_p9)
}
  0x36   :  { %s7473_s3 = smov 128   ;;  %s7474_s24 = smov 8  }
  0x37   :  { %85 = dma.hbm_to_vmem [thread:$0]  %s7758_s5, 6144, %s80_s16, [#allocation12], %s7473_s3, %s7473_s3, %s7474_s24  }
  0x38   :  { %s7475_s28 = smov [#allocation14]   ;;  %s7300_s12 = scalar_lea.hbm %s7760_s7, 2048 }
  0x39   :  { %s101_s29 = sshll.u32 %s7475_s28, 4  ;;  %p7301_p10 = scmp.ne.s32.totalorder %s7760_s7, %s7300_s12  ;;  %s102_s29 = int_to_ptr.vmem [resolvable:$true] %s101_s29 }
  0x3a   :  { %p7304_p11 = scmp.lt.u32.totalorder %s7300_s12, %s7760_s7 }
  0x3c   :  { %p7306_p12 = pnand %p7304_p11, %p7301_p10 }
  0x3e   :  { %7309 = shalt.err (!%p7306_p12)
}
  0x3f   :  { %s7310_s15 = scalar_lea.vmem %s102_s29, 2048  ;;  %p7315_p0 = scmp.lt.s32.totalorder %s102_s29, %s102_s29 }
  0x40   :  { %p7311_p13 = scmp.ne.s32.totalorder %s102_s29, %s7310_s15  ;;  %p7316_p1 = scmp.lt.s32.totalorder %s7310_s15, %s7310_s15 }
  0x42   :  { %p7317_p2 = por %p7316_p1, %p7315_p0 }
  0x44   :  { %p7318_p3 = pnand %p7317_p2, %p7311_p13 }
  0x46   :  { %7321 = shalt.err (!%p7318_p3)
}
  0x47   :  { %s7476_s5 = smov 64   ;;  %s7477_s16 = smov 4  }
  0x48   :  { %107 = dma.hbm_to_vmem [thread:$0]  %s7760_s7, 2048, %s102_s29, [#allocation15], %s7476_s5, %s7476_s5, %s7477_s16  }
  0x49   :  { %s7478_s19 = smov [#allocation2]   ;;  %s7479_s21 = smov [#allocation7]  }
  0x4a   :  { %s26_s20 = sshll.u32 %s7478_s19, 4  ;;  %s48_s22 = sshll.u32 %s7479_s21, 4  ;;  %s27_s20 = int_to_ptr.vmem [resolvable:$true] %s26_s20  ;;  %s49_s22 = int_to_ptr.vmem [resolvable:$true] %s48_s22 }
  0x4b   :  { %s7322_s3 = scalar_lea.hbm %s7753_s0, 512 }
  0x4c   :  { %p7323_p4 = scmp.ne.s32.totalorder %s7753_s0, %s7322_s3  ;;  %p7326_p5 = scmp.lt.u32.totalorder %s7322_s3, %s7753_s0 }
  0x4e   :  { %p7328_p6 = pnand %p7326_p5, %p7323_p4 }
  0x50   :  { %7331 = shalt.err (!%p7328_p6)
}
  0x51   :  { %s7332_s7 = scalar_lea.vmem %s27_s20, 512  ;;  %p7337_p8 = scmp.lt.s32.totalorder %s27_s20, %s27_s20 }
  0x52   :  { %p7333_p7 = scmp.ne.s32.totalorder %s27_s20, %s7332_s7  ;;  %p7338_p9 = scmp.lt.s32.totalorder %s7332_s7, %s7332_s7 }
  0x54   :  { %p7339_p10 = por %p7338_p9, %p7337_p8 }
  0x56   :  { %p7340_p11 = pnand %p7339_p10, %p7333_p7 }
  0x58   :  { %7343 = shalt.err (!%p7340_p11)
}
  0x59   :  { %29 = dma.hbm_to_vmem [thread:$0]  %s7753_s0, 512, %s27_s20, [#allocation3]  }
  0x5a   :  { %s7344_s1 = scalar_lea.hbm %s7755_s2, 64 }
  0x5b   :  { %p7345_p12 = scmp.ne.s32.totalorder %s7755_s2, %s7344_s1  ;;  %p7348_p13 = scmp.lt.u32.totalorder %s7344_s1, %s7755_s2 }
  0x5d   :  { %p7350_p0 = pnand %p7348_p13, %p7345_p12 }
  0x5f   :  { %7353 = shalt.err (!%p7350_p0)
}
  0x60   :  { %s7354_s5 = scalar_lea.vmem %s49_s22, 64  ;;  %p7359_p2 = scmp.lt.s32.totalorder %s49_s22, %s49_s22 }
  0x61   :  { %p7355_p1 = scmp.ne.s32.totalorder %s49_s22, %s7354_s5  ;;  %p7360_p3 = scmp.lt.s32.totalorder %s7354_s5, %s7354_s5 }
  0x63   :  { %p7361_p4 = por %p7360_p3, %p7359_p2 }
  0x65   :  { %p7362_p5 = pnand %p7361_p4, %p7355_p1 }
  0x67   :  { %7365 = shalt.err (!%p7362_p5)
}
  0x68   :  { %51 = dma.hbm_to_vmem [thread:$0]  %s7755_s2, 64, %s49_s22, [#allocation6]  }
  0x69   :  { %s7480_s17 = smov [#allocation10]   ;;  %s7481_s19 = smov [#allocation13]  }
  0x6a   :  { %s70_s18 = sshll.u32 %s7480_s17, 4  ;;  %s92_s20 = sshll.u32 %s7481_s19, 4  ;;  %s71_s18 = int_to_ptr.vmem [resolvable:$true] %s70_s18  ;;  %s93_s20 = int_to_ptr.vmem [resolvable:$true] %s92_s20 }
  0x6b   :  { %s7366_s25 = scalar_lea.hbm %s7757_s4, 48 }
  0x6c   :  { %p7367_p6 = scmp.ne.s32.totalorder %s7757_s4, %s7366_s25  ;;  %p7370_p7 = scmp.lt.u32.totalorder %s7366_s25, %s7757_s4 }
  0x6e   :  { %p7372_p8 = pnand %p7370_p7, %p7367_p6 }
  0x70   :  { %7375 = shalt.err (!%p7372_p8)
}
  0x71   :  { %s7376_s2 = scalar_lea.vmem %s71_s18, 48  ;;  %s7380_s22 = scalar_lea.vmem %s71_s18, 64 }
  0x72   :  { %p7377_p9 = scmp.ne.s32.totalorder %s71_s18, %s7376_s2  ;;  %p7381_p10 = scmp.lt.s32.totalorder %s71_s18, %s71_s18 }
  0x73   :  { %p7382_p11 = scmp.lt.s32.totalorder %s7380_s22, %s7376_s2 }
  0x75   :  { %p7383_p12 = por %p7382_p11, %p7381_p10 }
  0x77   :  { %p7384_p13 = pnand %p7383_p12, %p7377_p9 }
  0x79   :  { %7387 = shalt.err (!%p7384_p13)
}
  0x7a   :  { %73 = dma.hbm_to_vmem [thread:$0]  %s7757_s4, 48, %s71_s18, [#allocation9]  }
  0x7b   :  { %s7388_s11 = scalar_lea.hbm %s7759_s6, 32 }
  0x7c   :  { %p7389_p0 = scmp.ne.s32.totalorder %s7759_s6, %s7388_s11  ;;  %p7392_p1 = scmp.lt.u32.totalorder %s7388_s11, %s7759_s6 }
  0x7e   :  { %p7394_p2 = pnand %p7392_p1, %p7389_p0 }
  0x80   :  { %7397 = shalt.err (!%p7394_p2)
}
  0x81   :  { %s7398_s14 = scalar_lea.vmem %s93_s20, 32  ;;  %p7403_p4 = scmp.lt.s32.totalorder %s93_s20, %s93_s20 }
  0x82   :  { %p7399_p3 = scmp.ne.s32.totalorder %s93_s20, %s7398_s14  ;;  %p7404_p5 = scmp.lt.s32.totalorder %s7398_s14, %s7398_s14 }
  0x84   :  { %p7405_p6 = por %p7404_p5, %p7403_p4 }
  0x86   :  { %p7406_p7 = pnand %p7405_p6, %p7399_p3 }
  0x88   :  { %7409 = shalt.err (!%p7406_p7)
}
  0x89   :  { %95 = dma.hbm_to_vmem [thread:$0]  %s7759_s6, 32, %s93_s20, [#allocation12]  }
  0x8a   :  { %s7482_s5 = smov [#allocation16]   ;;  %s7410_s18 = scalar_lea.hbm %s7761_s8, 16 }
  0x8b   :  { %s114_s0 = sshll.u32 %s7482_s5, 4  ;;  %p7411_p8 = scmp.ne.s32.totalorder %s7761_s8, %s7410_s18  ;;  %s115_s0 = int_to_ptr.vmem [resolvable:$true] %s114_s0 }
  0x8c   :  { %p7414_p9 = scmp.lt.u32.totalorder %s7410_s18, %s7761_s8 }
  0x8e   :  { %p7416_p10 = pnand %p7414_p9, %p7411_p8 }
  0x90   :  { %7419 = shalt.err (!%p7416_p10)
}
  0x91   :  { %s7420_s3 = scalar_lea.vmem %s115_s0, 16  ;;  %s7424_s6 = scalar_lea.vmem %s115_s0, 32 }
  0x92   :  { %p7421_p11 = scmp.ne.s32.totalorder %s115_s0, %s7420_s3  ;;  %p7425_p12 = scmp.lt.s32.totalorder %s115_s0, %s115_s0 }
  0x93   :  { %p7426_p13 = scmp.lt.s32.totalorder %s7424_s6, %s7420_s3 }
  0x95   :  { %p7427_p0 = por %p7426_p13, %p7425_p12 }
  0x97   :  { %p7428_p1 = pnand %p7427_p0, %p7421_p11 }
  0x99   :  { %7431 = shalt.err (!%p7428_p1)
}
  0x9a   :  { %117 = dma.hbm_to_vmem [thread:$0]  %s7761_s8, 16, %s115_s0, [#allocation15]  }
  0x9b   :  { %7454 = dma.done.wait [#allocation3], 512  }
  0x9c   :  { %7455 = vsyncadd [#allocation3], 4294966784 }
  0x9d   :  { %7456 = dma.done.wait [#allocation6], 65600  }
  0x9e   :  { %7457 = vsyncadd [#allocation6], 4294901696 }
  0x9f   :  { %7458 = dma.done.wait [#allocation9], 12336  }
  0xa0   :  { %7459 = vsyncadd [#allocation9], 4294954960 }
  0xa1   :  { %7460 = dma.done.wait [#allocation12], 6176  }
  0xa2   :  { %7461 = vsyncadd [#allocation12], 4294961120 }
  0xa3   :  { %7462 = dma.done.wait [#allocation15], 2064  }
  0xa4   :  { %7463 = vsyncadd [#allocation15], 4294965232  ;;  %v6242_v0 = vld [vmem:[#allocation5 + $0x4] ss:$16 sps:$4 sm:$0xff]   ;;  %v6244_v1 = vld [vmem:[#allocation5 + $0xc] ss:$16 sps:$4 sm:$0xff]   ;;  %v664_v36 = vlaneseq }
  0xa5   :  { %3332 = vmatprep.subr.bf16.mxu0 %v6242_v0  ;;  %v6246_v2 = vld [vmem:[#allocation5] ss:$16 sps:$4 sm:$0xff]   ;;  %v6247_v3 = vld [vmem:[#allocation5 + $0x8] ss:$16 sps:$4 sm:$0xff]   ;;  %3660 = vmatprep.subr.bf16.mxu1 %v6244_v1  ;;  %v6248_v4 = vld [vmem:[#allocation5 + $0x24] ss:$16 sps:$4 sm:$0xff]  }
  0xa6   :  { %3333 = vmatpush1.bf16.msra.mxu0 %v6246_v2  ;;  %3661 = vmatpush1.bf16.msra.mxu1 %v6247_v3  ;;  %v6250_v5 = vld [vmem:[#allocation5 + $0x2c] ss:$16 sps:$4 sm:$0xff]   ;;  %v6252_v6 = vld [vmem:[#allocation5 + $0x20] ss:$16 sps:$4 sm:$0xff]   ;;  %v6253_v7 = vld [vmem:[#allocation5 + $0x28] ss:$16 sps:$4 sm:$0xff]  }
  0xa7   :  { %3334 = vmatprep.subr.bf16.mxu0 %v6248_v4  ;;  %3662 = vmatprep.subr.bf16.mxu1 %v6250_v5  ;;  %v6254_v8 = vld [vmem:[#allocation5 + $0x44] ss:$16 sps:$4 sm:$0xff]   ;;  %v6256_v9 = vld [vmem:[#allocation5 + $0x4c] ss:$16 sps:$4 sm:$0xff]   ;;  %v6258_v10 = vld [vmem:[#allocation5 + $0x40] ss:$16 sps:$4 sm:$0xff]  }
  0xa8   :  { %v6259_v11 = vld [vmem:[#allocation5 + $0x48] ss:$16 sps:$4 sm:$0xff]   ;;  %v6260_v12 = vld [vmem:[#allocation5 + $0x64] ss:$16 sps:$4 sm:$0xff]   ;;  %v6262_v13 = vld [vmem:[#allocation5 + $0x6c] ss:$16 sps:$4 sm:$0xff]  }
  0xa9   :  { %v6264_v14 = vld [vmem:[#allocation5 + $0x60] ss:$16 sps:$4 sm:$0xff]   ;;  %v6265_v15 = vld [vmem:[#allocation5 + $0x68] ss:$16 sps:$4 sm:$0xff]   ;;  %v6266_v16 = vld [vmem:[#allocation5 + $0x84] ss:$16 sps:$4 sm:$0xff]  }
  0xaa   :  { %3335 = vmatpush1.bf16.msra.mxu0 %v6252_v6  ;;  %3663 = vmatpush1.bf16.msra.mxu1 %v6253_v7  ;;  %v6268_v17 = vld [vmem:[#allocation5 + $0x8c] ss:$16 sps:$4 sm:$0xff]   ;;  %v6270_v18 = vld [vmem:[#allocation5 + $0x80] ss:$16 sps:$4 sm:$0xff]   ;;  %v6271_v19 = vld [vmem:[#allocation5 + $0x88] ss:$16 sps:$4 sm:$0xff]  }
  0xab   :  { %3336 = vmatprep.subr.bf16.mxu0 %v6254_v8  ;;  %3664 = vmatprep.subr.bf16.mxu1 %v6256_v9  ;;  %v6272_v20 = vld [vmem:[#allocation5 + $0xa4] ss:$16 sps:$4 sm:$0xff]   ;;  %v6274_v21 = vld [vmem:[#allocation5 + $0xac] ss:$16 sps:$4 sm:$0xff]   ;;  %v6276_v22 = vld [vmem:[#allocation5 + $0xa0] ss:$16 sps:$4 sm:$0xff]  }
  0xac   :  { %v6277_v23 = vld [vmem:[#allocation5 + $0xa8] ss:$16 sps:$4 sm:$0xff]   ;;  %v6278_v24 = vld [vmem:[#allocation5 + $0xc4] ss:$16 sps:$4 sm:$0xff]   ;;  %v6280_v25 = vld [vmem:[#allocation5 + $0xcc] ss:$16 sps:$4 sm:$0xff]  }
  0xad   :  { %v6282_v26 = vld [vmem:[#allocation5 + $0xc0] ss:$16 sps:$4 sm:$0xff]   ;;  %v6283_v27 = vld [vmem:[#allocation5 + $0xc8] ss:$16 sps:$4 sm:$0xff]   ;;  %v6284_v28 = vld [vmem:[#allocation5 + $0xe4] ss:$16 sps:$4 sm:$0xff]  }
  0xae   :  { %3337 = vmatpush1.bf16.msra.mxu0 %v6258_v10  ;;  %3665 = vmatpush1.bf16.msra.mxu1 %v6259_v11  ;;  %v6286_v29 = vld [vmem:[#allocation5 + $0xec] ss:$16 sps:$4 sm:$0xff]   ;;  %v6288_v30 = vld [vmem:[#allocation5 + $0xe0] ss:$16 sps:$4 sm:$0xff]   ;;  %v6289_v31 = vld [vmem:[#allocation5 + $0xe8] ss:$16 sps:$4 sm:$0xff]  }
  0xaf   :  { %3338 = vmatprep.subr.bf16.mxu0 %v6260_v12  ;;  %3666 = vmatprep.subr.bf16.mxu1 %v6262_v13  ;;  %v6290_v32 = vld [vmem:[#allocation5 + $0x104] ss:$16 sps:$4 sm:$0xff]   ;;  %v6292_v33 = vld [vmem:[#allocation5 + $0x10c] ss:$16 sps:$4 sm:$0xff]   ;;  %v6294_v34 = vld [vmem:[#allocation5 + $0x100] ss:$16 sps:$4 sm:$0xff]  }
  0xb0   :  { %v6295_v35 = vld [vmem:[#allocation5 + $0x108] ss:$16 sps:$4 sm:$0xff]   ;;  %v7483_v37 = vmov 1983009808   ;;  %v6296_v39 = vld [vmem:[#allocation5 + $0x124] ss:$16 sps:$4 sm:$0xff]  }
  0xb1   :  { %v690_v38 = vunpack.c.l.s4 %v7483_v37  ;;  %v6298_v40 = vld [vmem:[#allocation5 + $0x12c] ss:$16 sps:$4 sm:$0xff]   ;;  %v6300_v41 = vld [vmem:[#allocation5 + $0x120] ss:$16 sps:$4 sm:$0xff]   ;;  %v7644_v42 = vshrl.u32 %v664_v36, 7  ;;  %s7485_s8 = smov [#allocation17]  }
  0xb2   :  { %3339 = vmatpush1.bf16.msra.mxu0 %v6264_v14  ;;  %3667 = vmatpush1.bf16.msra.mxu1 %v6265_v15  ;;  %v6301_v44 = vld [vmem:[#allocation5 + $0x128] ss:$16 sps:$4 sm:$0xff]   ;;  %v6302_v45 = vld [vmem:[#allocation5 + $0x144] ss:$16 sps:$4 sm:$0xff]   ;;  %v6304_v46 = vld [vmem:[#allocation5 + $0x14c] ss:$16 sps:$4 sm:$0xff]  }
  0xb3   :  { %3340 = vmatprep.subr.bf16.mxu0 %v6266_v16  ;;  %3668 = vmatprep.subr.bf16.mxu1 %v6268_v17  ;;  %v691_v43 = vunpack.c.0.s8 %v690_v38  ;;  %v6306_v47 = vld [vmem:[#allocation5 + $0x140] ss:$16 sps:$4 sm:$0xff]   ;;  %v6307_v48 = vld [vmem:[#allocation5 + $0x148] ss:$16 sps:$4 sm:$0xff]   ;;  %v6308_v50 = vld [vmem:[#allocation5 + $0x164] ss:$16 sps:$4 sm:$0xff]  }
  0xb4   :  { %v6310_v51 = vld [vmem:[#allocation5 + $0x16c] ss:$16 sps:$4 sm:$0xff]   ;;  %v146_v52 = vld [vmem:[#allocation2] sm:$0xff]  ;;  %v6313_v55 = vld [vmem:[#allocation5 + $0x168] ss:$16 sps:$4 sm:$0xff]   ;;  %s5398_s26 = sshll.u32 %s7485_s8, 4  ;;  %s5399_s26 = int_to_ptr.vmem [resolvable:$true] %s5398_s26 }
  0xb5   :  { %v7647_v49 = vsub.s32 %v691_v43, %v7644_v42  ;;  %v6312_v53 = vld [vmem:[#allocation5 + $0x160] ss:$16 sps:$4 sm:$0xff]   ;;  %v6314_v56 = vld [vmem:[#allocation5 + $0x184] ss:$16 sps:$4 sm:$0xff]   ;;  %v6316_v57 = vld [vmem:[#allocation5 + $0x18c] ss:$16 sps:$4 sm:$0xff]   ;;  %v688_v7 = vcombine.high %v146_v52, %v146_v52  ;;  %p7437_p3 = scmp.lt.s32.totalorder %s5399_s26, %s5399_s26 }
  0xb6   :  { %3341 = vmatpush1.bf16.msra.mxu0 %v6270_v18  ;;  %3669 = vmatpush1.bf16.msra.mxu1 %v6271_v19  ;;  %v6318_v59 = vld [vmem:[#allocation5 + $0x180] ss:$16 sps:$4 sm:$0xff]   ;;  %v6319_v60 = vld [vmem:[#allocation5 + $0x188] ss:$16 sps:$4 sm:$0xff]   ;;  %v6320_v61 = vld [vmem:[#allocation5 + $0x1a4] ss:$16 sps:$4 sm:$0xff]  }
  0xb7   :  { %3342 = vmatprep.subr.bf16.mxu0 %v6272_v20  ;;  %3670 = vmatprep.subr.bf16.mxu1 %v6274_v21  ;;  %v695_v54 = vrot.slane %v146_v52, %v7647_v49  ;;  %v6322_v62 = vld [vmem:[#allocation5 + $0x1ac] ss:$16 sps:$4 sm:$0xff]   ;;  %v6324_v63 = vld [vmem:[#allocation5 + $0x1a0] ss:$16 sps:$4 sm:$0xff]   ;;  %v6325_v0 = vld [vmem:[#allocation5 + $0x1a8] ss:$16 sps:$4 sm:$0xff]   ;;  %v7651_v12 = vrot.slane %v688_v7, %v7647_v49 }
  0xb8   :  { %v6326_v1 = vld [vmem:[#allocation5 + $0x1c4] ss:$16 sps:$4 sm:$0xff]   ;;  %v6328_v2 = vld [vmem:[#allocation5 + $0x1cc] ss:$16 sps:$4 sm:$0xff]   ;;  %v6330_v3 = vld [vmem:[#allocation5 + $0x1c0] ss:$16 sps:$4 sm:$0xff]  }
  0xb9   :  { %v703_v58 = vcombine.high %v695_v54, %v695_v54  ;;  %v6331_v4 = vld [vmem:[#allocation5 + $0x1c8] ss:$16 sps:$4 sm:$0xff]   ;;  %v6332_v5 = vld [vmem:[#allocation5 + $0x1e4] ss:$16 sps:$4 sm:$0xff]   ;;  %v6334_v6 = vld [vmem:[#allocation5 + $0x1ec] ss:$16 sps:$4 sm:$0xff]   ;;  %v704_v17 = vcombine.high %v7651_v12, %v7651_v12 }
  0xba   :  { %3343 = vmatpush1.bf16.msra.mxu0 %v6276_v22  ;;  %3671 = vmatpush1.bf16.msra.mxu1 %v6277_v23  ;;  %v6336_v8 = vld [vmem:[#allocation5 + $0x1e0] ss:$16 sps:$4 sm:$0xff]   ;;  %v6337_v9 = vld [vmem:[#allocation5 + $0x1e8] ss:$16 sps:$4 sm:$0xff]   ;;  %v6341_v10 = vld [vmem:[#allocation5 + $0x204] ss:$16 sps:$4 sm:$0xff]  }
  0xbb   :  { %3344 = vmatprep.subr.bf16.mxu0 %v6278_v24  ;;  %3672 = vmatprep.subr.bf16.mxu1 %v6280_v25  ;;  %v6344_v11 = vld [vmem:[#allocation5 + $0x20c] ss:$16 sps:$4 sm:$0xff]   ;;  %v6339_v13 = vld [vmem:[#allocation5 + $0x200] ss:$16 sps:$4 sm:$0xff]   ;;  %v6342_v14 = vld [vmem:[#allocation5 + $0x208] ss:$16 sps:$4 sm:$0xff]  }
  0xbc   :  { %3364 = vmatprep.mubr.bf16.mxu0 %v703_v58  ;;  %3692 = vmatprep.mubr.bf16.mxu1 %v703_v58  ;;  %v6347_v15 = vld [vmem:[#allocation5 + $0x224] ss:$16 sps:$4 sm:$0xff]   ;;  %v6350_v16 = vld [vmem:[#allocation5 + $0x22c] ss:$16 sps:$4 sm:$0xff]   ;;  %v6345_v18 = vld [vmem:[#allocation5 + $0x220] ss:$16 sps:$4 sm:$0xff]  }
  0xbd   :  { %v6348_v19 = vld [vmem:[#allocation5 + $0x228] ss:$16 sps:$4 sm:$0xff]   ;;  %v6353_v20 = vld [vmem:[#allocation5 + $0x244] ss:$16 sps:$4 sm:$0xff]   ;;  %v6356_v21 = vld [vmem:[#allocation5 + $0x24c] ss:$16 sps:$4 sm:$0xff]  }
  0xbe   :  { %3345 = vmatpush1.bf16.msra.mxu0 %v6282_v26  ;;  %3673 = vmatpush1.bf16.msra.mxu1 %v6283_v27  ;;  %v6351_v22 = vld [vmem:[#allocation5 + $0x240] ss:$16 sps:$4 sm:$0xff]   ;;  %v6354_v23 = vld [vmem:[#allocation5 + $0x248] ss:$16 sps:$4 sm:$0xff]   ;;  %v6359_v24 = vld [vmem:[#allocation5 + $0x264] ss:$16 sps:$4 sm:$0xff]  }
  0xbf   :  { %3346 = vmatprep.subr.bf16.mxu0 %v6284_v28  ;;  %3674 = vmatprep.subr.bf16.mxu1 %v6286_v29  ;;  %v6362_v25 = vld [vmem:[#allocation5 + $0x26c] ss:$16 sps:$4 sm:$0xff]   ;;  %v6357_v26 = vld [vmem:[#allocation5 + $0x260] ss:$16 sps:$4 sm:$0xff]   ;;  %v6360_v27 = vld [vmem:[#allocation5 + $0x268] ss:$16 sps:$4 sm:$0xff]  }
  0xc0   :  { %v6365_v28 = vld [vmem:[#allocation5 + $0x284] ss:$16 sps:$4 sm:$0xff]   ;;  %v6368_v29 = vld [vmem:[#allocation5 + $0x28c] ss:$16 sps:$4 sm:$0xff]   ;;  %v6375_v38 = vld [vmem:[#allocation5 + $0x2c0] ss:$16 sps:$4 sm:$0xff]  }
  0xc1   :  { %v6377_v36 = vld [vmem:[#allocation5 + $0x2c4] ss:$16 sps:$4 sm:$0xff]   ;;  %v6380_v37 = vld [vmem:[#allocation5 + $0x2cc] ss:$16 sps:$4 sm:$0xff]   ;;  %v6381_v43 = vld [vmem:[#allocation5 + $0x2e0] ss:$16 sps:$4 sm:$0xff]  }
  0xc2   :  { %3347 = vmatpush1.bf16.msra.mxu0 %v6288_v30  ;;  %3675 = vmatpush1.bf16.msra.mxu1 %v6289_v31  ;;  %v6363_v30 = vld [vmem:[#allocation5 + $0x280] ss:$16 sps:$4 sm:$0xff]   ;;  %v6366_v31 = vld [vmem:[#allocation5 + $0x288] ss:$16 sps:$4 sm:$0xff]   ;;  %v6407_v58 = vld [vmem:[#allocation5 + $0x364] ss:$16 sps:$4 sm:$0xff]  }
  0xc3   :  { %3348 = vmatprep.subr.bf16.mxu0 %v6290_v32  ;;  %3676 = vmatprep.subr.bf16.mxu1 %v6292_v33  ;;  %v6371_v32 = vld [vmem:[#allocation5 + $0x2a4] ss:$16 sps:$4 sm:$0xff]   ;;  %v6374_v33 = vld [vmem:[#allocation5 + $0x2ac] ss:$16 sps:$4 sm:$0xff]   ;;  %v6393_v52 = vld [vmem:[#allocation5 + $0x320] ss:$16 sps:$4 sm:$0xff]  }
  0xc4   :  { %v6428_v7 = vld [vmem:[#allocation5 + $0x3cc] ss:$16 sps:$4 sm:$0xff]   ;;  %s7432_s27 = scalar_lea.vmem %s5399_s26, 64 }
  0xc5   :  { %p7433_p2 = scmp.ne.s32.totalorder %s5399_s26, %s7432_s27  ;;  %p7438_p4 = scmp.lt.s32.totalorder %s7432_s27, %s7432_s27 }
  0xc6   :  { %3349 = vmatpush1.bf16.msra.mxu0 %v6294_v34  ;;  %3677 = vmatpush1.bf16.msra.mxu1 %v6295_v35  ;;  %v6369_v34 = vld [vmem:[#allocation5 + $0x2a0] ss:$16 sps:$4 sm:$0xff]   ;;  %v6372_v35 = vld [vmem:[#allocation5 + $0x2a8] ss:$16 sps:$4 sm:$0xff]  }
  0xc7   :  { %3350 = vmatprep.subr.bf16.mxu0 %v6296_v39  ;;  %3678 = vmatprep.subr.bf16.mxu1 %v6298_v40  ;;  %v6378_v39 = vld [vmem:[#allocation5 + $0x2c8] ss:$16 sps:$4 sm:$0xff]   ;;  %v6383_v40 = vld [vmem:[#allocation5 + $0x2e4] ss:$16 sps:$4 sm:$0xff]   ;;  %p7439_p5 = por %p7438_p4, %p7437_p3 }
  0xc9   :  { %p7440_p6 = pnand %p7439_p5, %p7433_p2 }
  0xca   :  { %3351 = vmatpush1.bf16.msra.mxu0 %v6300_v41  ;;  %3679 = vmatpush1.bf16.msra.mxu1 %v6301_v44  ;;  %v6386_v41 = vld [vmem:[#allocation5 + $0x2ec] ss:$16 sps:$4 sm:$0xff]   ;;  %v6384_v44 = vld [vmem:[#allocation5 + $0x2e8] ss:$16 sps:$4 sm:$0xff]  }
  0xcb   :  { %3352 = vmatprep.subr.bf16.mxu0 %v6302_v45  ;;  %3680 = vmatprep.subr.bf16.mxu1 %v6304_v46  ;;  %v6389_v45 = vld [vmem:[#allocation5 + $0x304] ss:$16 sps:$4 sm:$0xff]   ;;  %v6392_v46 = vld [vmem:[#allocation5 + $0x30c] ss:$16 sps:$4 sm:$0xff]  }
  0xce   :  { %3353 = vmatpush1.bf16.msra.mxu0 %v6306_v47  ;;  %3681 = vmatpush1.bf16.msra.mxu1 %v6307_v48  ;;  %v6387_v47 = vld [vmem:[#allocation5 + $0x300] ss:$16 sps:$4 sm:$0xff]   ;;  %v6390_v48 = vld [vmem:[#allocation5 + $0x308] ss:$16 sps:$4 sm:$0xff]  }
  0xcf   :  { %3354 = vmatprep.subr.bf16.mxu0 %v6308_v50  ;;  %3682 = vmatprep.subr.bf16.mxu1 %v6310_v51  ;;  %v6395_v50 = vld [vmem:[#allocation5 + $0x324] ss:$16 sps:$4 sm:$0xff]   ;;  %v6398_v51 = vld [vmem:[#allocation5 + $0x32c] ss:$16 sps:$4 sm:$0xff]  }
  0xd2   :  { %3355 = vmatpush1.bf16.msra.mxu0 %v6312_v53  ;;  %3683 = vmatpush1.bf16.msra.mxu1 %v6313_v55  ;;  %v6396_v53 = vld [vmem:[#allocation5 + $0x328] ss:$16 sps:$4 sm:$0xff]   ;;  %v6404_v55 = vld [vmem:[#allocation5 + $0x34c] ss:$16 sps:$4 sm:$0xff]  }
  0xd3   :  { %3356 = vmatprep.subr.bf16.mxu0 %v6314_v56  ;;  %3684 = vmatprep.subr.bf16.mxu1 %v6316_v57  ;;  %v6399_v56 = vld [vmem:[#allocation5 + $0x340] ss:$16 sps:$4 sm:$0xff]   ;;  %v6402_v57 = vld [vmem:[#allocation5 + $0x348] ss:$16 sps:$4 sm:$0xff]  }
  0xd6   :  { %3357 = vmatpush1.bf16.msra.mxu0 %v6318_v59  ;;  %3685 = vmatpush1.bf16.msra.mxu1 %v6319_v60  ;;  %v6410_v59 = vld [vmem:[#allocation5 + $0x36c] ss:$16 sps:$4 sm:$0xff]   ;;  %v6405_v60 = vld [vmem:[#allocation5 + $0x360] ss:$16 sps:$4 sm:$0xff]  }
  0xd7   :  { %3358 = vmatprep.subr.bf16.mxu0 %v6320_v61  ;;  %3686 = vmatprep.subr.bf16.mxu1 %v6322_v62  ;;  %v6408_v61 = vld [vmem:[#allocation5 + $0x368] ss:$16 sps:$4 sm:$0xff]   ;;  %v6413_v62 = vld [vmem:[#allocation5 + $0x384] ss:$16 sps:$4 sm:$0xff]  }
  0xda   :  { %3359 = vmatpush1.bf16.msra.mxu0 %v6324_v63  ;;  %3687 = vmatpush1.bf16.msra.mxu1 %v6325_v0  ;;  %v6416_v63 = vld [vmem:[#allocation5 + $0x38c] ss:$16 sps:$4 sm:$0xff]   ;;  %v6411_v0 = vld [vmem:[#allocation5 + $0x380] ss:$16 sps:$4 sm:$0xff]  }
  0xdb   :  { %3360 = vmatprep.subr.bf16.mxu0 %v6326_v1  ;;  %3688 = vmatprep.subr.bf16.mxu1 %v6328_v2  ;;  %v6414_v1 = vld [vmem:[#allocation5 + $0x388] ss:$16 sps:$4 sm:$0xff]   ;;  %v6419_v2 = vld [vmem:[#allocation5 + $0x3a4] ss:$16 sps:$4 sm:$0xff]  }
  0xde   :  { %3361 = vmatpush1.bf16.msra.mxu0 %v6330_v3  ;;  %3689 = vmatpush1.bf16.msra.mxu1 %v6331_v4  ;;  %v6422_v3 = vld [vmem:[#allocation5 + $0x3ac] ss:$16 sps:$4 sm:$0xff]   ;;  %v6417_v4 = vld [vmem:[#allocation5 + $0x3a0] ss:$16 sps:$4 sm:$0xff]  }
  0xdf   :  { %3362 = vmatprep.subr.bf16.mxu0 %v6332_v5  ;;  %3690 = vmatprep.subr.bf16.mxu1 %v6334_v6  ;;  %v6420_v5 = vld [vmem:[#allocation5 + $0x3a8] ss:$16 sps:$4 sm:$0xff]   ;;  %v6425_v6 = vld [vmem:[#allocation5 + $0x3c4] ss:$16 sps:$4 sm:$0xff]  }
  0xe2   :  { %3363 = vmatpush1.bf16.msra.mxu0 %v6336_v8  ;;  %3691 = vmatpush1.bf16.msra.mxu1 %v6337_v9  ;;  %v6423_v8 = vld [vmem:[#allocation5 + $0x3c0] ss:$16 sps:$4 sm:$0xff]   ;;  %v6426_v9 = vld [vmem:[#allocation5 + $0x3c8] ss:$16 sps:$4 sm:$0xff]  }
  0xe3   :  { %3373 = vmatprep.subr.bf16.mxu0 %v6341_v10  ;;  %3701 = vmatprep.subr.bf16.mxu1 %v6344_v11  ;;  %v6431_v10 = vld [vmem:[#allocation5 + $0x3e4] ss:$16 sps:$4 sm:$0xff]   ;;  %v6434_v11 = vld [vmem:[#allocation5 + $0x3ec] ss:$16 sps:$4 sm:$0xff]  }
  0xe5   :  { %3365 = vmatmul.mubr.bf16.vlgmr.msra.gmra.mrb[0].mxu0 %v695_v54  ;;  %3693 = vmatmul.mubr.bf16.vlgmr.msra.gmra.mrb[0].mxu1 %v695_v54  ;;  %v6401_v54 = vld [vmem:[#allocation5 + $0x344] ss:$16 sps:$4 sm:$0xff]  }
  0xe6   :  { %3374 = vmatpush1.bf16.msra.mxu0 %v6339_v13  ;;  %3702 = vmatpush1.bf16.msra.mxu1 %v6342_v14  ;;  %v6429_v13 = vld [vmem:[#allocation5 + $0x3e0] ss:$16 sps:$4 sm:$0xff]   ;;  %v6432_v14 = vld [vmem:[#allocation5 + $0x3e8] ss:$16 sps:$4 sm:$0xff]  }
  0xe7   :  { %3375 = vmatprep.subr.bf16.mxu0 %v6347_v15  ;;  %3703 = vmatprep.subr.bf16.mxu1 %v6350_v16  ;;  %v6437_v15 = vld [vmem:[#allocation5 + $0x404] ss:$16 sps:$4 sm:$0xff]   ;;  %v6440_v16 = vld [vmem:[#allocation5 + $0x40c] ss:$16 sps:$4 sm:$0xff]  }
  0xe8   :  { %3405 = vmatprep.mubr.bf16.mxu0 %v704_v17  ;;  %3733 = vmatprep.mubr.bf16.mxu1 %v704_v17  ;;  %v6435_v17 = vld [vmem:[#allocation5 + $0x400] ss:$16 sps:$4 sm:$0xff]  }
  0xea   :  { %3376 = vmatpush1.bf16.msra.mxu0 %v6345_v18  ;;  %3704 = vmatpush1.bf16.msra.mxu1 %v6348_v19  ;;  %v6438_v18 = vld [vmem:[#allocation5 + $0x408] ss:$16 sps:$4 sm:$0xff]  }
  0xeb   :  { %3377 = vmatprep.subr.bf16.mxu0 %v6353_v20  ;;  %3705 = vmatprep.subr.bf16.mxu1 %v6356_v21  ;;  %v7655_v19 = vld [vmem:[#allocation2 + $0x8] sm:$0xff]  ;;  %v6443_v20 = vld [vmem:[#allocation5 + $0x424] ss:$16 sps:$4 sm:$0xff]  }
  0xec   :  { %v6446_v21 = vld [vmem:[#allocation5 + $0x42c] ss:$16 sps:$4 sm:$0xff]  }
  0xee   :  { %3378 = vmatpush1.bf16.msra.mxu0 %v6351_v22  ;;  %3706 = vmatpush1.bf16.msra.mxu1 %v6354_v23  ;;  %v7659_v22 = vrot.slane %v7655_v19, %v7647_v49 }
  0xef   :  { %3379 = vmatprep.subr.bf16.mxu0 %v6359_v24  ;;  %3707 = vmatprep.subr.bf16.mxu1 %v6362_v25  ;;  %v6441_v24 = vld [vmem:[#allocation5 + $0x420] ss:$16 sps:$4 sm:$0xff]   ;;  %v6444_v25 = vld [vmem:[#allocation5 + $0x428] ss:$16 sps:$4 sm:$0xff]  }
  0xf0   :  { %v720_v23 = vcombine.high %v7659_v22, %v7659_v22 }
  0xf2   :  { %3380 = vmatpush1.bf16.msra.mxu0 %v6357_v26  ;;  %3708 = vmatpush1.bf16.msra.mxu1 %v6360_v27  ;;  %v6449_v26 = vld [vmem:[#allocation5 + $0x444] ss:$16 sps:$4 sm:$0xff]   ;;  %v6452_v27 = vld [vmem:[#allocation5 + $0x44c] ss:$16 sps:$4 sm:$0xff]  }
  0xf3   :  { %3381 = vmatprep.subr.bf16.mxu0 %v6365_v28  ;;  %3709 = vmatprep.subr.bf16.mxu1 %v6368_v29  ;;  %v6447_v28 = vld [vmem:[#allocation5 + $0x440] ss:$16 sps:$4 sm:$0xff]   ;;  %v6450_v29 = vld [vmem:[#allocation5 + $0x448] ss:$16 sps:$4 sm:$0xff]  }
  0xf6   :  { %3382 = vmatpush1.bf16.msra.mxu0 %v6363_v30  ;;  %3710 = vmatpush1.bf16.msra.mxu1 %v6366_v31  ;;  %v6458_v30 = vld [vmem:[#allocation5 + $0x46c] ss:$16 sps:$4 sm:$0xff]   ;;  %v6453_v31 = vld [vmem:[#allocation5 + $0x460] ss:$16 sps:$4 sm:$0xff]  }
  0xf7   :  { %3383 = vmatprep.subr.bf16.mxu0 %v6371_v32  ;;  %3711 = vmatprep.subr.bf16.mxu1 %v6374_v33  ;;  %v6456_v32 = vld [vmem:[#allocation5 + $0x468] ss:$16 sps:$4 sm:$0xff]   ;;  %v6461_v33 = vld [vmem:[#allocation5 + $0x484] ss:$16 sps:$4 sm:$0xff]  }
  0xfa   :  { %3384 = vmatpush1.bf16.msra.mxu0 %v6369_v34  ;;  %3712 = vmatpush1.bf16.msra.mxu1 %v6372_v35  ;;  %v6464_v34 = vld [vmem:[#allocation5 + $0x48c] ss:$16 sps:$4 sm:$0xff]   ;;  %v6459_v35 = vld [vmem:[#allocation5 + $0x480] ss:$16 sps:$4 sm:$0xff]  }
  0xfb   :  { %3385 = vmatprep.subr.bf16.mxu0 %v6377_v36  ;;  %3713 = vmatprep.subr.bf16.mxu1 %v6380_v37  ;;  %v6462_v36 = vld [vmem:[#allocation5 + $0x488] ss:$16 sps:$4 sm:$0xff]   ;;  %v6467_v37 = vld [vmem:[#allocation5 + $0x4a4] ss:$16 sps:$4 sm:$0xff]  }
  0xfe   :  { %3386 = vmatpush1.bf16.msra.mxu0 %v6375_v38  ;;  %3714 = vmatpush1.bf16.msra.mxu1 %v6378_v39  ;;  %v6470_v38 = vld [vmem:[#allocation5 + $0x4ac] ss:$16 sps:$4 sm:$0xff]   ;;  %v6465_v39 = vld [vmem:[#allocation5 + $0x4a0] ss:$16 sps:$4 sm:$0xff]  }
  0xff   :  { %3387 = vmatprep.subr.bf16.mxu0 %v6383_v40  ;;  %3715 = vmatprep.subr.bf16.mxu1 %v6386_v41  ;;  %v6468_v40 = vld [vmem:[#allocation5 + $0x4a8] ss:$16 sps:$4 sm:$0xff]   ;;  %v6473_v41 = vld [vmem:[#allocation5 + $0x4c4] ss:$16 sps:$4 sm:$0xff]  }
 0x102   :  { %3388 = vmatpush1.bf16.msra.mxu0 %v6381_v43  ;;  %3716 = vmatpush1.bf16.msra.mxu1 %v6384_v44  ;;  %v6476_v43 = vld [vmem:[#allocation5 + $0x4cc] ss:$16 sps:$4 sm:$0xff]   ;;  %v6471_v44 = vld [vmem:[#allocation5 + $0x4c0] ss:$16 sps:$4 sm:$0xff]  }
 0x103   :  { %3389 = vmatprep.subr.bf16.mxu0 %v6389_v45  ;;  %3717 = vmatprep.subr.bf16.mxu1 %v6392_v46  ;;  %v6474_v45 = vld [vmem:[#allocation5 + $0x4c8] ss:$16 sps:$4 sm:$0xff]   ;;  %v6479_v46 = vld [vmem:[#allocation5 + $0x4e4] ss:$16 sps:$4 sm:$0xff]  }
 0x106   :  { %3390 = vmatpush1.bf16.msra.mxu0 %v6387_v47  ;;  %3718 = vmatpush1.bf16.msra.mxu1 %v6390_v48  ;;  %v6482_v47 = vld [vmem:[#allocation5 + $0x4ec] ss:$16 sps:$4 sm:$0xff]   ;;  %v6477_v48 = vld [vmem:[#allocation5 + $0x4e0] ss:$16 sps:$4 sm:$0xff]  }
 0x107   :  { %3391 = vmatprep.subr.bf16.mxu0 %v6395_v50  ;;  %3719 = vmatprep.subr.bf16.mxu1 %v6398_v51  ;;  %v6480_v50 = vld [vmem:[#allocation5 + $0x4e8] ss:$16 sps:$4 sm:$0xff]   ;;  %v6485_v51 = vld [vmem:[#allocation5 + $0x504] ss:$16 sps:$4 sm:$0xff]  }
 0x10a   :  { %3392 = vmatpush1.bf16.msra.mxu0 %v6393_v52  ;;  %3720 = vmatpush1.bf16.msra.mxu1 %v6396_v53  ;;  %v6488_v52 = vld [vmem:[#allocation5 + $0x50c] ss:$16 sps:$4 sm:$0xff]   ;;  %v6483_v53 = vld [vmem:[#allocation5 + $0x500] ss:$16 sps:$4 sm:$0xff]  }
 0x10b   :  { %3393 = vmatprep.subr.bf16.mxu0 %v6401_v54  ;;  %3721 = vmatprep.subr.bf16.mxu1 %v6404_v55  ;;  %v6486_v54 = vld [vmem:[#allocation5 + $0x508] ss:$16 sps:$4 sm:$0xff]   ;;  %v6491_v55 = vld [vmem:[#allocation5 + $0x524] ss:$16 sps:$4 sm:$0xff]  }
 0x10e   :  { %3394 = vmatpush1.bf16.msra.mxu0 %v6399_v56  ;;  %3722 = vmatpush1.bf16.msra.mxu1 %v6402_v57  ;;  %v6494_v56 = vld [vmem:[#allocation5 + $0x52c] ss:$16 sps:$4 sm:$0xff]   ;;  %v6489_v57 = vld [vmem:[#allocation5 + $0x520] ss:$16 sps:$4 sm:$0xff]  }
 0x10f   :  { %3395 = vmatprep.subr.bf16.mxu0 %v6407_v58  ;;  %3723 = vmatprep.subr.bf16.mxu1 %v6410_v59  ;;  %v6492_v58 = vld [vmem:[#allocation5 + $0x528] ss:$16 sps:$4 sm:$0xff]   ;;  %v6497_v59 = vld [vmem:[#allocation5 + $0x544] ss:$16 sps:$4 sm:$0xff]  }
 0x112   :  { %3396 = vmatpush1.bf16.msra.mxu0 %v6405_v60  ;;  %3724 = vmatpush1.bf16.msra.mxu1 %v6408_v61  ;;  %v6500_v60 = vld [vmem:[#allocation5 + $0x54c] ss:$16 sps:$4 sm:$0xff]   ;;  %v6495_v61 = vld [vmem:[#allocation5 + $0x540] ss:$16 sps:$4 sm:$0xff]  }
 0x113   :  { %3397 = vmatprep.subr.bf16.mxu0 %v6413_v62  ;;  %3725 = vmatprep.subr.bf16.mxu1 %v6416_v63  ;;  %v6498_v62 = vld [vmem:[#allocation5 + $0x548] ss:$16 sps:$4 sm:$0xff]   ;;  %v6503_v63 = vld [vmem:[#allocation5 + $0x564] ss:$16 sps:$4 sm:$0xff]  }
 0x116   :  { %3398 = vmatpush1.bf16.msra.mxu0 %v6411_v0  ;;  %3726 = vmatpush1.bf16.msra.mxu1 %v6414_v1  ;;  %v6506_v0 = vld [vmem:[#allocation5 + $0x56c] ss:$16 sps:$4 sm:$0xff]   ;;  %v6501_v1 = vld [vmem:[#allocation5 + $0x560] ss:$16 sps:$4 sm:$0xff]  }
 0x117   :  { %3399 = vmatprep.subr.bf16.mxu0 %v6419_v2  ;;  %3727 = vmatprep.subr.bf16.mxu1 %v6422_v3  ;;  %v6504_v2 = vld [vmem:[#allocation5 + $0x568] ss:$16 sps:$4 sm:$0xff]   ;;  %v6509_v3 = vld [vmem:[#allocation5 + $0x584] ss:$16 sps:$4 sm:$0xff]  }
 0x11a   :  { %3400 = vmatpush1.bf16.msra.mxu0 %v6417_v4  ;;  %3728 = vmatpush1.bf16.msra.mxu1 %v6420_v5  ;;  %v6512_v4 = vld [vmem:[#allocation5 + $0x58c] ss:$16 sps:$4 sm:$0xff]   ;;  %v6507_v5 = vld [vmem:[#allocation5 + $0x580] ss:$16 sps:$4 sm:$0xff]  }
 0x11b   :  { %3401 = vmatprep.subr.bf16.mxu0 %v6425_v6  ;;  %3729 = vmatprep.subr.bf16.mxu1 %v6428_v7  ;;  %v6510_v6 = vld [vmem:[#allocation5 + $0x588] ss:$16 sps:$4 sm:$0xff]   ;;  %v6515_v7 = vld [vmem:[#allocation5 + $0x5a4] ss:$16 sps:$4 sm:$0xff]  }
 0x11e   :  { %3402 = vmatpush1.bf16.msra.mxu0 %v6423_v8  ;;  %3730 = vmatpush1.bf16.msra.mxu1 %v6426_v9  ;;  %v6518_v8 = vld [vmem:[#allocation5 + $0x5ac] ss:$16 sps:$4 sm:$0xff]   ;;  %v6513_v9 = vld [vmem:[#allocation5 + $0x5a0] ss:$16 sps:$4 sm:$0xff]  }
 0x11f   :  { %3403 = vmatprep.subr.bf16.mxu0 %v6431_v10  ;;  %3731 = vmatprep.subr.bf16.mxu1 %v6434_v11  ;;  %v6516_v10 = vld [vmem:[#allocation5 + $0x5a8] ss:$16 sps:$4 sm:$0xff]   ;;  %v6521_v11 = vld [vmem:[#allocation5 + $0x5c4] ss:$16 sps:$4 sm:$0xff]  }
 0x122   :  { %3404 = vmatpush1.bf16.msra.mxu0 %v6429_v13  ;;  %3732 = vmatpush1.bf16.msra.mxu1 %v6432_v14  ;;  %v6524_v13 = vld [vmem:[#allocation5 + $0x5cc] ss:$16 sps:$4 sm:$0xff]   ;;  %v6519_v14 = vld [vmem:[#allocation5 + $0x5c0] ss:$16 sps:$4 sm:$0xff]  }
 0x123   :  { %3414 = vmatprep.subr.bf16.mxu0 %v6437_v15  ;;  %3742 = vmatprep.subr.bf16.mxu1 %v6440_v16  ;;  %v6522_v15 = vld [vmem:[#allocation5 + $0x5c8] ss:$16 sps:$4 sm:$0xff]   ;;  %v6527_v16 = vld [vmem:[#allocation5 + $0x5e4] ss:$16 sps:$4 sm:$0xff]  }
 0x125   :  { %3406 = vmatmul.mubr.bf16.vlgmr.msra.gmra.mrb[0].mxu0 %v7651_v12  ;;  %3734 = vmatmul.mubr.bf16.vlgmr.msra.gmra.mrb[0].mxu1 %v7651_v12  ;;  %v6455_v12 = vld [vmem:[#allocation5 + $0x464] ss:$16 sps:$4 sm:$0xff]  }
 0x126   :  { %3415 = vmatpush1.bf16.msra.mxu0 %v6435_v17  ;;  %3743 = vmatpush1.bf16.msra.mxu1 %v6438_v18  ;;  %v6530_v17 = vld [vmem:[#allocation5 + $0x5ec] ss:$16 sps:$4 sm:$0xff]   ;;  %v705_v18 = vcombine.high %v7655_v19, %v7655_v19 }
 0x127   :  { %3416 = vmatprep.subr.bf16.mxu0 %v6443_v20  ;;  %3744 = vmatprep.subr.bf16.mxu1 %v6446_v21  ;;  %v6525_v20 = vld [vmem:[#allocation5 + $0x5e0] ss:$16 sps:$4 sm:$0xff]   ;;  %v6528_v21 = vld [vmem:[#allocation5 + $0x5e8] ss:$16 sps:$4 sm:$0xff]  }
 0x128   :  { %3446 = vmatprep.mubr.bf16.mxu0 %v720_v23  ;;  %3774 = vmatprep.mubr.bf16.mxu1 %v720_v23  ;;  %v6533_v23 = vld [vmem:[#allocation5 + $0x604] ss:$16 sps:$4 sm:$0xff]  }
 0x12a   :  { %3417 = vmatpush1.bf16.msra.mxu0 %v6441_v24  ;;  %3745 = vmatpush1.bf16.msra.mxu1 %v6444_v25  ;;  %v6536_v24 = vld [vmem:[#allocation5 + $0x60c] ss:$16 sps:$4 sm:$0xff]   ;;  %v7668_v25 = vrot.slane %v705_v18, %v7647_v49 }
 0x12b   :  { %3418 = vmatprep.subr.bf16.mxu0 %v6449_v26  ;;  %3746 = vmatprep.subr.bf16.mxu1 %v6452_v27  ;;  %v6531_v26 = vld [vmem:[#allocation5 + $0x600] ss:$16 sps:$4 sm:$0xff]   ;;  %v6534_v27 = vld [vmem:[#allocation5 + $0x608] ss:$16 sps:$4 sm:$0xff]   ;;  %v6620_v18 = vld [vmem:[#allocation5 + $0x7cc] ss:$16 sps:$4 sm:$0xff]  }
 0x12c   :  { %v721_v19 = vcombine.high %v7668_v25, %v7668_v25 }
 0x12e   :  { %3419 = vmatpush1.bf16.msra.mxu0 %v6447_v28  ;;  %3747 = vmatpush1.bf16.msra.mxu1 %v6450_v29  ;;  %v6539_v28 = vld [vmem:[#allocation5 + $0x624] ss:$16 sps:$4 sm:$0xff]   ;;  %v6542_v29 = vld [vmem:[#allocation5 + $0x62c] ss:$16 sps:$4 sm:$0xff]  }
 0x12f   :  { %3420 = vmatprep.subr.bf16.mxu0 %v6455_v12  ;;  %3748 = vmatprep.subr.bf16.mxu1 %v6458_v30  ;;  %v6537_v12 = vld [vmem:[#allocation5 + $0x620] ss:$16 sps:$4 sm:$0xff]   ;;  %v6540_v30 = vld [vmem:[#allocation5 + $0x628] ss:$16 sps:$4 sm:$0xff]  }
 0x132   :  { %3421 = vmatpush1.bf16.msra.mxu0 %v6453_v31  ;;  %3749 = vmatpush1.bf16.msra.mxu1 %v6456_v32  ;;  %v6545_v31 = vld [vmem:[#allocation5 + $0x644] ss:$16 sps:$4 sm:$0xff]   ;;  %v6548_v32 = vld [vmem:[#allocation5 + $0x64c] ss:$16 sps:$4 sm:$0xff]  }
 0x133   :  { %3422 = vmatprep.subr.bf16.mxu0 %v6461_v33  ;;  %3750 = vmatprep.subr.bf16.mxu1 %v6464_v34  ;;  %v6543_v33 = vld [vmem:[#allocation5 + $0x640] ss:$16 sps:$4 sm:$0xff]   ;;  %v6546_v34 = vld [vmem:[#allocation5 + $0x648] ss:$16 sps:$4 sm:$0xff]  }
 0x136   :  { %3423 = vmatpush1.bf16.msra.mxu0 %v6459_v35  ;;  %3751 = vmatpush1.bf16.msra.mxu1 %v6462_v36  ;;  %v6551_v35 = vld [vmem:[#allocation5 + $0x664] ss:$16 sps:$4 sm:$0xff]   ;;  %v6554_v36 = vld [vmem:[#allocation5 + $0x66c] ss:$16 sps:$4 sm:$0xff]  }
 0x137   :  { %3424 = vmatprep.subr.bf16.mxu0 %v6467_v37  ;;  %3752 = vmatprep.subr.bf16.mxu1 %v6470_v38  ;;  %v6552_v37 = vld [vmem:[#allocation5 + $0x668] ss:$16 sps:$4 sm:$0xff]   ;;  %v6557_v38 = vld [vmem:[#allocation5 + $0x684] ss:$16 sps:$4 sm:$0xff]  }
 0x13a   :  { %3425 = vmatpush1.bf16.msra.mxu0 %v6465_v39  ;;  %3753 = vmatpush1.bf16.msra.mxu1 %v6468_v40  ;;  %v6560_v39 = vld [vmem:[#allocation5 + $0x68c] ss:$16 sps:$4 sm:$0xff]   ;;  %v6555_v40 = vld [vmem:[#allocation5 + $0x680] ss:$16 sps:$4 sm:$0xff]  }
 0x13b   :  { %3426 = vmatprep.subr.bf16.mxu0 %v6473_v41  ;;  %3754 = vmatprep.subr.bf16.mxu1 %v6476_v43  ;;  %v6558_v41 = vld [vmem:[#allocation5 + $0x688] ss:$16 sps:$4 sm:$0xff]   ;;  %v6563_v43 = vld [vmem:[#allocation5 + $0x6a4] ss:$16 sps:$4 sm:$0xff]  }
 0x13e   :  { %3427 = vmatpush1.bf16.msra.mxu0 %v6471_v44  ;;  %3755 = vmatpush1.bf16.msra.mxu1 %v6474_v45  ;;  %v6566_v44 = vld [vmem:[#allocation5 + $0x6ac] ss:$16 sps:$4 sm:$0xff]   ;;  %v6561_v45 = vld [vmem:[#allocation5 + $0x6a0] ss:$16 sps:$4 sm:$0xff]  }
 0x13f   :  { %3428 = vmatprep.subr.bf16.mxu0 %v6479_v46  ;;  %3756 = vmatprep.subr.bf16.mxu1 %v6482_v47  ;;  %v6564_v46 = vld [vmem:[#allocation5 + $0x6a8] ss:$16 sps:$4 sm:$0xff]   ;;  %v6569_v47 = vld [vmem:[#allocation5 + $0x6c4] ss:$16 sps:$4 sm:$0xff]  }
 0x142   :  { %3429 = vmatpush1.bf16.msra.mxu0 %v6477_v48  ;;  %3757 = vmatpush1.bf16.msra.mxu1 %v6480_v50  ;;  %v6572_v48 = vld [vmem:[#allocation5 + $0x6cc] ss:$16 sps:$4 sm:$0xff]   ;;  %v6567_v50 = vld [vmem:[#allocation5 + $0x6c0] ss:$16 sps:$4 sm:$0xff]  }
 0x143   :  { %3430 = vmatprep.subr.bf16.mxu0 %v6485_v51  ;;  %3758 = vmatprep.subr.bf16.mxu1 %v6488_v52  ;;  %v6570_v51 = vld [vmem:[#allocation5 + $0x6c8] ss:$16 sps:$4 sm:$0xff]   ;;  %v6575_v52 = vld [vmem:[#allocation5 + $0x6e4] ss:$16 sps:$4 sm:$0xff]  }
 0x146   :  { %3431 = vmatpush1.bf16.msra.mxu0 %v6483_v53  ;;  %3759 = vmatpush1.bf16.msra.mxu1 %v6486_v54  ;;  %v6578_v53 = vld [vmem:[#allocation5 + $0x6ec] ss:$16 sps:$4 sm:$0xff]   ;;  %v6573_v54 = vld [vmem:[#allocation5 + $0x6e0] ss:$16 sps:$4 sm:$0xff]  }
 0x147   :  { %3432 = vmatprep.subr.bf16.mxu0 %v6491_v55  ;;  %3760 = vmatprep.subr.bf16.mxu1 %v6494_v56  ;;  %v6576_v55 = vld [vmem:[#allocation5 + $0x6e8] ss:$16 sps:$4 sm:$0xff]   ;;  %v6581_v56 = vld [vmem:[#allocation5 + $0x704] ss:$16 sps:$4 sm:$0xff]  }
 0x14a   :  { %3433 = vmatpush1.bf16.msra.mxu0 %v6489_v57  ;;  %3761 = vmatpush1.bf16.msra.mxu1 %v6492_v58  ;;  %v6584_v57 = vld [vmem:[#allocation5 + $0x70c] ss:$16 sps:$4 sm:$0xff]   ;;  %v6579_v58 = vld [vmem:[#allocation5 + $0x700] ss:$16 sps:$4 sm:$0xff]  }
 0x14b   :  { %3434 = vmatprep.subr.bf16.mxu0 %v6497_v59  ;;  %3762 = vmatprep.subr.bf16.mxu1 %v6500_v60  ;;  %v6582_v59 = vld [vmem:[#allocation5 + $0x708] ss:$16 sps:$4 sm:$0xff]   ;;  %v6587_v60 = vld [vmem:[#allocation5 + $0x724] ss:$16 sps:$4 sm:$0xff]  }
 0x14e   :  { %3435 = vmatpush1.bf16.msra.mxu0 %v6495_v61  ;;  %3763 = vmatpush1.bf16.msra.mxu1 %v6498_v62  ;;  %v6590_v61 = vld [vmem:[#allocation5 + $0x72c] ss:$16 sps:$4 sm:$0xff]   ;;  %v6585_v62 = vld [vmem:[#allocation5 + $0x720] ss:$16 sps:$4 sm:$0xff]  }
 0x14f   :  { %3436 = vmatprep.subr.bf16.mxu0 %v6503_v63  ;;  %3764 = vmatprep.subr.bf16.mxu1 %v6506_v0  ;;  %v6588_v63 = vld [vmem:[#allocation5 + $0x728] ss:$16 sps:$4 sm:$0xff]   ;;  %v6593_v0 = vld [vmem:[#allocation5 + $0x744] ss:$16 sps:$4 sm:$0xff]  }
 0x152   :  { %3437 = vmatpush1.bf16.msra.mxu0 %v6501_v1  ;;  %3765 = vmatpush1.bf16.msra.mxu1 %v6504_v2  ;;  %v6596_v1 = vld [vmem:[#allocation5 + $0x74c] ss:$16 sps:$4 sm:$0xff]   ;;  %v6591_v2 = vld [vmem:[#allocation5 + $0x740] ss:$16 sps:$4 sm:$0xff]  }
 0x153   :  { %3438 = vmatprep.subr.bf16.mxu0 %v6509_v3  ;;  %3766 = vmatprep.subr.bf16.mxu1 %v6512_v4  ;;  %v6594_v3 = vld [vmem:[#allocation5 + $0x748] ss:$16 sps:$4 sm:$0xff]   ;;  %v6599_v4 = vld [vmem:[#allocation5 + $0x764] ss:$16 sps:$4 sm:$0xff]  }
 0x156   :  { %3439 = vmatpush1.bf16.msra.mxu0 %v6507_v5  ;;  %3767 = vmatpush1.bf16.msra.mxu1 %v6510_v6  ;;  %v6602_v5 = vld [vmem:[#allocation5 + $0x76c] ss:$16 sps:$4 sm:$0xff]   ;;  %v6597_v6 = vld [vmem:[#allocation5 + $0x760] ss:$16 sps:$4 sm:$0xff]  }
 0x157   :  { %3440 = vmatprep.subr.bf16.mxu0 %v6515_v7  ;;  %3768 = vmatprep.subr.bf16.mxu1 %v6518_v8  ;;  %v6600_v7 = vld [vmem:[#allocation5 + $0x768] ss:$16 sps:$4 sm:$0xff]   ;;  %v6605_v8 = vld [vmem:[#allocation5 + $0x784] ss:$16 sps:$4 sm:$0xff]  }
 0x15a   :  { %3441 = vmatpush1.bf16.msra.mxu0 %v6513_v9  ;;  %3769 = vmatpush1.bf16.msra.mxu1 %v6516_v10  ;;  %v6608_v9 = vld [vmem:[#allocation5 + $0x78c] ss:$16 sps:$4 sm:$0xff]   ;;  %v6603_v10 = vld [vmem:[#allocation5 + $0x780] ss:$16 sps:$4 sm:$0xff]  }
 0x15b   :  { %3442 = vmatprep.subr.bf16.mxu0 %v6521_v11  ;;  %3770 = vmatprep.subr.bf16.mxu1 %v6524_v13  ;;  %v6606_v11 = vld [vmem:[#allocation5 + $0x788] ss:$16 sps:$4 sm:$0xff]   ;;  %v6611_v13 = vld [vmem:[#allocation5 + $0x7a4] ss:$16 sps:$4 sm:$0xff]  }
 0x15e   :  { %3443 = vmatpush1.bf16.msra.mxu0 %v6519_v14  ;;  %3771 = vmatpush1.bf16.msra.mxu1 %v6522_v15  ;;  %v6614_v14 = vld [vmem:[#allocation5 + $0x7ac] ss:$16 sps:$4 sm:$0xff]   ;;  %v6609_v15 = vld [vmem:[#allocation5 + $0x7a0] ss:$16 sps:$4 sm:$0xff]  }
 0x15f   :  { %3444 = vmatprep.subr.bf16.mxu0 %v6527_v16  ;;  %3772 = vmatprep.subr.bf16.mxu1 %v6530_v17  ;;  %v6612_v16 = vld [vmem:[#allocation5 + $0x7a8] ss:$16 sps:$4 sm:$0xff]   ;;  %v6617_v17 = vld [vmem:[#allocation5 + $0x7c4] ss:$16 sps:$4 sm:$0xff]  }
 0x162   :  { %3445 = vmatpush1.bf16.msra.mxu0 %v6525_v20  ;;  %3773 = vmatpush1.bf16.msra.mxu1 %v6528_v21  ;;  %v6615_v20 = vld [vmem:[#allocation5 + $0x7c0] ss:$16 sps:$4 sm:$0xff]   ;;  %v6618_v21 = vld [vmem:[#allocation5 + $0x7c8] ss:$16 sps:$4 sm:$0xff]  }
 0x163   :  { %3455 = vmatprep.subr.bf16.mxu0 %v6533_v23  ;;  %3783 = vmatprep.subr.bf16.mxu1 %v6536_v24  ;;  %v6623_v23 = vld [vmem:[#allocation5 + $0x7e4] ss:$16 sps:$4 sm:$0xff]   ;;  %v6626_v24 = vld [vmem:[#allocation5 + $0x7ec] ss:$16 sps:$4 sm:$0xff]  }
 0x165   :  { %3447 = vmatmul.mubr.bf16.vlgmr.msra.gmra.mrb[0].mxu0 %v7659_v22  ;;  %3775 = vmatmul.mubr.bf16.vlgmr.msra.gmra.mrb[0].mxu1 %v7659_v22  ;;  %v6549_v22 = vld [vmem:[#allocation5 + $0x660] ss:$16 sps:$4 sm:$0xff]  }
 0x166   :  { %3456 = vmatpush1.bf16.msra.mxu0 %v6531_v26  ;;  %3784 = vmatpush1.bf16.msra.mxu1 %v6534_v27  ;;  %v6621_v26 = vld [vmem:[#allocation5 + $0x7e0] ss:$16 sps:$4 sm:$0xff]  }
 0x167   :  { %3457 = vmatprep.subr.bf16.mxu0 %v6539_v28  ;;  %3785 = vmatprep.subr.bf16.mxu1 %v6542_v29  ;;  %v7674_v27 = vld [vmem:[#allocation2 + $0x10] sm:$0xff]  ;;  %v6624_v28 = vld [vmem:[#allocation5 + $0x7e8] ss:$16 sps:$4 sm:$0xff]  }
 0x168   :  { %3487 = vmatprep.mubr.bf16.mxu0 %v721_v19  ;;  %3815 = vmatprep.mubr.bf16.mxu1 %v721_v19  ;;  %v6630_v29 = vld [vmem:[#allocation5 + $0x804] ss:$16 sps:$4 sm:$0xff]   ;;  %v6633_v19 = vld [vmem:[#allocation5 + $0x80c] ss:$16 sps:$4 sm:$0xff]  }
 0x16a   :  { %3458 = vmatpush1.bf16.msra.mxu0 %v6537_v12  ;;  %3786 = vmatpush1.bf16.msra.mxu1 %v6540_v30  ;;  %v7678_v12 = vrot.slane %v7674_v27, %v7647_v49  ;;  %v6628_v30 = vld [vmem:[#allocation5 + $0x800] ss:$16 sps:$4 sm:$0xff]  }
 0x16b   :  { %3459 = vmatprep.subr.bf16.mxu0 %v6545_v31  ;;  %3787 = vmatprep.subr.bf16.mxu1 %v6548_v32  ;;  %v6631_v31 = vld [vmem:[#allocation5 + $0x808] ss:$16 sps:$4 sm:$0xff]   ;;  %v6636_v32 = vld [vmem:[#allocation5 + $0x824] ss:$16 sps:$4 sm:$0xff]  }
 0x16e   :  { %3460 = vmatpush1.bf16.msra.mxu0 %v6543_v33  ;;  %3788 = vmatpush1.bf16.msra.mxu1 %v6546_v34  ;;  %v6639_v33 = vld [vmem:[#allocation5 + $0x82c] ss:$16 sps:$4 sm:$0xff]   ;;  %v737_v34 = vcombine.high %v7678_v12, %v7678_v12 }
 0x16f   :  { %3461 = vmatprep.subr.bf16.mxu0 %v6551_v35  ;;  %3789 = vmatprep.subr.bf16.mxu1 %v6554_v36  ;;  %v6634_v35 = vld [vmem:[#allocation5 + $0x820] ss:$16 sps:$4 sm:$0xff]   ;;  %v6637_v36 = vld [vmem:[#allocation5 + $0x828] ss:$16 sps:$4 sm:$0xff]  }
 0x172   :  { %3462 = vmatpush1.bf16.msra.mxu0 %v6549_v22  ;;  %3790 = vmatpush1.bf16.msra.mxu1 %v6552_v37  ;;  %v6642_v22 = vld [vmem:[#allocation5 + $0x844] ss:$16 sps:$4 sm:$0xff]   ;;  %v6645_v37 = vld [vmem:[#allocation5 + $0x84c] ss:$16 sps:$4 sm:$0xff]  }
 0x173   :  { %3463 = vmatprep.subr.bf16.mxu0 %v6557_v38  ;;  %3791 = vmatprep.subr.bf16.mxu1 %v6560_v39  ;;  %v6640_v38 = vld [vmem:[#allocation5 + $0x840] ss:$16 sps:$4 sm:$0xff]   ;;  %v6643_v39 = vld [vmem:[#allocation5 + $0x848] ss:$16 sps:$4 sm:$0xff]  }
 0x176   :  { %3464 = vmatpush1.bf16.msra.mxu0 %v6555_v40  ;;  %3792 = vmatpush1.bf16.msra.mxu1 %v6558_v41  ;;  %v6648_v40 = vld [vmem:[#allocation5 + $0x864] ss:$16 sps:$4 sm:$0xff]   ;;  %v6651_v41 = vld [vmem:[#allocation5 + $0x86c] ss:$16 sps:$4 sm:$0xff]  }
 0x177   :  { %3465 = vmatprep.subr.bf16.mxu0 %v6563_v43  ;;  %3793 = vmatprep.subr.bf16.mxu1 %v6566_v44  ;;  %v6649_v43 = vld [vmem:[#allocation5 + $0x868] ss:$16 sps:$4 sm:$0xff]   ;;  %v6654_v44 = vld [vmem:[#allocation5 + $0x884] ss:$16 sps:$4 sm:$0xff]  }
 0x17a   :  { %3466 = vmatpush1.bf16.msra.mxu0 %v6561_v45  ;;  %3794 = vmatpush1.bf16.msra.mxu1 %v6564_v46  ;;  %v6657_v45 = vld [vmem:[#allocation5 + $0x88c] ss:$16 sps:$4 sm:$0xff]   ;;  %v6652_v46 = vld [vmem:[#allocation5 + $0x880] ss:$16 sps:$4 sm:$0xff]  }
 0x17b   :  { %3467 = vmatprep.subr.bf16.mxu0 %v6569_v47  ;;  %3795 = vmatprep.subr.bf16.mxu1 %v6572_v48  ;;  %v6655_v47 = vld [vmem:[#allocation5 + $0x888] ss:$16 sps:$4 sm:$0xff]   ;;  %v6660_v48 = vld [vmem:[#allocation5 + $0x8a4] ss:$16 sps:$4 sm:$0xff]  }
 0x17e   :  { %3468 = vmatpush1.bf16.msra.mxu0 %v6567_v50  ;;  %3796 = vmatpush1.bf16.msra.mxu1 %v6570_v51  ;;  %v6663_v50 = vld [vmem:[#allocation5 + $0x8ac] ss:$16 sps:$4 sm:$0xff]   ;;  %v6658_v51 = vld [vmem:[#allocation5 + $0x8a0] ss:$16 sps:$4 sm:$0xff]  }
 0x17f   :  { %3469 = vmatprep.subr.bf16.mxu0 %v6575_v52  ;;  %3797 = vmatprep.subr.bf16.mxu1 %v6578_v53  ;;  %v6661_v52 = vld [vmem:[#allocation5 + $0x8a8] ss:$16 sps:$4 sm:$0xff]   ;;  %v6666_v53 = vld [vmem:[#allocation5 + $0x8c4] ss:$16 sps:$4 sm:$0xff]  }
 0x182   :  { %3470 = vmatpush1.bf16.msra.mxu0 %v6573_v54  ;;  %3798 = vmatpush1.bf16.msra.mxu1 %v6576_v55  ;;  %v6669_v54 = vld [vmem:[#allocation5 + $0x8cc] ss:$16 sps:$4 sm:$0xff]   ;;  %v6664_v55 = vld [vmem:[#allocation5 + $0x8c0] ss:$16 sps:$4 sm:$0xff]  }
 0x183   :  { %3471 = vmatprep.subr.bf16.mxu0 %v6581_v56  ;;  %3799 = vmatprep.subr.bf16.mxu1 %v6584_v57  ;;  %v6667_v56 = vld [vmem:[#allocation5 + $0x8c8] ss:$16 sps:$4 sm:$0xff]   ;;  %v6672_v57 = vld [vmem:[#allocation5 + $0x8e4] ss:$16 sps:$4 sm:$0xff]  }
 0x186   :  { %3472 = vmatpush1.bf16.msra.mxu0 %v6579_v58  ;;  %3800 = vmatpush1.bf16.msra.mxu1 %v6582_v59  ;;  %v6675_v58 = vld [vmem:[#allocation5 + $0x8ec] ss:$16 sps:$4 sm:$0xff]   ;;  %v6670_v59 = vld [vmem:[#allocation5 + $0x8e0] ss:$16 sps:$4 sm:$0xff]  }
 0x187   :  { %3473 = vmatprep.subr.bf16.mxu0 %v6587_v60  ;;  %3801 = vmatprep.subr.bf16.mxu1 %v6590_v61  ;;  %v6673_v60 = vld [vmem:[#allocation5 + $0x8e8] ss:$16 sps:$4 sm:$0xff]   ;;  %v6678_v61 = vld [vmem:[#allocation5 + $0x904] ss:$16 sps:$4 sm:$0xff]  }
 0x18a   :  { %3474 = vmatpush1.bf16.msra.mxu0 %v6585_v62  ;;  %3802 = vmatpush1.bf16.msra.mxu1 %v6588_v63  ;;  %v6681_v62 = vld [vmem:[#allocation5 + $0x90c] ss:$16 sps:$4 sm:$0xff]   ;;  %v6676_v63 = vld [vmem:[#allocation5 + $0x900] ss:$16 sps:$4 sm:$0xff]  }
 0x18b   :  { %3475 = vmatprep.subr.bf16.mxu0 %v6593_v0  ;;  %3803 = vmatprep.subr.bf16.mxu1 %v6596_v1  ;;  %v6679_v0 = vld [vmem:[#allocation5 + $0x908] ss:$16 sps:$4 sm:$0xff]   ;;  %v6684_v1 = vld [vmem:[#allocation5 + $0x924] ss:$16 sps:$4 sm:$0xff]  }
 0x18e   :  { %3476 = vmatpush1.bf16.msra.mxu0 %v6591_v2  ;;  %3804 = vmatpush1.bf16.msra.mxu1 %v6594_v3  ;;  %v6687_v2 = vld [vmem:[#allocation5 + $0x92c] ss:$16 sps:$4 sm:$0xff]   ;;  %v6682_v3 = vld [vmem:[#allocation5 + $0x920] ss:$16 sps:$4 sm:$0xff]  }
 0x18f   :  { %3477 = vmatprep.subr.bf16.mxu0 %v6599_v4  ;;  %3805 = vmatprep.subr.bf16.mxu1 %v6602_v5  ;;  %v6685_v4 = vld [vmem:[#allocation5 + $0x928] ss:$16 sps:$4 sm:$0xff]   ;;  %v6690_v5 = vld [vmem:[#allocation5 + $0x944] ss:$16 sps:$4 sm:$0xff]  }
 0x192   :  { %3478 = vmatpush1.bf16.msra.mxu0 %v6597_v6  ;;  %3806 = vmatpush1.bf16.msra.mxu1 %v6600_v7  ;;  %v6693_v6 = vld [vmem:[#allocation5 + $0x94c] ss:$16 sps:$4 sm:$0xff]   ;;  %v6688_v7 = vld [vmem:[#allocation5 + $0x940] ss:$16 sps:$4 sm:$0xff]  }
 0x193   :  { %3479 = vmatprep.subr.bf16.mxu0 %v6605_v8  ;;  %3807 = vmatprep.subr.bf16.mxu1 %v6608_v9  ;;  %v6691_v8 = vld [vmem:[#allocation5 + $0x948] ss:$16 sps:$4 sm:$0xff]   ;;  %v6696_v9 = vld [vmem:[#allocation5 + $0x964] ss:$16 sps:$4 sm:$0xff]  }
 0x196   :  { %3480 = vmatpush1.bf16.msra.mxu0 %v6603_v10  ;;  %3808 = vmatpush1.bf16.msra.mxu1 %v6606_v11  ;;  %v6699_v10 = vld [vmem:[#allocation5 + $0x96c] ss:$16 sps:$4 sm:$0xff]   ;;  %v6694_v11 = vld [vmem:[#allocation5 + $0x960] ss:$16 sps:$4 sm:$0xff]  }
 0x197   :  { %3481 = vmatprep.subr.bf16.mxu0 %v6611_v13  ;;  %3809 = vmatprep.subr.bf16.mxu1 %v6614_v14  ;;  %v6697_v13 = vld [vmem:[#allocation5 + $0x968] ss:$16 sps:$4 sm:$0xff]   ;;  %v6702_v14 = vld [vmem:[#allocation5 + $0x984] ss:$16 sps:$4 sm:$0xff]  }
 0x19a   :  { %3482 = vmatpush1.bf16.msra.mxu0 %v6609_v15  ;;  %3810 = vmatpush1.bf16.msra.mxu1 %v6612_v16  ;;  %v6705_v15 = vld [vmem:[#allocation5 + $0x98c] ss:$16 sps:$4 sm:$0xff]   ;;  %v6700_v16 = vld [vmem:[#allocation5 + $0x980] ss:$16 sps:$4 sm:$0xff]  }
 0x19b   :  { %3483 = vmatprep.subr.bf16.mxu0 %v6617_v17  ;;  %3811 = vmatprep.subr.bf16.mxu1 %v6620_v18  ;;  %v6703_v17 = vld [vmem:[#allocation5 + $0x988] ss:$16 sps:$4 sm:$0xff]   ;;  %v6708_v18 = vld [vmem:[#allocation5 + $0x9a4] ss:$16 sps:$4 sm:$0xff]  }
 0x19e   :  { %3484 = vmatpush1.bf16.msra.mxu0 %v6615_v20  ;;  %3812 = vmatpush1.bf16.msra.mxu1 %v6618_v21  ;;  %v6711_v20 = vld [vmem:[#allocation5 + $0x9ac] ss:$16 sps:$4 sm:$0xff]   ;;  %v6706_v21 = vld [vmem:[#allocation5 + $0x9a0] ss:$16 sps:$4 sm:$0xff]  }
 0x19f   :  { %3485 = vmatprep.subr.bf16.mxu0 %v6623_v23  ;;  %3813 = vmatprep.subr.bf16.mxu1 %v6626_v24  ;;  %v6709_v23 = vld [vmem:[#allocation5 + $0x9a8] ss:$16 sps:$4 sm:$0xff]   ;;  %v6714_v24 = vld [vmem:[#allocation5 + $0x9c4] ss:$16 sps:$4 sm:$0xff]  }
 0x1a2   :  { %3486 = vmatpush1.bf16.msra.mxu0 %v6621_v26  ;;  %3814 = vmatpush1.bf16.msra.mxu1 %v6624_v28  ;;  %v6717_v26 = vld [vmem:[#allocation5 + $0x9cc] ss:$16 sps:$4 sm:$0xff]   ;;  %v6712_v28 = vld [vmem:[#allocation5 + $0x9c0] ss:$16 sps:$4 sm:$0xff]  }
 0x1a3   :  { %3496 = vmatprep.subr.bf16.mxu0 %v6630_v29  ;;  %3824 = vmatprep.subr.bf16.mxu1 %v6633_v19  ;;  %v6715_v29 = vld [vmem:[#allocation5 + $0x9c8] ss:$16 sps:$4 sm:$0xff]   ;;  %v6720_v19 = vld [vmem:[#allocation5 + $0x9e4] ss:$16 sps:$4 sm:$0xff]  }
 0x1a5   :  { %3488 = vmatmul.mubr.bf16.vlgmr.msra.gmra.mrb[0].mxu0 %v7668_v25  ;;  %3816 = vmatmul.mubr.bf16.vlgmr.msra.gmra.mrb[0].mxu1 %v7668_v25  ;;  %v6646_v25 = vld [vmem:[#allocation5 + $0x860] ss:$16 sps:$4 sm:$0xff]  }
 0x1a6   :  { %3497 = vmatpush1.bf16.msra.mxu0 %v6628_v30  ;;  %3825 = vmatpush1.bf16.msra.mxu1 %v6631_v31  ;;  %v6723_v30 = vld [vmem:[#allocation5 + $0x9ec] ss:$16 sps:$4 sm:$0xff]   ;;  %v722_v31 = vcombine.high %v7674_v27, %v7674_v27 }
 0x1a7   :  { %3498 = vmatprep.subr.bf16.mxu0 %v6636_v32  ;;  %3826 = vmatprep.subr.bf16.mxu1 %v6639_v33  ;;  %v6718_v32 = vld [vmem:[#allocation5 + $0x9e0] ss:$16 sps:$4 sm:$0xff]   ;;  %v6721_v33 = vld [vmem:[#allocation5 + $0x9e8] ss:$16 sps:$4 sm:$0xff]  }
 0x1a8   :  { %3528 = vmatprep.mubr.bf16.mxu0 %v737_v34  ;;  %3856 = vmatprep.mubr.bf16.mxu1 %v737_v34  ;;  %v6726_v34 = vld [vmem:[#allocation5 + $0xa04] ss:$16 sps:$4 sm:$0xff]  }
 0x1aa   :  { %3499 = vmatpush1.bf16.msra.mxu0 %v6634_v35  ;;  %3827 = vmatpush1.bf16.msra.mxu1 %v6637_v36  ;;  %v6729_v35 = vld [vmem:[#allocation5 + $0xa0c] ss:$16 sps:$4 sm:$0xff]   ;;  %v7687_v36 = vrot.slane %v722_v31, %v7647_v49 }
 0x1ab   :  { %3500 = vmatprep.subr.bf16.mxu0 %v6642_v22  ;;  %3828 = vmatprep.subr.bf16.mxu1 %v6645_v37  ;;  %v6724_v22 = vld [vmem:[#allocation5 + $0xa00] ss:$16 sps:$4 sm:$0xff]   ;;  %v6727_v37 = vld [vmem:[#allocation5 + $0xa08] ss:$16 sps:$4 sm:$0xff]   ;;  %v6813_v31 = vld [vmem:[#allocation5 + $0xbcc] ss:$16 sps:$4 sm:$0xff]  }
 0x1ac   :  { %v738_v27 = vcombine.high %v7687_v36, %v7687_v36 }
 0x1ae   :  { %3501 = vmatpush1.bf16.msra.mxu0 %v6640_v38  ;;  %3829 = vmatpush1.bf16.msra.mxu1 %v6643_v39  ;;  %v6732_v38 = vld [vmem:[#allocation5 + $0xa24] ss:$16 sps:$4 sm:$0xff]   ;;  %v6735_v39 = vld [vmem:[#allocation5 + $0xa2c] ss:$16 sps:$4 sm:$0xff]  }
 0x1af   :  { %3502 = vmatprep.subr.bf16.mxu0 %v6648_v40  ;;  %3830 = vmatprep.subr.bf16.mxu1 %v6651_v41  ;;  %v6730_v40 = vld [vmem:[#allocation5 + $0xa20] ss:$16 sps:$4 sm:$0xff]   ;;  %v6733_v41 = vld [vmem:[#allocation5 + $0xa28] ss:$16 sps:$4 sm:$0xff]  }
 0x1b2   :  { %3503 = vmatpush1.bf16.msra.mxu0 %v6646_v25  ;;  %3831 = vmatpush1.bf16.msra.mxu1 %v6649_v43  ;;  %v6738_v25 = vld [vmem:[#allocation5 + $0xa44] ss:$16 sps:$4 sm:$0xff]   ;;  %v6741_v43 = vld [vmem:[#allocation5 + $0xa4c] ss:$16 sps:$4 sm:$0xff]  }
 0x1b3   :  { %3504 = vmatprep.subr.bf16.mxu0 %v6654_v44  ;;  %3832 = vmatprep.subr.bf16.mxu1 %v6657_v45  ;;  %v6736_v44 = vld [vmem:[#allocation5 + $0xa40] ss:$16 sps:$4 sm:$0xff]   ;;  %v6739_v45 = vld [vmem:[#allocation5 + $0xa48] ss:$16 sps:$4 sm:$0xff]  }
 0x1b6   :  { %3505 = vmatpush1.bf16.msra.mxu0 %v6652_v46  ;;  %3833 = vmatpush1.bf16.msra.mxu1 %v6655_v47  ;;  %v6744_v46 = vld [vmem:[#allocation5 + $0xa64] ss:$16 sps:$4 sm:$0xff]   ;;  %v6747_v47 = vld [vmem:[#allocation5 + $0xa6c] ss:$16 sps:$4 sm:$0xff]  }
 0x1b7   :  { %3506 = vmatprep.subr.bf16.mxu0 %v6660_v48  ;;  %3834 = vmatprep.subr.bf16.mxu1 %v6663_v50  ;;  %v6745_v48 = vld [vmem:[#allocation5 + $0xa68] ss:$16 sps:$4 sm:$0xff]   ;;  %v6750_v50 = vld [vmem:[#allocation5 + $0xa84] ss:$16 sps:$4 sm:$0xff]  }
 0x1ba   :  { %3507 = vmatpush1.bf16.msra.mxu0 %v6658_v51  ;;  %3835 = vmatpush1.bf16.msra.mxu1 %v6661_v52  ;;  %v6753_v51 = vld [vmem:[#allocation5 + $0xa8c] ss:$16 sps:$4 sm:$0xff]   ;;  %v6748_v52 = vld [vmem:[#allocation5 + $0xa80] ss:$16 sps:$4 sm:$0xff]  }
 0x1bb   :  { %3508 = vmatprep.subr.bf16.mxu0 %v6666_v53  ;;  %3836 = vmatprep.subr.bf16.mxu1 %v6669_v54  ;;  %v6751_v53 = vld [vmem:[#allocation5 + $0xa88] ss:$16 sps:$4 sm:$0xff]   ;;  %v6756_v54 = vld [vmem:[#allocation5 + $0xaa4] ss:$16 sps:$4 sm:$0xff]  }
 0x1be   :  { %3509 = vmatpush1.bf16.msra.mxu0 %v6664_v55  ;;  %3837 = vmatpush1.bf16.msra.mxu1 %v6667_v56  ;;  %v6759_v55 = vld [vmem:[#allocation5 + $0xaac] ss:$16 sps:$4 sm:$0xff]   ;;  %v6754_v56 = vld [vmem:[#allocation5 + $0xaa0] ss:$16 sps:$4 sm:$0xff]  }
 0x1bf   :  { %3510 = vmatprep.subr.bf16.mxu0 %v6672_v57  ;;  %3838 = vmatprep.subr.bf16.mxu1 %v6675_v58  ;;  %v6757_v57 = vld [vmem:[#allocation5 + $0xaa8] ss:$16 sps:$4 sm:$0xff]   ;;  %v6762_v58 = vld [vmem:[#allocation5 + $0xac4] ss:$16 sps:$4 sm:$0xff]  }
 0x1c2   :  { %3511 = vmatpush1.bf16.msra.mxu0 %v6670_v59  ;;  %3839 = vmatpush1.bf16.msra.mxu1 %v6673_v60  ;;  %v6765_v59 = vld [vmem:[#allocation5 + $0xacc] ss:$16 sps:$4 sm:$0xff]   ;;  %v6760_v60 = vld [vmem:[#allocation5 + $0xac0] ss:$16 sps:$4 sm:$0xff]  }
 0x1c3   :  { %3512 = vmatprep.subr.bf16.mxu0 %v6678_v61  ;;  %3840 = vmatprep.subr.bf16.mxu1 %v6681_v62  ;;  %v6763_v61 = vld [vmem:[#allocation5 + $0xac8] ss:$16 sps:$4 sm:$0xff]   ;;  %v6768_v62 = vld [vmem:[#allocation5 + $0xae4] ss:$16 sps:$4 sm:$0xff]  }
 0x1c6   :  { %3513 = vmatpush1.bf16.msra.mxu0 %v6676_v63  ;;  %3841 = vmatpush1.bf16.msra.mxu1 %v6679_v0  ;;  %v6771_v63 = vld [vmem:[#allocation5 + $0xaec] ss:$16 sps:$4 sm:$0xff]   ;;  %v6766_v0 = vld [vmem:[#allocation5 + $0xae0] ss:$16 sps:$4 sm:$0xff]  }
 0x1c7   :  { %3514 = vmatprep.subr.bf16.mxu0 %v6684_v1  ;;  %3842 = vmatprep.subr.bf16.mxu1 %v6687_v2  ;;  %v6769_v1 = vld [vmem:[#allocation5 + $0xae8] ss:$16 sps:$4 sm:$0xff]   ;;  %v6774_v2 = vld [vmem:[#allocation5 + $0xb04] ss:$16 sps:$4 sm:$0xff]  }
 0x1ca   :  { %3515 = vmatpush1.bf16.msra.mxu0 %v6682_v3  ;;  %3843 = vmatpush1.bf16.msra.mxu1 %v6685_v4  ;;  %v6777_v3 = vld [vmem:[#allocation5 + $0xb0c] ss:$16 sps:$4 sm:$0xff]   ;;  %v6772_v4 = vld [vmem:[#allocation5 + $0xb00] ss:$16 sps:$4 sm:$0xff]  }
 0x1cb   :  { %3516 = vmatprep.subr.bf16.mxu0 %v6690_v5  ;;  %3844 = vmatprep.subr.bf16.mxu1 %v6693_v6  ;;  %v6775_v5 = vld [vmem:[#allocation5 + $0xb08] ss:$16 sps:$4 sm:$0xff]   ;;  %v6780_v6 = vld [vmem:[#allocation5 + $0xb24] ss:$16 sps:$4 sm:$0xff]  }
 0x1ce   :  { %3517 = vmatpush1.bf16.msra.mxu0 %v6688_v7  ;;  %3845 = vmatpush1.bf16.msra.mxu1 %v6691_v8  ;;  %v6783_v7 = vld [vmem:[#allocation5 + $0xb2c] ss:$16 sps:$4 sm:$0xff]   ;;  %v6778_v8 = vld [vmem:[#allocation5 + $0xb20] ss:$16 sps:$4 sm:$0xff]  }
 0x1cf   :  { %3518 = vmatprep.subr.bf16.mxu0 %v6696_v9  ;;  %3846 = vmatprep.subr.bf16.mxu1 %v6699_v10  ;;  %v6781_v9 = vld [vmem:[#allocation5 + $0xb28] ss:$16 sps:$4 sm:$0xff]   ;;  %v6786_v10 = vld [vmem:[#allocation5 + $0xb44] ss:$16 sps:$4 sm:$0xff]  }
 0x1d2   :  { %3519 = vmatpush1.bf16.msra.mxu0 %v6694_v11  ;;  %3847 = vmatpush1.bf16.msra.mxu1 %v6697_v13  ;;  %v6789_v11 = vld [vmem:[#allocation5 + $0xb4c] ss:$16 sps:$4 sm:$0xff]   ;;  %v6784_v13 = vld [vmem:[#allocation5 + $0xb40] ss:$16 sps:$4 sm:$0xff]  }
 0x1d3   :  { %3520 = vmatprep.subr.bf16.mxu0 %v6702_v14  ;;  %3848 = vmatprep.subr.bf16.mxu1 %v6705_v15  ;;  %v6787_v14 = vld [vmem:[#allocation5 + $0xb48] ss:$16 sps:$4 sm:$0xff]   ;;  %v6792_v15 = vld [vmem:[#allocation5 + $0xb64] ss:$16 sps:$4 sm:$0xff]  }
 0x1d6   :  { %3521 = vmatpush1.bf16.msra.mxu0 %v6700_v16  ;;  %3849 = vmatpush1.bf16.msra.mxu1 %v6703_v17  ;;  %v6795_v16 = vld [vmem:[#allocation5 + $0xb6c] ss:$16 sps:$4 sm:$0xff]   ;;  %v6790_v17 = vld [vmem:[#allocation5 + $0xb60] ss:$16 sps:$4 sm:$0xff]  }
 0x1d7   :  { %3522 = vmatprep.subr.bf16.mxu0 %v6708_v18  ;;  %3850 = vmatprep.subr.bf16.mxu1 %v6711_v20  ;;  %v6793_v18 = vld [vmem:[#allocation5 + $0xb68] ss:$16 sps:$4 sm:$0xff]   ;;  %v6798_v20 = vld [vmem:[#allocation5 + $0xb84] ss:$16 sps:$4 sm:$0xff]  }
 0x1da   :  { %3523 = vmatpush1.bf16.msra.mxu0 %v6706_v21  ;;  %3851 = vmatpush1.bf16.msra.mxu1 %v6709_v23  ;;  %v6801_v21 = vld [vmem:[#allocation5 + $0xb8c] ss:$16 sps:$4 sm:$0xff]   ;;  %v6796_v23 = vld [vmem:[#allocation5 + $0xb80] ss:$16 sps:$4 sm:$0xff]  }
 0x1db   :  { %3524 = vmatprep.subr.bf16.mxu0 %v6714_v24  ;;  %3852 = vmatprep.subr.bf16.mxu1 %v6717_v26  ;;  %v6799_v24 = vld [vmem:[#allocation5 + $0xb88] ss:$16 sps:$4 sm:$0xff]   ;;  %v6804_v26 = vld [vmem:[#allocation5 + $0xba4] ss:$16 sps:$4 sm:$0xff]  }
 0x1de   :  { %3525 = vmatpush1.bf16.msra.mxu0 %v6712_v28  ;;  %3853 = vmatpush1.bf16.msra.mxu1 %v6715_v29  ;;  %v6807_v28 = vld [vmem:[#allocation5 + $0xbac] ss:$16 sps:$4 sm:$0xff]   ;;  %v6802_v29 = vld [vmem:[#allocation5 + $0xba0] ss:$16 sps:$4 sm:$0xff]  }
 0x1df   :  { %3526 = vmatprep.subr.bf16.mxu0 %v6720_v19  ;;  %3854 = vmatprep.subr.bf16.mxu1 %v6723_v30  ;;  %v6805_v19 = vld [vmem:[#allocation5 + $0xba8] ss:$16 sps:$4 sm:$0xff]   ;;  %v6810_v30 = vld [vmem:[#allocation5 + $0xbc4] ss:$16 sps:$4 sm:$0xff]  }
 0x1e2   :  { %3527 = vmatpush1.bf16.msra.mxu0 %v6718_v32  ;;  %3855 = vmatpush1.bf16.msra.mxu1 %v6721_v33  ;;  %v6808_v32 = vld [vmem:[#allocation5 + $0xbc0] ss:$16 sps:$4 sm:$0xff]   ;;  %v6811_v33 = vld [vmem:[#allocation5 + $0xbc8] ss:$16 sps:$4 sm:$0xff]  }
 0x1e3   :  { %3537 = vmatprep.subr.bf16.mxu0 %v6726_v34  ;;  %3865 = vmatprep.subr.bf16.mxu1 %v6729_v35  ;;  %v6816_v34 = vld [vmem:[#allocation5 + $0xbe4] ss:$16 sps:$4 sm:$0xff]   ;;  %v6819_v35 = vld [vmem:[#allocation5 + $0xbec] ss:$16 sps:$4 sm:$0xff]  }
 0x1e5   :  { %3529 = vmatmul.mubr.bf16.vlgmr.msra.gmra.mrb[0].mxu0 %v7678_v12  ;;  %3857 = vmatmul.mubr.bf16.vlgmr.msra.gmra.mrb[0].mxu1 %v7678_v12  ;;  %v6742_v12 = vld [vmem:[#allocation5 + $0xa60] ss:$16 sps:$4 sm:$0xff]  }
 0x1e6   :  { %3538 = vmatpush1.bf16.msra.mxu0 %v6724_v22  ;;  %3866 = vmatpush1.bf16.msra.mxu1 %v6727_v37  ;;  %v7693_v22 = vld [vmem:[#allocation2 + $0x18] sm:$0xff]  ;;  %v6814_v37 = vld [vmem:[#allocation5 + $0xbe0] ss:$16 sps:$4 sm:$0xff]  }
 0x1e7   :  { %3539 = vmatprep.subr.bf16.mxu0 %v6732_v38  ;;  %3867 = vmatprep.subr.bf16.mxu1 %v6735_v39  ;;  %v6817_v38 = vld [vmem:[#allocation5 + $0xbe8] ss:$16 sps:$4 sm:$0xff]   ;;  %v6823_v39 = vld [vmem:[#allocation5 + $0xc04] ss:$16 sps:$4 sm:$0xff]  }
 0x1e8   :  { %3569 = vmatprep.mubr.bf16.mxu0 %v738_v27  ;;  %3897 = vmatprep.mubr.bf16.mxu1 %v738_v27  ;;  %v6826_v27 = vld [vmem:[#allocation5 + $0xc0c] ss:$16 sps:$4 sm:$0xff]  }
 0x1ea   :  { %3540 = vmatpush1.bf16.msra.mxu0 %v6730_v40  ;;  %3868 = vmatpush1.bf16.msra.mxu1 %v6733_v41  ;;  %v6821_v40 = vld [vmem:[#allocation5 + $0xc00] ss:$16 sps:$4 sm:$0xff]   ;;  %v6824_v41 = vld [vmem:[#allocation5 + $0xc08] ss:$16 sps:$4 sm:$0xff]  }
 0x1eb   :  { %3541 = vmatprep.subr.bf16.mxu0 %v6738_v25  ;;  %3869 = vmatprep.subr.bf16.mxu1 %v6741_v43  ;;  %v7697_v25 = vrot.slane %v7693_v22, %v7647_v49  ;;  %v6829_v43 = vld [vmem:[#allocation5 + $0xc24] ss:$16 sps:$4 sm:$0xff]  }
 0x1ee   :  { %3542 = vmatpush1.bf16.msra.mxu0 %v6736_v44  ;;  %3870 = vmatpush1.bf16.msra.mxu1 %v6739_v45  ;;  %v6832_v44 = vld [vmem:[#allocation5 + $0xc2c] ss:$16 sps:$4 sm:$0xff]   ;;  %v754_v45 = vcombine.high %v7697_v25, %v7697_v25 }
 0x1ef   :  { %3543 = vmatprep.subr.bf16.mxu0 %v6744_v46  ;;  %3871 = vmatprep.subr.bf16.mxu1 %v6747_v47  ;;  %v6827_v46 = vld [vmem:[#allocation5 + $0xc20] ss:$16 sps:$4 sm:$0xff]   ;;  %v6830_v47 = vld [vmem:[#allocation5 + $0xc28] ss:$16 sps:$4 sm:$0xff]  }
 0x1f2   :  { %3544 = vmatpush1.bf16.msra.mxu0 %v6742_v12  ;;  %3872 = vmatpush1.bf16.msra.mxu1 %v6745_v48  ;;  %v6835_v12 = vld [vmem:[#allocation5 + $0xc44] ss:$16 sps:$4 sm:$0xff]   ;;  %v6838_v48 = vld [vmem:[#allocation5 + $0xc4c] ss:$16 sps:$4 sm:$0xff]  }
 0x1f3   :  { %3545 = vmatprep.subr.bf16.mxu0 %v6750_v50  ;;  %3873 = vmatprep.subr.bf16.mxu1 %v6753_v51  ;;  %v6833_v50 = vld [vmem:[#allocation5 + $0xc40] ss:$16 sps:$4 sm:$0xff]   ;;  %v6836_v51 = vld [vmem:[#allocation5 + $0xc48] ss:$16 sps:$4 sm:$0xff]  }
 0x1f6   :  { %3546 = vmatpush1.bf16.msra.mxu0 %v6748_v52  ;;  %3874 = vmatpush1.bf16.msra.mxu1 %v6751_v53  ;;  %v6841_v52 = vld [vmem:[#allocation5 + $0xc64] ss:$16 sps:$4 sm:$0xff]   ;;  %v6844_v53 = vld [vmem:[#allocation5 + $0xc6c] ss:$16 sps:$4 sm:$0xff]  }
 0x1f7   :  { %3547 = vmatprep.subr.bf16.mxu0 %v6756_v54  ;;  %3875 = vmatprep.subr.bf16.mxu1 %v6759_v55  ;;  %v6839_v54 = vld [vmem:[#allocation5 + $0xc60] ss:$16 sps:$4 sm:$0xff]   ;;  %v6847_v55 = vld [vmem:[#allocation5 + $0xc84] ss:$16 sps:$4 sm:$0xff]  }
 0x1fa   :  { %3548 = vmatpush1.bf16.msra.mxu0 %v6754_v56  ;;  %3876 = vmatpush1.bf16.msra.mxu1 %v6757_v57  ;;  %v6850_v56 = vld [vmem:[#allocation5 + $0xc8c] ss:$16 sps:$4 sm:$0xff]   ;;  %v6845_v57 = vld [vmem:[#allocation5 + $0xc80] ss:$16 sps:$4 sm:$0xff]  }
 0x1fb   :  { %3549 = vmatprep.subr.bf16.mxu0 %v6762_v58  ;;  %3877 = vmatprep.subr.bf16.mxu1 %v6765_v59  ;;  %v6848_v58 = vld [vmem:[#allocation5 + $0xc88] ss:$16 sps:$4 sm:$0xff]   ;;  %v6853_v59 = vld [vmem:[#allocation5 + $0xca4] ss:$16 sps:$4 sm:$0xff]  }
 0x1fe   :  { %3550 = vmatpush1.bf16.msra.mxu0 %v6760_v60  ;;  %3878 = vmatpush1.bf16.msra.mxu1 %v6763_v61  ;;  %v6856_v60 = vld [vmem:[#allocation5 + $0xcac] ss:$16 sps:$4 sm:$0xff]   ;;  %v6851_v61 = vld [vmem:[#allocation5 + $0xca0] ss:$16 sps:$4 sm:$0xff]  }
 0x1ff   :  { %3551 = vmatprep.subr.bf16.mxu0 %v6768_v62  ;;  %3879 = vmatprep.subr.bf16.mxu1 %v6771_v63  ;;  %v6854_v62 = vld [vmem:[#allocation5 + $0xca8] ss:$16 sps:$4 sm:$0xff]   ;;  %v6859_v63 = vld [vmem:[#allocation5 + $0xcc4] ss:$16 sps:$4 sm:$0xff]  }
 0x202   :  { %3552 = vmatpush1.bf16.msra.mxu0 %v6766_v0  ;;  %3880 = vmatpush1.bf16.msra.mxu1 %v6769_v1  ;;  %v6862_v0 = vld [vmem:[#allocation5 + $0xccc] ss:$16 sps:$4 sm:$0xff]   ;;  %v6857_v1 = vld [vmem:[#allocation5 + $0xcc0] ss:$16 sps:$4 sm:$0xff]  }
 0x203   :  { %3553 = vmatprep.subr.bf16.mxu0 %v6774_v2  ;;  %3881 = vmatprep.subr.bf16.mxu1 %v6777_v3  ;;  %v6860_v2 = vld [vmem:[#allocation5 + $0xcc8] ss:$16 sps:$4 sm:$0xff]   ;;  %v6865_v3 = vld [vmem:[#allocation5 + $0xce4] ss:$16 sps:$4 sm:$0xff]  }
 0x206   :  { %3554 = vmatpush1.bf16.msra.mxu0 %v6772_v4  ;;  %3882 = vmatpush1.bf16.msra.mxu1 %v6775_v5  ;;  %v6868_v4 = vld [vmem:[#allocation5 + $0xcec] ss:$16 sps:$4 sm:$0xff]   ;;  %v6863_v5 = vld [vmem:[#allocation5 + $0xce0] ss:$16 sps:$4 sm:$0xff]  }
 0x207   :  { %3555 = vmatprep.subr.bf16.mxu0 %v6780_v6  ;;  %3883 = vmatprep.subr.bf16.mxu1 %v6783_v7  ;;  %v6866_v6 = vld [vmem:[#allocation5 + $0xce8] ss:$16 sps:$4 sm:$0xff]   ;;  %v6871_v7 = vld [vmem:[#allocation5 + $0xd04] ss:$16 sps:$4 sm:$0xff]  }
 0x20a   :  { %3556 = vmatpush1.bf16.msra.mxu0 %v6778_v8  ;;  %3884 = vmatpush1.bf16.msra.mxu1 %v6781_v9  ;;  %v6874_v8 = vld [vmem:[#allocation5 + $0xd0c] ss:$16 sps:$4 sm:$0xff]   ;;  %v6869_v9 = vld [vmem:[#allocation5 + $0xd00] ss:$16 sps:$4 sm:$0xff]  }
 0x20b   :  { %3557 = vmatprep.subr.bf16.mxu0 %v6786_v10  ;;  %3885 = vmatprep.subr.bf16.mxu1 %v6789_v11  ;;  %v6872_v10 = vld [vmem:[#allocation5 + $0xd08] ss:$16 sps:$4 sm:$0xff]   ;;  %v6877_v11 = vld [vmem:[#allocation5 + $0xd24] ss:$16 sps:$4 sm:$0xff]  }
 0x20e   :  { %3558 = vmatpush1.bf16.msra.mxu0 %v6784_v13  ;;  %3886 = vmatpush1.bf16.msra.mxu1 %v6787_v14  ;;  %v6880_v13 = vld [vmem:[#allocation5 + $0xd2c] ss:$16 sps:$4 sm:$0xff]   ;;  %v6875_v14 = vld [vmem:[#allocation5 + $0xd20] ss:$16 sps:$4 sm:$0xff]  }
 0x20f   :  { %3559 = vmatprep.subr.bf16.mxu0 %v6792_v15  ;;  %3887 = vmatprep.subr.bf16.mxu1 %v6795_v16  ;;  %v6878_v15 = vld [vmem:[#allocation5 + $0xd28] ss:$16 sps:$4 sm:$0xff]   ;;  %v6883_v16 = vld [vmem:[#allocation5 + $0xd44] ss:$16 sps:$4 sm:$0xff]  }
 0x212   :  { %3560 = vmatpush1.bf16.msra.mxu0 %v6790_v17  ;;  %3888 = vmatpush1.bf16.msra.mxu1 %v6793_v18  ;;  %v6886_v17 = vld [vmem:[#allocation5 + $0xd4c] ss:$16 sps:$4 sm:$0xff]   ;;  %v6881_v18 = vld [vmem:[#allocation5 + $0xd40] ss:$16 sps:$4 sm:$0xff]  }
 0x213   :  { %3561 = vmatprep.subr.bf16.mxu0 %v6798_v20  ;;  %3889 = vmatprep.subr.bf16.mxu1 %v6801_v21  ;;  %v6884_v20 = vld [vmem:[#allocation5 + $0xd48] ss:$16 sps:$4 sm:$0xff]   ;;  %v6889_v21 = vld [vmem:[#allocation5 + $0xd64] ss:$16 sps:$4 sm:$0xff]  }
 0x216   :  { %3562 = vmatpush1.bf16.msra.mxu0 %v6796_v23  ;;  %3890 = vmatpush1.bf16.msra.mxu1 %v6799_v24  ;;  %v6892_v23 = vld [vmem:[#allocation5 + $0xd6c] ss:$16 sps:$4 sm:$0xff]   ;;  %v6887_v24 = vld [vmem:[#allocation5 + $0xd60] ss:$16 sps:$4 sm:$0xff]  }
 0x217   :  { %3563 = vmatprep.subr.bf16.mxu0 %v6804_v26  ;;  %3891 = vmatprep.subr.bf16.mxu1 %v6807_v28  ;;  %v6890_v26 = vld [vmem:[#allocation5 + $0xd68] ss:$16 sps:$4 sm:$0xff]   ;;  %v6895_v28 = vld [vmem:[#allocation5 + $0xd84] ss:$16 sps:$4 sm:$0xff]  }
 0x21a   :  { %3564 = vmatpush1.bf16.msra.mxu0 %v6802_v29  ;;  %3892 = vmatpush1.bf16.msra.mxu1 %v6805_v19  ;;  %v6898_v29 = vld [vmem:[#allocation5 + $0xd8c] ss:$16 sps:$4 sm:$0xff]   ;;  %v6893_v19 = vld [vmem:[#allocation5 + $0xd80] ss:$16 sps:$4 sm:$0xff]  }
 0x21b   :  { %3565 = vmatprep.subr.bf16.mxu0 %v6810_v30  ;;  %3893 = vmatprep.subr.bf16.mxu1 %v6813_v31  ;;  %v6896_v30 = vld [vmem:[#allocation5 + $0xd88] ss:$16 sps:$4 sm:$0xff]   ;;  %v6901_v31 = vld [vmem:[#allocation5 + $0xda4] ss:$16 sps:$4 sm:$0xff]  }
 0x21e   :  { %3566 = vmatpush1.bf16.msra.mxu0 %v6808_v32  ;;  %3894 = vmatpush1.bf16.msra.mxu1 %v6811_v33  ;;  %v6904_v32 = vld [vmem:[#allocation5 + $0xdac] ss:$16 sps:$4 sm:$0xff]   ;;  %v6899_v33 = vld [vmem:[#allocation5 + $0xda0] ss:$16 sps:$4 sm:$0xff]  }
 0x21f   :  { %3567 = vmatprep.subr.bf16.mxu0 %v6816_v34  ;;  %3895 = vmatprep.subr.bf16.mxu1 %v6819_v35  ;;  %v6902_v34 = vld [vmem:[#allocation5 + $0xda8] ss:$16 sps:$4 sm:$0xff]   ;;  %v6907_v35 = vld [vmem:[#allocation5 + $0xdc4] ss:$16 sps:$4 sm:$0xff]  }
 0x222   :  { %3568 = vmatpush1.bf16.msra.mxu0 %v6814_v37  ;;  %3896 = vmatpush1.bf16.msra.mxu1 %v6817_v38  ;;  %v6910_v37 = vld [vmem:[#allocation5 + $0xdcc] ss:$16 sps:$4 sm:$0xff]   ;;  %v6905_v38 = vld [vmem:[#allocation5 + $0xdc0] ss:$16 sps:$4 sm:$0xff]  }
 0x223   :  { %3578 = vmatprep.subr.bf16.mxu0 %v6823_v39  ;;  %3906 = vmatprep.subr.bf16.mxu1 %v6826_v27  ;;  %v6908_v39 = vld [vmem:[#allocation5 + $0xdc8] ss:$16 sps:$4 sm:$0xff]   ;;  %v6913_v27 = vld [vmem:[#allocation5 + $0xde4] ss:$16 sps:$4 sm:$0xff]  }
 0x225   :  { %3570 = vmatmul.mubr.bf16.vlgmr.msra.gmra.mrb[0].mxu0 %v7687_v36  ;;  %3898 = vmatmul.mubr.bf16.vlgmr.msra.gmra.mrb[0].mxu1 %v7687_v36  ;;  %v6842_v36 = vld [vmem:[#allocation5 + $0xc68] ss:$16 sps:$4 sm:$0xff]  }
 0x226   :  { %3579 = vmatpush1.bf16.msra.mxu0 %v6821_v40  ;;  %3907 = vmatpush1.bf16.msra.mxu1 %v6824_v41  ;;  %v6916_v40 = vld [vmem:[#allocation5 + $0xdec] ss:$16 sps:$4 sm:$0xff]   ;;  %v739_v41 = vcombine.high %v7693_v22, %v7693_v22 }
 0x227   :  { %3580 = vmatprep.subr.bf16.mxu0 %v6829_v43  ;;  %3908 = vmatprep.subr.bf16.mxu1 %v6832_v44  ;;  %v6911_v43 = vld [vmem:[#allocation5 + $0xde0] ss:$16 sps:$4 sm:$0xff]   ;;  %v6914_v44 = vld [vmem:[#allocation5 + $0xde8] ss:$16 sps:$4 sm:$0xff]  }
 0x228   :  { %3610 = vmatprep.mubr.bf16.mxu0 %v754_v45  ;;  %3938 = vmatprep.mubr.bf16.mxu1 %v754_v45  ;;  %v6919_v45 = vld [vmem:[#allocation5 + $0xe04] ss:$16 sps:$4 sm:$0xff]  }
 0x22a   :  { %3581 = vmatpush1.bf16.msra.mxu0 %v6827_v46  ;;  %3909 = vmatpush1.bf16.msra.mxu1 %v6830_v47  ;;  %v6922_v46 = vld [vmem:[#allocation5 + $0xe0c] ss:$16 sps:$4 sm:$0xff]   ;;  %v7706_v47 = vrot.slane %v739_v41, %v7647_v49  ;;  %v6926_v49 = vld [vmem:[#allocation5 + $0xe28] ss:$16 sps:$4 sm:$0xff]   ;;  %v7001_v41 = vld [vmem:[#allocation5 + $0xfc0] ss:$16 sps:$4 sm:$0xff]  }
 0x22b   :  { %3582 = vmatprep.subr.bf16.mxu0 %v6835_v12  ;;  %3910 = vmatprep.subr.bf16.mxu1 %v6838_v48  ;;  %v6917_v12 = vld [vmem:[#allocation5 + $0xe00] ss:$16 sps:$4 sm:$0xff]   ;;  %v6920_v48 = vld [vmem:[#allocation5 + $0xe08] ss:$16 sps:$4 sm:$0xff]  }
 0x22c   :  { %v755_v22 = vcombine.high %v7706_v47, %v7706_v47 }
 0x22e   :  { %3583 = vmatpush1.bf16.msra.mxu0 %v6833_v50  ;;  %3911 = vmatpush1.bf16.msra.mxu1 %v6836_v51  ;;  %v6925_v50 = vld [vmem:[#allocation5 + $0xe24] ss:$16 sps:$4 sm:$0xff]   ;;  %v6928_v51 = vld [vmem:[#allocation5 + $0xe2c] ss:$16 sps:$4 sm:$0xff]  }
 0x22f   :  { %3584 = vmatprep.subr.bf16.mxu0 %v6841_v52  ;;  %3912 = vmatprep.subr.bf16.mxu1 %v6844_v53  ;;  %v6923_v52 = vld [vmem:[#allocation5 + $0xe20] ss:$16 sps:$4 sm:$0xff]   ;;  %v6931_v53 = vld [vmem:[#allocation5 + $0xe44] ss:$16 sps:$4 sm:$0xff]  }
 0x232   :  { %3585 = vmatpush1.bf16.msra.mxu0 %v6839_v54  ;;  %3913 = vmatpush1.bf16.msra.mxu1 %v6842_v36  ;;  %v6934_v54 = vld [vmem:[#allocation5 + $0xe4c] ss:$16 sps:$4 sm:$0xff]   ;;  %v6929_v36 = vld [vmem:[#allocation5 + $0xe40] ss:$16 sps:$4 sm:$0xff]  }
 0x233   :  { %3586 = vmatprep.subr.bf16.mxu0 %v6847_v55  ;;  %3914 = vmatprep.subr.bf16.mxu1 %v6850_v56  ;;  %v6932_v55 = vld [vmem:[#allocation5 + $0xe48] ss:$16 sps:$4 sm:$0xff]   ;;  %v6937_v56 = vld [vmem:[#allocation5 + $0xe64] ss:$16 sps:$4 sm:$0xff]  }
 0x236   :  { %3587 = vmatpush1.bf16.msra.mxu0 %v6845_v57  ;;  %3915 = vmatpush1.bf16.msra.mxu1 %v6848_v58  ;;  %v6940_v57 = vld [vmem:[#allocation5 + $0xe6c] ss:$16 sps:$4 sm:$0xff]   ;;  %v6938_v58 = vld [vmem:[#allocation5 + $0xe68] ss:$16 sps:$4 sm:$0xff]  }
 0x237   :  { %3588 = vmatprep.subr.bf16.mxu0 %v6853_v59  ;;  %3916 = vmatprep.subr.bf16.mxu1 %v6856_v60  ;;  %v6943_v59 = vld [vmem:[#allocation5 + $0xe84] ss:$16 sps:$4 sm:$0xff]   ;;  %v6946_v60 = vld [vmem:[#allocation5 + $0xe8c] ss:$16 sps:$4 sm:$0xff]  }
 0x23a   :  { %3589 = vmatpush1.bf16.msra.mxu0 %v6851_v61  ;;  %3917 = vmatpush1.bf16.msra.mxu1 %v6854_v62  ;;  %v6941_v61 = vld [vmem:[#allocation5 + $0xe80] ss:$16 sps:$4 sm:$0xff]   ;;  %v6944_v62 = vld [vmem:[#allocation5 + $0xe88] ss:$16 sps:$4 sm:$0xff]  }
 0x23b   :  { %3590 = vmatprep.subr.bf16.mxu0 %v6859_v63  ;;  %3918 = vmatprep.subr.bf16.mxu1 %v6862_v0  ;;  %v6949_v63 = vld [vmem:[#allocation5 + $0xea4] ss:$16 sps:$4 sm:$0xff]   ;;  %v6952_v0 = vld [vmem:[#allocation5 + $0xeac] ss:$16 sps:$4 sm:$0xff]  }
 0x23e   :  { %3591 = vmatpush1.bf16.msra.mxu0 %v6857_v1  ;;  %3919 = vmatpush1.bf16.msra.mxu1 %v6860_v2  ;;  %v6947_v1 = vld [vmem:[#allocation5 + $0xea0] ss:$16 sps:$4 sm:$0xff]   ;;  %v6950_v2 = vld [vmem:[#allocation5 + $0xea8] ss:$16 sps:$4 sm:$0xff]  }
 0x23f   :  { %3592 = vmatprep.subr.bf16.mxu0 %v6865_v3  ;;  %3920 = vmatprep.subr.bf16.mxu1 %v6868_v4  ;;  %v6955_v3 = vld [vmem:[#allocation5 + $0xec4] ss:$16 sps:$4 sm:$0xff]   ;;  %v6958_v4 = vld [vmem:[#allocation5 + $0xecc] ss:$16 sps:$4 sm:$0xff]  }
 0x242   :  { %3593 = vmatpush1.bf16.msra.mxu0 %v6863_v5  ;;  %3921 = vmatpush1.bf16.msra.mxu1 %v6866_v6  ;;  %v6953_v5 = vld [vmem:[#allocation5 + $0xec0] ss:$16 sps:$4 sm:$0xff]   ;;  %v6956_v6 = vld [vmem:[#allocation5 + $0xec8] ss:$16 sps:$4 sm:$0xff]  }
 0x243   :  { %3594 = vmatprep.subr.bf16.mxu0 %v6871_v7  ;;  %3922 = vmatprep.subr.bf16.mxu1 %v6874_v8  ;;  %v6961_v7 = vld [vmem:[#allocation5 + $0xee4] ss:$16 sps:$4 sm:$0xff]   ;;  %v6964_v8 = vld [vmem:[#allocation5 + $0xeec] ss:$16 sps:$4 sm:$0xff]  }
 0x246   :  { %3595 = vmatpush1.bf16.msra.mxu0 %v6869_v9  ;;  %3923 = vmatpush1.bf16.msra.mxu1 %v6872_v10  ;;  %v6959_v9 = vld [vmem:[#allocation5 + $0xee0] ss:$16 sps:$4 sm:$0xff]   ;;  %v6962_v10 = vld [vmem:[#allocation5 + $0xee8] ss:$16 sps:$4 sm:$0xff]  }
 0x247   :  { %3596 = vmatprep.subr.bf16.mxu0 %v6877_v11  ;;  %3924 = vmatprep.subr.bf16.mxu1 %v6880_v13  ;;  %v6967_v11 = vld [vmem:[#allocation5 + $0xf04] ss:$16 sps:$4 sm:$0xff]   ;;  %v6970_v13 = vld [vmem:[#allocation5 + $0xf0c] ss:$16 sps:$4 sm:$0xff]  }
 0x24a   :  { %3597 = vmatpush1.bf16.msra.mxu0 %v6875_v14  ;;  %3925 = vmatpush1.bf16.msra.mxu1 %v6878_v15  ;;  %v6965_v14 = vld [vmem:[#allocation5 + $0xf00] ss:$16 sps:$4 sm:$0xff]   ;;  %v6968_v15 = vld [vmem:[#allocation5 + $0xf08] ss:$16 sps:$4 sm:$0xff]  }
 0x24b   :  { %3598 = vmatprep.subr.bf16.mxu0 %v6883_v16  ;;  %3926 = vmatprep.subr.bf16.mxu1 %v6886_v17  ;;  %v6973_v16 = vld [vmem:[#allocation5 + $0xf24] ss:$16 sps:$4 sm:$0xff]   ;;  %v6976_v17 = vld [vmem:[#allocation5 + $0xf2c] ss:$16 sps:$4 sm:$0xff]  }
 0x24e   :  { %3599 = vmatpush1.bf16.msra.mxu0 %v6881_v18  ;;  %3927 = vmatpush1.bf16.msra.mxu1 %v6884_v20  ;;  %v6971_v18 = vld [vmem:[#allocation5 + $0xf20] ss:$16 sps:$4 sm:$0xff]   ;;  %v6974_v20 = vld [vmem:[#allocation5 + $0xf28] ss:$16 sps:$4 sm:$0xff]  }
 0x24f   :  { %3600 = vmatprep.subr.bf16.mxu0 %v6889_v21  ;;  %3928 = vmatprep.subr.bf16.mxu1 %v6892_v23  ;;  %v6979_v21 = vld [vmem:[#allocation5 + $0xf44] ss:$16 sps:$4 sm:$0xff]   ;;  %v6982_v23 = vld [vmem:[#allocation5 + $0xf4c] ss:$16 sps:$4 sm:$0xff]  }
 0x252   :  { %3601 = vmatpush1.bf16.msra.mxu0 %v6887_v24  ;;  %3929 = vmatpush1.bf16.msra.mxu1 %v6890_v26  ;;  %v6977_v24 = vld [vmem:[#allocation5 + $0xf40] ss:$16 sps:$4 sm:$0xff]   ;;  %v6980_v26 = vld [vmem:[#allocation5 + $0xf48] ss:$16 sps:$4 sm:$0xff]  }
 0x253   :  { %3602 = vmatprep.subr.bf16.mxu0 %v6895_v28  ;;  %3930 = vmatprep.subr.bf16.mxu1 %v6898_v29  ;;  %v6985_v28 = vld [vmem:[#allocation5 + $0xf64] ss:$16 sps:$4 sm:$0xff]   ;;  %v6988_v29 = vld [vmem:[#allocation5 + $0xf6c] ss:$16 sps:$4 sm:$0xff]  }
 0x256   :  { %3603 = vmatpush1.bf16.msra.mxu0 %v6893_v19  ;;  %3931 = vmatpush1.bf16.msra.mxu1 %v6896_v30  ;;  %v6983_v19 = vld [vmem:[#allocation5 + $0xf60] ss:$16 sps:$4 sm:$0xff]   ;;  %v6986_v30 = vld [vmem:[#allocation5 + $0xf68] ss:$16 sps:$4 sm:$0xff]  }
 0x257   :  { %3604 = vmatprep.subr.bf16.mxu0 %v6901_v31  ;;  %3932 = vmatprep.subr.bf16.mxu1 %v6904_v32  ;;  %v6991_v31 = vld [vmem:[#allocation5 + $0xf84] ss:$16 sps:$4 sm:$0xff]   ;;  %v6994_v32 = vld [vmem:[#allocation5 + $0xf8c] ss:$16 sps:$4 sm:$0xff]  }
 0x25a   :  { %3605 = vmatpush1.bf16.msra.mxu0 %v6899_v33  ;;  %3933 = vmatpush1.bf16.msra.mxu1 %v6902_v34  ;;  %v6989_v33 = vld [vmem:[#allocation5 + $0xf80] ss:$16 sps:$4 sm:$0xff]   ;;  %v6992_v34 = vld [vmem:[#allocation5 + $0xf88] ss:$16 sps:$4 sm:$0xff]  }
 0x25b   :  { %3606 = vmatprep.subr.bf16.mxu0 %v6907_v35  ;;  %3934 = vmatprep.subr.bf16.mxu1 %v6910_v37  ;;  %v6997_v35 = vld [vmem:[#allocation5 + $0xfa4] ss:$16 sps:$4 sm:$0xff]   ;;  %v7000_v37 = vld [vmem:[#allocation5 + $0xfac] ss:$16 sps:$4 sm:$0xff]  }
 0x25e   :  { %3607 = vmatpush1.bf16.msra.mxu0 %v6905_v38  ;;  %3935 = vmatpush1.bf16.msra.mxu1 %v6908_v39  ;;  %v6995_v38 = vld [vmem:[#allocation5 + $0xfa0] ss:$16 sps:$4 sm:$0xff]   ;;  %v6998_v39 = vld [vmem:[#allocation5 + $0xfa8] ss:$16 sps:$4 sm:$0xff]  }
 0x25f   :  { %3608 = vmatprep.subr.bf16.mxu0 %v6913_v27  ;;  %3936 = vmatprep.subr.bf16.mxu1 %v6916_v40  ;;  %v7003_v27 = vld [vmem:[#allocation5 + $0xfc4] ss:$16 sps:$4 sm:$0xff]   ;;  %v7006_v40 = vld [vmem:[#allocation5 + $0xfcc] ss:$16 sps:$4 sm:$0xff]  }
 0x262   :  { %3609 = vmatpush1.bf16.msra.mxu0 %v6911_v43  ;;  %3937 = vmatpush1.bf16.msra.mxu1 %v6914_v44  ;;  %v7004_v43 = vld [vmem:[#allocation5 + $0xfc8] ss:$16 sps:$4 sm:$0xff]   ;;  %v7009_v44 = vld [vmem:[#allocation5 + $0xfe4] ss:$16 sps:$4 sm:$0xff]  }
 0x263   :  { %3619 = vmatprep.subr.bf16.mxu0 %v6919_v45  ;;  %3947 = vmatprep.subr.bf16.mxu1 %v6922_v46  ;;  %v7012_v45 = vld [vmem:[#allocation5 + $0xfec] ss:$16 sps:$4 sm:$0xff]   ;;  %v7007_v46 = vld [vmem:[#allocation5 + $0xfe0] ss:$16 sps:$4 sm:$0xff]  }
 0x265   :  { %3611 = vmatmul.mubr.bf16.vlgmr.msra.gmra.mrb[0].mxu0 %v7697_v25  ;;  %3939 = vmatmul.mubr.bf16.vlgmr.msra.gmra.mrb[0].mxu1 %v7697_v25  ;;  %v6935_v25 = vld [vmem:[#allocation5 + $0xe60] ss:$16 sps:$4 sm:$0xff]  }
 0x266   :  { %3620 = vmatpush1.bf16.msra.mxu0 %v6917_v12  ;;  %3948 = vmatpush1.bf16.msra.mxu1 %v6920_v48  ;;  %v7010_v12 = vld [vmem:[#allocation5 + $0xfe8] ss:$16 sps:$4 sm:$0xff]  }
 0x267   :  { %3621 = vmatprep.subr.bf16.mxu0 %v6925_v50  ;;  %3949 = vmatprep.subr.bf16.mxu1 %v6928_v51  ;;  %v7016_v48 = vld [vmem:[#allocation8 + $0x4] ss:$12 sps:$4 sm:$0xff]   ;;  %v7041_v50 = vld [vmem:[#allocation8 + $0xc8] ss:$12 sps:$4 sm:$0xff]   ;;  %v7014_v51 = vld [vmem:[#allocation8] ss:$12 sps:$4 sm:$0xff]  }
 0x268   :  { %3651 = vmatprep.mubr.bf16.mxu0 %v755_v22  ;;  %3979 = vmatprep.mubr.bf16.mxu1 %v755_v22  ;;  %v7042_v22 = vld [vmem:[#allocation8 + $0x8] ss:$12 sps:$4 sm:$0xff]  }
 0x26a   :  { %3622 = vmatpush1.bf16.msra.mxu0 %v6923_v52  ;;  %3950 = vmatpush1.bf16.msra.mxu1 %v6926_v49  ;;  %v7019_v52 = vld [vmem:[#allocation8 + $0x1c] ss:$12 sps:$4 sm:$0xff]   ;;  %v7046_v49 = vld [vmem:[#allocation8 + $0xe0] ss:$12 sps:$4 sm:$0xff]  }
 0x26b   :  { %3623 = vmatprep.subr.bf16.mxu0 %v6931_v53  ;;  %3951 = vmatprep.subr.bf16.mxu1 %v6934_v54  ;;  %v7017_v53 = vld [vmem:[#allocation8 + $0x18] ss:$12 sps:$4 sm:$0xff]   ;;  %v7047_v54 = vld [vmem:[#allocation8 + $0x20] ss:$12 sps:$4 sm:$0xff]  }
 0x26e   :  { %3624 = vmatpush1.bf16.msra.mxu0 %v6929_v36  ;;  %3952 = vmatpush1.bf16.msra.mxu1 %v6932_v55  ;;  %v7022_v36 = vld [vmem:[#allocation8 + $0x34] ss:$12 sps:$4 sm:$0xff]   ;;  %v7051_v55 = vld [vmem:[#allocation8 + $0xf8] ss:$12 sps:$4 sm:$0xff]  }
 0x26f   :  { %3625 = vmatprep.subr.bf16.mxu0 %v6937_v56  ;;  %3953 = vmatprep.subr.bf16.mxu1 %v6940_v57  ;;  %v7020_v56 = vld [vmem:[#allocation8 + $0x30] ss:$12 sps:$4 sm:$0xff]   ;;  %v7052_v57 = vld [vmem:[#allocation8 + $0x38] ss:$12 sps:$4 sm:$0xff]  }
 0x272   :  { %3626 = vmatpush1.bf16.msra.mxu0 %v6935_v25  ;;  %3954 = vmatpush1.bf16.msra.mxu1 %v6938_v58  ;;  %v7025_v25 = vld [vmem:[#allocation8 + $0x4c] ss:$12 sps:$4 sm:$0xff]   ;;  %v7056_v58 = vld [vmem:[#allocation8 + $0x110] ss:$12 sps:$4 sm:$0xff]  }
 0x273   :  { %3627 = vmatprep.subr.bf16.mxu0 %v6943_v59  ;;  %3955 = vmatprep.subr.bf16.mxu1 %v6946_v60  ;;  %v7023_v59 = vld [vmem:[#allocation8 + $0x48] ss:$12 sps:$4 sm:$0xff]   ;;  %v7028_v60 = vld [vmem:[#allocation8 + $0x64] ss:$12 sps:$4 sm:$0xff]  }
 0x276   :  { %3628 = vmatpush1.bf16.msra.mxu0 %v6941_v61  ;;  %3956 = vmatpush1.bf16.msra.mxu1 %v6944_v62  ;;  %v7061_v61 = vld [vmem:[#allocation8 + $0x128] ss:$12 sps:$4 sm:$0xff]   ;;  %v7026_v62 = vld [vmem:[#allocation8 + $0x60] ss:$12 sps:$4 sm:$0xff]  }
 0x277   :  { %3629 = vmatprep.subr.bf16.mxu0 %v6949_v63  ;;  %3957 = vmatprep.subr.bf16.mxu1 %v6952_v0  ;;  %v7062_v63 = vld [vmem:[#allocation8 + $0x68] ss:$12 sps:$4 sm:$0xff]  }
 0x278   :  { %v7031_v0 = vld [vmem:[#allocation8 + $0x7c] ss:$12 sps:$4 sm:$0xff]  }
 0x27a   :  { %3630 = vmatpush1.bf16.msra.mxu0 %v6947_v1  ;;  %3958 = vmatpush1.bf16.msra.mxu1 %v6950_v2  ;;  %v7066_v1 = vld [vmem:[#allocation8 + $0x140] ss:$12 sps:$4 sm:$0xff]   ;;  %v7029_v2 = vld [vmem:[#allocation8 + $0x78] ss:$12 sps:$4 sm:$0xff]  }
 0x27b   :  { %3631 = vmatprep.subr.bf16.mxu0 %v6955_v3  ;;  %3959 = vmatprep.subr.bf16.mxu1 %v6958_v4  ;;  %v7067_v3 = vld [vmem:[#allocation8 + $0x80] ss:$12 sps:$4 sm:$0xff]  }
 0x27c   :  { %v7034_v4 = vld [vmem:[#allocation8 + $0x94] ss:$12 sps:$4 sm:$0xff]  }
 0x27e   :  { %3632 = vmatpush1.bf16.msra.mxu0 %v6953_v5  ;;  %3960 = vmatpush1.bf16.msra.mxu1 %v6956_v6  ;;  %v7032_v5 = vld [vmem:[#allocation8 + $0x90] ss:$12 sps:$4 sm:$0xff]   ;;  %v7037_v6 = vld [vmem:[#allocation8 + $0xac] ss:$12 sps:$4 sm:$0xff]  }
 0x27f   :  { %3633 = vmatprep.subr.bf16.mxu0 %v6961_v7  ;;  %3961 = vmatprep.subr.bf16.mxu1 %v6964_v8  ;;  %v7035_v7 = vld [vmem:[#allocation8 + $0xa8] ss:$12 sps:$4 sm:$0xff]   ;;  %v7040_v8 = vld [vmem:[#allocation8 + $0xc4] ss:$12 sps:$4 sm:$0xff]  }
 0x282   :  { %3634 = vmatpush1.bf16.msra.mxu0 %v6959_v9  ;;  %3962 = vmatpush1.bf16.msra.mxu1 %v6962_v10  ;;  %v7038_v9 = vld [vmem:[#allocation8 + $0xc0] ss:$12 sps:$4 sm:$0xff]   ;;  %v7045_v10 = vld [vmem:[#allocation8 + $0xdc] ss:$12 sps:$4 sm:$0xff]  }
 0x283   :  { %3635 = vmatprep.subr.bf16.mxu0 %v6967_v11  ;;  %3963 = vmatprep.subr.bf16.mxu1 %v6970_v13  ;;  %v7043_v11 = vld [vmem:[#allocation8 + $0xd8] ss:$12 sps:$4 sm:$0xff]   ;;  %v7050_v13 = vld [vmem:[#allocation8 + $0xf4] ss:$12 sps:$4 sm:$0xff]  }
 0x286   :  { %3636 = vmatpush1.bf16.msra.mxu0 %v6965_v14  ;;  %3964 = vmatpush1.bf16.msra.mxu1 %v6968_v15  ;;  %v7048_v14 = vld [vmem:[#allocation8 + $0xf0] ss:$12 sps:$4 sm:$0xff]   ;;  %v7055_v15 = vld [vmem:[#allocation8 + $0x10c] ss:$12 sps:$4 sm:$0xff]  }
 0x287   :  { %3637 = vmatprep.subr.bf16.mxu0 %v6973_v16  ;;  %3965 = vmatprep.subr.bf16.mxu1 %v6976_v17  ;;  %v7053_v16 = vld [vmem:[#allocation8 + $0x108] ss:$12 sps:$4 sm:$0xff]   ;;  %v7060_v17 = vld [vmem:[#allocation8 + $0x124] ss:$12 sps:$4 sm:$0xff]  }
 0x28a   :  { %3638 = vmatpush1.bf16.msra.mxu0 %v6971_v18  ;;  %3966 = vmatpush1.bf16.msra.mxu1 %v6974_v20  ;;  %v7058_v18 = vld [vmem:[#allocation8 + $0x120] ss:$12 sps:$4 sm:$0xff]   ;;  %v7065_v20 = vld [vmem:[#allocation8 + $0x13c] ss:$12 sps:$4 sm:$0xff]  }
 0x28b   :  { %3639 = vmatprep.subr.bf16.mxu0 %v6979_v21  ;;  %3967 = vmatprep.subr.bf16.mxu1 %v6982_v23  ;;  %v7063_v21 = vld [vmem:[#allocation8 + $0x138] ss:$12 sps:$4 sm:$0xff]   ;;  %v7070_v23 = vld [vmem:[#allocation8 + $0x154] ss:$12 sps:$4 sm:$0xff]  }
 0x28e   :  { %3640 = vmatpush1.bf16.msra.mxu0 %v6977_v24  ;;  %3968 = vmatpush1.bf16.msra.mxu1 %v6980_v26  ;;  %v7071_v24 = vld [vmem:[#allocation8 + $0x158] ss:$12 sps:$4 sm:$0xff]   ;;  %v7068_v26 = vld [vmem:[#allocation8 + $0x150] ss:$12 sps:$4 sm:$0xff]  }
 0x28f   :  { %3641 = vmatprep.subr.bf16.mxu0 %v6985_v28  ;;  %3969 = vmatprep.subr.bf16.mxu1 %v6988_v29  ;;  %v7072_v28 = vld [vmem:[#allocation8 + $0x98] ss:$12 sps:$4 sm:$0xff]  }
 0x290   :  { %v7075_v29 = vld [vmem:[#allocation8 + $0x16c] ss:$12 sps:$4 sm:$0xff]  }
 0x292   :  { %3642 = vmatpush1.bf16.msra.mxu0 %v6983_v19  ;;  %3970 = vmatpush1.bf16.msra.mxu1 %v6986_v30  ;;  %v7076_v19 = vld [vmem:[#allocation8 + $0x170] ss:$12 sps:$4 sm:$0xff]   ;;  %v7073_v30 = vld [vmem:[#allocation8 + $0x168] ss:$12 sps:$4 sm:$0xff]  }
 0x293   :  { %3643 = vmatprep.subr.bf16.mxu0 %v6991_v31  ;;  %3971 = vmatprep.subr.bf16.mxu1 %v6994_v32  ;;  %v7077_v31 = vld [vmem:[#allocation8 + $0xb0] ss:$12 sps:$4 sm:$0xff]  }
 0x294   :  { %v7080_v32 = vld [vmem:[#allocation8 + $0x184] ss:$12 sps:$4 sm:$0xff]  }
 0x296   :  { %3644 = vmatpush1.bf16.msra.mxu0 %v6989_v33  ;;  %3972 = vmatpush1.bf16.msra.mxu1 %v6992_v34  ;;  %v7081_v33 = vld [vmem:[#allocation8 + $0x248] ss:$12 sps:$4 sm:$0xff]   ;;  %v7715_v34 = vsub.s32 0, %v7644_v42 }
 0x297   :  { %3645 = vmatprep.subr.bf16.mxu0 %v6997_v35  ;;  %3973 = vmatprep.subr.bf16.mxu1 %v7000_v37  ;;  %v7717_v35 = vld [vmem:[#allocation7] sm:$0xf]  ;;  %v7720_v37 = vsub.s32 1, %v7644_v42 }
 0x29a   :  { %3646 = vmatpush1.bf16.msra.mxu0 %v6995_v38  ;;  %3974 = vmatpush1.bf16.msra.mxu1 %v6998_v39  ;;  %v678_v38 = vsub.s32 3, %v7644_v42  ;;  %v667_v39 = vrot.slane %v7717_v35, %v7715_v34 }
 0x29b   :  { %3647 = vmatprep.subr.bf16.mxu0 %v7003_v27  ;;  %3975 = vmatprep.subr.bf16.mxu1 %v7006_v40  ;;  %v671_v27 = vrot.slane %v7717_v35, %v7720_v37 }
 0x29c   :  { %v679_v40 = vrot.slane %v7717_v35, %v678_v38  ;;  %v7124_v38 = vld [vmem:[#allocation8 + $0x270] ss:$12 sps:$4 sm:$0xff]  }
 0x29e   :  { %3648 = vmatpush1.bf16.msra.mxu0 %v7001_v41  ;;  %3976 = vmatpush1.bf16.msra.mxu1 %v7004_v43 }
 0x29f   :  { %3649 = vmatprep.subr.bf16.mxu0 %v7009_v44  ;;  %3977 = vmatprep.subr.bf16.mxu1 %v7012_v45 }
 0x2a2   :  { %3650 = vmatpush1.bf16.msra.mxu0 %v7007_v46  ;;  %3978 = vmatpush1.bf16.msra.mxu1 %v7010_v12 }
 0x2a3   :  { %4653 = vmatprep.subr.bf16.mxu0 %v7016_v48  ;;  %6084 = vmatprep.subr.bf16.mxu1 %v7041_v50 }
 0x2a5   :  { %3652 = vmatmul.mubr.bf16.vlgmr.msra.gmra.mrb[0].mxu0 %v7706_v47  ;;  %3980 = vmatmul.mubr.bf16.vlgmr.msra.gmra.mrb[0].mxu1 %v7706_v47  ;;  %v7057_v47 = vld [vmem:[#allocation8 + $0x50] ss:$12 sps:$4 sm:$0xff]  }
 0x2a6   :  { %4654 = vmatpush1.bf16.msra.mxu0 %v7014_v51  ;;  %6085 = vmatpush3.bf16.msra.mxu1 %v7042_v22 }
 0x2a7   :  { %4655 = vmatprep.subr.bf16.mxu0 %v7019_v52  ;;  %6086 = vmatprep.subr.bf16.mxu1 %v7046_v49 }
 0x2aa   :  { %4656 = vmatpush1.bf16.msra.mxu0 %v7017_v53  ;;  %6087 = vmatpush3.bf16.msra.mxu1 %v7047_v54 }
 0x2ab   :  { %4657 = vmatprep.subr.bf16.mxu0 %v7022_v36  ;;  %6088 = vmatprep.subr.bf16.mxu1 %v7051_v55  ;;  %v7078_v55 = vld [vmem:[#allocation8 + $0x180] ss:$12 sps:$4 sm:$0xff]  }
 0x2ae   :  { %4658 = vmatpush1.bf16.msra.mxu0 %v7020_v56  ;;  %6089 = vmatpush3.bf16.msra.mxu1 %v7052_v57  ;;  %v7082_v56 = vld [vmem:[#allocation8 + $0x188] ss:$12 sps:$4 sm:$0xff]  }
 0x2af   :  { %4659 = vmatprep.subr.bf16.mxu0 %v7025_v25  ;;  %6090 = vmatprep.subr.bf16.mxu1 %v7056_v58  ;;  %v7085_v25 = vld [vmem:[#allocation8 + $0x19c] ss:$12 sps:$4 sm:$0xff]   ;;  %v7086_v58 = vld [vmem:[#allocation8 + $0x260] ss:$12 sps:$4 sm:$0xff]  }
 0x2b2   :  { %4660 = vmatpush1.bf16.msra.mxu0 %v7023_v59  ;;  %6091 = vmatpush3.bf16.msra.mxu1 %v7057_v47  ;;  %v7083_v47 = vld [vmem:[#allocation8 + $0x198] ss:$12 sps:$4 sm:$0xff]  }
 0x2b3   :  { %4661 = vmatprep.subr.bf16.mxu0 %v7028_v60  ;;  %6092 = vmatprep.subr.bf16.mxu1 %v7061_v61  ;;  %v7087_v60 = vld [vmem:[#allocation8 + $0x1a0] ss:$12 sps:$4 sm:$0xff]  }
 0x2b4   :  { %v7090_v61 = vld [vmem:[#allocation8 + $0x1b4] ss:$12 sps:$4 sm:$0xff]  }
 0x2b6   :  { %4662 = vmatpush1.bf16.msra.mxu0 %v7026_v62  ;;  %6093 = vmatpush3.bf16.msra.mxu1 %v7062_v63  ;;  %v7091_v62 = vld [vmem:[#allocation8 + $0x278] ss:$12 sps:$4 sm:$0xff]   ;;  %v7088_v63 = vld [vmem:[#allocation8 + $0x1b0] ss:$12 sps:$4 sm:$0xff]  }
 0x2b7   :  { %4663 = vmatprep.subr.bf16.mxu0 %v7031_v0  ;;  %6094 = vmatprep.subr.bf16.mxu1 %v7066_v1  ;;  %v7092_v0 = vld [vmem:[#allocation8 + $0x1b8] ss:$12 sps:$4 sm:$0xff]  }
 0x2b8   :  { %v7095_v1 = vld [vmem:[#allocation8 + $0x1cc] ss:$12 sps:$4 sm:$0xff]  }
 0x2ba   :  { %4664 = vmatpush1.bf16.msra.mxu0 %v7029_v2  ;;  %6095 = vmatpush3.bf16.msra.mxu1 %v7067_v3  ;;  %v7096_v2 = vld [vmem:[#allocation8 + $0x290] ss:$12 sps:$4 sm:$0xff]   ;;  %v7093_v3 = vld [vmem:[#allocation8 + $0x1c8] ss:$12 sps:$4 sm:$0xff]  }
 0x2bb   :  { %4665 = vmatprep.subr.bf16.mxu0 %v7034_v4  ;;  %6096 = vmatprep.subr.bf16.mxu1 %v7071_v24  ;;  %v7097_v4 = vld [vmem:[#allocation8 + $0x1d0] ss:$12 sps:$4 sm:$0xff]  }
 0x2bc   :  { %v7116_v24 = vld [vmem:[#allocation8 + $0x2f0] ss:$12 sps:$4 sm:$0xff]  }
 0x2be   :  { %4666 = vmatpush1.bf16.msra.mxu0 %v7032_v5  ;;  %6097 = vmatpush3.bf16.msra.mxu1 %v7072_v28  ;;  %v7100_v5 = vld [vmem:[#allocation8 + $0x1e4] ss:$12 sps:$4 sm:$0xff]  }
 0x2bf   :  { %4667 = vmatprep.subr.bf16.mxu0 %v7037_v6  ;;  %6098 = vmatprep.subr.bf16.mxu1 %v7076_v19  ;;  %v7101_v6 = vld [vmem:[#allocation8 + $0x2a8] ss:$12 sps:$4 sm:$0xff]   ;;  %v7117_v28 = vld [vmem:[#allocation8 + $0x230] ss:$12 sps:$4 sm:$0xff]  }
 0x2c0   :  { %v7120_v19 = vld [vmem:[#allocation8 + $0x244] ss:$12 sps:$4 sm:$0xff]  }
 0x2c2   :  { %4668 = vmatpush1.bf16.msra.mxu0 %v7035_v7  ;;  %6099 = vmatpush3.bf16.msra.mxu1 %v7077_v31  ;;  %v7098_v7 = vld [vmem:[#allocation8 + $0x1e0] ss:$12 sps:$4 sm:$0xff]  }
 0x2c3   :  { %4669 = vmatprep.subr.bf16.mxu0 %v7040_v8  ;;  %6106 = vmatprep.subr.bf16.mxu1 %v7081_v33  ;;  %v7102_v8 = vld [vmem:[#allocation8 + $0x1e8] ss:$12 sps:$4 sm:$0xff]   ;;  %v7121_v33 = vld [vmem:[#allocation8 + $0x258] ss:$12 sps:$4 sm:$0xff]  }
 0x2c6   :  { %4670 = vmatpush1.bf16.msra.mxu0 %v7038_v9  ;;  %v674_v9 = vsub.s32 2, %v7644_v42 }
 0x2c7   :  { %4671 = vmatprep.subr.bf16.mxu0 %v7045_v10  ;;  %v7105_v10 = vld [vmem:[#allocation8 + $0x1fc] ss:$12 sps:$4 sm:$0xff]  }
 0x2ca   :  { %4672 = vmatpush1.bf16.msra.mxu0 %v7043_v11  ;;  %v7106_v11 = vld [vmem:[#allocation8 + $0x2c0] ss:$12 sps:$4 sm:$0xff]  }
 0x2cb   :  { %4673 = vmatprep.subr.bf16.mxu0 %v7050_v13  ;;  %v7103_v13 = vld [vmem:[#allocation8 + $0x1f8] ss:$12 sps:$4 sm:$0xff]  }
 0x2ce   :  { %4674 = vmatpush1.bf16.msra.mxu0 %v7048_v14  ;;  %v7107_v14 = vld [vmem:[#allocation8 + $0x200] ss:$12 sps:$4 sm:$0xff]  }
 0x2cf   :  { %4675 = vmatprep.subr.bf16.mxu0 %v7055_v15  ;;  %v675_v15 = vrot.slane %v7717_v35, %v674_v9  ;;  %v7126_v35 = vld [vmem:[#allocation8 + $0x274] ss:$12 sps:$4 sm:$0xff]  }
 0x2d2   :  { %4676 = vmatpush1.bf16.msra.mxu0 %v7053_v16  ;;  %v7110_v16 = vld [vmem:[#allocation8 + $0x214] ss:$12 sps:$4 sm:$0xff]  }
 0x2d3   :  { %4677 = vmatprep.subr.bf16.mxu0 %v7060_v17  ;;  %v7111_v17 = vld [vmem:[#allocation8 + $0x2d8] ss:$12 sps:$4 sm:$0xff]  }
 0x2d6   :  { %4678 = vmatpush1.bf16.msra.mxu0 %v7058_v18  ;;  %v7108_v18 = vld [vmem:[#allocation8 + $0x210] ss:$12 sps:$4 sm:$0xff]  }
 0x2d7   :  { %4679 = vmatprep.subr.bf16.mxu0 %v7065_v20  ;;  %v7112_v20 = vld [vmem:[#allocation8 + $0x218] ss:$12 sps:$4 sm:$0xff]  }
 0x2da   :  { %4680 = vmatpush1.bf16.msra.mxu0 %v7063_v21 }
 0x2db   :  { %4681 = vmatprep.subr.bf16.mxu0 %v7070_v23  ;;  %v7115_v23 = vld [vmem:[#allocation8 + $0x22c] ss:$12 sps:$4 sm:$0xff]  }
 0x2de   :  { %4682 = vmatpush1.bf16.msra.mxu0 %v7068_v26  ;;  %v7113_v26 = vld [vmem:[#allocation8 + $0x228] ss:$12 sps:$4 sm:$0xff]  }
 0x2df   :  { %4683 = vmatprep.subr.bf16.mxu0 %v7075_v29 }
 0x2e2   :  { %4684 = vmatpush1.bf16.msra.mxu0 %v7073_v30  ;;  %v7118_v30 = vld [vmem:[#allocation8 + $0x240] ss:$12 sps:$4 sm:$0xff]  }
 0x2e3   :  { %4694 = vmatprep.subr.bf16.mxu0 %v7080_v32  ;;  %v7123_v32 = vld [vmem:[#allocation8 + $0x25c] ss:$12 sps:$4 sm:$0xff]  }
 0x378   :  { %v3653_v41 = vpop.f32.mrb[0].mxu0  ;;  %v7728_v43 = vpop.f32.mrb[0].mxu1 }
 0x379   :  { %v6150_v44 = vadd.f32 %v3653_v41, %v667_v39  ;;  %v3655_v45 = vpop.f32.mrb[1].mxu0  ;;  %v3983_v46 = vpop.f32.mrb[1].mxu1  ;;  %v6152_v21 = vadd.f32 %v7728_v43, %v675_v15  ;;  %v7129_v39 = vld [vmem:[#allocation8 + $0x28c] ss:$12 sps:$4 sm:$0xff]   ;;  %v7135_v43 = vld [vmem:[#allocation8 + $0x2bc] ss:$12 sps:$4 sm:$0xff]  }
 0x37a   :  { %v6151_v12 = vadd.f32 %v3655_v45, %v671_v27  ;;  %v6153_v48 = vadd.f32 %v3983_v46, %v679_v40  ;;  %v3657_v50 = vpop.f32.mrb[2].mxu0  ;;  %v3985_v51 = vpop.f32.mrb[2].mxu1  ;;  %v7127_v27 = vld [vmem:[#allocation8 + $0x288] ss:$12 sps:$4 sm:$0xff]   ;;  %v7132_v40 = vld [vmem:[#allocation8 + $0x2a4] ss:$12 sps:$4 sm:$0xff]  }
 0x37b   :  { %v3988_v22 = vmax.f32 %v6150_v44, 0.0  ;;  %v3658_v52 = vpop.f32.mrb[3].mxu0  ;;  %v3986_v49 = vpop.f32.mrb[3].mxu1  ;;  %v3990_v29 = vmax.f32 %v6152_v21, 0.0  ;;  %v7130_v41 = vld [vmem:[#allocation8 + $0x2a0] ss:$12 sps:$4 sm:$0xff]  }
 0x37c   :  { %v3989_v53 = vmax.f32 %v6151_v12, 0.0  ;;  %v3991_v54 = vmax.f32 %v6153_v48, 0.0  ;;  %v7133_v44 = vld [vmem:[#allocation8 + $0x2b8] ss:$12 sps:$4 sm:$0xff]   ;;  %v7138_v45 = vld [vmem:[#allocation8 + $0x2d4] ss:$12 sps:$4 sm:$0xff]  }
 0x37d   :  { %v3992_v57 = vpack.c.bf16 %v3988_v22, %v3988_v22  ;;  %v3994_v31 = vpack.c.bf16 %v3990_v29, %v3990_v29  ;;  %v7136_v46 = vld [vmem:[#allocation8 + $0x2d0] ss:$12 sps:$4 sm:$0xff]   ;;  %v7141_v12 = vld [vmem:[#allocation8 + $0x2ec] ss:$12 sps:$4 sm:$0xff]   ;;  %v7139_v48 = vld [vmem:[#allocation8 + $0x2e8] ss:$12 sps:$4 sm:$0xff]  }
 0x37e   :  { %v3993_v36 = vpack.c.bf16 %v3989_v53, %v3989_v53  ;;  %v3995_v59 = vpack.c.bf16 %v3991_v54, %v3991_v54  ;;  %v7142_v50 = vld [vmem:[#allocation11] ss:$8 sps:$4 sm:$0xff]   ;;  %v7144_v51 = vld [vmem:[#allocation11 + $0x4] ss:$8 sps:$4 sm:$0xff]   ;;  %v7147_v22 = vld [vmem:[#allocation11 + $0x14] ss:$8 sps:$4 sm:$0xff]  }
 0x37f   :  { %v7145_v52 = vld [vmem:[#allocation11 + $0x10] ss:$8 sps:$4 sm:$0xff]   ;;  %v7150_v49 = vld [vmem:[#allocation11 + $0x24] ss:$8 sps:$4 sm:$0xff]   ;;  %v7148_v53 = vld [vmem:[#allocation11 + $0x20] ss:$8 sps:$4 sm:$0xff]  }
 0x380   :  { %4685 = vmatprep.mubr.bf16.mxu0 %v3993_v36  ;;  %4767 = vmatprep.mubr.bf16.mxu1 %v3993_v36  ;;  %v7153_v54 = vld [vmem:[#allocation11 + $0x34] ss:$8 sps:$4 sm:$0xff]   ;;  %v7151_v36 = vld [vmem:[#allocation11 + $0x30] ss:$8 sps:$4 sm:$0xff]   ;;  %v7192_v15 = vld [vmem:[#allocation11 + $0x104] ss:$8 sps:$4 sm:$0xff]  }
 0x381   :  { %4686 = vmatmul.mubr.bf16.vlgmr.msra.gmra.mrb[4].mxu0 %v3992_v57  ;;  %4768 = vmatmul.mubr.bf16.vlgmr.msra.gmra.mrb[4].mxu1 %v3992_v57  ;;  %v7159_v57 = vld [vmem:[#allocation11 + $0x54] ss:$8 sps:$4 sm:$0xff]   ;;  %v7223_v29 = vld [vmem:[#allocation14 + $0x20] sm:$0xff]  }
 0x382   :  { %4695 = vmatpush1.bf16.msra.mxu0 %v7078_v55  ;;  %6107 = vmatpush3.bf16.msra.mxu1 %v7082_v56  ;;  %v7156_v55 = vld [vmem:[#allocation11 + $0x44] ss:$8 sps:$4 sm:$0xff]   ;;  %v7154_v56 = vld [vmem:[#allocation11 + $0x40] ss:$8 sps:$4 sm:$0xff]   ;;  %v7218_v21 = vld [vmem:[#allocation14 + $0x50] sm:$0xff]  }
 0x383   :  { %4726 = vmatprep.mubr.bf16.mxu0 %v3995_v59  ;;  %4807 = vmatprep.mubr.bf16.mxu1 %v3995_v59  ;;  %v7160_v59 = vld [vmem:[#allocation11 + $0x60] ss:$8 sps:$4 sm:$0xff]  }
 0x384   :  { %4696 = vmatprep.subr.bf16.mxu0 %v7085_v25  ;;  %6108 = vmatprep.subr.bf16.mxu1 %v7086_v58  ;;  %v7157_v25 = vld [vmem:[#allocation11 + $0x50] ss:$8 sps:$4 sm:$0xff]   ;;  %v7162_v58 = vld [vmem:[#allocation11 + $0x64] ss:$8 sps:$4 sm:$0xff]  }
 0x386   :  { %4697 = vmatpush1.bf16.msra.mxu0 %v7083_v47  ;;  %6109 = vmatpush3.bf16.msra.mxu1 %v7087_v60  ;;  %v7165_v47 = vld [vmem:[#allocation11 + $0x74] ss:$8 sps:$4 sm:$0xff]   ;;  %v7163_v60 = vld [vmem:[#allocation11 + $0x70] ss:$8 sps:$4 sm:$0xff]  }
 0x387   :  { %4698 = vmatprep.subr.bf16.mxu0 %v7090_v61  ;;  %6110 = vmatprep.subr.bf16.mxu1 %v7091_v62  ;;  %v7168_v61 = vld [vmem:[#allocation11 + $0x84] ss:$8 sps:$4 sm:$0xff]   ;;  %v7166_v62 = vld [vmem:[#allocation11 + $0x80] ss:$8 sps:$4 sm:$0xff]  }
 0x38a   :  { %4699 = vmatpush1.bf16.msra.mxu0 %v7088_v63  ;;  %6111 = vmatpush3.bf16.msra.mxu1 %v7092_v0  ;;  %v7171_v63 = vld [vmem:[#allocation11 + $0x94] ss:$8 sps:$4 sm:$0xff]   ;;  %v7169_v0 = vld [vmem:[#allocation11 + $0x90] ss:$8 sps:$4 sm:$0xff]  }
 0x38b   :  { %4700 = vmatprep.subr.bf16.mxu0 %v7095_v1  ;;  %6112 = vmatprep.subr.bf16.mxu1 %v7096_v2  ;;  %v7174_v1 = vld [vmem:[#allocation11 + $0xa4] ss:$8 sps:$4 sm:$0xff]   ;;  %v7172_v2 = vld [vmem:[#allocation11 + $0xa0] ss:$8 sps:$4 sm:$0xff]  }
 0x38e   :  { %4701 = vmatpush1.bf16.msra.mxu0 %v7093_v3  ;;  %6113 = vmatpush3.bf16.msra.mxu1 %v7097_v4  ;;  %v7177_v3 = vld [vmem:[#allocation11 + $0xb4] ss:$8 sps:$4 sm:$0xff]   ;;  %v7175_v4 = vld [vmem:[#allocation11 + $0xb0] ss:$8 sps:$4 sm:$0xff]  }
 0x38f   :  { %4702 = vmatprep.subr.bf16.mxu0 %v7100_v5  ;;  %6114 = vmatprep.subr.bf16.mxu1 %v7101_v6  ;;  %v7180_v5 = vld [vmem:[#allocation11 + $0xc4] ss:$8 sps:$4 sm:$0xff]   ;;  %v7178_v6 = vld [vmem:[#allocation11 + $0xc0] ss:$8 sps:$4 sm:$0xff]  }
 0x392   :  { %4703 = vmatpush1.bf16.msra.mxu0 %v7098_v7  ;;  %6115 = vmatpush3.bf16.msra.mxu1 %v7102_v8  ;;  %v7183_v7 = vld [vmem:[#allocation11 + $0xd4] ss:$8 sps:$4 sm:$0xff]   ;;  %v7181_v8 = vld [vmem:[#allocation11 + $0xd0] ss:$8 sps:$4 sm:$0xff]  }
 0x393   :  { %4704 = vmatprep.subr.bf16.mxu0 %v7105_v10  ;;  %6116 = vmatprep.subr.bf16.mxu1 %v7106_v11  ;;  %v7186_v10 = vld [vmem:[#allocation11 + $0xe4] ss:$8 sps:$4 sm:$0xff]   ;;  %v7184_v11 = vld [vmem:[#allocation11 + $0xe0] ss:$8 sps:$4 sm:$0xff]  }
 0x396   :  { %4705 = vmatpush1.bf16.msra.mxu0 %v7103_v13  ;;  %6117 = vmatpush3.bf16.msra.mxu1 %v7107_v14  ;;  %v7189_v13 = vld [vmem:[#allocation11 + $0xf4] ss:$8 sps:$4 sm:$0xff]   ;;  %v7187_v14 = vld [vmem:[#allocation11 + $0xf0] ss:$8 sps:$4 sm:$0xff]  }
 0x397   :  { %4706 = vmatprep.subr.bf16.mxu0 %v7110_v16  ;;  %6118 = vmatprep.subr.bf16.mxu1 %v7111_v17  ;;  %v7214_v16 = vld [vmem:[#allocation14 + $0x40] sm:$0xff]  }
 0x398   :  { %v7215_v17 = vld [vmem:[#allocation14] sm:$0xff]  }
 0x39a   :  { %4707 = vmatpush1.bf16.msra.mxu0 %v7108_v18  ;;  %6119 = vmatpush3.bf16.msra.mxu1 %v7112_v20  ;;  %v7216_v18 = vld [vmem:[#allocation14 + $0x48] sm:$0xff]  }
 0x39b   :  { %4708 = vmatprep.subr.bf16.mxu0 %v7115_v23  ;;  %6120 = vmatprep.subr.bf16.mxu1 %v7116_v24  ;;  %v7217_v20 = vld [vmem:[#allocation14 + $0x8] sm:$0xff]   ;;  %v7219_v23 = vld [vmem:[#allocation14 + $0x10] sm:$0xff]   ;;  %v7220_v24 = vld [vmem:[#allocation14 + $0x58] sm:$0xff]  }
 0x39e   :  { %4709 = vmatpush1.bf16.msra.mxu0 %v7113_v26  ;;  %6121 = vmatpush3.bf16.msra.mxu1 %v7117_v28  ;;  %v7221_v26 = vld [vmem:[#allocation14 + $0x18] sm:$0xff]   ;;  %v7222_v28 = vld [vmem:[#allocation14 + $0x60] sm:$0xff]  }
 0x39f   :  { %4710 = vmatprep.subr.bf16.mxu0 %v7120_v19  ;;  %5121 = vmatprep.subr.bf16.mxu1 %v7144_v51  ;;  %v7224_v19 = vld [vmem:[#allocation14 + $0x68] sm:$0xff]  }
 0x3a1   :  { %4808 = vmatmul.mubr.bf16.vlgmr.msra.gmra.mrb[8].mxu1 %v3994_v31 }
 0x3a2   :  { %4711 = vmatpush1.bf16.msra.mxu0 %v7118_v30  ;;  %5122 = vmatpush1.bf16.msra.mxu1 %v7142_v50  ;;  %v7225_v30 = vld [vmem:[#allocation14 + $0x28] sm:$0xff]  }
 0x3a3   :  { %4712 = vmatprep.subr.bf16.mxu0 %v7123_v32  ;;  %5123 = vmatprep.subr.bf16.mxu1 %v7147_v22 }
 0x3a6   :  { %4713 = vmatpush1.bf16.msra.mxu0 %v7121_v33  ;;  %5124 = vmatpush1.bf16.msra.mxu1 %v7145_v52 }
 0x3a7   :  { %4714 = vmatprep.subr.bf16.mxu0 %v7126_v35  ;;  %5125 = vmatprep.subr.bf16.mxu1 %v7150_v49 }
 0x3aa   :  { %4715 = vmatpush1.bf16.msra.mxu0 %v7124_v38  ;;  %5126 = vmatpush1.bf16.msra.mxu1 %v7148_v53 }
 0x3ab   :  { %4716 = vmatprep.subr.bf16.mxu0 %v7129_v39  ;;  %5127 = vmatprep.subr.bf16.mxu1 %v7153_v54  ;;  %v4124_v39 = vld [vmem:[#allocation10] sm:$0x7] }
 0x3ac   :  { %v4133_v50 = vrot.slane %v4124_v39, %v7720_v37 }
 0x3ae   :  { %4717 = vmatpush1.bf16.msra.mxu0 %v7127_v27  ;;  %5128 = vmatpush1.bf16.msra.mxu1 %v7151_v36  ;;  %v4137_v27 = vrot.slane %v4124_v39, %v674_v9 }
 0x3af   :  { %4718 = vmatprep.subr.bf16.mxu0 %v7132_v40  ;;  %5129 = vmatprep.subr.bf16.mxu1 %v7156_v55  ;;  %v7190_v55 = vld [vmem:[#allocation11 + $0x100] ss:$8 sps:$4 sm:$0xff]  }
 0x3b2   :  { %4719 = vmatpush1.bf16.msra.mxu0 %v7130_v41  ;;  %5130 = vmatpush1.bf16.msra.mxu1 %v7154_v56 }
 0x3b3   :  { %4720 = vmatprep.subr.bf16.mxu0 %v7135_v43  ;;  %5131 = vmatprep.subr.bf16.mxu1 %v7159_v57  ;;  %v7195_v57 = vld [vmem:[#allocation11 + $0x114] ss:$8 sps:$4 sm:$0xff]  }
 0x3b6   :  { %4721 = vmatpush1.bf16.msra.mxu0 %v7133_v44  ;;  %5132 = vmatpush1.bf16.msra.mxu1 %v7157_v25  ;;  %v7193_v25 = vld [vmem:[#allocation11 + $0x110] ss:$8 sps:$4 sm:$0xff]  }
 0x3b7   :  { %4722 = vmatprep.subr.bf16.mxu0 %v7138_v45  ;;  %5133 = vmatprep.subr.bf16.mxu1 %v7162_v58  ;;  %v7484_v58 = vmov 0  }
 0x3ba   :  { %4723 = vmatpush1.bf16.msra.mxu0 %v7136_v46  ;;  %5134 = vmatpush1.bf16.msra.mxu1 %v7160_v59  ;;  %v7198_v59 = vld [vmem:[#allocation11 + $0x124] ss:$8 sps:$4 sm:$0xff]  }
 0x3bb   :  { %4724 = vmatprep.subr.bf16.mxu0 %v7141_v12  ;;  %5135 = vmatprep.subr.bf16.mxu1 %v7165_v47  ;;  %v7196_v47 = vld [vmem:[#allocation11 + $0x120] ss:$8 sps:$4 sm:$0xff]  }
 0x3be   :  { %4725 = vmatpush1.bf16.msra.mxu0 %v7139_v48  ;;  %5136 = vmatpush1.bf16.msra.mxu1 %v7163_v60  ;;  %v4129_v48 = vrot.slane %v4124_v39, %v7715_v34  ;;  %v7201_v60 = vld [vmem:[#allocation11 + $0x134] ss:$8 sps:$4 sm:$0xff]  }
 0x3bf   :  { %5137 = vmatprep.subr.bf16.mxu1 %v7168_v61  ;;  %6128 = vmatprep.subr.bf16.mxu0 %v7214_v16  ;;  %v7199_v61 = vld [vmem:[#allocation11 + $0x130] ss:$8 sps:$4 sm:$0xff]  }
 0x3c1   :  { %4727 = vmatmul.mubr.bf16.vlgmr.msra.gmra.mrb[4].mxu0 %v3994_v31 }
 0x3c2   :  { %5138 = vmatpush1.bf16.msra.mxu1 %v7166_v62  ;;  %6129 = vmatpush3.bf16.msra.mxu0 %v7215_v17  ;;  %v7204_v62 = vld [vmem:[#allocation11 + $0x144] ss:$8 sps:$4 sm:$0xff]  }
 0x3c3   :  { %5139 = vmatprep.subr.bf16.mxu1 %v7171_v63  ;;  %6130 = vmatprep.subr.bf16.mxu0 %v7216_v18  ;;  %v7202_v63 = vld [vmem:[#allocation11 + $0x140] ss:$8 sps:$4 sm:$0xff]  }
 0x3c6   :  { %5140 = vmatpush1.bf16.msra.mxu1 %v7169_v0  ;;  %6131 = vmatpush3.bf16.msra.mxu0 %v7217_v20  ;;  %v7207_v0 = vld [vmem:[#allocation11 + $0x154] ss:$8 sps:$4 sm:$0xff]  }
 0x3c7   :  { %5141 = vmatprep.subr.bf16.mxu1 %v7174_v1  ;;  %6132 = vmatprep.subr.bf16.mxu0 %v7218_v21  ;;  %v7205_v1 = vld [vmem:[#allocation11 + $0x150] ss:$8 sps:$4 sm:$0xff]  }
 0x3ca   :  { %5142 = vmatpush1.bf16.msra.mxu1 %v7172_v2  ;;  %6133 = vmatpush3.bf16.msra.mxu0 %v7219_v23  ;;  %v7210_v2 = vld [vmem:[#allocation11 + $0x164] ss:$8 sps:$4 sm:$0xff]  }
 0x3cb   :  { %5143 = vmatprep.subr.bf16.mxu1 %v7177_v3  ;;  %6134 = vmatprep.subr.bf16.mxu0 %v7220_v24  ;;  %v7208_v3 = vld [vmem:[#allocation11 + $0x160] ss:$8 sps:$4 sm:$0xff]  }
 0x3ce   :  { %5144 = vmatpush1.bf16.msra.mxu1 %v7175_v4  ;;  %6135 = vmatpush3.bf16.msra.mxu0 %v7221_v26  ;;  %v7213_v4 = vld [vmem:[#allocation11 + $0x174] ss:$8 sps:$4 sm:$0xff]  }
 0x3cf   :  { %5145 = vmatprep.subr.bf16.mxu1 %v7180_v5  ;;  %6136 = vmatprep.subr.bf16.mxu0 %v7222_v28  ;;  %v7211_v5 = vld [vmem:[#allocation11 + $0x170] ss:$8 sps:$4 sm:$0xff]  }
 0x3d2   :  { %5146 = vmatpush1.bf16.msra.mxu1 %v7178_v6  ;;  %6137 = vmatpush3.bf16.msra.mxu0 %v7223_v29 }
 0x3d3   :  { %5147 = vmatprep.subr.bf16.mxu1 %v7183_v7  ;;  %6138 = vmatprep.subr.bf16.mxu0 %v7224_v19 }
 0x3d6   :  { %5148 = vmatpush1.bf16.msra.mxu1 %v7181_v8  ;;  %6139 = vmatpush3.bf16.msra.mxu0 %v7225_v30  ;;  %v7226_v8 = vld [vmem:[#allocation14 + $0x70] sm:$0xff]  }
 0x3d7   :  { %5149 = vmatprep.subr.bf16.mxu1 %v7186_v10  ;;  %v7227_v10 = vld [vmem:[#allocation14 + $0x30] sm:$0xff]   ;;  %6140 = vmatprep.subr.bf16.mxu0 %v7226_v8 }
 0x3da   :  { %5150 = vmatpush1.bf16.msra.mxu1 %v7184_v11  ;;  %6141 = vmatpush3.bf16.msra.mxu0 %v7227_v10  ;;  %v7228_v11 = vld [vmem:[#allocation14 + $0x78] sm:$0xff]  }
 0x3db   :  { %5151 = vmatprep.subr.bf16.mxu1 %v7189_v13  ;;  %v7229_v13 = vld [vmem:[#allocation14 + $0x38] sm:$0xff]   ;;  %6142 = vmatprep.subr.bf16.mxu0 %v7228_v11 }
 0x3de   :  { %5152 = vmatpush1.bf16.msra.mxu1 %v7187_v14  ;;  %6143 = vmatpush3.bf16.msra.mxu0 %v7229_v13  ;;  %v4869_v14 = vld [vmem:[#allocation13] sm:$0x3] }
 0x3df   :  { %5162 = vmatprep.subr.bf16.mxu1 %v7192_v15  ;;  %v4874_v15 = vrot.slane %v4869_v14, %v7715_v34  ;;  %v4878_v16 = vrot.slane %v4869_v14, %v7720_v37 }
 0x454   :  { %v6100_v31 = vpop.f32.mrb[4].mxu1 }
 0x455   :  { %v6101_v32 = vpop.f32.mrb[5].mxu1 }
 0x456   :  { %v6102_v33 = vadd.f32 %v6101_v32, %v6100_v31  ;;  %v6103_v35 = vpop.f32.mrb[6].mxu1  ;;  %v6067_v31 = vld [vmem:[#allocation16] ss:$0 sm:$0xff] }
 0x457   :  { %v6104_v38 = vpop.f32.mrb[7].mxu1 }
 0x458   :  { %v4770_v43 = vadd.f32 %v6102_v33, %v4137_v27 }
 0x474   :  { %v6122_v40 = vpop.f32.mrb[8].mxu1 }
 0x475   :  { %v6123_v41 = vpop.f32.mrb[9].mxu1 }
 0x476   :  { %v6124_v44 = vadd.f32 %v6123_v41, %v6122_v40  ;;  %v6125_v45 = vpop.f32.mrb[10].mxu1 }
 0x477   :  { %v6126_v46 = vpop.f32.mrb[11].mxu1 }
 0x478   :  { %v4810_v12 = vadd.f32 %v6124_v44, %v4770_v43 }
 0x47a   :  { %v4817_v6 = vmax.f32 %v4810_v12, 0.0 }
 0x47c   :  { %v4820_v7 = vpack.c.bf16 %v4817_v6, %v4817_v6 }
 0x494   :  { %v4728_v51 = vpop.f32.mrb[4].mxu0 }
 0x495   :  { %v6154_v22 = vadd.f32 %v4728_v51, %v4129_v48  ;;  %v4730_v52 = vpop.f32.mrb[5].mxu0 }
 0x496   :  { %v6155_v49 = vadd.f32 %v4730_v52, %v4133_v50  ;;  %v4732_v53 = vpop.f32.mrb[6].mxu0 }
 0x497   :  { %v4815_v54 = vmax.f32 %v6154_v22, 0.0  ;;  %v4733_v36 = vpop.f32.mrb[7].mxu0 }
 0x498   :  { %v4816_v42 = vmax.f32 %v6155_v49, 0.0 }
 0x499   :  { %v4818_v56 = vpack.c.bf16 %v4815_v54, %v4815_v54 }
 0x49a   :  { %v4819_v9 = vpack.c.bf16 %v4816_v42, %v4816_v42 }
 0x49c   :  { %5153 = vmatprep.mubr.bf16.mxu1 %v4819_v9 }
 0x49d   :  { %5154 = vmatmul.mubr.bf16.vlgmr.msra.gmra.mrb[12].mxu1 %v4818_v56 }
 0x49e   :  { %5163 = vmatpush1.bf16.msra.mxu1 %v7190_v55  ;;  %5194 = vmatprep.mubr.bf16.mxu1 %v7484_v58 }
 0x49f   :  { %5164 = vmatprep.subr.bf16.mxu1 %v7195_v57 }
 0x4a2   :  { %5165 = vmatpush1.bf16.msra.mxu1 %v7193_v25 }
 0x4a3   :  { %5166 = vmatprep.subr.bf16.mxu1 %v7198_v59 }
 0x4a6   :  { %5167 = vmatpush1.bf16.msra.mxu1 %v7196_v47 }
 0x4a7   :  { %5168 = vmatprep.subr.bf16.mxu1 %v7201_v60 }
 0x4aa   :  { %5169 = vmatpush1.bf16.msra.mxu1 %v7199_v61 }
 0x4ab   :  { %5170 = vmatprep.subr.bf16.mxu1 %v7204_v62 }
 0x4ae   :  { %5171 = vmatpush1.bf16.msra.mxu1 %v7202_v63 }
 0x4af   :  { %5172 = vmatprep.subr.bf16.mxu1 %v7207_v0 }
 0x4b2   :  { %5173 = vmatpush1.bf16.msra.mxu1 %v7205_v1 }
 0x4b3   :  { %5174 = vmatprep.subr.bf16.mxu1 %v7210_v2 }
 0x4b6   :  { %5175 = vmatpush1.bf16.msra.mxu1 %v7208_v3 }
 0x4b7   :  { %5176 = vmatprep.subr.bf16.mxu1 %v7213_v4 }
 0x4ba   :  { %5177 = vmatpush1.bf16.msra.mxu1 %v7211_v5 }
 0x4bd   :  { %5195 = vmatmul.mubr.bf16.vlgmr.msra.gmra.mrb[12].mxu1 %v4820_v7 }
 0x590   :  { %v5196_v17 = vpop.f32.mrb[12].mxu1 }
 0x591   :  { %v6156_v18 = vadd.f32 %v5196_v17, %v4874_v15  ;;  %v5198_v20 = vpop.f32.mrb[13].mxu1 }
 0x592   :  { %v6157_v21 = vadd.f32 %v5198_v20, %v4878_v16  ;;  %v5200_v23 = vpop.f32.mrb[14].mxu1 }
 0x593   :  { %v5203_v24 = vmax.f32 %v6156_v18, 0.0  ;;  %v5201_v26 = vpop.f32.mrb[15].mxu1 }
 0x594   :  { %v5204_v28 = vmax.f32 %v6157_v21, 0.0 }
 0x595   :  { %v5205_v19 = vpack.c.bf16 %v5203_v24, %v5203_v24 }
 0x596   :  { %v5206_v29 = vpack.c.bf16 %v5204_v28, %v5204_v28 }
 0x598   :  { %5374 = vmatprep.mubr.bf16.mxu0 %v5206_v29 }
 0x599   :  { %5375 = vmatmul.mubr.bf16.vlgmr.msra.gmra.mrb[8].mxu0 %v5205_v19 }
 0x66c   :  { %v6144_v30 = vpop.f32.mrb[8].mxu0 }
 0x66d   :  { %v6145_v32 = vpop.f32.mrb[9].mxu0 }
 0x66e   :  { %v6146_v33 = vadd.f32 %v6145_v32, %v6144_v30  ;;  %v6147_v35 = vpop.f32.mrb[10].mxu0 }
 0x66f   :  { %v6148_v34 = vpop.f32.mrb[11].mxu0 }
 0x670   :  { %v5377_v38 = vadd.f32 %v6146_v33, %v6067_v31 }
 0x672   :  { %v5383_v37 = vand.u32 2147483647, %v5377_v38  ;;  %v5382_v44 = vmax.f32 %v5377_v38, 0.0 }
 0x674   :  { %v5384_v39 = vsub.f32 0.0, %v5383_v37 }
 0x676   :  { %v5385_v27 = vmul.f32 1.442695, %v5384_v39 }
 0x678   :  { %7230 = vpow2.f32 %v5385_v27 }
 0x682   :  { %v7231_v40 = vpop.eup %7230 }
 0x683   :  { %v5387_v41 = vadd.f32 1.0, %v7231_v40 }
 0x685   :  { %7232 = vlog2.f32 %v5387_v41 }
 0x68f   :  { %v7233_v43 = vpop.eup %7232 }
 0x690   :  { %v5389_v45 = vmul.f32 0.6931472, %v7233_v43 }
 0x692   :  { %v5390_v46 = vadd.f32 %v5389_v45, %v5382_v44 }
 0x694   :  { %5391 = vst [vmem:[#allocation17] sm:$0xf] %v5390_v46 }
 0x695   :  { %7443 = shalt.err (!%p7440_p6)
}
 0x696   :  { %s7444_s28 = scalar_lea.hbm %s7762_s9, 64 }
 0x697   :  { %p7445_p7 = scmp.ne.s32.totalorder %s7762_s9, %s7444_s28  ;;  %p7448_p8 = scmp.lt.u32.totalorder %s7444_s28, %s7762_s9 }
 0x699   :  { %p7450_p9 = pnand %p7448_p8, %p7445_p7 }
 0x69b   :  { %7453 = shalt.err (!%p7450_p9)
}
 0x69c   :  { %5401 = dma.vmem_to_hbm [thread:$0]  %s5399_s26, 64, %s7762_s9, [#allocation4]  }
 0x69d   :  { %7464 = dma.done.wait [#allocation4], 64  }
 0x69e   :  { %7465 = vsyncadd [#allocation4], 4294967232 }
 0x69f   :  { %5405 = vsyncpa [#allocation3], 1 }
 0x6a0   :  { %5406 = vsyncpa [#allocation6], 1 }
 0x6a1   :  { %5407 = vsyncpa [#allocation9], 1 }
 0x6a2   :  { %5408 = vsyncpa [#allocation12], 1 }
 0x6a3   :  { %5409 = vsyncpa [#allocation15], 1 }
 0x6a4   :  { %5410 = vsyncpa [#allocation4], 1 }

// kernel: tpu_custom_call.1
= control target key start
LH: loop header
LB: loop body
LE: loop exit
PB: predicated region body
PF: predicated region fallthrough
CT: control target
= control target key end

     0   :  { %14 = vsyncpa [#allocation3], 0  ;;  %s7753_s0 = inlined_call_operand.hbm [shape: bf16[4,2048], index: 0, kind: input, shape index: {}]   ;;  %s7754_s1 = inlined_call_operand.hbm [shape: bf16[2048,512], index: 1, kind: input, shape index: {}]   ;;  %s7755_s2 = inlined_call_operand.hbm [shape: f32[1,512], index: 2, kind: input, shape index: {}]   ;;  %s7756_s3 = inlined_call_operand.hbm [shape: bf16[512,384], index: 3, kind: input, shape index: {}]   ;;  %s7757_s4 = inlined_call_operand.hbm [shape: f32[1,384], index: 4, kind: input, shape index: {}]   ;;  %s7758_s5 = inlined_call_operand.hbm [shape: bf16[384,256], index: 5, kind: input, shape index: {}]   ;;  %s7759_s6 = inlined_call_operand.hbm [shape: f32[1,256], index: 6, kind: input, shape index: {}]   ;;  %s7760_s7 = inlined_call_operand.hbm [shape: bf16[256,128], index: 7, kind: input, shape index: {}]   ;;  %s7761_s8 = inlined_call_operand.hbm [shape: f32[1,128], index: 8, kind: input, shape index: {}]   ;;  %s7762_s9 = inlined_call_operand.hbm [shape: f32[4,128], index: 9, kind: output, shape index: {}]  }
   0x1   :  { %15 = vsyncpa [#allocation6], 0 }
   0x2   :  { %16 = vsyncpa [#allocation9], 0 }
   0x3   :  { %17 = vsyncpa [#allocation12], 0 }
   0x4   :  { %18 = vsyncpa [#allocation15], 0 }
   0x5   :  { %19 = vsyncpa [#allocation4], 0  ;;  %s7466_s30 = smov [#allocation5]   ;;  %s7234_s13 = scalar_lea.hbm %s7754_s1, 65536 }
   0x6   :  { %s35_s10 = sshll.u32 %s7466_s30, 4  ;;  %p7235_p0 = scmp.ne.s32.totalorder %s7754_s1, %s7234_s13  ;;  %s36_s10 = int_to_ptr.vmem [resolvable:$true] %s35_s10 }
   0x7   :  { %p7238_p1 = scmp.lt.u32.totalorder %s7234_s13, %s7754_s1 }
   0x9   :  { %p7240_p2 = pnand %p7238_p1, %p7235_p0 }
   0xb   :  { %7243 = shalt.err (!%p7240_p2)
}
   0xc   :  { %s7244_s18 = scalar_lea.vmem %s36_s10, 65536  ;;  %p7249_p4 = scmp.lt.s32.totalorder %s36_s10, %s36_s10 }
   0xd   :  { %p7245_p3 = scmp.ne.s32.totalorder %s36_s10, %s7244_s18  ;;  %p7250_p5 = scmp.lt.s32.totalorder %s7244_s18, %s7244_s18 }
   0xf   :  { %p7251_p6 = por %p7250_p5, %p7249_p4 }
  0x11   :  { %p7252_p7 = pnand %p7251_p6, %p7245_p3 }
  0x13   :  { %7255 = shalt.err (!%p7252_p7)
}
  0x14   :  { %s7467_s19 = smov 256   ;;  %s7468_s20 = smov 16  }
  0x15   :  { %41 = dma.hbm_to_vmem [thread:$0]  %s7754_s1, 65536, %s36_s10, [#allocation6], %s7467_s19, %s7467_s19, %s7468_s20  }
  0x16   :  { %s7469_s23 = smov [#allocation8]   ;;  %s7256_s27 = scalar_lea.hbm %s7756_s3, 12288 }
  0x17   :  { %s57_s24 = sshll.u32 %s7469_s23, 4  ;;  %p7257_p8 = scmp.ne.s32.totalorder %s7756_s3, %s7256_s27  ;;  %s58_s24 = int_to_ptr.vmem [resolvable:$true] %s57_s24 }
  0x18   :  { %p7260_p9 = scmp.lt.u32.totalorder %s7256_s27, %s7756_s3 }
  0x1a   :  { %p7262_p10 = pnand %p7260_p9, %p7257_p8 }
  0x1c   :  { %7265 = shalt.err (!%p7262_p10)
}
  0x1d   :  { %s7266_s12 = scalar_lea.vmem %s58_s24, 12288  ;;  %p7271_p12 = scmp.lt.s32.totalorder %s58_s24, %s58_s24 }
  0x1e   :  { %p7267_p11 = scmp.ne.s32.totalorder %s58_s24, %s7266_s12  ;;  %p7272_p13 = scmp.lt.s32.totalorder %s7266_s12, %s7266_s12 }
  0x20   :  { %p7273_p0 = por %p7272_p13, %p7271_p12 }
  0x22   :  { %p7274_p1 = pnand %p7273_p0, %p7267_p11 }
  0x24   :  { %7277 = shalt.err (!%p7274_p1)
}
  0x25   :  { %s7470_s1 = smov 192   ;;  %s7471_s10 = smov 12  }
  0x26   :  { %63 = dma.hbm_to_vmem [thread:$0]  %s7756_s3, 12288, %s58_s24, [#allocation9], %s7470_s1, %s7470_s1, %s7471_s10  }
  0x27   :  { %s7472_s15 = smov [#allocation11]   ;;  %s7278_s19 = scalar_lea.hbm %s7758_s5, 6144 }
  0x28   :  { %s79_s16 = sshll.u32 %s7472_s15, 4  ;;  %p7279_p2 = scmp.ne.s32.totalorder %s7758_s5, %s7278_s19  ;;  %s80_s16 = int_to_ptr.vmem [resolvable:$true] %s79_s16 }
  0x29   :  { %p7282_p3 = scmp.lt.u32.totalorder %s7278_s19, %s7758_s5 }
  0x2b   :  { %p7284_p4 = pnand %p7282_p3, %p7279_p2 }
  0x2d   :  { %7287 = shalt.err (!%p7284_p4)
}
  0x2e   :  { %s7288_s25 = scalar_lea.vmem %s80_s16, 6144  ;;  %p7293_p6 = scmp.lt.s32.totalorder %s80_s16, %s80_s16 }
  0x2f   :  { %p7289_p5 = scmp.ne.s32.totalorder %s80_s16, %s7288_s25  ;;  %p7294_p7 = scmp.lt.s32.totalorder %s7288_s25, %s7288_s25 }
  0x31   :  { %p7295_p8 = por %p7294_p7, %p7293_p6 }
  0x33   :  { %p7296_p9 = pnand %p7295_p8, %p7289_p5 }
  0x35   :  { %7299 = shalt.err (!%p7296_p9)
}
  0x36   :  { %s7473_s3 = smov 128   ;;  %s7474_s24 = smov 8  }
  0x37   :  { %85 = dma.hbm_to_vmem [thread:$0]  %s7758_s5, 6144, %s80_s16, [#allocation12], %s7473_s3, %s7473_s3, %s7474_s24  }
  0x38   :  { %s7475_s28 = smov [#allocation14]   ;;  %s7300_s12 = scalar_lea.hbm %s7760_s7, 2048 }
  0x39   :  { %s101_s29 = sshll.u32 %s7475_s28, 4  ;;  %p7301_p10 = scmp.ne.s32.totalorder %s7760_s7, %s7300_s12  ;;  %s102_s29 = int_to_ptr.vmem [resolvable:$true] %s101_s29 }
  0x3a   :  { %p7304_p11 = scmp.lt.u32.totalorder %s7300_s12, %s7760_s7 }
  0x3c   :  { %p7306_p12 = pnand %p7304_p11, %p7301_p10 }
  0x3e   :  { %7309 = shalt.err (!%p7306_p12)
}
  0x3f   :  { %s7310_s15 = scalar_lea.vmem %s102_s29, 2048  ;;  %p7315_p0 = scmp.lt.s32.totalorder %s102_s29, %s102_s29 }
  0x40   :  { %p7311_p13 = scmp.ne.s32.totalorder %s102_s29, %s7310_s15  ;;  %p7316_p1 = scmp.lt.s32.totalorder %s7310_s15, %s7310_s15 }
  0x42   :  { %p7317_p2 = por %p7316_p1, %p7315_p0 }
  0x44   :  { %p7318_p3 = pnand %p7317_p2, %p7311_p13 }
  0x46   :  { %7321 = shalt.err (!%p7318_p3)
}
  0x47   :  { %s7476_s5 = smov 64   ;;  %s7477_s16 = smov 4  }
  0x48   :  { %107 = dma.hbm_to_vmem [thread:$0]  %s7760_s7, 2048, %s102_s29, [#allocation15], %s7476_s5, %s7476_s5, %s7477_s16  }
  0x49   :  { %s7478_s19 = smov [#allocation2]   ;;  %s7479_s21 = smov [#allocation7]  }
  0x4a   :  { %s26_s20 = sshll.u32 %s7478_s19, 4  ;;  %s48_s22 = sshll.u32 %s7479_s21, 4  ;;  %s27_s20 = int_to_ptr.vmem [resolvable:$true] %s26_s20  ;;  %s49_s22 = int_to_ptr.vmem [resolvable:$true] %s48_s22 }
  0x4b   :  { %s7322_s3 = scalar_lea.hbm %s7753_s0, 512 }
  0x4c   :  { %p7323_p4 = scmp.ne.s32.totalorder %s7753_s0, %s7322_s3  ;;  %p7326_p5 = scmp.lt.u32.totalorder %s7322_s3, %s7753_s0 }
  0x4e   :  { %p7328_p6 = pnand %p7326_p5, %p7323_p4 }
  0x50   :  { %7331 = shalt.err (!%p7328_p6)
}
  0x51   :  { %s7332_s7 = scalar_lea.vmem %s27_s20, 512  ;;  %p7337_p8 = scmp.lt.s32.totalorder %s27_s20, %s27_s20 }
  0x52   :  { %p7333_p7 = scmp.ne.s32.totalorder %s27_s20, %s7332_s7  ;;  %p7338_p9 = scmp.lt.s32.totalorder %s7332_s7, %s7332_s7 }
  0x54   :  { %p7339_p10 = por %p7338_p9, %p7337_p8 }
  0x56   :  { %p7340_p11 = pnand %p7339_p10, %p7333_p7 }
  0x58   :  { %7343 = shalt.err (!%p7340_p11)
}
  0x59   :  { %29 = dma.hbm_to_vmem [thread:$0]  %s7753_s0, 512, %s27_s20, [#allocation3]  }
  0x5a   :  { %s7344_s1 = scalar_lea.hbm %s7755_s2, 64 }
  0x5b   :  { %p7345_p12 = scmp.ne.s32.totalorder %s7755_s2, %s7344_s1  ;;  %p7348_p13 = scmp.lt.u32.totalorder %s7344_s1, %s7755_s2 }
  0x5d   :  { %p7350_p0 = pnand %p7348_p13, %p7345_p12 }
  0x5f   :  { %7353 = shalt.err (!%p7350_p0)
}
  0x60   :  { %s7354_s5 = scalar_lea.vmem %s49_s22, 64  ;;  %p7359_p2 = scmp.lt.s32.totalorder %s49_s22, %s49_s22 }
  0x61   :  { %p7355_p1 = scmp.ne.s32.totalorder %s49_s22, %s7354_s5  ;;  %p7360_p3 = scmp.lt.s32.totalorder %s7354_s5, %s7354_s5 }
  0x63   :  { %p7361_p4 = por %p7360_p3, %p7359_p2 }
  0x65   :  { %p7362_p5 = pnand %p7361_p4, %p7355_p1 }
  0x67   :  { %7365 = shalt.err (!%p7362_p5)
}
  0x68   :  { %51 = dma.hbm_to_vmem [thread:$0]  %s7755_s2, 64, %s49_s22, [#allocation6]  }
  0x69   :  { %s7480_s17 = smov [#allocation10]   ;;  %s7481_s19 = smov [#allocation13]  }
  0x6a   :  { %s70_s18 = sshll.u32 %s7480_s17, 4  ;;  %s92_s20 = sshll.u32 %s7481_s19, 4  ;;  %s71_s18 = int_to_ptr.vmem [resolvable:$true] %s70_s18  ;;  %s93_s20 = int_to_ptr.vmem [resolvable:$true] %s92_s20 }
  0x6b   :  { %s7366_s25 = scalar_lea.hbm %s7757_s4, 48 }
  0x6c   :  { %p7367_p6 = scmp.ne.s32.totalorder %s7757_s4, %s7366_s25  ;;  %p7370_p7 = scmp.lt.u32.totalorder %s7366_s25, %s7757_s4 }
  0x6e   :  { %p7372_p8 = pnand %p7370_p7, %p7367_p6 }
  0x70   :  { %7375 = shalt.err (!%p7372_p8)
}
  0x71   :  { %s7376_s2 = scalar_lea.vmem %s71_s18, 48  ;;  %s7380_s22 = scalar_lea.vmem %s71_s18, 64 }
  0x72   :  { %p7377_p9 = scmp.ne.s32.totalorder %s71_s18, %s7376_s2  ;;  %p7381_p10 = scmp.lt.s32.totalorder %s71_s18, %s71_s18 }
  0x73   :  { %p7382_p11 = scmp.lt.s32.totalorder %s7380_s22, %s7376_s2 }
  0x75   :  { %p7383_p12 = por %p7382_p11, %p7381_p10 }
  0x77   :  { %p7384_p13 = pnand %p7383_p12, %p7377_p9 }
  0x79   :  { %7387 = shalt.err (!%p7384_p13)
}
  0x7a   :  { %73 = dma.hbm_to_vmem [thread:$0]  %s7757_s4, 48, %s71_s18, [#allocation9]  }
  0x7b   :  { %s7388_s11 = scalar_lea.hbm %s7759_s6, 32 }
  0x7c   :  { %p7389_p0 = scmp.ne.s32.totalorder %s7759_s6, %s7388_s11  ;;  %p7392_p1 = scmp.lt.u32.totalorder %s7388_s11, %s7759_s6 }
  0x7e   :  { %p7394_p2 = pnand %p7392_p1, %p7389_p0 }
  0x80   :  { %7397 = shalt.err (!%p7394_p2)
}
  0x81   :  { %s7398_s14 = scalar_lea.vmem %s93_s20, 32  ;;  %p7403_p4 = scmp.lt.s32.totalorder %s93_s20, %s93_s20 }
  0x82   :  { %p7399_p3 = scmp.ne.s32.totalorder %s93_s20, %s7398_s14  ;;  %p7404_p5 = scmp.lt.s32.totalorder %s7398_s14, %s7398_s14 }
  0x84   :  { %p7405_p6 = por %p7404_p5, %p7403_p4 }
  0x86   :  { %p7406_p7 = pnand %p7405_p6, %p7399_p3 }
  0x88   :  { %7409 = shalt.err (!%p7406_p7)
}
  0x89   :  { %95 = dma.hbm_to_vmem [thread:$0]  %s7759_s6, 32, %s93_s20, [#allocation12]  }
  0x8a   :  { %s7482_s5 = smov [#allocation16]   ;;  %s7410_s18 = scalar_lea.hbm %s7761_s8, 16 }
  0x8b   :  { %s114_s0 = sshll.u32 %s7482_s5, 4  ;;  %p7411_p8 = scmp.ne.s32.totalorder %s7761_s8, %s7410_s18  ;;  %s115_s0 = int_to_ptr.vmem [resolvable:$true] %s114_s0 }
  0x8c   :  { %p7414_p9 = scmp.lt.u32.totalorder %s7410_s18, %s7761_s8 }
  0x8e   :  { %p7416_p10 = pnand %p7414_p9, %p7411_p8 }
  0x90   :  { %7419 = shalt.err (!%p7416_p10)
}
  0x91   :  { %s7420_s3 = scalar_lea.vmem %s115_s0, 16  ;;  %s7424_s6 = scalar_lea.vmem %s115_s0, 32 }
  0x92   :  { %p7421_p11 = scmp.ne.s32.totalorder %s115_s0, %s7420_s3  ;;  %p7425_p12 = scmp.lt.s32.totalorder %s115_s0, %s115_s0 }
  0x93   :  { %p7426_p13 = scmp.lt.s32.totalorder %s7424_s6, %s7420_s3 }
  0x95   :  { %p7427_p0 = por %p7426_p13, %p7425_p12 }
  0x97   :  { %p7428_p1 = pnand %p7427_p0, %p7421_p11 }
  0x99   :  { %7431 = shalt.err (!%p7428_p1)
}
  0x9a   :  { %117 = dma.hbm_to_vmem [thread:$0]  %s7761_s8, 16, %s115_s0, [#allocation15]  }
  0x9b   :  { %7454 = dma.done.wait [#allocation3], 512  }
  0x9c   :  { %7455 = vsyncadd [#allocation3], 4294966784 }
  0x9d   :  { %7456 = dma.done.wait [#allocation6], 65600  }
  0x9e   :  { %7457 = vsyncadd [#allocation6], 4294901696 }
  0x9f   :  { %7458 = dma.done.wait [#allocation9], 12336  }
  0xa0   :  { %7459 = vsyncadd [#allocation9], 4294954960 }
  0xa1   :  { %7460 = dma.done.wait [#allocation12], 6176  }
  0xa2   :  { %7461 = vsyncadd [#allocation12], 4294961120 }
  0xa3   :  { %7462 = dma.done.wait [#allocation15], 2064  }
  0xa4   :  { %7463 = vsyncadd [#allocation15], 4294965232  ;;  %v6242_v0 = vld [vmem:[#allocation5 + $0x4] ss:$16 sps:$4 sm:$0xff]   ;;  %v6244_v1 = vld [vmem:[#allocation5 + $0xc] ss:$16 sps:$4 sm:$0xff]   ;;  %v664_v36 = vlaneseq }
  0xa5   :  { %3332 = vmatprep.subr.bf16.mxu0 %v6242_v0  ;;  %v6246_v2 = vld [vmem:[#allocation5] ss:$16 sps:$4 sm:$0xff]   ;;  %v6247_v3 = vld [vmem:[#allocation5 + $0x8] ss:$16 sps:$4 sm:$0xff]   ;;  %3660 = vmatprep.subr.bf16.mxu1 %v6244_v1  ;;  %v6248_v4 = vld [vmem:[#allocation5 + $0x24] ss:$16 sps:$4 sm:$0xff]  }
  0xa6   :  { %3333 = vmatpush1.bf16.msra.mxu0 %v6246_v2  ;;  %3661 = vmatpush1.bf16.msra.mxu1 %v6247_v3  ;;  %v6250_v5 = vld [vmem:[#allocation5 + $0x2c] ss:$16 sps:$4 sm:$0xff]   ;;  %v6252_v6 = vld [vmem:[#allocation5 + $0x20] ss:$16 sps:$4 sm:$0xff]   ;;  %v6253_v7 = vld [vmem:[#allocation5 + $0x28] ss:$16 sps:$4 sm:$0xff]  }
  0xa7   :  { %3334 = vmatprep.subr.bf16.mxu0 %v6248_v4  ;;  %3662 = vmatprep.subr.bf16.mxu1 %v6250_v5  ;;  %v6254_v8 = vld [vmem:[#allocation5 + $0x44] ss:$16 sps:$4 sm:$0xff]   ;;  %v6256_v9 = vld [vmem:[#allocation5 + $0x4c] ss:$16 sps:$4 sm:$0xff]   ;;  %v6258_v10 = vld [vmem:[#allocation5 + $0x40] ss:$16 sps:$4 sm:$0xff]  }
  0xa8   :  { %v6259_v11 = vld [vmem:[#allocation5 + $0x48] ss:$16 sps:$4 sm:$0xff]   ;;  %v6260_v12 = vld [vmem:[#allocation5 + $0x64] ss:$16 sps:$4 sm:$0xff]   ;;  %v6262_v13 = vld [vmem:[#allocation5 + $0x6c] ss:$16 sps:$4 sm:$0xff]  }
  0xa9   :  { %v6264_v14 = vld [vmem:[#allocation5 + $0x60] ss:$16 sps:$4 sm:$0xff]   ;;  %v6265_v15 = vld [vmem:[#allocation5 + $0x68] ss:$16 sps:$4 sm:$0xff]   ;;  %v6266_v16 = vld [vmem:[#allocation5 + $0x84] ss:$16 sps:$4 sm:$0xff]  }
  0xaa   :  { %3335 = vmatpush1.bf16.msra.mxu0 %v6252_v6  ;;  %3663 = vmatpush1.bf16.msra.mxu1 %v6253_v7  ;;  %v6268_v17 = vld [vmem:[#allocation5 + $0x8c] ss:$16 sps:$4 sm:$0xff]   ;;  %v6270_v18 = vld [vmem:[#allocation5 + $0x80] ss:$16 sps:$4 sm:$0xff]   ;;  %v6271_v19 = vld [vmem:[#allocation5 + $0x88] ss:$16 sps:$4 sm:$0xff]  }
  0xab   :  { %3336 = vmatprep.subr.bf16.mxu0 %v6254_v8  ;;  %3664 = vmatprep.subr.bf16.mxu1 %v6256_v9  ;;  %v6272_v20 = vld [vmem:[#allocation5 + $0xa4] ss:$16 sps:$4 sm:$0xff]   ;;  %v6274_v21 = vld [vmem:[#allocation5 + $0xac] ss:$16 sps:$4 sm:$0xff]   ;;  %v6276_v22 = vld [vmem:[#allocation5 + $0xa0] ss:$16 sps:$4 sm:$0xff]  }
  0xac   :  { %v6277_v23 = vld [vmem:[#allocation5 + $0xa8] ss:$16 sps:$4 sm:$0xff]   ;;  %v6278_v24 = vld [vmem:[#allocation5 + $0xc4] ss:$16 sps:$4 sm:$0xff]   ;;  %v6280_v25 = vld [vmem:[#allocation5 + $0xcc] ss:$16 sps:$4 sm:$0xff]  }
  0xad   :  { %v6282_v26 = vld [vmem:[#allocation5 + $0xc0] ss:$16 sps:$4 sm:$0xff]   ;;  %v6283_v27 = vld [vmem:[#allocation5 + $0xc8] ss:$16 sps:$4 sm:$0xff]   ;;  %v6284_v28 = vld [vmem:[#allocation5 + $0xe4] ss:$16 sps:$4 sm:$0xff]  }
  0xae   :  { %3337 = vmatpush1.bf16.msra.mxu0 %v6258_v10  ;;  %3665 = vmatpush1.bf16.msra.mxu1 %v6259_v11  ;;  %v6286_v29 = vld [vmem:[#allocation5 + $0xec] ss:$16 sps:$4 sm:$0xff]   ;;  %v6288_v30 = vld [vmem:[#allocation5 + $0xe0] ss:$16 sps:$4 sm:$0xff]   ;;  %v6289_v31 = vld [vmem:[#allocation5 + $0xe8] ss:$16 sps:$4 sm:$0xff]  }
  0xaf   :  { %3338 = vmatprep.subr.bf16.mxu0 %v6260_v12  ;;  %3666 = vmatprep.subr.bf16.mxu1 %v6262_v13  ;;  %v6290_v32 = vld [vmem:[#allocation5 + $0x104] ss:$16 sps:$4 sm:$0xff]   ;;  %v6292_v33 = vld [vmem:[#allocation5 + $0x10c] ss:$16 sps:$4 sm:$0xff]   ;;  %v6294_v34 = vld [vmem:[#allocation5 + $0x100] ss:$16 sps:$4 sm:$0xff]  }
  0xb0   :  { %v6295_v35 = vld [vmem:[#allocation5 + $0x108] ss:$16 sps:$4 sm:$0xff]   ;;  %v7483_v37 = vmov 1983009808   ;;  %v6296_v39 = vld [vmem:[#allocation5 + $0x124] ss:$16 sps:$4 sm:$0xff]  }
  0xb1   :  { %v690_v38 = vunpack.c.l.s4 %v7483_v37  ;;  %v6298_v40 = vld [vmem:[#allocation5 + $0x12c] ss:$16 sps:$4 sm:$0xff]   ;;  %v6300_v41 = vld [vmem:[#allocation5 + $0x120] ss:$16 sps:$4 sm:$0xff]   ;;  %v7644_v42 = vshrl.u32 %v664_v36, 7  ;;  %s7485_s8 = smov [#allocation17]  }
  0xb2   :  { %3339 = vmatpush1.bf16.msra.mxu0 %v6264_v14  ;;  %3667 = vmatpush1.bf16.msra.mxu1 %v6265_v15  ;;  %v6301_v44 = vld [vmem:[#allocation5 + $0x128] ss:$16 sps:$4 sm:$0xff]   ;;  %v6302_v45 = vld [vmem:[#allocation5 + $0x144] ss:$16 sps:$4 sm:$0xff]   ;;  %v6304_v46 = vld [vmem:[#allocation5 + $0x14c] ss:$16 sps:$4 sm:$0xff]  }
  0xb3   :  { %3340 = vmatprep.subr.bf16.mxu0 %v6266_v16  ;;  %3668 = vmatprep.subr.bf16.mxu1 %v6268_v17  ;;  %v691_v43 = vunpack.c.0.s8 %v690_v38  ;;  %v6306_v47 = vld [vmem:[#allocation5 + $0x140] ss:$16 sps:$4 sm:$0xff]   ;;  %v6307_v48 = vld [vmem:[#allocation5 + $0x148] ss:$16 sps:$4 sm:$0xff]   ;;  %v6308_v50 = vld [vmem:[#allocation5 + $0x164] ss:$16 sps:$4 sm:$0xff]  }
  0xb4   :  { %v6310_v51 = vld [vmem:[#allocation5 + $0x16c] ss:$16 sps:$4 sm:$0xff]   ;;  %v146_v52 = vld [vmem:[#allocation2] sm:$0xff]  ;;  %v6313_v55 = vld [vmem:[#allocation5 + $0x168] ss:$16 sps:$4 sm:$0xff]   ;;  %s5398_s26 = sshll.u32 %s7485_s8, 4  ;;  %s5399_s26 = int_to_ptr.vmem [resolvable:$true] %s5398_s26 }
  0xb5   :  { %v7647_v49 = vsub.s32 %v691_v43, %v7644_v42  ;;  %v6312_v53 = vld [vmem:[#allocation5 + $0x160] ss:$16 sps:$4 sm:$0xff]   ;;  %v6314_v56 = vld [vmem:[#allocation5 + $0x184] ss:$16 sps:$4 sm:$0xff]   ;;  %v6316_v57 = vld [vmem:[#allocation5 + $0x18c] ss:$16 sps:$4 sm:$0xff]   ;;  %v688_v7 = vcombine.high %v146_v52, %v146_v52  ;;  %p7437_p3 = scmp.lt.s32.totalorder %s5399_s26, %s5399_s26 }
  0xb6   :  { %3341 = vmatpush1.bf16.msra.mxu0 %v6270_v18  ;;  %3669 = vmatpush1.bf16.msra.mxu1 %v6271_v19  ;;  %v6318_v59 = vld [vmem:[#allocation5 + $0x180] ss:$16 sps:$4 sm:$0xff]   ;;  %v6319_v60 = vld [vmem:[#allocation5 + $0x188] ss:$16 sps:$4 sm:$0xff]   ;;  %v6320_v61 = vld [vmem:[#allocation5 + $0x1a4] ss:$16 sps:$4 sm:$0xff]  }
  0xb7   :  { %3342 = vmatprep.subr.bf16.mxu0 %v6272_v20  ;;  %3670 = vmatprep.subr.bf16.mxu1 %v6274_v21  ;;  %v695_v54 = vrot.slane %v146_v52, %v7647_v49  ;;  %v6322_v62 = vld [vmem:[#allocation5 + $0x1ac] ss:$16 sps:$4 sm:$0xff]   ;;  %v6324_v63 = vld [vmem:[#allocation5 + $0x1a0] ss:$16 sps:$4 sm:$0xff]   ;;  %v6325_v0 = vld [vmem:[#allocation5 + $0x1a8] ss:$16 sps:$4 sm:$0xff]   ;;  %v7651_v12 = vrot.slane %v688_v7, %v7647_v49 }
  0xb8   :  { %v6326_v1 = vld [vmem:[#allocation5 + $0x1c4] ss:$16 sps:$4 sm:$0xff]   ;;  %v6328_v2 = vld [vmem:[#allocation5 + $0x1cc] ss:$16 sps:$4 sm:$0xff]   ;;  %v6330_v3 = vld [vmem:[#allocation5 + $0x1c0] ss:$16 sps:$4 sm:$0xff]  }
  0xb9   :  { %v703_v58 = vcombine.high %v695_v54, %v695_v54  ;;  %v6331_v4 = vld [vmem:[#allocation5 + $0x1c8] ss:$16 sps:$4 sm:$0xff]   ;;  %v6332_v5 = vld [vmem:[#allocation5 + $0x1e4] ss:$16 sps:$4 sm:$0xff]   ;;  %v6334_v6 = vld [vmem:[#allocation5 + $0x1ec] ss:$16 sps:$4 sm:$0xff]   ;;  %v704_v17 = vcombine.high %v7651_v12, %v7651_v12 }
  0xba   :  { %3343 = vmatpush1.bf16.msra.mxu0 %v6276_v22  ;;  %3671 = vmatpush1.bf16.msra.mxu1 %v6277_v23  ;;  %v6336_v8 = vld [vmem:[#allocation5 + $0x1e0] ss:$16 sps:$4 sm:$0xff]   ;;  %v6337_v9 = vld [vmem:[#allocation5 + $0x1e8] ss:$16 sps:$4 sm:$0xff]   ;;  %v6341_v10 = vld [vmem:[#allocation5 + $0x204] ss:$16 sps:$4 sm:$0xff]  }
  0xbb   :  { %3344 = vmatprep.subr.bf16.mxu0 %v6278_v24  ;;  %3672 = vmatprep.subr.bf16.mxu1 %v6280_v25  ;;  %v6344_v11 = vld [vmem:[#allocation5 + $0x20c] ss:$16 sps:$4 sm:$0xff]   ;;  %v6339_v13 = vld [vmem:[#allocation5 + $0x200] ss:$16 sps:$4 sm:$0xff]   ;;  %v6342_v14 = vld [vmem:[#allocation5 + $0x208] ss:$16 sps:$4 sm:$0xff]  }
  0xbc   :  { %3364 = vmatprep.mubr.bf16.mxu0 %v703_v58  ;;  %3692 = vmatprep.mubr.bf16.mxu1 %v703_v58  ;;  %v6347_v15 = vld [vmem:[#allocation5 + $0x224] ss:$16 sps:$4 sm:$0xff]   ;;  %v6350_v16 = vld [vmem:[#allocation5 + $0x22c] ss:$16 sps:$4 sm:$0xff]   ;;  %v6345_v18 = vld [vmem:[#allocation5 + $0x220] ss:$16 sps:$4 sm:$0xff]  }
  0xbd   :  { %v6348_v19 = vld [vmem:[#allocation5 + $0x228] ss:$16 sps:$4 sm:$0xff]   ;;  %v6353_v20 = vld [vmem:[#allocation5 + $0x244] ss:$16 sps:$4 sm:$0xff]   ;;  %v6356_v21 = vld [vmem:[#allocation5 + $0x24c] ss:$16 sps:$4 sm:$0xff]  }
  0xbe   :  { %3345 = vmatpush1.bf16.msra.mxu0 %v6282_v26  ;;  %3673 = vmatpush1.bf16.msra.mxu1 %v6283_v27  ;;  %v6351_v22 = vld [vmem:[#allocation5 + $0x240] ss:$16 sps:$4 sm:$0xff]   ;;  %v6354_v23 = vld [vmem:[#allocation5 + $0x248] ss:$16 sps:$4 sm:$0xff]   ;;  %v6359_v24 = vld [vmem:[#allocation5 + $0x264] ss:$16 sps:$4 sm:$0xff]  }
  0xbf   :  { %3346 = vmatprep.subr.bf16.mxu0 %v6284_v28  ;;  %3674 = vmatprep.subr.bf16.mxu1 %v6286_v29  ;;  %v6362_v25 = vld [vmem:[#allocation5 + $0x26c] ss:$16 sps:$4 sm:$0xff]   ;;  %v6357_v26 = vld [vmem:[#allocation5 + $0x260] ss:$16 sps:$4 sm:$0xff]   ;;  %v6360_v27 = vld [vmem:[#allocation5 + $0x268] ss:$16 sps:$4 sm:$0xff]  }
  0xc0   :  { %v6365_v28 = vld [vmem:[#allocation5 + $0x284] ss:$16 sps:$4 sm:$0xff]   ;;  %v6368_v29 = vld [vmem:[#allocation5 + $0x28c] ss:$16 sps:$4 sm:$0xff]   ;;  %v6375_v38 = vld [vmem:[#allocation5 + $0x2c0] ss:$16 sps:$4 sm:$0xff]  }
  0xc1   :  { %v6377_v36 = vld [vmem:[#allocation5 + $0x2c4] ss:$16 sps:$4 sm:$0xff]   ;;  %v6380_v37 = vld [vmem:[#allocation5 + $0x2cc] ss:$16 sps:$4 sm:$0xff]   ;;  %v6381_v43 = vld [vmem:[#allocation5 + $0x2e0] ss:$16 sps:$4 sm:$0xff]  }
  0xc2   :  { %3347 = vmatpush1.bf16.msra.mxu0 %v6288_v30  ;;  %3675 = vmatpush1.bf16.msra.mxu1 %v6289_v31  ;;  %v6363_v30 = vld [vmem:[#allocation5 + $0x280] ss:$16 sps:$4 sm:$0xff]   ;;  %v6366_v31 = vld [vmem:[#allocation5 + $0x288] ss:$16 sps:$4 sm:$0xff]   ;;  %v6407_v58 = vld [vmem:[#allocation5 + $0x364] ss:$16 sps:$4 sm:$0xff]  }
  0xc3   :  { %3348 = vmatprep.subr.bf16.mxu0 %v6290_v32  ;;  %3676 = vmatprep.subr.bf16.mxu1 %v6292_v33  ;;  %v6371_v32 = vld [vmem:[#allocation5 + $0x2a4] ss:$16 sps:$4 sm:$0xff]   ;;  %v6374_v33 = vld [vmem:[#allocation5 + $0x2ac] ss:$16 sps:$4 sm:$0xff]   ;;  %v6393_v52 = vld [vmem:[#allocation5 + $0x320] ss:$16 sps:$4 sm:$0xff]  }
  0xc4   :  { %v6428_v7 = vld [vmem:[#allocation5 + $0x3cc] ss:$16 sps:$4 sm:$0xff]   ;;  %s7432_s27 = scalar_lea.vmem %s5399_s26, 64 }
  0xc5   :  { %p7433_p2 = scmp.ne.s32.totalorder %s5399_s26, %s7432_s27  ;;  %p7438_p4 = scmp.lt.s32.totalorder %s7432_s27, %s7432_s27 }
  0xc6   :  { %3349 = vmatpush1.bf16.msra.mxu0 %v6294_v34  ;;  %3677 = vmatpush1.bf16.msra.mxu1 %v6295_v35  ;;  %v6369_v34 = vld [vmem:[#allocation5 + $0x2a0] ss:$16 sps:$4 sm:$0xff]   ;;  %v6372_v35 = vld [vmem:[#allocation5 + $0x2a8] ss:$16 sps:$4 sm:$0xff]  }
  0xc7   :  { %3350 = vmatprep.subr.bf16.mxu0 %v6296_v39  ;;  %3678 = vmatprep.subr.bf16.mxu1 %v6298_v40  ;;  %v6378_v39 = vld [vmem:[#allocation5 + $0x2c8] ss:$16 sps:$4 sm:$0xff]   ;;  %v6383_v40 = vld [vmem:[#allocation5 + $0x2e4] ss:$16 sps:$4 sm:$0xff]   ;;  %p7439_p5 = por %p7438_p4, %p7437_p3 }
  0xc9   :  { %p7440_p6 = pnand %p7439_p5, %p7433_p2 }
  0xca   :  { %3351 = vmatpush1.bf16.msra.mxu0 %v6300_v41  ;;  %3679 = vmatpush1.bf16.msra.mxu1 %v6301_v44  ;;  %v6386_v41 = vld [vmem:[#allocation5 + $0x2ec] ss:$16 sps:$4 sm:$0xff]   ;;  %v6384_v44 = vld [vmem:[#allocation5 + $0x2e8] ss:$16 sps:$4 sm:$0xff]  }
  0xcb   :  { %3352 = vmatprep.subr.bf16.mxu0 %v6302_v45  ;;  %3680 = vmatprep.subr.bf16.mxu1 %v6304_v46  ;;  %v6389_v45 = vld [vmem:[#allocation5 + $0x304] ss:$16 sps:$4 sm:$0xff]   ;;  %v6392_v46 = vld [vmem:[#allocation5 + $0x30c] ss:$16 sps:$4 sm:$0xff]  }
  0xce   :  { %3353 = vmatpush1.bf16.msra.mxu0 %v6306_v47  ;;  %3681 = vmatpush1.bf16.msra.mxu1 %v6307_v48  ;;  %v6387_v47 = vld [vmem:[#allocation5 + $0x300] ss:$16 sps:$4 sm:$0xff]   ;;  %v6390_v48 = vld [vmem:[#allocation5 + $0x308] ss:$16 sps:$4 sm:$0xff]  }
  0xcf   :  { %3354 = vmatprep.subr.bf16.mxu0 %v6308_v50  ;;  %3682 = vmatprep.subr.bf16.mxu1 %v6310_v51  ;;  %v6395_v50 = vld [vmem:[#allocation5 + $0x324] ss:$16 sps:$4 sm:$0xff]   ;;  %v6398_v51 = vld [vmem:[#allocation5 + $0x32c] ss:$16 sps:$4 sm:$0xff]  }
  0xd2   :  { %3355 = vmatpush1.bf16.msra.mxu0 %v6312_v53  ;;  %3683 = vmatpush1.bf16.msra.mxu1 %v6313_v55  ;;  %v6396_v53 = vld [vmem:[#allocation5 + $0x328] ss:$16 sps:$4 sm:$0xff]   ;;  %v6404_v55 = vld [vmem:[#allocation5 + $0x34c] ss:$16 sps:$4 sm:$0xff]  }
  0xd3   :  { %3356 = vmatprep.subr.bf16.mxu0 %v6314_v56  ;;  %3684 = vmatprep.subr.bf16.mxu1 %v6316_v57  ;;  %v6399_v56 = vld [vmem:[#allocation5 + $0x340] ss:$16 sps:$4 sm:$0xff]   ;;  %v6402_v57 = vld [vmem:[#allocation5 + $0x348] ss:$16 sps:$4 sm:$0xff]  }
  0xd6   :  { %3357 = vmatpush1.bf16.msra.mxu0 %v6318_v59  ;;  %3685 = vmatpush1.bf16.msra.mxu1 %v6319_v60  ;;  %v6410_v59 = vld [vmem:[#allocation5 + $0x36c] ss:$16 sps:$4 sm:$0xff]   ;;  %v6405_v60 = vld [vmem:[#allocation5 + $0x360] ss:$16 sps:$4 sm:$0xff]  }
  0xd7   :  { %3358 = vmatprep.subr.bf16.mxu0 %v6320_v61  ;;  %3686 = vmatprep.subr.bf16.mxu1 %v6322_v62  ;;  %v6408_v61 = vld [vmem:[#allocation5 + $0x368] ss:$16 sps:$4 sm:$0xff]   ;;  %v6413_v62 = vld [vmem:[#allocation5 + $0x384] ss:$16 sps:$4 sm:$0xff]  }
  0xda   :  { %3359 = vmatpush1.bf16.msra.mxu0 %v6324_v63  ;;  %3687 = vmatpush1.bf16.msra.mxu1 %v6325_v0  ;;  %v6416_v63 = vld [vmem:[#allocation5 + $0x38c] ss:$16 sps:$4 sm:$0xff]   ;;  %v6411_v0 = vld [vmem:[#allocation5 + $0x380] ss:$16 sps:$4 sm:$0xff]  }
  0xdb   :  { %3360 = vmatprep.subr.bf16.mxu0 %v6326_v1  ;;  %3688 = vmatprep.subr.bf16.mxu1 %v6328_v2  ;;  %v6414_v1 = vld [vmem:[#allocation5 + $0x388] ss:$16 sps:$4 sm:$0xff]   ;;  %v6419_v2 = vld [vmem:[#allocation5 + $0x3a4] ss:$16 sps:$4 sm:$0xff]  }
  0xde   :  { %3361 = vmatpush1.bf16.msra.mxu0 %v6330_v3  ;;  %3689 = vmatpush1.bf16.msra.mxu1 %v6331_v4  ;;  %v6422_v3 = vld [vmem:[#allocation5 + $0x3ac] ss:$16 sps:$4 sm:$0xff]   ;;  %v6417_v4 = vld [vmem:[#allocation5 + $0x3a0] ss:$16 sps:$4 sm:$0xff]  }
  0xdf   :  { %3362 = vmatprep.subr.bf16.mxu0 %v6332_v5  ;;  %3690 = vmatprep.subr.bf16.mxu1 %v6334_v6  ;;  %v6420_v5 = vld [vmem:[#allocation5 + $0x3a8] ss:$16 sps:$4 sm:$0xff]   ;;  %v6425_v6 = vld [vmem:[#allocation5 + $0x3c4] ss:$16 sps:$4 sm:$0xff]  }
  0xe2   :  { %3363 = vmatpush1.bf16.msra.mxu0 %v6336_v8  ;;  %3691 = vmatpush1.bf16.msra.mxu1 %v6337_v9  ;;  %v6423_v8 = vld [vmem:[#allocation5 + $0x3c0] ss:$16 sps:$4 sm:$0xff]   ;;  %v6426_v9 = vld [vmem:[#allocation5 + $0x3c8] ss:$16 sps:$4 sm:$0xff]  }
  0xe3   :  { %3373 = vmatprep.subr.bf16.mxu0 %v6341_v10  ;;  %3701 = vmatprep.subr.bf16.mxu1 %v6344_v11  ;;  %v6431_v10 = vld [vmem:[#allocation5 + $0x3e4] ss:$16 sps:$4 sm:$0xff]   ;;  %v6434_v11 = vld [vmem:[#allocation5 + $0x3ec] ss:$16 sps:$4 sm:$0xff]  }
  0xe5   :  { %3365 = vmatmul.mubr.bf16.vlgmr.msra.gmra.mrb[0].mxu0 %v695_v54  ;;  %3693 = vmatmul.mubr.bf16.vlgmr.msra.gmra.mrb[0].mxu1 %v695_v54  ;;  %v6401_v54 = vld [vmem:[#allocation5 + $0x344] ss:$16 sps:$4 sm:$0xff]  }
  0xe6   :  { %3374 = vmatpush1.bf16.msra.mxu0 %v6339_v13  ;;  %3702 = vmatpush1.bf16.msra.mxu1 %v6342_v14  ;;  %v6429_v13 = vld [vmem:[#allocation5 + $0x3e0] ss:$16 sps:$4 sm:$0xff]   ;;  %v6432_v14 = vld [vmem:[#allocation5 + $0x3e8] ss:$16 sps:$4 sm:$0xff]  }
  0xe7   :  { %3375 = vmatprep.subr.bf16.mxu0 %v6347_v15  ;;  %3703 = vmatprep.subr.bf16.mxu1 %v6350_v16  ;;  %v6437_v15 = vld [vmem:[#allocation5 + $0x404] ss:$16 sps:$4 sm:$0xff]   ;;  %v6440_v16 = vld [vmem:[#allocation5 + $0x40c] ss:$16 sps:$4 sm:$0xff]  }
  0xe8   :  { %3405 = vmatprep.mubr.bf16.mxu0 %v704_v17  ;;  %3733 = vmatprep.mubr.bf16.mxu1 %v704_v17  ;;  %v6435_v17 = vld [vmem:[#allocation5 + $0x400] ss:$16 sps:$4 sm:$0xff]  }
  0xea   :  { %3376 = vmatpush1.bf16.msra.mxu0 %v6345_v18  ;;  %3704 = vmatpush1.bf16.msra.mxu1 %v6348_v19  ;;  %v6438_v18 = vld [vmem:[#allocation5 + $0x408] ss:$16 sps:$4 sm:$0xff]  }
  0xeb   :  { %3377 = vmatprep.subr.bf16.mxu0 %v6353_v20  ;;  %3705 = vmatprep.subr.bf16.mxu1 %v6356_v21  ;;  %v7655_v19 = vld [vmem:[#allocation2 + $0x8] sm:$0xff]  ;;  %v6443_v20 = vld [vmem:[#allocation5 + $0x424] ss:$16 sps:$4 sm:$0xff]  }
  0xec   :  { %v6446_v21 = vld [vmem:[#allocation5 + $0x42c] ss:$16 sps:$4 sm:$0xff]  }
  0xee   :  { %3378 = vmatpush1.bf16.msra.mxu0 %v6351_v22  ;;  %3706 = vmatpush1.bf16.msra.mxu1 %v6354_v23  ;;  %v7659_v22 = vrot.slane %v7655_v19, %v7647_v49 }
  0xef   :  { %3379 = vmatprep.subr.bf16.mxu0 %v6359_v24  ;;  %3707 = vmatprep.subr.bf16.mxu1 %v6362_v25  ;;  %v6441_v24 = vld [vmem:[#allocation5 + $0x420] ss:$16 sps:$4 sm:$0xff]   ;;  %v6444_v25 = vld [vmem:[#allocation5 + $0x428] ss:$16 sps:$4 sm:$0xff]  }
  0xf0   :  { %v720_v23 = vcombine.high %v7659_v22, %v7659_v22 }
  0xf2   :  { %3380 = vmatpush1.bf16.msra.mxu0 %v6357_v26  ;;  %3708 = vmatpush1.bf16.msra.mxu1 %v6360_v27  ;;  %v6449_v26 = vld [vmem:[#allocation5 + $0x444] ss:$16 sps:$4 sm:$0xff]   ;;  %v6452_v27 = vld [vmem:[#allocation5 + $0x44c] ss:$16 sps:$4 sm:$0xff]  }
  0xf3   :  { %3381 = vmatprep.subr.bf16.mxu0 %v6365_v28  ;;  %3709 = vmatprep.subr.bf16.mxu1 %v6368_v29  ;;  %v6447_v28 = vld [vmem:[#allocation5 + $0x440] ss:$16 sps:$4 sm:$0xff]   ;;  %v6450_v29 = vld [vmem:[#allocation5 + $0x448] ss:$16 sps:$4 sm:$0xff]  }
  0xf6   :  { %3382 = vmatpush1.bf16.msra.mxu0 %v6363_v30  ;;  %3710 = vmatpush1.bf16.msra.mxu1 %v6366_v31  ;;  %v6458_v30 = vld [vmem:[#allocation5 + $0x46c] ss:$16 sps:$4 sm:$0xff]   ;;  %v6453_v31 = vld [vmem:[#allocation5 + $0x460] ss:$16 sps:$4 sm:$0xff]  }
  0xf7   :  { %3383 = vmatprep.subr.bf16.mxu0 %v6371_v32  ;;  %3711 = vmatprep.subr.bf16.mxu1 %v6374_v33  ;;  %v6456_v32 = vld [vmem:[#allocation5 + $0x468] ss:$16 sps:$4 sm:$0xff]   ;;  %v6461_v33 = vld [vmem:[#allocation5 + $0x484] ss:$16 sps:$4 sm:$0xff]  }
  0xfa   :  { %3384 = vmatpush1.bf16.msra.mxu0 %v6369_v34  ;;  %3712 = vmatpush1.bf16.msra.mxu1 %v6372_v35  ;;  %v6464_v34 = vld [vmem:[#allocation5 + $0x48c] ss:$16 sps:$4 sm:$0xff]   ;;  %v6459_v35 = vld [vmem:[#allocation5 + $0x480] ss:$16 sps:$4 sm:$0xff]  }
  0xfb   :  { %3385 = vmatprep.subr.bf16.mxu0 %v6377_v36  ;;  %3713 = vmatprep.subr.bf16.mxu1 %v6380_v37  ;;  %v6462_v36 = vld [vmem:[#allocation5 + $0x488] ss:$16 sps:$4 sm:$0xff]   ;;  %v6467_v37 = vld [vmem:[#allocation5 + $0x4a4] ss:$16 sps:$4 sm:$0xff]  }
  0xfe   :  { %3386 = vmatpush1.bf16.msra.mxu0 %v6375_v38  ;;  %3714 = vmatpush1.bf16.msra.mxu1 %v6378_v39  ;;  %v6470_v38 = vld [vmem:[#allocation5 + $0x4ac] ss:$16 sps:$4 sm:$0xff]   ;;  %v6465_v39 = vld [vmem:[#allocation5 + $0x4a0] ss:$16 sps:$4 sm:$0xff]  }
  0xff   :  { %3387 = vmatprep.subr.bf16.mxu0 %v6383_v40  ;;  %3715 = vmatprep.subr.bf16.mxu1 %v6386_v41  ;;  %v6468_v40 = vld [vmem:[#allocation5 + $0x4a8] ss:$16 sps:$4 sm:$0xff]   ;;  %v6473_v41 = vld [vmem:[#allocation5 + $0x4c4] ss:$16 sps:$4 sm:$0xff]  }
 0x102   :  { %3388 = vmatpush1.bf16.msra.mxu0 %v6381_v43  ;;  %3716 = vmatpush1.bf16.msra.mxu1 %v6384_v44  ;;  %v6476_v43 = vld [vmem:[#allocation5 + $0x4cc] ss:$16 sps:$4 sm:$0xff]   ;;  %v6471_v44 = vld [vmem:[#allocation5 + $0x4c0] ss:$16 sps:$4 sm:$0xff]  }
 0x103   :  { %3389 = vmatprep.subr.bf16.mxu0 %v6389_v45  ;;  %3717 = vmatprep.subr.bf16.mxu1 %v6392_v46  ;;  %v6474_v45 = vld [vmem:[#allocation5 + $0x4c8] ss:$16 sps:$4 sm:$0xff]   ;;  %v6479_v46 = vld [vmem:[#allocation5 + $0x4e4] ss:$16 sps:$4 sm:$0xff]  }
 0x106   :  { %3390 = vmatpush1.bf16.msra.mxu0 %v6387_v47  ;;  %3718 = vmatpush1.bf16.msra.mxu1 %v6390_v48  ;;  %v6482_v47 = vld [vmem:[#allocation5 + $0x4ec] ss:$16 sps:$4 sm:$0xff]   ;;  %v6477_v48 = vld [vmem:[#allocation5 + $0x4e0] ss:$16 sps:$4 sm:$0xff]  }
 0x107   :  { %3391 = vmatprep.subr.bf16.mxu0 %v6395_v50  ;;  %3719 = vmatprep.subr.bf16.mxu1 %v6398_v51  ;;  %v6480_v50 = vld [vmem:[#allocation5 + $0x4e8] ss:$16 sps:$4 sm:$0xff]   ;;  %v6485_v51 = vld [vmem:[#allocation5 + $0x504] ss:$16 sps:$4 sm:$0xff]  }
 0x10a   :  { %3392 = vmatpush1.bf16.msra.mxu0 %v6393_v52  ;;  %3720 = vmatpush1.bf16.msra.mxu1 %v6396_v53  ;;  %v6488_v52 = vld [vmem:[#allocation5 + $0x50c] ss:$16 sps:$4 sm:$0xff]   ;;  %v6483_v53 = vld [vmem:[#allocation5 + $0x500] ss:$16 sps:$4 sm:$0xff]  }
 0x10b   :  { %3393 = vmatprep.subr.bf16.mxu0 %v6401_v54  ;;  %3721 = vmatprep.subr.bf16.mxu1 %v6404_v55  ;;  %v6486_v54 = vld [vmem:[#allocation5 + $0x508] ss:$16 sps:$4 sm:$0xff]   ;;  %v6491_v55 = vld [vmem:[#allocation5 + $0x524] ss:$16 sps:$4 sm:$0xff]  }
 0x10e   :  { %3394 = vmatpush1.bf16.msra.mxu0 %v6399_v56  ;;  %3722 = vmatpush1.bf16.msra.mxu1 %v6402_v57  ;;  %v6494_v56 = vld [vmem:[#allocation5 + $0x52c] ss:$16 sps:$4 sm:$0xff]   ;;  %v6489_v57 = vld [vmem:[#allocation5 + $0x520] ss:$16 sps:$4 sm:$0xff]  }
 0x10f   :  { %3395 = vmatprep.subr.bf16.mxu0 %v6407_v58  ;;  %3723 = vmatprep.subr.bf16.mxu1 %v6410_v59  ;;  %v6492_v58 = vld [vmem:[#allocation5 + $0x528] ss:$16 sps:$4 sm:$0xff]   ;;  %v6497_v59 = vld [vmem:[#allocation5 + $0x544] ss:$16 sps:$4 sm:$0xff]  }
 0x112   :  { %3396 = vmatpush1.bf16.msra.mxu0 %v6405_v60  ;;  %3724 = vmatpush1.bf16.msra.mxu1 %v6408_v61  ;;  %v6500_v60 = vld [vmem:[#allocation5 + $0x54c] ss:$16 sps:$4 sm:$0xff]   ;;  %v6495_v61 = vld [vmem:[#allocation5 + $0x540] ss:$16 sps:$4 sm:$0xff]  }
 0x113   :  { %3397 = vmatprep.subr.bf16.mxu0 %v6413_v62  ;;  %3725 = vmatprep.subr.bf16.mxu1 %v6416_v63  ;;  %v6498_v62 = vld [vmem:[#allocation5 + $0x548] ss:$16 sps:$4 sm:$0xff]   ;;  %v6503_v63 = vld [vmem:[#allocation5 + $0x564] ss:$16 sps:$4 sm:$0xff]  }
 0x116   :  { %3398 = vmatpush1.bf16.msra.mxu0 %v6411_v0  ;;  %3726 = vmatpush1.bf16.msra.mxu1 %v6414_v1  ;;  %v6506_v0 = vld [vmem:[#allocation5 + $0x56c] ss:$16 sps:$4 sm:$0xff]   ;;  %v6501_v1 = vld [vmem:[#allocation5 + $0x560] ss:$16 sps:$4 sm:$0xff]  }
 0x117   :  { %3399 = vmatprep.subr.bf16.mxu0 %v6419_v2  ;;  %3727 = vmatprep.subr.bf16.mxu1 %v6422_v3  ;;  %v6504_v2 = vld [vmem:[#allocation5 + $0x568] ss:$16 sps:$4 sm:$0xff]   ;;  %v6509_v3 = vld [vmem:[#allocation5 + $0x584] ss:$16 sps:$4 sm:$0xff]  }
 0x11a   :  { %3400 = vmatpush1.bf16.msra.mxu0 %v6417_v4  ;;  %3728 = vmatpush1.bf16.msra.mxu1 %v6420_v5  ;;  %v6512_v4 = vld [vmem:[#allocation5 + $0x58c] ss:$16 sps:$4 sm:$0xff]   ;;  %v6507_v5 = vld [vmem:[#allocation5 + $0x580] ss:$16 sps:$4 sm:$0xff]  }
 0x11b   :  { %3401 = vmatprep.subr.bf16.mxu0 %v6425_v6  ;;  %3729 = vmatprep.subr.bf16.mxu1 %v6428_v7  ;;  %v6510_v6 = vld [vmem:[#allocation5 + $0x588] ss:$16 sps:$4 sm:$0xff]   ;;  %v6515_v7 = vld [vmem:[#allocation5 + $0x5a4] ss:$16 sps:$4 sm:$0xff]  }
 0x11e   :  { %3402 = vmatpush1.bf16.msra.mxu0 %v6423_v8  ;;  %3730 = vmatpush1.bf16.msra.mxu1 %v6426_v9  ;;  %v6518_v8 = vld [vmem:[#allocation5 + $0x5ac] ss:$16 sps:$4 sm:$0xff]   ;;  %v6513_v9 = vld [vmem:[#allocation5 + $0x5a0] ss:$16 sps:$4 sm:$0xff]  }
 0x11f   :  { %3403 = vmatprep.subr.bf16.mxu0 %v6431_v10  ;;  %3731 = vmatprep.subr.bf16.mxu1 %v6434_v11  ;;  %v6516_v10 = vld [vmem:[#allocation5 + $0x5a8] ss:$16 sps:$4 sm:$0xff]   ;;  %v6521_v11 = vld [vmem:[#allocation5 + $0x5c4] ss:$16 sps:$4 sm:$0xff]  }
 0x122   :  { %3404 = vmatpush1.bf16.msra.mxu0 %v6429_v13  ;;  %3732 = vmatpush1.bf16.msra.mxu1 %v6432_v14  ;;  %v6524_v13 = vld [vmem:[#allocation5 + $0x5cc] ss:$16 sps:$4 sm:$0xff]   ;;  %v6519_v14 = vld [vmem:[#allocation5 + $0x5c0] ss:$16 sps:$4 sm:$0xff]  }
 0x123   :  { %3414 = vmatprep.subr.bf16.mxu0 %v6437_v15  ;;  %3742 = vmatprep.subr.bf16.mxu1 %v6440_v16  ;;  %v6522_v15 = vld [vmem:[#allocation5 + $0x5c8] ss:$16 sps:$4 sm:$0xff]   ;;  %v6527_v16 = vld [vmem:[#allocation5 + $0x5e4] ss:$16 sps:$4 sm:$0xff]  }
 0x125   :  { %3406 = vmatmul.mubr.bf16.vlgmr.msra.gmra.mrb[0].mxu0 %v7651_v12  ;;  %3734 = vmatmul.mubr.bf16.vlgmr.msra.gmra.mrb[0].mxu1 %v7651_v12  ;;  %v6455_v12 = vld [vmem:[#allocation5 + $0x464] ss:$16 sps:$4 sm:$0xff]  }
 0x126   :  { %3415 = vmatpush1.bf16.msra.mxu0 %v6435_v17  ;;  %3743 = vmatpush1.bf16.msra.mxu1 %v6438_v18  ;;  %v6530_v17 = vld [vmem:[#allocation5 + $0x5ec] ss:$16 sps:$4 sm:$0xff]   ;;  %v705_v18 = vcombine.high %v7655_v19, %v7655_v19 }
 0x127   :  { %3416 = vmatprep.subr.bf16.mxu0 %v6443_v20  ;;  %3744 = vmatprep.subr.bf16.mxu1 %v6446_v21  ;;  %v6525_v20 = vld [vmem:[#allocation5 + $0x5e0] ss:$16 sps:$4 sm:$0xff]   ;;  %v6528_v21 = vld [vmem:[#allocation5 + $0x5e8] ss:$16 sps:$4 sm:$0xff]  }
 0x128   :  { %3446 = vmatprep.mubr.bf16.mxu0 %v720_v23  ;;  %3774 = vmatprep.mubr.bf16.mxu1 %v720_v23  ;;  %v6533_v23 = vld [vmem:[#allocation5 + $0x604] ss:$16 sps:$4 sm:$0xff]  }
 0x12a   :  { %3417 = vmatpush1.bf16.msra.mxu0 %v6441_v24  ;;  %3745 = vmatpush1.bf16.msra.mxu1 %v6444_v25  ;;  %v6536_v24 = vld [vmem:[#allocation5 + $0x60c] ss:$16 sps:$4 sm:$0xff]   ;;  %v7668_v25 = vrot.slane %v705_v18, %v7647_v49 }
 0x12b   :  { %3418 = vmatprep.subr.bf16.mxu0 %v6449_v26  ;;  %3746 = vmatprep.subr.bf16.mxu1 %v6452_v27  ;;  %v6531_v26 = vld [vmem:[#allocation5 + $0x600] ss:$16 sps:$4 sm:$0xff]   ;;  %v6534_v27 = vld [vmem:[#allocation5 + $0x608] ss:$16 sps:$4 sm:$0xff]   ;;  %v6620_v18 = vld [vmem:[#allocation5 + $0x7cc] ss:$16 sps:$4 sm:$0xff]  }
 0x12c   :  { %v721_v19 = vcombine.high %v7668_v25, %v7668_v25 }
 0x12e   :  { %3419 = vmatpush1.bf16.msra.mxu0 %v6447_v28  ;;  %3747 = vmatpush1.bf16.msra.mxu1 %v6450_v29  ;;  %v6539_v28 = vld [vmem:[#allocation5 + $0x624] ss:$16 sps:$4 sm:$0xff]   ;;  %v6542_v29 = vld [vmem:[#allocation5 + $0x62c] ss:$16 sps:$4 sm:$0xff]  }
 0x12f   :  { %3420 = vmatprep.subr.bf16.mxu0 %v6455_v12  ;;  %3748 = vmatprep.subr.bf16.mxu1 %v6458_v30  ;;  %v6537_v12 = vld [vmem:[#allocation5 + $0x620] ss:$16 sps:$4 sm:$0xff]   ;;  %v6540_v30 = vld [vmem:[#allocation5 + $0x628] ss:$16 sps:$4 sm:$0xff]  }
 0x132   :  { %3421 = vmatpush1.bf16.msra.mxu0 %v6453_v31  ;;  %3749 = vmatpush1.bf16.msra.mxu1 %v6456_v32  ;;  %v6545_v31 = vld [vmem:[#allocation5 + $0x644] ss:$16 sps:$4 sm:$0xff]   ;;  %v6548_v32 = vld [vmem:[#allocation5 + $0x64c] ss:$16 sps:$4 sm:$0xff]  }
 0x133   :  { %3422 = vmatprep.subr.bf16.mxu0 %v6461_v33  ;;  %3750 = vmatprep.subr.bf16.mxu1 %v6464_v34  ;;  %v6543_v33 = vld [vmem:[#allocation5 + $0x640] ss:$16 sps:$4 sm:$0xff]   ;;  %v6546_v34 = vld [vmem:[#allocation5 + $0x648] ss:$16 sps:$4 sm:$0xff]  }
 0x136   :  { %3423 = vmatpush1.bf16.msra.mxu0 %v6459_v35  ;;  %3751 = vmatpush1.bf16.msra.mxu1 %v6462_v36  ;;  %v6551_v35 = vld [vmem:[#allocation5 + $0x664] ss:$16 sps:$4 sm:$0xff]   ;;  %v6554_v36 = vld [vmem:[#allocation5 + $0x66c] ss:$16 sps:$4 sm:$0xff]  }
 0x137   :  { %3424 = vmatprep.subr.bf16.mxu0 %v6467_v37  ;;  %3752 = vmatprep.subr.bf16.mxu1 %v6470_v38  ;;  %v6552_v37 = vld [vmem:[#allocation5 + $0x668] ss:$16 sps:$4 sm:$0xff]   ;;  %v6557_v38 = vld [vmem:[#allocation5 + $0x684] ss:$16 sps:$4 sm:$0xff]  }
 0x13a   :  { %3425 = vmatpush1.bf16.msra.mxu0 %v6465_v39  ;;  %3753 = vmatpush1.bf16.msra.mxu1 %v6468_v40  ;;  %v6560_v39 = vld [vmem:[#allocation5 + $0x68c] ss:$16 sps:$4 sm:$0xff]   ;;  %v6555_v40 = vld [vmem:[#allocation5 + $0x680] ss:$16 sps:$4 sm:$0xff]  }
 0x13b   :  { %3426 = vmatprep.subr.bf16.mxu0 %v6473_v41  ;;  %3754 = vmatprep.subr.bf16.mxu1 %v6476_v43  ;;  %v6558_v41 = vld [vmem:[#allocation5 + $0x688] ss:$16 sps:$4 sm:$0xff]   ;;  %v6563_v43 = vld [vmem:[#allocation5 + $0x6a4] ss:$16 sps:$4 sm:$0xff]  }
 0x13e   :  { %3427 = vmatpush1.bf16.msra.mxu0 %v6471_v44  ;;  %3755 = vmatpush1.bf16.msra.mxu1 %v6474_v45  ;;  %v6566_v44 = vld [vmem:[#allocation5 + $0x6ac] ss:$16 sps:$4 sm:$0xff]   ;;  %v6561_v45 = vld [vmem:[#allocation5 + $0x6a0] ss:$16 sps:$4 sm:$0xff]  }
 0x13f   :  { %3428 = vmatprep.subr.bf16.mxu0 %v6479_v46  ;;  %3756 = vmatprep.subr.bf16.mxu1 %v6482_v47  ;;  %v6564_v46 = vld [vmem:[#allocation5 + $0x6a8] ss:$16 sps:$4 sm:$0xff]   ;;  %v6569_v47 = vld [vmem:[#allocation5 + $0x6c4] ss:$16 sps:$4 sm:$0xff]  }
 0x142   :  { %3429 = vmatpush1.bf16.msra.mxu0 %v6477_v48  ;;  %3757 = vmatpush1.bf16.msra.mxu1 %v6480_v50  ;;  %v6572_v48 = vld [vmem:[#allocation5 + $0x6cc] ss:$16 sps:$4 sm:$0xff]   ;;  %v6567_v50 = vld [vmem:[#allocation5 + $0x6c0] ss:$16 sps:$4 sm:$0xff]  }
 0x143   :  { %3430 = vmatprep.subr.bf16.mxu0 %v6485_v51  ;;  %3758 = vmatprep.subr.bf16.mxu1 %v6488_v52  ;;  %v6570_v51 = vld [vmem:[#allocation5 + $0x6c8] ss:$16 sps:$4 sm:$0xff]   ;;  %v6575_v52 = vld [vmem:[#allocation5 + $0x6e4] ss:$16 sps:$4 sm:$0xff]  }
 0x146   :  { %3431 = vmatpush1.bf16.msra.mxu0 %v6483_v53  ;;  %3759 = vmatpush1.bf16.msra.mxu1 %v6486_v54  ;;  %v6578_v53 = vld [vmem:[#allocation5 + $0x6ec] ss:$16 sps:$4 sm:$0xff]   ;;  %v6573_v54 = vld [vmem:[#allocation5 + $0x6e0] ss:$16 sps:$4 sm:$0xff]  }
 0x147   :  { %3432 = vmatprep.subr.bf16.mxu0 %v6491_v55  ;;  %3760 = vmatprep.subr.bf16.mxu1 %v6494_v56  ;;  %v6576_v55 = vld [vmem:[#allocation5 + $0x6e8] ss:$16 sps:$4 sm:$0xff]   ;;  %v6581_v56 = vld [vmem:[#allocation5 + $0x704] ss:$16 sps:$4 sm:$0xff]  }
 0x14a   :  { %3433 = vmatpush1.bf16.msra.mxu0 %v6489_v57  ;;  %3761 = vmatpush1.bf16.msra.mxu1 %v6492_v58  ;;  %v6584_v57 = vld [vmem:[#allocation5 + $0x70c] ss:$16 sps:$4 sm:$0xff]   ;;  %v6579_v58 = vld [vmem:[#allocation5 + $0x700] ss:$16 sps:$4 sm:$0xff]  }
 0x14b   :  { %3434 = vmatprep.subr.bf16.mxu0 %v6497_v59  ;;  %3762 = vmatprep.subr.bf16.mxu1 %v6500_v60  ;;  %v6582_v59 = vld [vmem:[#allocation5 + $0x708] ss:$16 sps:$4 sm:$0xff]   ;;  %v6587_v60 = vld [vmem:[#allocation5 + $0x724] ss:$16 sps:$4 sm:$0xff]  }
 0x14e   :  { %3435 = vmatpush1.bf16.msra.mxu0 %v6495_v61  ;;  %3763 = vmatpush1.bf16.msra.mxu1 %v6498_v62  ;;  %v6590_v61 = vld [vmem:[#allocation5 + $0x72c] ss:$16 sps:$4 sm:$0xff]   ;;  %v6585_v62 = vld [vmem:[#allocation5 + $0x720] ss:$16 sps:$4 sm:$0xff]  }
 0x14f   :  { %3436 = vmatprep.subr.bf16.mxu0 %v6503_v63  ;;  %3764 = vmatprep.subr.bf16.mxu1 %v6506_v0  ;;  %v6588_v63 = vld [vmem:[#allocation5 + $0x728] ss:$16 sps:$4 sm:$0xff]   ;;  %v6593_v0 = vld [vmem:[#allocation5 + $0x744] ss:$16 sps:$4 sm:$0xff]  }
 0x152   :  { %3437 = vmatpush1.bf16.msra.mxu0 %v6501_v1  ;;  %3765 = vmatpush1.bf16.msra.mxu1 %v6504_v2  ;;  %v6596_v1 = vld [vmem:[#allocation5 + $0x74c] ss:$16 sps:$4 sm:$0xff]   ;;  %v6591_v2 = vld [vmem:[#allocation5 + $0x740] ss:$16 sps:$4 sm:$0xff]  }
 0x153   :  { %3438 = vmatprep.subr.bf16.mxu0 %v6509_v3  ;;  %3766 = vmatprep.subr.bf16.mxu1 %v6512_v4  ;;  %v6594_v3 = vld [vmem:[#allocation5 + $0x748] ss:$16 sps:$4 sm:$0xff]   ;;  %v6599_v4 = vld [vmem:[#allocation5 + $0x764] ss:$16 sps:$4 sm:$0xff]  }
 0x156   :  { %3439 = vmatpush1.bf16.msra.mxu0 %v6507_v5  ;;  %3767 = vmatpush1.bf16.msra.mxu1 %v6510_v6  ;;  %v6602_v5 = vld [vmem:[#allocation5 + $0x76c] ss:$16 sps:$4 sm:$0xff]   ;;  %v6597_v6 = vld [vmem:[#allocation5 + $0x760] ss:$16 sps:$4 sm:$0xff]  }
 0x157   :  { %3440 = vmatprep.subr.bf16.mxu0 %v6515_v7  ;;  %3768 = vmatprep.subr.bf16.mxu1 %v6518_v8  ;;  %v6600_v7 = vld [vmem:[#allocation5 + $0x768] ss:$16 sps:$4 sm:$0xff]   ;;  %v6605_v8 = vld [vmem:[#allocation5 + $0x784] ss:$16 sps:$4 sm:$0xff]  }
 0x15a   :  { %3441 = vmatpush1.bf16.msra.mxu0 %v6513_v9  ;;  %3769 = vmatpush1.bf16.msra.mxu1 %v6516_v10  ;;  %v6608_v9 = vld [vmem:[#allocation5 + $0x78c] ss:$16 sps:$4 sm:$0xff]   ;;  %v6603_v10 = vld [vmem:[#allocation5 + $0x780] ss:$16 sps:$4 sm:$0xff]  }
 0x15b   :  { %3442 = vmatprep.subr.bf16.mxu0 %v6521_v11  ;;  %3770 = vmatprep.subr.bf16.mxu1 %v6524_v13  ;;  %v6606_v11 = vld [vmem:[#allocation5 + $0x788] ss:$16 sps:$4 sm:$0xff]   ;;  %v6611_v13 = vld [vmem:[#allocation5 + $0x7a4] ss:$16 sps:$4 sm:$0xff]  }
 0x15e   :  { %3443 = vmatpush1.bf16.msra.mxu0 %v6519_v14  ;;  %3771 = vmatpush1.bf16.msra.mxu1 %v6522_v15  ;;  %v6614_v14 = vld [vmem:[#allocation5 + $0x7ac] ss:$16 sps:$4 sm:$0xff]   ;;  %v6609_v15 = vld [vmem:[#allocation5 + $0x7a0] ss:$16 sps:$4 sm:$0xff]  }
 0x15f   :  { %3444 = vmatprep.subr.bf16.mxu0 %v6527_v16  ;;  %3772 = vmatprep.subr.bf16.mxu1 %v6530_v17  ;;  %v6612_v16 = vld [vmem:[#allocation5 + $0x7a8] ss:$16 sps:$4 sm:$0xff]   ;;  %v6617_v17 = vld [vmem:[#allocation5 + $0x7c4] ss:$16 sps:$4 sm:$0xff]  }
 0x162   :  { %3445 = vmatpush1.bf16.msra.mxu0 %v6525_v20  ;;  %3773 = vmatpush1.bf16.msra.mxu1 %v6528_v21  ;;  %v6615_v20 = vld [vmem:[#allocation5 + $0x7c0] ss:$16 sps:$4 sm:$0xff]   ;;  %v6618_v21 = vld [vmem:[#allocation5 + $0x7c8] ss:$16 sps:$4 sm:$0xff]  }
 0x163   :  { %3455 = vmatprep.subr.bf16.mxu0 %v6533_v23  ;;  %3783 = vmatprep.subr.bf16.mxu1 %v6536_v24  ;;  %v6623_v23 = vld [vmem:[#allocation5 + $0x7e4] ss:$16 sps:$4 sm:$0xff]   ;;  %v6626_v24 = vld [vmem:[#allocation5 + $0x7ec] ss:$16 sps:$4 sm:$0xff]  }
 0x165   :  { %3447 = vmatmul.mubr.bf16.vlgmr.msra.gmra.mrb[0].mxu0 %v7659_v22  ;;  %3775 = vmatmul.mubr.bf16.vlgmr.msra.gmra.mrb[0].mxu1 %v7659_v22  ;;  %v6549_v22 = vld [vmem:[#allocation5 + $0x660] ss:$16 sps:$4 sm:$0xff]  }
 0x166   :  { %3456 = vmatpush1.bf16.msra.mxu0 %v6531_v26  ;;  %3784 = vmatpush1.bf16.msra.mxu1 %v6534_v27  ;;  %v6621_v26 = vld [vmem:[#allocation5 + $0x7e0] ss:$16 sps:$4 sm:$0xff]  }
 0x167   :  { %3457 = vmatprep.subr.bf16.mxu0 %v6539_v28  ;;  %3785 = vmatprep.subr.bf16.mxu1 %v6542_v29  ;;  %v7674_v27 = vld [vmem:[#allocation2 + $0x10] sm:$0xff]  ;;  %v6624_v28 = vld [vmem:[#allocation5 + $0x7e8] ss:$16 sps:$4 sm:$0xff]  }
 0x168   :  { %3487 = vmatprep.mubr.bf16.mxu0 %v721_v19  ;;  %3815 = vmatprep.mubr.bf16.mxu1 %v721_v19  ;;  %v6630_v29 = vld [vmem:[#allocation5 + $0x804] ss:$16 sps:$4 sm:$0xff]   ;;  %v6633_v19 = vld [vmem:[#allocation5 + $0x80c] ss:$16 sps:$4 sm:$0xff]  }
 0x16a   :  { %3458 = vmatpush1.bf16.msra.mxu0 %v6537_v12  ;;  %3786 = vmatpush1.bf16.msra.mxu1 %v6540_v30  ;;  %v7678_v12 = vrot.slane %v7674_v27, %v7647_v49  ;;  %v6628_v30 = vld [vmem:[#allocation5 + $0x800] ss:$16 sps:$4 sm:$0xff]  }
 0x16b   :  { %3459 = vmatprep.subr.bf16.mxu0 %v6545_v31  ;;  %3787 = vmatprep.subr.bf16.mxu1 %v6548_v32  ;;  %v6631_v31 = vld [vmem:[#allocation5 + $0x808] ss:$16 sps:$4 sm:$0xff]   ;;  %v6636_v32 = vld [vmem:[#allocation5 + $0x824] ss:$16 sps:$4 sm:$0xff]  }
 0x16e   :  { %3460 = vmatpush1.bf16.msra.mxu0 %v6543_v33  ;;  %3788 = vmatpush1.bf16.msra.mxu1 %v6546_v34  ;;  %v6639_v33 = vld [vmem:[#allocation5 + $0x82c] ss:$16 sps:$4 sm:$0xff]   ;;  %v737_v34 = vcombine.high %v7678_v12, %v7678_v12 }
 0x16f   :  { %3461 = vmatprep.subr.bf16.mxu0 %v6551_v35  ;;  %3789 = vmatprep.subr.bf16.mxu1 %v6554_v36  ;;  %v6634_v35 = vld [vmem:[#allocation5 + $0x820] ss:$16 sps:$4 sm:$0xff]   ;;  %v6637_v36 = vld [vmem:[#allocation5 + $0x828] ss:$16 sps:$4 sm:$0xff]  }
 0x172   :  { %3462 = vmatpush1.bf16.msra.mxu0 %v6549_v22  ;;  %3790 = vmatpush1.bf16.msra.mxu1 %v6552_v37  ;;  %v6642_v22 = vld [vmem:[#allocation5 + $0x844] ss:$16 sps:$4 sm:$0xff]   ;;  %v6645_v37 = vld [vmem:[#allocation5 + $0x84c] ss:$16 sps:$4 sm:$0xff]  }
 0x173   :  { %3463 = vmatprep.subr.bf16.mxu0 %v6557_v38  ;;  %3791 = vmatprep.subr.bf16.mxu1 %v6560_v39  ;;  %v6640_v38 = vld [vmem:[#allocation5 + $0x840] ss:$16 sps:$4 sm:$0xff]   ;;  %v6643_v39 = vld [vmem:[#allocation5 + $0x848] ss:$16 sps:$4 sm:$0xff]  }
 0x176   :  { %3464 = vmatpush1.bf16.msra.mxu0 %v6555_v40  ;;  %3792 = vmatpush1.bf16.msra.mxu1 %v6558_v41  ;;  %v6648_v40 = vld [vmem:[#allocation5 + $0x864] ss:$16 sps:$4 sm:$0xff]   ;;  %v6651_v41 = vld [vmem:[#allocation5 + $0x86c] ss:$16 sps:$4 sm:$0xff]  }
 0x177   :  { %3465 = vmatprep.subr.bf16.mxu0 %v6563_v43  ;;  %3793 = vmatprep.subr.bf16.mxu1 %v6566_v44  ;;  %v6649_v43 = vld [vmem:[#allocation5 + $0x868] ss:$16 sps:$4 sm:$0xff]   ;;  %v6654_v44 = vld [vmem:[#allocation5 + $0x884] ss:$16 sps:$4 sm:$0xff]  }
 0x17a   :  { %3466 = vmatpush1.bf16.msra.mxu0 %v6561_v45  ;;  %3794 = vmatpush1.bf16.msra.mxu1 %v6564_v46  ;;  %v6657_v45 = vld [vmem:[#allocation5 + $0x88c] ss:$16 sps:$4 sm:$0xff]   ;;  %v6652_v46 = vld [vmem:[#allocation5 + $0x880] ss:$16 sps:$4 sm:$0xff]  }
 0x17b   :  { %3467 = vmatprep.subr.bf16.mxu0 %v6569_v47  ;;  %3795 = vmatprep.subr.bf16.mxu1 %v6572_v48  ;;  %v6655_v47 = vld [vmem:[#allocation5 + $0x888] ss:$16 sps:$4 sm:$0xff]   ;;  %v6660_v48 = vld [vmem:[#allocation5 + $0x8a4] ss:$16 sps:$4 sm:$0xff]  }
 0x17e   :  { %3468 = vmatpush1.bf16.msra.mxu0 %v6567_v50  ;;  %3796 = vmatpush1.bf16.msra.mxu1 %v6570_v51  ;;  %v6663_v50 = vld [vmem:[#allocation5 + $0x8ac] ss:$16 sps:$4 sm:$0xff]   ;;  %v6658_v51 = vld [vmem:[#allocation5 + $0x8a0] ss:$16 sps:$4 sm:$0xff]  }
 0x17f   :  { %3469 = vmatprep.subr.bf16.mxu0 %v6575_v52  ;;  %3797 = vmatprep.subr.bf16.mxu1 %v6578_v53  ;;  %v6661_v52 = vld [vmem:[#allocation5 + $0x8a8] ss:$16 sps:$4 sm:$0xff]   ;;  %v6666_v53 = vld [vmem:[#allocation5 + $0x8c4] ss:$16 sps:$4 sm:$0xff]  }
 0x182   :  { %3470 = vmatpush1.bf16.msra.mxu0 %v6573_v54  ;;  %3798 = vmatpush1.bf16.msra.mxu1 %v6576_v55  ;;  %v6669_v54 = vld [vmem:[#allocation5 + $0x8cc] ss:$16 sps:$4 sm:$0xff]   ;;  %v6664_v55 = vld [vmem:[#allocation5 + $0x8c0] ss:$16 sps:$4 sm:$0xff]  }
 0x183   :  { %3471 = vmatprep.subr.bf16.mxu0 %v6581_v56  ;;  %3799 = vmatprep.subr.bf16.mxu1 %v6584_v57  ;;  %v6667_v56 = vld [vmem:[#allocation5 + $0x8c8] ss:$16 sps:$4 sm:$0xff]   ;;  %v6672_v57 = vld [vmem:[#allocation5 + $0x8e4] ss:$16 sps:$4 sm:$0xff]  }
 0x186   :  { %3472 = vmatpush1.bf16.msra.mxu0 %v6579_v58  ;;  %3800 = vmatpush1.bf16.msra.mxu1 %v6582_v59  ;;  %v6675_v58 = vld [vmem:[#allocation5 + $0x8ec] ss:$16 sps:$4 sm:$0xff]   ;;  %v6670_v59 = vld [vmem:[#allocation5 + $0x8e0] ss:$16 sps:$4 sm:$0xff]  }
 0x187   :  { %3473 = vmatprep.subr.bf16.mxu0 %v6587_v60  ;;  %3801 = vmatprep.subr.bf16.mxu1 %v6590_v61  ;;  %v6673_v60 = vld [vmem:[#allocation5 + $0x8e8] ss:$16 sps:$4 sm:$0xff]   ;;  %v6678_v61 = vld [vmem:[#allocation5 + $0x904] ss:$16 sps:$4 sm:$0xff]  }
 0x18a   :  { %3474 = vmatpush1.bf16.msra.mxu0 %v6585_v62  ;;  %3802 = vmatpush1.bf16.msra.mxu1 %v6588_v63  ;;  %v6681_v62 = vld [vmem:[#allocation5 + $0x90c] ss:$16 sps:$4 sm:$0xff]   ;;  %v6676_v63 = vld [vmem:[#allocation5 + $0x900] ss:$16 sps:$4 sm:$0xff]  }
 0x18b   :  { %3475 = vmatprep.subr.bf16.mxu0 %v6593_v0  ;;  %3803 = vmatprep.subr.bf16.mxu1 %v6596_v1  ;;  %v6679_v0 = vld [vmem:[#allocation5 + $0x908] ss:$16 sps:$4 sm:$0xff]   ;;  %v6684_v1 = vld [vmem:[#allocation5 + $0x924] ss:$16 sps:$4 sm:$0xff]  }
 0x18e   :  { %3476 = vmatpush1.bf16.msra.mxu0 %v6591_v2  ;;  %3804 = vmatpush1.bf16.msra.mxu1 %v6594_v3  ;;  %v6687_v2 = vld [vmem:[#allocation5 + $0x92c] ss:$16 sps:$4 sm:$0xff]   ;;  %v6682_v3 = vld [vmem:[#allocation5 + $0x920] ss:$16 sps:$4 sm:$0xff]  }
 0x18f   :  { %3477 = vmatprep.subr.bf16.mxu0 %v6599_v4  ;;  %3805 = vmatprep.subr.bf16.mxu1 %v6602_v5  ;;  %v6685_v4 = vld [vmem:[#allocation5 + $0x928] ss:$16 sps:$4 sm:$0xff]   ;;  %v6690_v5 = vld [vmem:[#allocation5 + $0x944] ss:$16 sps:$4 sm:$0xff]  }
 0x192   :  { %3478 = vmatpush1.bf16.msra.mxu0 %v6597_v6  ;;  %3806 = vmatpush1.bf16.msra.mxu1 %v6600_v7  ;;  %v6693_v6 = vld [vmem:[#allocation5 + $0x94c] ss:$16 sps:$4 sm:$0xff]   ;;  %v6688_v7 = vld [vmem:[#allocation5 + $0x940] ss:$16 sps:$4 sm:$0xff]  }
 0x193   :  { %3479 = vmatprep.subr.bf16.mxu0 %v6605_v8  ;;  %3807 = vmatprep.subr.bf16.mxu1 %v6608_v9  ;;  %v6691_v8 = vld [vmem:[#allocation5 + $0x948] ss:$16 sps:$4 sm:$0xff]   ;;  %v6696_v9 = vld [vmem:[#allocation5 + $0x964] ss:$16 sps:$4 sm:$0xff]  }
 0x196   :  { %3480 = vmatpush1.bf16.msra.mxu0 %v6603_v10  ;;  %3808 = vmatpush1.bf16.msra.mxu1 %v6606_v11  ;;  %v6699_v10 = vld [vmem:[#allocation5 + $0x96c] ss:$16 sps:$4 sm:$0xff]   ;;  %v6694_v11 = vld [vmem:[#allocation5 + $0x960] ss:$16 sps:$4 sm:$0xff]  }
 0x197   :  { %3481 = vmatprep.subr.bf16.mxu0 %v6611_v13  ;;  %3809 = vmatprep.subr.bf16.mxu1 %v6614_v14  ;;  %v6697_v13 = vld [vmem:[#allocation5 + $0x968] ss:$16 sps:$4 sm:$0xff]   ;;  %v6702_v14 = vld [vmem:[#allocation5 + $0x984] ss:$16 sps:$4 sm:$0xff]  }
 0x19a   :  { %3482 = vmatpush1.bf16.msra.mxu0 %v6609_v15  ;;  %3810 = vmatpush1.bf16.msra.mxu1 %v6612_v16  ;;  %v6705_v15 = vld [vmem:[#allocation5 + $0x98c] ss:$16 sps:$4 sm:$0xff]   ;;  %v6700_v16 = vld [vmem:[#allocation5 + $0x980] ss:$16 sps:$4 sm:$0xff]  }
 0x19b   :  { %3483 = vmatprep.subr.bf16.mxu0 %v6617_v17  ;;  %3811 = vmatprep.subr.bf16.mxu1 %v6620_v18  ;;  %v6703_v17 = vld [vmem:[#allocation5 + $0x988] ss:$16 sps:$4 sm:$0xff]   ;;  %v6708_v18 = vld [vmem:[#allocation5 + $0x9a4] ss:$16 sps:$4 sm:$0xff]  }
 0x19e   :  { %3484 = vmatpush1.bf16.msra.mxu0 %v6615_v20  ;;  %3812 = vmatpush1.bf16.msra.mxu1 %v6618_v21  ;;  %v6711_v20 = vld [vmem:[#allocation5 + $0x9ac] ss:$16 sps:$4 sm:$0xff]   ;;  %v6706_v21 = vld [vmem:[#allocation5 + $0x9a0] ss:$16 sps:$4 sm:$0xff]  }
 0x19f   :  { %3485 = vmatprep.subr.bf16.mxu0 %v6623_v23  ;;  %3813 = vmatprep.subr.bf16.mxu1 %v6626_v24  ;;  %v6709_v23 = vld [vmem:[#allocation5 + $0x9a8] ss:$16 sps:$4 sm:$0xff]   ;;  %v6714_v24 = vld [vmem:[#allocation5 + $0x9c4] ss:$16 sps:$4 sm:$0xff]  }
 0x1a2   :  { %3486 = vmatpush1.bf16.msra.mxu0 %v6621_v26  ;;  %3814 = vmatpush1.bf16.msra.mxu1 %v6624_v28  ;;  %v6717_v26 = vld [vmem:[#allocation5 + $0x9cc] ss:$16 sps:$4 sm:$0xff]   ;;  %v6712_v28 = vld [vmem:[#allocation5 + $0x9c0] ss:$16 sps:$4 sm:$0xff]  }
 0x1a3   :  { %3496 = vmatprep.subr.bf16.mxu0 %v6630_v29  ;;  %3824 = vmatprep.subr.bf16.mxu1 %v6633_v19  ;;  %v6715_v29 = vld [vmem:[#allocation5 + $0x9c8] ss:$16 sps:$4 sm:$0xff]   ;;  %v6720_v19 = vld [vmem:[#allocation5 + $0x9e4] ss:$16 sps:$4 sm:$0xff]  }
 0x1a5   :  { %3488 = vmatmul.mubr.bf16.vlgmr.msra.gmra.mrb[0].mxu0 %v7668_v25  ;;  %3816 = vmatmul.mubr.bf16.vlgmr.msra.gmra.mrb[0].mxu1 %v7668_v25  ;;  %v6646_v25 = vld [vmem:[#allocation5 + $0x860] ss:$16 sps:$4 sm:$0xff]  }
 0x1a6   :  { %3497 = vmatpush1.bf16.msra.mxu0 %v6628_v30  ;;  %3825 = vmatpush1.bf16.msra.mxu1 %v6631_v31  ;;  %v6723_v30 = vld [vmem:[#allocation5 + $0x9ec] ss:$16 sps:$4 sm:$0xff]   ;;  %v722_v31 = vcombine.high %v7674_v27, %v7674_v27 }
 0x1a7   :  { %3498 = vmatprep.subr.bf16.mxu0 %v6636_v32  ;;  %3826 = vmatprep.subr.bf16.mxu1 %v6639_v33  ;;  %v6718_v32 = vld [vmem:[#allocation5 + $0x9e0] ss:$16 sps:$4 sm:$0xff]   ;;  %v6721_v33 = vld [vmem:[#allocation5 + $0x9e8] ss:$16 sps:$4 sm:$0xff]  }
 0x1a8   :  { %3528 = vmatprep.mubr.bf16.mxu0 %v737_v34  ;;  %3856 = vmatprep.mubr.bf16.mxu1 %v737_v34  ;;  %v6726_v34 = vld [vmem:[#allocation5 + $0xa04] ss:$16 sps:$4 sm:$0xff]  }
 0x1aa   :  { %3499 = vmatpush1.bf16.msra.mxu0 %v6634_v35  ;;  %3827 = vmatpush1.bf16.msra.mxu1 %v6637_v36  ;;  %v6729_v35 = vld [vmem:[#allocation5 + $0xa0c] ss:$16 sps:$4 sm:$0xff]   ;;  %v7687_v36 = vrot.slane %v722_v31, %v7647_v49 }
 0x1ab   :  { %3500 = vmatprep.subr.bf16.mxu0 %v6642_v22  ;;  %3828 = vmatprep.subr.bf16.mxu1 %v6645_v37  ;;  %v6724_v22 = vld [vmem:[#allocation5 + $0xa00] ss:$16 sps:$4 sm:$0xff]   ;;  %v6727_v37 = vld [vmem:[#allocation5 + $0xa08] ss:$16 sps:$4 sm:$0xff]   ;;  %v6813_v31 = vld [vmem:[#allocation5 + $0xbcc] ss:$16 sps:$4 sm:$0xff]  }
 0x1ac   :  { %v738_v27 = vcombine.high %v7687_v36, %v7687_v36 }
 0x1ae   :  { %3501 = vmatpush1.bf16.msra.mxu0 %v6640_v38  ;;  %3829 = vmatpush1.bf16.msra.mxu1 %v6643_v39  ;;  %v6732_v38 = vld [vmem:[#allocation5 + $0xa24] ss:$16 sps:$4 sm:$0xff]   ;;  %v6735_v39 = vld [vmem:[#allocation5 + $0xa2c] ss:$16 sps:$4 sm:$0xff]  }
 0x1af   :  { %3502 = vmatprep.subr.bf16.mxu0 %v6648_v40  ;;  %3830 = vmatprep.subr.bf16.mxu1 %v6651_v41  ;;  %v6730_v40 = vld [vmem:[#allocation5 + $0xa20] ss:$16 sps:$4 sm:$0xff]   ;;  %v6733_v41 = vld [vmem:[#allocation5 + $0xa28] ss:$16 sps:$4 sm:$0xff]  }
 0x1b2   :  { %3503 = vmatpush1.bf16.msra.mxu0 %v6646_v25  ;;  %3831 = vmatpush1.bf16.msra.mxu1 %v6649_v43  ;;  %v6738_v25 = vld [vmem:[#allocation5 + $0xa44] ss:$16 sps:$4 sm:$0xff]   ;;  %v6741_v43 = vld [vmem:[#allocation5 + $0xa4c] ss:$16 sps:$4 sm:$0xff]  }
 0x1b3   :  { %3504 = vmatprep.subr.bf16.mxu0 %v6654_v44  ;;  %3832 = vmatprep.subr.bf16.mxu1 %v6657_v45  ;;  %v6736_v44 = vld [vmem:[#allocation5 + $0xa40] ss:$16 sps:$4 sm:$0xff]   ;;  %v6739_v45 = vld [vmem:[#allocation5 + $0xa48] ss:$16 sps:$4 sm:$0xff]  }
 0x1b6   :  { %3505 = vmatpush1.bf16.msra.mxu0 %v6652_v46  ;;  %3833 = vmatpush1.bf16.msra.mxu1 %v6655_v47  ;;  %v6744_v46 = vld [vmem:[#allocation5 + $0xa64] ss:$16 sps:$4 sm:$0xff]   ;;  %v6747_v47 = vld [vmem:[#allocation5 + $0xa6c] ss:$16 sps:$4 sm:$0xff]  }
 0x1b7   :  { %3506 = vmatprep.subr.bf16.mxu0 %v6660_v48  ;;  %3834 = vmatprep.subr.bf16.mxu1 %v6663_v50  ;;  %v6745_v48 = vld [vmem:[#allocation5 + $0xa68] ss:$16 sps:$4 sm:$0xff]   ;;  %v6750_v50 = vld [vmem:[#allocation5 + $0xa84] ss:$16 sps:$4 sm:$0xff]  }
 0x1ba   :  { %3507 = vmatpush1.bf16.msra.mxu0 %v6658_v51  ;;  %3835 = vmatpush1.bf16.msra.mxu1 %v6661_v52  ;;  %v6753_v51 = vld [vmem:[#allocation5 + $0xa8c] ss:$16 sps:$4 sm:$0xff]   ;;  %v6748_v52 = vld [vmem:[#allocation5 + $0xa80] ss:$16 sps:$4 sm:$0xff]  }
 0x1bb   :  { %3508 = vmatprep.subr.bf16.mxu0 %v6666_v53  ;;  %3836 = vmatprep.subr.bf16.mxu1 %v6669_v54  ;;  %v6751_v53 = vld [vmem:[#allocation5 + $0xa88] ss:$16 sps:$4 sm:$0xff]   ;;  %v6756_v54 = vld [vmem:[#allocation5 + $0xaa4] ss:$16 sps:$4 sm:$0xff]  }
 0x1be   :  { %3509 = vmatpush1.bf16.msra.mxu0 %v6664_v55  ;;  %3837 = vmatpush1.bf16.msra.mxu1 %v6667_v56  ;;  %v6759_v55 = vld [vmem:[#allocation5 + $0xaac] ss:$16 sps:$4 sm:$0xff]   ;;  %v6754_v56 = vld [vmem:[#allocation5 + $0xaa0] ss:$16 sps:$4 sm:$0xff]  }
 0x1bf   :  { %3510 = vmatprep.subr.bf16.mxu0 %v6672_v57  ;;  %3838 = vmatprep.subr.bf16.mxu1 %v6675_v58  ;;  %v6757_v57 = vld [vmem:[#allocation5 + $0xaa8] ss:$16 sps:$4 sm:$0xff]   ;;  %v6762_v58 = vld [vmem:[#allocation5 + $0xac4] ss:$16 sps:$4 sm:$0xff]  }
 0x1c2   :  { %3511 = vmatpush1.bf16.msra.mxu0 %v6670_v59  ;;  %3839 = vmatpush1.bf16.msra.mxu1 %v6673_v60  ;;  %v6765_v59 = vld [vmem:[#allocation5 + $0xacc] ss:$16 sps:$4 sm:$0xff]   ;;  %v6760_v60 = vld [vmem:[#allocation5 + $0xac0] ss:$16 sps:$4 sm:$0xff]  }
 0x1c3   :  { %3512 = vmatprep.subr.bf16.mxu0 %v6678_v61  ;;  %3840 = vmatprep.subr.bf16.mxu1 %v6681_v62  ;;  %v6763_v61 = vld [vmem:[#allocation5 + $0xac8] ss:$16 sps:$4 sm:$0xff]   ;;  %v6768_v62 = vld [vmem:[#allocation5 + $0xae4] ss:$16 sps:$4 sm:$0xff]  }
 0x1c6   :  { %3513 = vmatpush1.bf16.msra.mxu0 %v6676_v63  ;;  %3841 = vmatpush1.bf16.msra.mxu1 %v6679_v0  ;;  %v6771_v63 = vld [vmem:[#allocation5 + $0xaec] ss:$16 sps:$4 sm:$0xff]   ;;  %v6766_v0 = vld [vmem:[#allocation5 + $0xae0] ss:$16 sps:$4 sm:$0xff]  }
 0x1c7   :  { %3514 = vmatprep.subr.bf16.mxu0 %v6684_v1  ;;  %3842 = vmatprep.subr.bf16.mxu1 %v6687_v2  ;;  %v6769_v1 = vld [vmem:[#allocation5 + $0xae8] ss:$16 sps:$4 sm:$0xff]   ;;  %v6774_v2 = vld [vmem:[#allocation5 + $0xb04] ss:$16 sps:$4 sm:$0xff]  }
 0x1ca   :  { %3515 = vmatpush1.bf16.msra.mxu0 %v6682_v3  ;;  %3843 = vmatpush1.bf16.msra.mxu1 %v6685_v4  ;;  %v6777_v3 = vld [vmem:[#allocation5 + $0xb0c] ss:$16 sps:$4 sm:$0xff]   ;;  %v6772_v4 = vld [vmem:[#allocation5 + $0xb00] ss:$16 sps:$4 sm:$0xff]  }
 0x1cb   :  { %3516 = vmatprep.subr.bf16.mxu0 %v6690_v5  ;;  %3844 = vmatprep.subr.bf16.mxu1 %v6693_v6  ;;  %v6775_v5 = vld [vmem:[#allocation5 + $0xb08] ss:$16 sps:$4 sm:$0xff]   ;;  %v6780_v6 = vld [vmem:[#allocation5 + $0xb24] ss:$16 sps:$4 sm:$0xff]  }
 0x1ce   :  { %3517 = vmatpush1.bf16.msra.mxu0 %v6688_v7  ;;  %3845 = vmatpush1.bf16.msra.mxu1 %v6691_v8  ;;  %v6783_v7 = vld [vmem:[#allocation5 + $0xb2c] ss:$16 sps:$4 sm:$0xff]   ;;  %v6778_v8 = vld [vmem:[#allocation5 + $0xb20] ss:$16 sps:$4 sm:$0xff]  }
 0x1cf   :  { %3518 = vmatprep.subr.bf16.mxu0 %v6696_v9  ;;  %3846 = vmatprep.subr.bf16.mxu1 %v6699_v10  ;;  %v6781_v9 = vld [vmem:[#allocation5 + $0xb28] ss:$16 sps:$4 sm:$0xff]   ;;  %v6786_v10 = vld [vmem:[#allocation5 + $0xb44] ss:$16 sps:$4 sm:$0xff]  }
 0x1d2   :  { %3519 = vmatpush1.bf16.msra.mxu0 %v6694_v11  ;;  %3847 = vmatpush1.bf16.msra.mxu1 %v6697_v13  ;;  %v6789_v11 = vld [vmem:[#allocation5 + $0xb4c] ss:$16 sps:$4 sm:$0xff]   ;;  %v6784_v13 = vld [vmem:[#allocation5 + $0xb40] ss:$16 sps:$4 sm:$0xff]  }
 0x1d3   :  { %3520 = vmatprep.subr.bf16.mxu0 %v6702_v14  ;;  %3848 = vmatprep.subr.bf16.mxu1 %v6705_v15  ;;  %v6787_v14 = vld [vmem:[#allocation5 + $0xb48] ss:$16 sps:$4 sm:$0xff]   ;;  %v6792_v15 = vld [vmem:[#allocation5 + $0xb64] ss:$16 sps:$4 sm:$0xff]  }
 0x1d6   :  { %3521 = vmatpush1.bf16.msra.mxu0 %v6700_v16  ;;  %3849 = vmatpush1.bf16.msra.mxu1 %v6703_v17  ;;  %v6795_v16 = vld [vmem:[#allocation5 + $0xb6c] ss:$16 sps:$4 sm:$0xff]   ;;  %v6790_v17 = vld [vmem:[#allocation5 + $0xb60] ss:$16 sps:$4 sm:$0xff]  }
 0x1d7   :  { %3522 = vmatprep.subr.bf16.mxu0 %v6708_v18  ;;  %3850 = vmatprep.subr.bf16.mxu1 %v6711_v20  ;;  %v6793_v18 = vld [vmem:[#allocation5 + $0xb68] ss:$16 sps:$4 sm:$0xff]   ;;  %v6798_v20 = vld [vmem:[#allocation5 + $0xb84] ss:$16 sps:$4 sm:$0xff]  }
 0x1da   :  { %3523 = vmatpush1.bf16.msra.mxu0 %v6706_v21  ;;  %3851 = vmatpush1.bf16.msra.mxu1 %v6709_v23  ;;  %v6801_v21 = vld [vmem:[#allocation5 + $0xb8c] ss:$16 sps:$4 sm:$0xff]   ;;  %v6796_v23 = vld [vmem:[#allocation5 + $0xb80] ss:$16 sps:$4 sm:$0xff]  }
 0x1db   :  { %3524 = vmatprep.subr.bf16.mxu0 %v6714_v24  ;;  %3852 = vmatprep.subr.bf16.mxu1 %v6717_v26  ;;  %v6799_v24 = vld [vmem:[#allocation5 + $0xb88] ss:$16 sps:$4 sm:$0xff]   ;;  %v6804_v26 = vld [vmem:[#allocation5 + $0xba4] ss:$16 sps:$4 sm:$0xff]  }
 0x1de   :  { %3525 = vmatpush1.bf16.msra.mxu0 %v6712_v28  ;;  %3853 = vmatpush1.bf16.msra.mxu1 %v6715_v29  ;;  %v6807_v28 = vld [vmem:[#allocation5 + $0xbac] ss:$16 sps:$4 sm:$0xff]   ;;  %v6802_v29 = vld [vmem:[#allocation5 + $0xba0] ss:$16 sps:$4 sm:$0xff]  }
 0x1df   :  { %3526 = vmatprep.subr.bf16.mxu0 %v6720_v19  ;;  %3854 = vmatprep.subr.bf16.mxu1 %v6723_v30  ;;  %v6805_v19 = vld [vmem:[#allocation5 + $0xba8] ss:$16 sps:$4 sm:$0xff]   ;;  %v6810_v30 = vld [vmem:[#allocation5 + $0xbc4] ss:$16 sps:$4 sm:$0xff]  }
 0x1e2   :  { %3527 = vmatpush1.bf16.msra.mxu0 %v6718_v32  ;;  %3855 = vmatpush1.bf16.msra.mxu1 %v6721_v33  ;;  %v6808_v32 = vld [vmem:[#allocation5 + $0xbc0] ss:$16 sps:$4 sm:$0xff]   ;;  %v6811_v33 = vld [vmem:[#allocation5 + $0xbc8] ss:$16 sps:$4 sm:$0xff]  }
 0x1e3   :  { %3537 = vmatprep.subr.bf16.mxu0 %v6726_v34  ;;  %3865 = vmatprep.subr.bf16.mxu1 %v6729_v35  ;;  %v6816_v34 = vld [vmem:[#allocation5 + $0xbe4] ss:$16 sps:$4 sm:$0xff]   ;;  %v6819_v35 = vld [vmem:[#allocation5 + $0xbec] ss:$16 sps:$4 sm:$0xff]  }
 0x1e5   :  { %3529 = vmatmul.mubr.bf16.vlgmr.msra.gmra.mrb[0].mxu0 %v7678_v12  ;;  %3857 = vmatmul.mubr.bf16.vlgmr.msra.gmra.mrb[0].mxu1 %v7678_v12  ;;  %v6742_v12 = vld [vmem:[#allocation5 + $0xa60] ss:$16 sps:$4 sm:$0xff]  }
 0x1e6   :  { %3538 = vmatpush1.bf16.msra.mxu0 %v6724_v22  ;;  %3866 = vmatpush1.bf16.msra.mxu1 %v6727_v37  ;;  %v7693_v22 = vld [vmem:[#allocation2 + $0x18] sm:$0xff]  ;;  %v6814_v37 = vld [vmem:[#allocation5 + $0xbe0] ss:$16 sps:$4 sm:$0xff]  }
 0x1e7   :  { %3539 = vmatprep.subr.bf16.mxu0 %v6732_v38  ;;  %3867 = vmatprep.subr.bf16.mxu1 %v6735_v39  ;;  %v6817_v38 = vld [vmem:[#allocation5 + $0xbe8] ss:$16 sps:$4 sm:$0xff]   ;;  %v6823_v39 = vld [vmem:[#allocation5 + $0xc04] ss:$16 sps:$4 sm:$0xff]  }
 0x1e8   :  { %3569 = vmatprep.mubr.bf16.mxu0 %v738_v27  ;;  %3897 = vmatprep.mubr.bf16.mxu1 %v738_v27  ;;  %v6826_v27 = vld [vmem:[#allocation5 + $0xc0c] ss:$16 sps:$4 sm:$0xff]  }
 0x1ea   :  { %3540 = vmatpush1.bf16.msra.mxu0 %v6730_v40  ;;  %3868 = vmatpush1.bf16.msra.mxu1 %v6733_v41  ;;  %v6821_v40 = vld [vmem:[#allocation5 + $0xc00] ss:$16 sps:$4 sm:$0xff]   ;;  %v6824_v41 = vld [vmem:[#allocation5 + $0xc08] ss:$16 sps:$4 sm:$0xff]  }
 0x1eb   :  { %3541 = vmatprep.subr.bf16.mxu0 %v6738_v25  ;;  %3869 = vmatprep.subr.bf16.mxu1 %v6741_v43  ;;  %v7697_v25 = vrot.slane %v7693_v22, %v7647_v49  ;;  %v6829_v43 = vld [vmem:[#allocation5 + $0xc24] ss:$16 sps:$4 sm:$0xff]  }
 0x1ee   :  { %3542 = vmatpush1.bf16.msra.mxu0 %v6736_v44  ;;  %3870 = vmatpush1.bf16.msra.mxu1 %v6739_v45  ;;  %v6832_v44 = vld [vmem:[#allocation5 + $0xc2c] ss:$16 sps:$4 sm:$0xff]   ;;  %v754_v45 = vcombine.high %v7697_v25, %v7697_v25 }
 0x1ef   :  { %3543 = vmatprep.subr.bf16.mxu0 %v6744_v46  ;;  %3871 = vmatprep.subr.bf16.mxu1 %v6747_v47  ;;  %v6827_v46 = vld [vmem:[#allocation5 + $0xc20] ss:$16 sps:$4 sm:$0xff]   ;;  %v6830_v47 = vld [vmem:[#allocation5 + $0xc28] ss:$16 sps:$4 sm:$0xff]  }
 0x1f2   :  { %3544 = vmatpush1.bf16.msra.mxu0 %v6742_v12  ;;  %3872 = vmatpush1.bf16.msra.mxu1 %v6745_v48  ;;  %v6835_v12 = vld [vmem:[#allocation5 + $0xc44] ss:$16 sps:$4 sm:$0xff]   ;;  %v6838_v48 = vld [vmem:[#allocation5 + $0xc4c] ss:$16 sps:$4 sm:$0xff]  }
 0x1f3   :  { %3545 = vmatprep.subr.bf16.mxu0 %v6750_v50  ;;  %3873 = vmatprep.subr.bf16.mxu1 %v6753_v51  ;;  %v6833_v50 = vld [vmem:[#allocation5 + $0xc40] ss:$16 sps:$4 sm:$0xff]   ;;  %v6836_v51 = vld [vmem:[#allocation5 + $0xc48] ss:$16 sps:$4 sm:$0xff]  }
 0x1f6   :  { %3546 = vmatpush1.bf16.msra.mxu0 %v6748_v52  ;;  %3874 = vmatpush1.bf16.msra.mxu1 %v6751_v53  ;;  %v6841_v52 = vld [vmem:[#allocation5 + $0xc64] ss:$16 sps:$4 sm:$0xff]   ;;  %v6844_v53 = vld [vmem:[#allocation5 + $0xc6c] ss:$16 sps:$4 sm:$0xff]  }
 0x1f7   :  { %3547 = vmatprep.subr.bf16.mxu0 %v6756_v54  ;;  %3875 = vmatprep.subr.bf16.mxu1 %v6759_v55  ;;  %v6839_v54 = vld [vmem:[#allocation5 + $0xc60] ss:$16 sps:$4 sm:$0xff]   ;;  %v6847_v55 = vld [vmem:[#allocation5 + $0xc84] ss:$16 sps:$4 sm:$0xff]  }
 0x1fa   :  { %3548 = vmatpush1.bf16.msra.mxu0 %v6754_v56  ;;  %3876 = vmatpush1.bf16.msra.mxu1 %v6757_v57  ;;  %v6850_v56 = vld [vmem:[#allocation5 + $0xc8c] ss:$16 sps:$4 sm:$0xff]   ;;  %v6845_v57 = vld [vmem:[#allocation5 + $0xc80] ss:$16 sps:$4 sm:$0xff]  }
 0x1fb   :  { %3549 = vmatprep.subr.bf16.mxu0 %v6762_v58  ;;  %3877 = vmatprep.subr.bf16.mxu1 %v6765_v59  ;;  %v6848_v58 = vld [vmem:[#allocation5 + $0xc88] ss:$16 sps:$4 sm:$0xff]   ;;  %v6853_v59 = vld [vmem:[#allocation5 + $0xca4] ss:$16 sps:$4 sm:$0xff]  }
 0x1fe   :  { %3550 = vmatpush1.bf16.msra.mxu0 %v6760_v60  ;;  %3878 = vmatpush1.bf16.msra.mxu1 %v6763_v61  ;;  %v6856_v60 = vld [vmem:[#allocation5 + $0xcac] ss:$16 sps:$4 sm:$0xff]   ;;  %v6851_v61 = vld [vmem:[#allocation5 + $0xca0] ss:$16 sps:$4 sm:$0xff]  }
 0x1ff   :  { %3551 = vmatprep.subr.bf16.mxu0 %v6768_v62  ;;  %3879 = vmatprep.subr.bf16.mxu1 %v6771_v63  ;;  %v6854_v62 = vld [vmem:[#allocation5 + $0xca8] ss:$16 sps:$4 sm:$0xff]   ;;  %v6859_v63 = vld [vmem:[#allocation5 + $0xcc4] ss:$16 sps:$4 sm:$0xff]  }
 0x202   :  { %3552 = vmatpush1.bf16.msra.mxu0 %v6766_v0  ;;  %3880 = vmatpush1.bf16.msra.mxu1 %v6769_v1  ;;  %v6862_v0 = vld [vmem:[#allocation5 + $0xccc] ss:$16 sps:$4 sm:$0xff]   ;;  %v6857_v1 = vld [vmem:[#allocation5 + $0xcc0] ss:$16 sps:$4 sm:$0xff]  }
 0x203   :  { %3553 = vmatprep.subr.bf16.mxu0 %v6774_v2  ;;  %3881 = vmatprep.subr.bf16.mxu1 %v6777_v3  ;;  %v6860_v2 = vld [vmem:[#allocation5 + $0xcc8] ss:$16 sps:$4 sm:$0xff]   ;;  %v6865_v3 = vld [vmem:[#allocation5 + $0xce4] ss:$16 sps:$4 sm:$0xff]  }
 0x206   :  { %3554 = vmatpush1.bf16.msra.mxu0 %v6772_v4  ;;  %3882 = vmatpush1.bf16.msra.mxu1 %v6775_v5  ;;  %v6868_v4 = vld [vmem:[#allocation5 + $0xcec] ss:$16 sps:$4 sm:$0xff]   ;;  %v6863_v5 = vld [vmem:[#allocation5 + $0xce0] ss:$16 sps:$4 sm:$0xff]  }
 0x207   :  { %3555 = vmatprep.subr.bf16.mxu0 %v6780_v6  ;;  %3883 = vmatprep.subr.bf16.mxu1 %v6783_v7  ;;  %v6866_v6 = vld [vmem:[#allocation5 + $0xce8] ss:$16 sps:$4 sm:$0xff]   ;;  %v6871_v7 = vld [vmem:[#allocation5 + $0xd04] ss:$16 sps:$4 sm:$0xff]  }
 0x20a   :  { %3556 = vmatpush1.bf16.msra.mxu0 %v6778_v8  ;;  %3884 = vmatpush1.bf16.msra.mxu1 %v6781_v9  ;;  %v6874_v8 = vld [vmem:[#allocation5 + $0xd0c] ss:$16 sps:$4 sm:$0xff]   ;;  %v6869_v9 = vld [vmem:[#allocation5 + $0xd00] ss:$16 sps:$4 sm:$0xff]  }
 0x20b   :  { %3557 = vmatprep.subr.bf16.mxu0 %v6786_v10  ;;  %3885 = vmatprep.subr.bf16.mxu1 %v6789_v11  ;;  %v6872_v10 = vld [vmem:[#allocation5 + $0xd08] ss:$16 sps:$4 sm:$0xff]   ;;  %v6877_v11 = vld [vmem:[#allocation5 + $0xd24] ss:$16 sps:$4 sm:$0xff]  }
 0x20e   :  { %3558 = vmatpush1.bf16.msra.mxu0 %v6784_v13  ;;  %3886 = vmatpush1.bf16.msra.mxu1 %v6787_v14  ;;  %v6880_v13 = vld [vmem:[#allocation5 + $0xd2c] ss:$16 sps:$4 sm:$0xff]   ;;  %v6875_v14 = vld [vmem:[#allocation5 + $0xd20] ss:$16 sps:$4 sm:$0xff]  }
 0x20f   :  { %3559 = vmatprep.subr.bf16.mxu0 %v6792_v15  ;;  %3887 = vmatprep.subr.bf16.mxu1 %v6795_v16  ;;  %v6878_v15 = vld [vmem:[#allocation5 + $0xd28] ss:$16 sps:$4 sm:$0xff]   ;;  %v6883_v16 = vld [vmem:[#allocation5 + $0xd44] ss:$16 sps:$4 sm:$0xff]  }
 0x212   :  { %3560 = vmatpush1.bf16.msra.mxu0 %v6790_v17  ;;  %3888 = vmatpush1.bf16.msra.mxu1 %v6793_v18  ;;  %v6886_v17 = vld [vmem:[#allocation5 + $0xd4c] ss:$16 sps:$4 sm:$0xff]   ;;  %v6881_v18 = vld [vmem:[#allocation5 + $0xd40] ss:$16 sps:$4 sm:$0xff]  }
 0x213   :  { %3561 = vmatprep.subr.bf16.mxu0 %v6798_v20  ;;  %3889 = vmatprep.subr.bf16.mxu1 %v6801_v21  ;;  %v6884_v20 = vld [vmem:[#allocation5 + $0xd48] ss:$16 sps:$4 sm:$0xff]   ;;  %v6889_v21 = vld [vmem:[#allocation5 + $0xd64] ss:$16 sps:$4 sm:$0xff]  }
 0x216   :  { %3562 = vmatpush1.bf16.msra.mxu0 %v6796_v23  ;;  %3890 = vmatpush1.bf16.msra.mxu1 %v6799_v24  ;;  %v6892_v23 = vld [vmem:[#allocation5 + $0xd6c] ss:$16 sps:$4 sm:$0xff]   ;;  %v6887_v24 = vld [vmem:[#allocation5 + $0xd60] ss:$16 sps:$4 sm:$0xff]  }
 0x217   :  { %3563 = vmatprep.subr.bf16.mxu0 %v6804_v26  ;;  %3891 = vmatprep.subr.bf16.mxu1 %v6807_v28  ;;  %v6890_v26 = vld [vmem:[#allocation5 + $0xd68] ss:$16 sps:$4 sm:$0xff]   ;;  %v6895_v28 = vld [vmem:[#allocation5 + $0xd84] ss:$16 sps:$4 sm:$0xff]  }
 0x21a   :  { %3564 = vmatpush1.bf16.msra.mxu0 %v6802_v29  ;;  %3892 = vmatpush1.bf16.msra.mxu1 %v6805_v19  ;;  %v6898_v29 = vld [vmem:[#allocation5 + $0xd8c] ss:$16 sps:$4 sm:$0xff]   ;;  %v6893_v19 = vld [vmem:[#allocation5 + $0xd80] ss:$16 sps:$4 sm:$0xff]  }
 0x21b   :  { %3565 = vmatprep.subr.bf16.mxu0 %v6810_v30  ;;  %3893 = vmatprep.subr.bf16.mxu1 %v6813_v31  ;;  %v6896_v30 = vld [vmem:[#allocation5 + $0xd88] ss:$16 sps:$4 sm:$0xff]   ;;  %v6901_v31 = vld [vmem:[#allocation5 + $0xda4] ss:$16 sps:$4 sm:$0xff]  }
 0x21e   :  { %3566 = vmatpush1.bf16.msra.mxu0 %v6808_v32  ;;  %3894 = vmatpush1.bf16.msra.mxu1 %v6811_v33  ;;  %v6904_v32 = vld [vmem:[#allocation5 + $0xdac] ss:$16 sps:$4 sm:$0xff]   ;;  %v6899_v33 = vld [vmem:[#allocation5 + $0xda0] ss:$16 sps:$4 sm:$0xff]  }
 0x21f   :  { %3567 = vmatprep.subr.bf16.mxu0 %v6816_v34  ;;  %3895 = vmatprep.subr.bf16.mxu1 %v6819_v35  ;;  %v6902_v34 = vld [vmem:[#allocation5 + $0xda8] ss:$16 sps:$4 sm:$0xff]   ;;  %v6907_v35 = vld [vmem:[#allocation5 + $0xdc4] ss:$16 sps:$4 sm:$0xff]  }
 0x222   :  { %3568 = vmatpush1.bf16.msra.mxu0 %v6814_v37  ;;  %3896 = vmatpush1.bf16.msra.mxu1 %v6817_v38  ;;  %v6910_v37 = vld [vmem:[#allocation5 + $0xdcc] ss:$16 sps:$4 sm:$0xff]   ;;  %v6905_v38 = vld [vmem:[#allocation5 + $0xdc0] ss:$16 sps:$4 sm:$0xff]  }
 0x223   :  { %3578 = vmatprep.subr.bf16.mxu0 %v6823_v39  ;;  %3906 = vmatprep.subr.bf16.mxu1 %v6826_v27  ;;  %v6908_v39 = vld [vmem:[#allocation5 + $0xdc8] ss:$16 sps:$4 sm:$0xff]   ;;  %v6913_v27 = vld [vmem:[#allocation5 + $0xde4] ss:$16 sps:$4 sm:$0xff]  }
 0x225   :  { %3570 = vmatmul.mubr.bf16.vlgmr.msra.gmra.mrb[0].mxu0 %v7687_v36  ;;  %3898 = vmatmul.mubr.bf16.vlgmr.msra.gmra.mrb[0].mxu1 %v7687_v36  ;;  %v6842_v36 = vld [vmem:[#allocation5 + $0xc68] ss:$16 sps:$4 sm:$0xff]  }
 0x226   :  { %3579 = vmatpush1.bf16.msra.mxu0 %v6821_v40  ;;  %3907 = vmatpush1.bf16.msra.mxu1 %v6824_v41  ;;  %v6916_v40 = vld [vmem:[#allocation5 + $0xdec] ss:$16 sps:$4 sm:$0xff]   ;;  %v739_v41 = vcombine.high %v7693_v22, %v7693_v22 }
 0x227   :  { %3580 = vmatprep.subr.bf16.mxu0 %v6829_v43  ;;  %3908 = vmatprep.subr.bf16.mxu1 %v6832_v44  ;;  %v6911_v43 = vld [vmem:[#allocation5 + $0xde0] ss:$16 sps:$4 sm:$0xff]   ;;  %v6914_v44 = vld [vmem:[#allocation5 + $0xde8] ss:$16 sps:$4 sm:$0xff]  }
 0x228   :  { %3610 = vmatprep.mubr.bf16.mxu0 %v754_v45  ;;  %3938 = vmatprep.mubr.bf16.mxu1 %v754_v45  ;;  %v6919_v45 = vld [vmem:[#allocation5 + $0xe04] ss:$16 sps:$4 sm:$0xff]  }
 0x22a   :  { %3581 = vmatpush1.bf16.msra.mxu0 %v6827_v46  ;;  %3909 = vmatpush1.bf16.msra.mxu1 %v6830_v47  ;;  %v6922_v46 = vld [vmem:[#allocation5 + $0xe0c] ss:$16 sps:$4 sm:$0xff]   ;;  %v7706_v47 = vrot.slane %v739_v41, %v7647_v49  ;;  %v6926_v49 = vld [vmem:[#allocation5 + $0xe28] ss:$16 sps:$4 sm:$0xff]   ;;  %v7001_v41 = vld [vmem:[#allocation5 + $0xfc0] ss:$16 sps:$4 sm:$0xff]  }
 0x22b   :  { %3582 = vmatprep.subr.bf16.mxu0 %v6835_v12  ;;  %3910 = vmatprep.subr.bf16.mxu1 %v6838_v48  ;;  %v6917_v12 = vld [vmem:[#allocation5 + $0xe00] ss:$16 sps:$4 sm:$0xff]   ;;  %v6920_v48 = vld [vmem:[#allocation5 + $0xe08] ss:$16 sps:$4 sm:$0xff]  }
 0x22c   :  { %v755_v22 = vcombine.high %v7706_v47, %v7706_v47 }
 0x22e   :  { %3583 = vmatpush1.bf16.msra.mxu0 %v6833_v50  ;;  %3911 = vmatpush1.bf16.msra.mxu1 %v6836_v51  ;;  %v6925_v50 = vld [vmem:[#allocation5 + $0xe24] ss:$16 sps:$4 sm:$0xff]   ;;  %v6928_v51 = vld [vmem:[#allocation5 + $0xe2c] ss:$16 sps:$4 sm:$0xff]  }
 0x22f   :  { %3584 = vmatprep.subr.bf16.mxu0 %v6841_v52  ;;  %3912 = vmatprep.subr.bf16.mxu1 %v6844_v53  ;;  %v6923_v52 = vld [vmem:[#allocation5 + $0xe20] ss:$16 sps:$4 sm:$0xff]   ;;  %v6931_v53 = vld [vmem:[#allocation5 + $0xe44] ss:$16 sps:$4 sm:$0xff]  }
 0x232   :  { %3585 = vmatpush1.bf16.msra.mxu0 %v6839_v54  ;;  %3913 = vmatpush1.bf16.msra.mxu1 %v6842_v36  ;;  %v6934_v54 = vld [vmem:[#allocation5 + $0xe4c] ss:$16 sps:$4 sm:$0xff]   ;;  %v6929_v36 = vld [vmem:[#allocation5 + $0xe40] ss:$16 sps:$4 sm:$0xff]  }
 0x233   :  { %3586 = vmatprep.subr.bf16.mxu0 %v6847_v55  ;;  %3914 = vmatprep.subr.bf16.mxu1 %v6850_v56  ;;  %v6932_v55 = vld [vmem:[#allocation5 + $0xe48] ss:$16 sps:$4 sm:$0xff]   ;;  %v6937_v56 = vld [vmem:[#allocation5 + $0xe64] ss:$16 sps:$4 sm:$0xff]  }
 0x236   :  { %3587 = vmatpush1.bf16.msra.mxu0 %v6845_v57  ;;  %3915 = vmatpush1.bf16.msra.mxu1 %v6848_v58  ;;  %v6940_v57 = vld [vmem:[#allocation5 + $0xe6c] ss:$16 sps:$4 sm:$0xff]   ;;  %v6938_v58 = vld [vmem:[#allocation5 + $0xe68] ss:$16 sps:$4 sm:$0xff]  }
 0x237   :  { %3588 = vmatprep.subr.bf16.mxu0 %v6853_v59  ;;  %3916 = vmatprep.subr.bf16.mxu1 %v6856_v60  ;;  %v6943_v59 = vld [vmem:[#allocation5 + $0xe84] ss:$16 sps:$4 sm:$0xff]   ;;  %v6946_v60 = vld [vmem:[#allocation5 + $0xe8c] ss:$16 sps:$4 sm:$0xff]  }
 0x23a   :  { %3589 = vmatpush1.bf16.msra.mxu0 %v6851_v61  ;;  %3917 = vmatpush1.bf16.msra.mxu1 %v6854_v62  ;;  %v6941_v61 = vld [vmem:[#allocation5 + $0xe80] ss:$16 sps:$4 sm:$0xff]   ;;  %v6944_v62 = vld [vmem:[#allocation5 + $0xe88] ss:$16 sps:$4 sm:$0xff]  }
 0x23b   :  { %3590 = vmatprep.subr.bf16.mxu0 %v6859_v63  ;;  %3918 = vmatprep.subr.bf16.mxu1 %v6862_v0  ;;  %v6949_v63 = vld [vmem:[#allocation5 + $0xea4] ss:$16 sps:$4 sm:$0xff]   ;;  %v6952_v0 = vld [vmem:[#allocation5 + $0xeac] ss:$16 sps:$4 sm:$0xff]  }
 0x23e   :  { %3591 = vmatpush1.bf16.msra.mxu0 %v6857_v1  ;;  %3919 = vmatpush1.bf16.msra.mxu1 %v6860_v2  ;;  %v6947_v1 = vld [vmem:[#allocation5 + $0xea0] ss:$16 sps:$4 sm:$0xff]   ;;  %v6950_v2 = vld [vmem:[#allocation5 + $0xea8] ss:$16 sps:$4 sm:$0xff]  }
 0x23f   :  { %3592 = vmatprep.subr.bf16.mxu0 %v6865_v3  ;;  %3920 = vmatprep.subr.bf16.mxu1 %v6868_v4  ;;  %v6955_v3 = vld [vmem:[#allocation5 + $0xec4] ss:$16 sps:$4 sm:$0xff]   ;;  %v6958_v4 = vld [vmem:[#allocation5 + $0xecc] ss:$16 sps:$4 sm:$0xff]  }
 0x242   :  { %3593 = vmatpush1.bf16.msra.mxu0 %v6863_v5  ;;  %3921 = vmatpush1.bf16.msra.mxu1 %v6866_v6  ;;  %v6953_v5 = vld [vmem:[#allocation5 + $0xec0] ss:$16 sps:$4 sm:$0xff]   ;;  %v6956_v6 = vld [vmem:[#allocation5 + $0xec8] ss:$16 sps:$4 sm:$0xff]  }
 0x243   :  { %3594 = vmatprep.subr.bf16.mxu0 %v6871_v7  ;;  %3922 = vmatprep.subr.bf16.mxu1 %v6874_v8  ;;  %v6961_v7 = vld [vmem:[#allocation5 + $0xee4] ss:$16 sps:$4 sm:$0xff]   ;;  %v6964_v8 = vld [vmem:[#allocation5 + $0xeec] ss:$16 sps:$4 sm:$0xff]  }
 0x246   :  { %3595 = vmatpush1.bf16.msra.mxu0 %v6869_v9  ;;  %3923 = vmatpush1.bf16.msra.mxu1 %v6872_v10  ;;  %v6959_v9 = vld [vmem:[#allocation5 + $0xee0] ss:$16 sps:$4 sm:$0xff]   ;;  %v6962_v10 = vld [vmem:[#allocation5 + $0xee8] ss:$16 sps:$4 sm:$0xff]  }
 0x247   :  { %3596 = vmatprep.subr.bf16.mxu0 %v6877_v11  ;;  %3924 = vmatprep.subr.bf16.mxu1 %v6880_v13  ;;  %v6967_v11 = vld [vmem:[#allocation5 + $0xf04] ss:$16 sps:$4 sm:$0xff]   ;;  %v6970_v13 = vld [vmem:[#allocation5 + $0xf0c] ss:$16 sps:$4 sm:$0xff]  }
 0x24a   :  { %3597 = vmatpush1.bf16.msra.mxu0 %v6875_v14  ;;  %3925 = vmatpush1.bf16.msra.mxu1 %v6878_v15  ;;  %v6965_v14 = vld [vmem:[#allocation5 + $0xf00] ss:$16 sps:$4 sm:$0xff]   ;;  %v6968_v15 = vld [vmem:[#allocation5 + $0xf08] ss:$16 sps:$4 sm:$0xff]  }
 0x24b   :  { %3598 = vmatprep.subr.bf16.mxu0 %v6883_v16  ;;  %3926 = vmatprep.subr.bf16.mxu1 %v6886_v17  ;;  %v6973_v16 = vld [vmem:[#allocation5 + $0xf24] ss:$16 sps:$4 sm:$0xff]   ;;  %v6976_v17 = vld [vmem:[#allocation5 + $0xf2c] ss:$16 sps:$4 sm:$0xff]  }
 0x24e   :  { %3599 = vmatpush1.bf16.msra.mxu0 %v6881_v18  ;;  %3927 = vmatpush1.bf16.msra.mxu1 %v6884_v20  ;;  %v6971_v18 = vld [vmem:[#allocation5 + $0xf20] ss:$16 sps:$4 sm:$0xff]   ;;  %v6974_v20 = vld [vmem:[#allocation5 + $0xf28] ss:$16 sps:$4 sm:$0xff]  }
 0x24f   :  { %3600 = vmatprep.subr.bf16.mxu0 %v6889_v21  ;;  %3928 = vmatprep.subr.bf16.mxu1 %v6892_v23  ;;  %v6979_v21 = vld [vmem:[#allocation5 + $0xf44] ss:$16 sps:$4 sm:$0xff]   ;;  %v6982_v23 = vld [vmem:[#allocation5 + $0xf4c] ss:$16 sps:$4 sm:$0xff]  }
 0x252   :  { %3601 = vmatpush1.bf16.msra.mxu0 %v6887_v24  ;;  %3929 = vmatpush1.bf16.msra.mxu1 %v6890_v26  ;;  %v6977_v24 = vld [vmem:[#allocation5 + $0xf40] ss:$16 sps:$4 sm:$0xff]   ;;  %v6980_v26 = vld [vmem:[#allocation5 + $0xf48] ss:$16 sps:$4 sm:$0xff]  }
 0x253   :  { %3602 = vmatprep.subr.bf16.mxu0 %v6895_v28  ;;  %3930 = vmatprep.subr.bf16.mxu1 %v6898_v29  ;;  %v6985_v28 = vld [vmem:[#allocation5 + $0xf64] ss:$16 sps:$4 sm:$0xff]   ;;  %v6988_v29 = vld [vmem:[#allocation5 + $0xf6c] ss:$16 sps:$4 sm:$0xff]  }
 0x256   :  { %3603 = vmatpush1.bf16.msra.mxu0 %v6893_v19  ;;  %3931 = vmatpush1.bf16.msra.mxu1 %v6896_v30  ;;  %v6983_v19 = vld [vmem:[#allocation5 + $0xf60] ss:$16 sps:$4 sm:$0xff]   ;;  %v6986_v30 = vld [vmem:[#allocation5 + $0xf68] ss:$16 sps:$4 sm:$0xff]  }
 0x257   :  { %3604 = vmatprep.subr.bf16.mxu0 %v6901_v31  ;;  %3932 = vmatprep.subr.bf16.mxu1 %v6904_v32  ;;  %v6991_v31 = vld [vmem:[#allocation5 + $0xf84] ss:$16 sps:$4 sm:$0xff]   ;;  %v6994_v32 = vld [vmem:[#allocation5 + $0xf8c] ss:$16 sps:$4 sm:$0xff]  }
 0x25a   :  { %3605 = vmatpush1.bf16.msra.mxu0 %v6899_v33  ;;  %3933 = vmatpush1.bf16.msra.mxu1 %v6902_v34  ;;  %v6989_v33 = vld [vmem:[#allocation5 + $0xf80] ss:$16 sps:$4 sm:$0xff]   ;;  %v6992_v34 = vld [vmem:[#allocation5 + $0xf88] ss:$16 sps:$4 sm:$0xff]  }
 0x25b   :  { %3606 = vmatprep.subr.bf16.mxu0 %v6907_v35  ;;  %3934 = vmatprep.subr.bf16.mxu1 %v6910_v37  ;;  %v6997_v35 = vld [vmem:[#allocation5 + $0xfa4] ss:$16 sps:$4 sm:$0xff]   ;;  %v7000_v37 = vld [vmem:[#allocation5 + $0xfac] ss:$16 sps:$4 sm:$0xff]  }
 0x25e   :  { %3607 = vmatpush1.bf16.msra.mxu0 %v6905_v38  ;;  %3935 = vmatpush1.bf16.msra.mxu1 %v6908_v39  ;;  %v6995_v38 = vld [vmem:[#allocation5 + $0xfa0] ss:$16 sps:$4 sm:$0xff]   ;;  %v6998_v39 = vld [vmem:[#allocation5 + $0xfa8] ss:$16 sps:$4 sm:$0xff]  }
 0x25f   :  { %3608 = vmatprep.subr.bf16.mxu0 %v6913_v27  ;;  %3936 = vmatprep.subr.bf16.mxu1 %v6916_v40  ;;  %v7003_v27 = vld [vmem:[#allocation5 + $0xfc4] ss:$16 sps:$4 sm:$0xff]   ;;  %v7006_v40 = vld [vmem:[#allocation5 + $0xfcc] ss:$16 sps:$4 sm:$0xff]  }
 0x262   :  { %3609 = vmatpush1.bf16.msra.mxu0 %v6911_v43  ;;  %3937 = vmatpush1.bf16.msra.mxu1 %v6914_v44  ;;  %v7004_v43 = vld [vmem:[#allocation5 + $0xfc8] ss:$16 sps:$4 sm:$0xff]   ;;  %v7009_v44 = vld [vmem:[#allocation5 + $0xfe4] ss:$16 sps:$4 sm:$0xff]  }
 0x263   :  { %3619 = vmatprep.subr.bf16.mxu0 %v6919_v45  ;;  %3947 = vmatprep.subr.bf16.mxu1 %v6922_v46  ;;  %v7012_v45 = vld [vmem:[#allocation5 + $0xfec] ss:$16 sps:$4 sm:$0xff]   ;;  %v7007_v46 = vld [vmem:[#allocation5 + $0xfe0] ss:$16 sps:$4 sm:$0xff]  }
 0x265   :  { %3611 = vmatmul.mubr.bf16.vlgmr.msra.gmra.mrb[0].mxu0 %v7697_v25  ;;  %3939 = vmatmul.mubr.bf16.vlgmr.msra.gmra.mrb[0].mxu1 %v7697_v25  ;;  %v6935_v25 = vld [vmem:[#allocation5 + $0xe60] ss:$16 sps:$4 sm:$0xff]  }
 0x266   :  { %3620 = vmatpush1.bf16.msra.mxu0 %v6917_v12  ;;  %3948 = vmatpush1.bf16.msra.mxu1 %v6920_v48  ;;  %v7010_v12 = vld [vmem:[#allocation5 + $0xfe8] ss:$16 sps:$4 sm:$0xff]  }
 0x267   :  { %3621 = vmatprep.subr.bf16.mxu0 %v6925_v50  ;;  %3949 = vmatprep.subr.bf16.mxu1 %v6928_v51  ;;  %v7016_v48 = vld [vmem:[#allocation8 + $0x4] ss:$12 sps:$4 sm:$0xff]   ;;  %v7041_v50 = vld [vmem:[#allocation8 + $0xc8] ss:$12 sps:$4 sm:$0xff]   ;;  %v7014_v51 = vld [vmem:[#allocation8] ss:$12 sps:$4 sm:$0xff]  }
 0x268   :  { %3651 = vmatprep.mubr.bf16.mxu0 %v755_v22  ;;  %3979 = vmatprep.mubr.bf16.mxu1 %v755_v22  ;;  %v7042_v22 = vld [vmem:[#allocation8 + $0x8] ss:$12 sps:$4 sm:$0xff]  }
 0x26a   :  { %3622 = vmatpush1.bf16.msra.mxu0 %v6923_v52  ;;  %3950 = vmatpush1.bf16.msra.mxu1 %v6926_v49  ;;  %v7019_v52 = vld [vmem:[#allocation8 + $0x1c] ss:$12 sps:$4 sm:$0xff]   ;;  %v7046_v49 = vld [vmem:[#allocation8 + $0xe0] ss:$12 sps:$4 sm:$0xff]  }
 0x26b   :  { %3623 = vmatprep.subr.bf16.mxu0 %v6931_v53  ;;  %3951 = vmatprep.subr.bf16.mxu1 %v6934_v54  ;;  %v7017_v53 = vld [vmem:[#allocation8 + $0x18] ss:$12 sps:$4 sm:$0xff]   ;;  %v7047_v54 = vld [vmem:[#allocation8 + $0x20] ss:$12 sps:$4 sm:$0xff]  }
 0x26e   :  { %3624 = vmatpush1.bf16.msra.mxu0 %v6929_v36  ;;  %3952 = vmatpush1.bf16.msra.mxu1 %v6932_v55  ;;  %v7022_v36 = vld [vmem:[#allocation8 + $0x34] ss:$12 sps:$4 sm:$0xff]   ;;  %v7051_v55 = vld [vmem:[#allocation8 + $0xf8] ss:$12 sps:$4 sm:$0xff]  }
 0x26f   :  { %3625 = vmatprep.subr.bf16.mxu0 %v6937_v56  ;;  %3953 = vmatprep.subr.bf16.mxu1 %v6940_v57  ;;  %v7020_v56 = vld [vmem:[#allocation8 + $0x30] ss:$12 sps:$4 sm:$0xff]   ;;  %v7052_v57 = vld [vmem:[#allocation8 + $0x38] ss:$12 sps:$4 sm:$0xff]  }
 0x272   :  { %3626 = vmatpush1.bf16.msra.mxu0 %v6935_v25  ;;  %3954 = vmatpush1.bf16.msra.mxu1 %v6938_v58  ;;  %v7025_v25 = vld [vmem:[#allocation8 + $0x4c] ss:$12 sps:$4 sm:$0xff]   ;;  %v7056_v58 = vld [vmem:[#allocation8 + $0x110] ss:$12 sps:$4 sm:$0xff]  }
 0x273   :  { %3627 = vmatprep.subr.bf16.mxu0 %v6943_v59  ;;  %3955 = vmatprep.subr.bf16.mxu1 %v6946_v60  ;;  %v7023_v59 = vld [vmem:[#allocation8 + $0x48] ss:$12 sps:$4 sm:$0xff]   ;;  %v7028_v60 = vld [vmem:[#allocation8 + $0x64] ss:$12 sps:$4 sm:$0xff]  }
 0x276   :  { %3628 = vmatpush1.bf16.msra.mxu0 %v6941_v61  ;;  %3956 = vmatpush1.bf16.msra.mxu1 %v6944_v62  ;;  %v7061_v61 = vld [vmem:[#allocation8 + $0x128] ss:$12 sps:$4 sm:$0xff]   ;;  %v7026_v62 = vld [vmem:[#allocation8 + $0x60] ss:$12 sps:$4 sm:$0xff]  }
 0x277   :  { %3629 = vmatprep.subr.bf16.mxu0 %v6949_v63  ;;  %3957 = vmatprep.subr.bf16.mxu1 %v6952_v0  ;;  %v7062_v63 = vld [vmem:[#allocation8 + $0x68] ss:$12 sps:$4 sm:$0xff]  }
 0x278   :  { %v7031_v0 = vld [vmem:[#allocation8 + $0x7c] ss:$12 sps:$4 sm:$0xff]  }
 0x27a   :  { %3630 = vmatpush1.bf16.msra.mxu0 %v6947_v1  ;;  %3958 = vmatpush1.bf16.msra.mxu1 %v6950_v2  ;;  %v7066_v1 = vld [vmem:[#allocation8 + $0x140] ss:$12 sps:$4 sm:$0xff]   ;;  %v7029_v2 = vld [vmem:[#allocation8 + $0x78] ss:$12 sps:$4 sm:$0xff]  }
 0x27b   :  { %3631 = vmatprep.subr.bf16.mxu0 %v6955_v3  ;;  %3959 = vmatprep.subr.bf16.mxu1 %v6958_v4  ;;  %v7067_v3 = vld [vmem:[#allocation8 + $0x80] ss:$12 sps:$4 sm:$0xff]  }
 0x27c   :  { %v7034_v4 = vld [vmem:[#allocation8 + $0x94] ss:$12 sps:$4 sm:$0xff]  }
 0x27e   :  { %3632 = vmatpush1.bf16.msra.mxu0 %v6953_v5  ;;  %3960 = vmatpush1.bf16.msra.mxu1 %v6956_v6  ;;  %v7032_v5 = vld [vmem:[#allocation8 + $0x90] ss:$12 sps:$4 sm:$0xff]   ;;  %v7037_v6 = vld [vmem:[#allocation8 + $0xac] ss:$12 sps:$4 sm:$0xff]  }
 0x27f   :  { %3633 = vmatprep.subr.bf16.mxu0 %v6961_v7  ;;  %3961 = vmatprep.subr.bf16.mxu1 %v6964_v8  ;;  %v7035_v7 = vld [vmem:[#allocation8 + $0xa8] ss:$12 sps:$4 sm:$0xff]   ;;  %v7040_v8 = vld [vmem:[#allocation8 + $0xc4] ss:$12 sps:$4 sm:$0xff]  }
 0x282   :  { %3634 = vmatpush1.bf16.msra.mxu0 %v6959_v9  ;;  %3962 = vmatpush1.bf16.msra.mxu1 %v6962_v10  ;;  %v7038_v9 = vld [vmem:[#allocation8 + $0xc0] ss:$12 sps:$4 sm:$0xff]   ;;  %v7045_v10 = vld [vmem:[#allocation8 + $0xdc] ss:$12 sps:$4 sm:$0xff]  }
 0x283   :  { %3635 = vmatprep.subr.bf16.mxu0 %v6967_v11  ;;  %3963 = vmatprep.subr.bf16.mxu1 %v6970_v13  ;;  %v7043_v11 = vld [vmem:[#allocation8 + $0xd8] ss:$12 sps:$4 sm:$0xff]   ;;  %v7050_v13 = vld [vmem:[#allocation8 + $0xf4] ss:$12 sps:$4 sm:$0xff]  }
 0x286   :  { %3636 = vmatpush1.bf16.msra.mxu0 %v6965_v14  ;;  %3964 = vmatpush1.bf16.msra.mxu1 %v6968_v15  ;;  %v7048_v14 = vld [vmem:[#allocation8 + $0xf0] ss:$12 sps:$4 sm:$0xff]   ;;  %v7055_v15 = vld [vmem:[#allocation8 + $0x10c] ss:$12 sps:$4 sm:$0xff]  }
 0x287   :  { %3637 = vmatprep.subr.bf16.mxu0 %v6973_v16  ;;  %3965 = vmatprep.subr.bf16.mxu1 %v6976_v17  ;;  %v7053_v16 = vld [vmem:[#allocation8 + $0x108] ss:$12 sps:$4 sm:$0xff]   ;;  %v7060_v17 = vld [vmem:[#allocation8 + $0x124] ss:$12 sps:$4 sm:$0xff]  }
 0x28a   :  { %3638 = vmatpush1.bf16.msra.mxu0 %v6971_v18  ;;  %3966 = vmatpush1.bf16.msra.mxu1 %v6974_v20  ;;  %v7058_v18 = vld [vmem:[#allocation8 + $0x120] ss:$12 sps:$4 sm:$0xff]   ;;  %v7065_v20 = vld [vmem:[#allocation8 + $0x13c] ss:$12 sps:$4 sm:$0xff]  }
 0x28b   :  { %3639 = vmatprep.subr.bf16.mxu0 %v6979_v21  ;;  %3967 = vmatprep.subr.bf16.mxu1 %v6982_v23  ;;  %v7063_v21 = vld [vmem:[#allocation8 + $0x138] ss:$12 sps:$4 sm:$0xff]   ;;  %v7070_v23 = vld [vmem:[#allocation8 + $0x154] ss:$12 sps:$4 sm:$0xff]  }
 0x28e   :  { %3640 = vmatpush1.bf16.msra.mxu0 %v6977_v24  ;;  %3968 = vmatpush1.bf16.msra.mxu1 %v6980_v26  ;;  %v7071_v24 = vld [vmem:[#allocation8 + $0x158] ss:$12 sps:$4 sm:$0xff]   ;;  %v7068_v26 = vld [vmem:[#allocation8 + $0x150] ss:$12 sps:$4 sm:$0xff]  }
 0x28f   :  { %3641 = vmatprep.subr.bf16.mxu0 %v6985_v28  ;;  %3969 = vmatprep.subr.bf16.mxu1 %v6988_v29  ;;  %v7072_v28 = vld [vmem:[#allocation8 + $0x98] ss:$12 sps:$4 sm:$0xff]  }
 0x290   :  { %v7075_v29 = vld [vmem:[#allocation8 + $0x16c] ss:$12 sps:$4 sm:$0xff]  }
 0x292   :  { %3642 = vmatpush1.bf16.msra.mxu0 %v6983_v19  ;;  %3970 = vmatpush1.bf16.msra.mxu1 %v6986_v30  ;;  %v7076_v19 = vld [vmem:[#allocation8 + $0x170] ss:$12 sps:$4 sm:$0xff]   ;;  %v7073_v30 = vld [vmem:[#allocation8 + $0x168] ss:$12 sps:$4 sm:$0xff]  }
 0x293   :  { %3643 = vmatprep.subr.bf16.mxu0 %v6991_v31  ;;  %3971 = vmatprep.subr.bf16.mxu1 %v6994_v32  ;;  %v7077_v31 = vld [vmem:[#allocation8 + $0xb0] ss:$12 sps:$4 sm:$0xff]  }
 0x294   :  { %v7080_v32 = vld [vmem:[#allocation8 + $0x184] ss:$12 sps:$4 sm:$0xff]  }
 0x296   :  { %3644 = vmatpush1.bf16.msra.mxu0 %v6989_v33  ;;  %3972 = vmatpush1.bf16.msra.mxu1 %v6992_v34  ;;  %v7081_v33 = vld [vmem:[#allocation8 + $0x248] ss:$12 sps:$4 sm:$0xff]   ;;  %v7715_v34 = vsub.s32 0, %v7644_v42 }
 0x297   :  { %3645 = vmatprep.subr.bf16.mxu0 %v6997_v35  ;;  %3973 = vmatprep.subr.bf16.mxu1 %v7000_v37  ;;  %v7717_v35 = vld [vmem:[#allocation7] sm:$0xf]  ;;  %v7720_v37 = vsub.s32 1, %v7644_v42 }
 0x29a   :  { %3646 = vmatpush1.bf16.msra.mxu0 %v6995_v38  ;;  %3974 = vmatpush1.bf16.msra.mxu1 %v6998_v39  ;;  %v678_v38 = vsub.s32 3, %v7644_v42  ;;  %v667_v39 = vrot.slane %v7717_v35, %v7715_v34 }
 0x29b   :  { %3647 = vmatprep.subr.bf16.mxu0 %v7003_v27  ;;  %3975 = vmatprep.subr.bf16.mxu1 %v7006_v40  ;;  %v671_v27 = vrot.slane %v7717_v35, %v7720_v37 }
 0x29c   :  { %v679_v40 = vrot.slane %v7717_v35, %v678_v38  ;;  %v7124_v38 = vld [vmem:[#allocation8 + $0x270] ss:$12 sps:$4 sm:$0xff]  }
 0x29e   :  { %3648 = vmatpush1.bf16.msra.mxu0 %v7001_v41  ;;  %3976 = vmatpush1.bf16.msra.mxu1 %v7004_v43 }
 0x29f   :  { %3649 = vmatprep.subr.bf16.mxu0 %v7009_v44  ;;  %3977 = vmatprep.subr.bf16.mxu1 %v7012_v45 }
 0x2a2   :  { %3650 = vmatpush1.bf16.msra.mxu0 %v7007_v46  ;;  %3978 = vmatpush1.bf16.msra.mxu1 %v7010_v12 }
 0x2a3   :  { %4653 = vmatprep.subr.bf16.mxu0 %v7016_v48  ;;  %6084 = vmatprep.subr.bf16.mxu1 %v7041_v50 }
 0x2a5   :  { %3652 = vmatmul.mubr.bf16.vlgmr.msra.gmra.mrb[0].mxu0 %v7706_v47  ;;  %3980 = vmatmul.mubr.bf16.vlgmr.msra.gmra.mrb[0].mxu1 %v7706_v47  ;;  %v7057_v47 = vld [vmem:[#allocation8 + $0x50] ss:$12 sps:$4 sm:$0xff]  }
 0x2a6   :  { %4654 = vmatpush1.bf16.msra.mxu0 %v7014_v51  ;;  %6085 = vmatpush3.bf16.msra.mxu1 %v7042_v22 }
 0x2a7   :  { %4655 = vmatprep.subr.bf16.mxu0 %v7019_v52  ;;  %6086 = vmatprep.subr.bf16.mxu1 %v7046_v49 }
 0x2aa   :  { %4656 = vmatpush1.bf16.msra.mxu0 %v7017_v53  ;;  %6087 = vmatpush3.bf16.msra.mxu1 %v7047_v54 }
 0x2ab   :  { %4657 = vmatprep.subr.bf16.mxu0 %v7022_v36  ;;  %6088 = vmatprep.subr.bf16.mxu1 %v7051_v55  ;;  %v7078_v55 = vld [vmem:[#allocation8 + $0x180] ss:$12 sps:$4 sm:$0xff]  }
 0x2ae   :  { %4658 = vmatpush1.bf16.msra.mxu0 %v7020_v56  ;;  %6089 = vmatpush3.bf16.msra.mxu1 %v7052_v57  ;;  %v7082_v56 = vld [vmem:[#allocation8 + $0x188] ss:$12 sps:$4 sm:$0xff]  }
 0x2af   :  { %4659 = vmatprep.subr.bf16.mxu0 %v7025_v25  ;;  %6090 = vmatprep.subr.bf16.mxu1 %v7056_v58  ;;  %v7085_v25 = vld [vmem:[#allocation8 + $0x19c] ss:$12 sps:$4 sm:$0xff]   ;;  %v7086_v58 = vld [vmem:[#allocation8 + $0x260] ss:$12 sps:$4 sm:$0xff]  }
 0x2b2   :  { %4660 = vmatpush1.bf16.msra.mxu0 %v7023_v59  ;;  %6091 = vmatpush3.bf16.msra.mxu1 %v7057_v47  ;;  %v7083_v47 = vld [vmem:[#allocation8 + $0x198] ss:$12 sps:$4 sm:$0xff]  }
 0x2b3   :  { %4661 = vmatprep.subr.bf16.mxu0 %v7028_v60  ;;  %6092 = vmatprep.subr.bf16.mxu1 %v7061_v61  ;;  %v7087_v60 = vld [vmem:[#allocation8 + $0x1a0] ss:$12 sps:$4 sm:$0xff]  }
 0x2b4   :  { %v7090_v61 = vld [vmem:[#allocation8 + $0x1b4] ss:$12 sps:$4 sm:$0xff]  }
 0x2b6   :  { %4662 = vmatpush1.bf16.msra.mxu0 %v7026_v62  ;;  %6093 = vmatpush3.bf16.msra.mxu1 %v7062_v63  ;;  %v7091_v62 = vld [vmem:[#allocation8 + $0x278] ss:$12 sps:$4 sm:$0xff]   ;;  %v7088_v63 = vld [vmem:[#allocation8 + $0x1b0] ss:$12 sps:$4 sm:$0xff]  }
 0x2b7   :  { %4663 = vmatprep.subr.bf16.mxu0 %v7031_v0  ;;  %6094 = vmatprep.subr.bf16.mxu1 %v7066_v1  ;;  %v7092_v0 = vld [vmem:[#allocation8 + $0x1b8] ss:$12 sps:$4 sm:$0xff]  }
 0x2b8   :  { %v7095_v1 = vld [vmem:[#allocation8 + $0x1cc] ss:$12 sps:$4 sm:$0xff]  }
 0x2ba   :  { %4664 = vmatpush1.bf16.msra.mxu0 %v7029_v2  ;;  %6095 = vmatpush3.bf16.msra.mxu1 %v7067_v3  ;;  %v7096_v2 = vld [vmem:[#allocation8 + $0x290] ss:$12 sps:$4 sm:$0xff]   ;;  %v7093_v3 = vld [vmem:[#allocation8 + $0x1c8] ss:$12 sps:$4 sm:$0xff]  }
 0x2bb   :  { %4665 = vmatprep.subr.bf16.mxu0 %v7034_v4  ;;  %6096 = vmatprep.subr.bf16.mxu1 %v7071_v24  ;;  %v7097_v4 = vld [vmem:[#allocation8 + $0x1d0] ss:$12 sps:$4 sm:$0xff]  }
 0x2bc   :  { %v7116_v24 = vld [vmem:[#allocation8 + $0x2f0] ss:$12 sps:$4 sm:$0xff]  }
 0x2be   :  { %4666 = vmatpush1.bf16.msra.mxu0 %v7032_v5  ;;  %6097 = vmatpush3.bf16.msra.mxu1 %v7072_v28  ;;  %v7100_v5 = vld [vmem:[#allocation8 + $0x1e4] ss:$12 sps:$4 sm:$0xff]  }
 0x2bf   :  { %4667 = vmatprep.subr.bf16.mxu0 %v7037_v6  ;;  %6098 = vmatprep.subr.bf16.mxu1 %v7076_v19  ;;  %v7101_v6 = vld [vmem:[#allocation8 + $0x2a8] ss:$12 sps:$4 sm:$0xff]   ;;  %v7117_v28 = vld [vmem:[#allocation8 + $0x230] ss:$12 sps:$4 sm:$0xff]  }
 0x2c0   :  { %v7120_v19 = vld [vmem:[#allocation8 + $0x244] ss:$12 sps:$4 sm:$0xff]  }
 0x2c2   :  { %4668 = vmatpush1.bf16.msra.mxu0 %v7035_v7  ;;  %6099 = vmatpush3.bf16.msra.mxu1 %v7077_v31  ;;  %v7098_v7 = vld [vmem:[#allocation8 + $0x1e0] ss:$12 sps:$4 sm:$0xff]  }
 0x2c3   :  { %4669 = vmatprep.subr.bf16.mxu0 %v7040_v8  ;;  %6106 = vmatprep.subr.bf16.mxu1 %v7081_v33  ;;  %v7102_v8 = vld [vmem:[#allocation8 + $0x1e8] ss:$12 sps:$4 sm:$0xff]   ;;  %v7121_v33 = vld [vmem:[#allocation8 + $0x258] ss:$12 sps:$4 sm:$0xff]  }
 0x2c6   :  { %4670 = vmatpush1.bf16.msra.mxu0 %v7038_v9  ;;  %v674_v9 = vsub.s32 2, %v7644_v42 }
 0x2c7   :  { %4671 = vmatprep.subr.bf16.mxu0 %v7045_v10  ;;  %v7105_v10 = vld [vmem:[#allocation8 + $0x1fc] ss:$12 sps:$4 sm:$0xff]  }
 0x2ca   :  { %4672 = vmatpush1.bf16.msra.mxu0 %v7043_v11  ;;  %v7106_v11 = vld [vmem:[#allocation8 + $0x2c0] ss:$12 sps:$4 sm:$0xff]  }
 0x2cb   :  { %4673 = vmatprep.subr.bf16.mxu0 %v7050_v13  ;;  %v7103_v13 = vld [vmem:[#allocation8 + $0x1f8] ss:$12 sps:$4 sm:$0xff]  }
 0x2ce   :  { %4674 = vmatpush1.bf16.msra.mxu0 %v7048_v14  ;;  %v7107_v14 = vld [vmem:[#allocation8 + $0x200] ss:$12 sps:$4 sm:$0xff]  }
 0x2cf   :  { %4675 = vmatprep.subr.bf16.mxu0 %v7055_v15  ;;  %v675_v15 = vrot.slane %v7717_v35, %v674_v9  ;;  %v7126_v35 = vld [vmem:[#allocation8 + $0x274] ss:$12 sps:$4 sm:$0xff]  }
 0x2d2   :  { %4676 = vmatpush1.bf16.msra.mxu0 %v7053_v16  ;;  %v7110_v16 = vld [vmem:[#allocation8 + $0x214] ss:$12 sps:$4 sm:$0xff]  }
 0x2d3   :  { %4677 = vmatprep.subr.bf16.mxu0 %v7060_v17  ;;  %v7111_v17 = vld [vmem:[#allocation8 + $0x2d8] ss:$12 sps:$4 sm:$0xff]  }
 0x2d6   :  { %4678 = vmatpush1.bf16.msra.mxu0 %v7058_v18  ;;  %v7108_v18 = vld [vmem:[#allocation8 + $0x210] ss:$12 sps:$4 sm:$0xff]  }
 0x2d7   :  { %4679 = vmatprep.subr.bf16.mxu0 %v7065_v20  ;;  %v7112_v20 = vld [vmem:[#allocation8 + $0x218] ss:$12 sps:$4 sm:$0xff]  }
 0x2da   :  { %4680 = vmatpush1.bf16.msra.mxu0 %v7063_v21 }
 0x2db   :  { %4681 = vmatprep.subr.bf16.mxu0 %v7070_v23  ;;  %v7115_v23 = vld [vmem:[#allocation8 + $0x22c] ss:$12 sps:$4 sm:$0xff]  }
 0x2de   :  { %4682 = vmatpush1.bf16.msra.mxu0 %v7068_v26  ;;  %v7113_v26 = vld [vmem:[#allocation8 + $0x228] ss:$12 sps:$4 sm:$0xff]  }
 0x2df   :  { %4683 = vmatprep.subr.bf16.mxu0 %v7075_v29 }
 0x2e2   :  { %4684 = vmatpush1.bf16.msra.mxu0 %v7073_v30  ;;  %v7118_v30 = vld [vmem:[#allocation8 + $0x240] ss:$12 sps:$4 sm:$0xff]  }
 0x2e3   :  { %4694 = vmatprep.subr.bf16.mxu0 %v7080_v32  ;;  %v7123_v32 = vld [vmem:[#allocation8 + $0x25c] ss:$12 sps:$4 sm:$0xff]  }
 0x378   :  { %v3653_v41 = vpop.f32.mrb[0].mxu0  ;;  %v7728_v43 = vpop.f32.mrb[0].mxu1 }
 0x379   :  { %v6150_v44 = vadd.f32 %v3653_v41, %v667_v39  ;;  %v3655_v45 = vpop.f32.mrb[1].mxu0  ;;  %v3983_v46 = vpop.f32.mrb[1].mxu1  ;;  %v6152_v21 = vadd.f32 %v7728_v43, %v675_v15  ;;  %v7129_v39 = vld [vmem:[#allocation8 + $0x28c] ss:$12 sps:$4 sm:$0xff]   ;;  %v7135_v43 = vld [vmem:[#allocation8 + $0x2bc] ss:$12 sps:$4 sm:$0xff]  }
 0x37a   :  { %v6151_v12 = vadd.f32 %v3655_v45, %v671_v27  ;;  %v6153_v48 = vadd.f32 %v3983_v46, %v679_v40  ;;  %v3657_v50 = vpop.f32.mrb[2].mxu0  ;;  %v3985_v51 = vpop.f32.mrb[2].mxu1  ;;  %v7127_v27 = vld [vmem:[#allocation8 + $0x288] ss:$12 sps:$4 sm:$0xff]   ;;  %v7132_v40 = vld [vmem:[#allocation8 + $0x2a4] ss:$12 sps:$4 sm:$0xff]  }
 0x37b   :  { %v3988_v22 = vmax.f32 %v6150_v44, 0.0  ;;  %v3658_v52 = vpop.f32.mrb[3].mxu0  ;;  %v3986_v49 = vpop.f32.mrb[3].mxu1  ;;  %v3990_v29 = vmax.f32 %v6152_v21, 0.0  ;;  %v7130_v41 = vld [vmem:[#allocation8 + $0x2a0] ss:$12 sps:$4 sm:$0xff]  }
 0x37c   :  { %v3989_v53 = vmax.f32 %v6151_v12, 0.0  ;;  %v3991_v54 = vmax.f32 %v6153_v48, 0.0  ;;  %v7133_v44 = vld [vmem:[#allocation8 + $0x2b8] ss:$12 sps:$4 sm:$0xff]   ;;  %v7138_v45 = vld [vmem:[#allocation8 + $0x2d4] ss:$12 sps:$4 sm:$0xff]  }
 0x37d   :  { %v3992_v57 = vpack.c.bf16 %v3988_v22, %v3988_v22  ;;  %v3994_v31 = vpack.c.bf16 %v3990_v29, %v3990_v29  ;;  %v7136_v46 = vld [vmem:[#allocation8 + $0x2d0] ss:$12 sps:$4 sm:$0xff]   ;;  %v7141_v12 = vld [vmem:[#allocation8 + $0x2ec] ss:$12 sps:$4 sm:$0xff]   ;;  %v7139_v48 = vld [vmem:[#allocation8 + $0x2e8] ss:$12 sps:$4 sm:$0xff]  }
 0x37e   :  { %v3993_v36 = vpack.c.bf16 %v3989_v53, %v3989_v53  ;;  %v3995_v59 = vpack.c.bf16 %v3991_v54, %v3991_v54  ;;  %v7142_v50 = vld [vmem:[#allocation11] ss:$8 sps:$4 sm:$0xff]   ;;  %v7144_v51 = vld [vmem:[#allocation11 + $0x4] ss:$8 sps:$4 sm:$0xff]   ;;  %v7147_v22 = vld [vmem:[#allocation11 + $0x14] ss:$8 sps:$4 sm:$0xff]  }
 0x37f   :  { %v7145_v52 = vld [vmem:[#allocation11 + $0x10] ss:$8 sps:$4 sm:$0xff]   ;;  %v7150_v49 = vld [vmem:[#allocation11 + $0x24] ss:$8 sps:$4 sm:$0xff]   ;;  %v7148_v53 = vld [vmem:[#allocation11 + $0x20] ss:$8 sps:$4 sm:$0xff]  }
 0x380   :  { %4685 = vmatprep.mubr.bf16.mxu0 %v3993_v36  ;;  %4767 = vmatprep.mubr.bf16.mxu1 %v3993_v36  ;;  %v7153_v54 = vld [vmem:[#allocation11 + $0x34] ss:$8 sps:$4 sm:$0xff]   ;;  %v7151_v36 = vld [vmem:[#allocation11 + $0x30] ss:$8 sps:$4 sm:$0xff]   ;;  %v7192_v15 = vld [vmem:[#allocation11 + $0x104] ss:$8 sps:$4 sm:$0xff]  }
 0x381   :  { %4686 = vmatmul.mubr.bf16.vlgmr.msra.gmra.mrb[4].mxu0 %v3992_v57  ;;  %4768 = vmatmul.mubr.bf16.vlgmr.msra.gmra.mrb[4].mxu1 %v3992_v57  ;;  %v7159_v57 = vld [vmem:[#allocation11 + $0x54] ss:$8 sps:$4 sm:$0xff]   ;;  %v7223_v29 = vld [vmem:[#allocation14 + $0x20] sm:$0xff]  }
 0x382   :  { %4695 = vmatpush1.bf16.msra.mxu0 %v7078_v55  ;;  %6107 = vmatpush3.bf16.msra.mxu1 %v7082_v56  ;;  %v7156_v55 = vld [vmem:[#allocation11 + $0x44] ss:$8 sps:$4 sm:$0xff]   ;;  %v7154_v56 = vld [vmem:[#allocation11 + $0x40] ss:$8 sps:$4 sm:$0xff]   ;;  %v7218_v21 = vld [vmem:[#allocation14 + $0x50] sm:$0xff]  }
 0x383   :  { %4726 = vmatprep.mubr.bf16.mxu0 %v3995_v59  ;;  %4807 = vmatprep.mubr.bf16.mxu1 %v3995_v59  ;;  %v7160_v59 = vld [vmem:[#allocation11 + $0x60] ss:$8 sps:$4 sm:$0xff]  }
 0x384   :  { %4696 = vmatprep.subr.bf16.mxu0 %v7085_v25  ;;  %6108 = vmatprep.subr.bf16.mxu1 %v7086_v58  ;;  %v7157_v25 = vld [vmem:[#allocation11 + $0x50] ss:$8 sps:$4 sm:$0xff]   ;;  %v7162_v58 = vld [vmem:[#allocation11 + $0x64] ss:$8 sps:$4 sm:$0xff]  }
 0x386   :  { %4697 = vmatpush1.bf16.msra.mxu0 %v7083_v47  ;;  %6109 = vmatpush3.bf16.msra.mxu1 %v7087_v60  ;;  %v7165_v47 = vld [vmem:[#allocation11 + $0x74] ss:$8 sps:$4 sm:$0xff]   ;;  %v7163_v60 = vld [vmem:[#allocation11 + $0x70] ss:$8 sps:$4 sm:$0xff]  }
 0x387   :  { %4698 = vmatprep.subr.bf16.mxu0 %v7090_v61  ;;  %6110 = vmatprep.subr.bf16.mxu1 %v7091_v62  ;;  %v7168_v61 = vld [vmem:[#allocation11 + $0x84] ss:$8 sps:$4 sm:$0xff]   ;;  %v7166_v62 = vld [vmem:[#allocation11 + $0x80] ss:$8 sps:$4 sm:$0xff]  }
 0x38a   :  { %4699 = vmatpush1.bf16.msra.mxu0 %v7088_v63  ;;  %6111 = vmatpush3.bf16.msra.mxu1 %v7092_v0  ;;  %v7171_v63 = vld [vmem:[#allocation11 + $0x94] ss:$8 sps:$4 sm:$0xff]   ;;  %v7169_v0 = vld [vmem:[#allocation11 + $0x90] ss:$8 sps:$4 sm:$0xff]  }
 0x38b   :  { %4700 = vmatprep.subr.bf16.mxu0 %v7095_v1  ;;  %6112 = vmatprep.subr.bf16.mxu1 %v7096_v2  ;;  %v7174_v1 = vld [vmem:[#allocation11 + $0xa4] ss:$8 sps:$4 sm:$0xff]   ;;  %v7172_v2 = vld [vmem:[#allocation11 + $0xa0] ss:$8 sps:$4 sm:$0xff]  }
 0x38e   :  { %4701 = vmatpush1.bf16.msra.mxu0 %v7093_v3  ;;  %6113 = vmatpush3.bf16.msra.mxu1 %v7097_v4  ;;  %v7177_v3 = vld [vmem:[#allocation11 + $0xb4] ss:$8 sps:$4 sm:$0xff]   ;;  %v7175_v4 = vld [vmem:[#allocation11 + $0xb0] ss:$8 sps:$4 sm:$0xff]  }
 0x38f   :  { %4702 = vmatprep.subr.bf16.mxu0 %v7100_v5  ;;  %6114 = vmatprep.subr.bf16.mxu1 %v7101_v6  ;;  %v7180_v5 = vld [vmem:[#allocation11 + $0xc4] ss:$8 sps:$4 sm:$0xff]   ;;  %v7178_v6 = vld [vmem:[#allocation11 + $0xc0] ss:$8 sps:$4 sm:$0xff]  }
 0x392   :  { %4703 = vmatpush1.bf16.msra.mxu0 %v7098_v7  ;;  %6115 = vmatpush3.bf16.msra.mxu1 %v7102_v8  ;;  %v7183_v7 = vld [vmem:[#allocation11 + $0xd4] ss:$8 sps:$4 sm:$0xff]   ;;  %v7181_v8 = vld [vmem:[#allocation11 + $0xd0] ss:$8 sps:$4 sm:$0xff]  }
 0x393   :  { %4704 = vmatprep.subr.bf16.mxu0 %v7105_v10  ;;  %6116 = vmatprep.subr.bf16.mxu1 %v7106_v11  ;;  %v7186_v10 = vld [vmem:[#allocation11 + $0xe4] ss:$8 sps:$4 sm:$0xff]   ;;  %v7184_v11 = vld [vmem:[#allocation11 + $0xe0] ss:$8 sps:$4 sm:$0xff]  }
 0x396   :  { %4705 = vmatpush1.bf16.msra.mxu0 %v7103_v13  ;;  %6117 = vmatpush3.bf16.msra.mxu1 %v7107_v14  ;;  %v7189_v13 = vld [vmem:[#allocation11 + $0xf4] ss:$8 sps:$4 sm:$0xff]   ;;  %v7187_v14 = vld [vmem:[#allocation11 + $0xf0] ss:$8 sps:$4 sm:$0xff]  }
 0x397   :  { %4706 = vmatprep.subr.bf16.mxu0 %v7110_v16  ;;  %6118 = vmatprep.subr.bf16.mxu1 %v7111_v17  ;;  %v7214_v16 = vld [vmem:[#allocation14 + $0x40] sm:$0xff]  }
 0x398   :  { %v7215_v17 = vld [vmem:[#allocation14] sm:$0xff]  }
 0x39a   :  { %4707 = vmatpush1.bf16.msra.mxu0 %v7108_v18  ;;  %6119 = vmatpush3.bf16.msra.mxu1 %v7112_v20  ;;  %v7216_v18 = vld [vmem:[#allocation14 + $0x48] sm:$0xff]  }
 0x39b   :  { %4708 = vmatprep.subr.bf16.mxu0 %v7115_v23  ;;  %6120 = vmatprep.subr.bf16.mxu1 %v7116_v24  ;;  %v7217_v20 = vld [vmem:[#allocation14 + $0x8] sm:$0xff]   ;;  %v7219_v23 = vld [vmem:[#allocation14 + $0x10] sm:$0xff]   ;;  %v7220_v24 = vld [vmem:[#allocation14 + $0x58] sm:$0xff]  }
 0x39e   :  { %4709 = vmatpush1.bf16.msra.mxu0 %v7113_v26  ;;  %6121 = vmatpush3.bf16.msra.mxu1 %v7117_v28  ;;  %v7221_v26 = vld [vmem:[#allocation14 + $0x18] sm:$0xff]   ;;  %v7222_v28 = vld [vmem:[#allocation14 + $0x60] sm:$0xff]  }
 0x39f   :  { %4710 = vmatprep.subr.bf16.mxu0 %v7120_v19  ;;  %5121 = vmatprep.subr.bf16.mxu1 %v7144_v51  ;;  %v7224_v19 = vld [vmem:[#allocation14 + $0x68] sm:$0xff]  }
 0x3a1   :  { %4808 = vmatmul.mubr.bf16.vlgmr.msra.gmra.mrb[8].mxu1 %v3994_v31 }
 0x3a2   :  { %4711 = vmatpush1.bf16.msra.mxu0 %v7118_v30  ;;  %5122 = vmatpush1.bf16.msra.mxu1 %v7142_v50  ;;  %v7225_v30 = vld [vmem:[#allocation14 + $0x28] sm:$0xff]  }
 0x3a3   :  { %4712 = vmatprep.subr.bf16.mxu0 %v7123_v32  ;;  %5123 = vmatprep.subr.bf16.mxu1 %v7147_v22 }
 0x3a6   :  { %4713 = vmatpush1.bf16.msra.mxu0 %v7121_v33  ;;  %5124 = vmatpush1.bf16.msra.mxu1 %v7145_v52 }
 0x3a7   :  { %4714 = vmatprep.subr.bf16.mxu0 %v7126_v35  ;;  %5125 = vmatprep.subr.bf16.mxu1 %v7150_v49 }
 0x3aa   :  { %4715 = vmatpush1.bf16.msra.mxu0 %v7124_v38  ;;  %5126 = vmatpush1.bf16.msra.mxu1 %v7148_v53 }
 0x3ab   :  { %4716 = vmatprep.subr.bf16.mxu0 %v7129_v39  ;;  %5127 = vmatprep.subr.bf16.mxu1 %v7153_v54  ;;  %v4124_v39 = vld [vmem:[#allocation10] sm:$0x7] }
 0x3ac   :  { %v4133_v50 = vrot.slane %v4124_v39, %v7720_v37 }
 0x3ae   :  { %4717 = vmatpush1.bf16.msra.mxu0 %v7127_v27  ;;  %5128 = vmatpush1.bf16.msra.mxu1 %v7151_v36  ;;  %v4137_v27 = vrot.slane %v4124_v39, %v674_v9 }
 0x3af   :  { %4718 = vmatprep.subr.bf16.mxu0 %v7132_v40  ;;  %5129 = vmatprep.subr.bf16.mxu1 %v7156_v55  ;;  %v7190_v55 = vld [vmem:[#allocation11 + $0x100] ss:$8 sps:$4 sm:$0xff]  }
 0x3b2   :  { %4719 = vmatpush1.bf16.msra.mxu0 %v7130_v41  ;;  %5130 = vmatpush1.bf16.msra.mxu1 %v7154_v56 }
 0x3b3   :  { %4720 = vmatprep.subr.bf16.mxu0 %v7135_v43  ;;  %5131 = vmatprep.subr.bf16.mxu1 %v7159_v57  ;;  %v7195_v57 = vld [vmem:[#allocation11 + $0x114] ss:$8 sps:$4 sm:$0xff]  }
 0x3b6   :  { %4721 = vmatpush1.bf16.msra.mxu0 %v7133_v44  ;;  %5132 = vmatpush1.bf16.msra.mxu1 %v7157_v25  ;;  %v7193_v25 = vld [vmem:[#allocation11 + $0x110] ss:$8 sps:$4 sm:$0xff]  }
 0x3b7   :  { %4722 = vmatprep.subr.bf16.mxu0 %v7138_v45  ;;  %5133 = vmatprep.subr.bf16.mxu1 %v7162_v58  ;;  %v7484_v58 = vmov 0  }
 0x3ba   :  { %4723 = vmatpush1.bf16.msra.mxu0 %v7136_v46  ;;  %5134 = vmatpush1.bf16.msra.mxu1 %v7160_v59  ;;  %v7198_v59 = vld [vmem:[#allocation11 + $0x124] ss:$8 sps:$4 sm:$0xff]  }
 0x3bb   :  { %4724 = vmatprep.subr.bf16.mxu0 %v7141_v12  ;;  %5135 = vmatprep.subr.bf16.mxu1 %v7165_v47  ;;  %v7196_v47 = vld [vmem:[#allocation11 + $0x120] ss:$8 sps:$4 sm:$0xff]  }
 0x3be   :  { %4725 = vmatpush1.bf16.msra.mxu0 %v7139_v48  ;;  %5136 = vmatpush1.bf16.msra.mxu1 %v7163_v60  ;;  %v4129_v48 = vrot.slane %v4124_v39, %v7715_v34  ;;  %v7201_v60 = vld [vmem:[#allocation11 + $0x134] ss:$8 sps:$4 sm:$0xff]  }
 0x3bf   :  { %5137 = vmatprep.subr.bf16.mxu1 %v7168_v61  ;;  %6128 = vmatprep.subr.bf16.mxu0 %v7214_v16  ;;  %v7199_v61 = vld [vmem:[#allocation11 + $0x130] ss:$8 sps:$4 sm:$0xff]  }
 0x3c1   :  { %4727 = vmatmul.mubr.bf16.vlgmr.msra.gmra.mrb[4].mxu0 %v3994_v31 }
 0x3c2   :  { %5138 = vmatpush1.bf16.msra.mxu1 %v7166_v62  ;;  %6129 = vmatpush3.bf16.msra.mxu0 %v7215_v17  ;;  %v7204_v62 = vld [vmem:[#allocation11 + $0x144] ss:$8 sps:$4 sm:$0xff]  }
 0x3c3   :  { %5139 = vmatprep.subr.bf16.mxu1 %v7171_v63  ;;  %6130 = vmatprep.subr.bf16.mxu0 %v7216_v18  ;;  %v7202_v63 = vld [vmem:[#allocation11 + $0x140] ss:$8 sps:$4 sm:$0xff]  }
 0x3c6   :  { %5140 = vmatpush1.bf16.msra.mxu1 %v7169_v0  ;;  %6131 = vmatpush3.bf16.msra.mxu0 %v7217_v20  ;;  %v7207_v0 = vld [vmem:[#allocation11 + $0x154] ss:$8 sps:$4 sm:$0xff]  }
 0x3c7   :  { %5141 = vmatprep.subr.bf16.mxu1 %v7174_v1  ;;  %6132 = vmatprep.subr.bf16.mxu0 %v7218_v21  ;;  %v7205_v1 = vld [vmem:[#allocation11 + $0x150] ss:$8 sps:$4 sm:$0xff]  }
 0x3ca   :  { %5142 = vmatpush1.bf16.msra.mxu1 %v7172_v2  ;;  %6133 = vmatpush3.bf16.msra.mxu0 %v7219_v23  ;;  %v7210_v2 = vld [vmem:[#allocation11 + $0x164] ss:$8 sps:$4 sm:$0xff]  }
 0x3cb   :  { %5143 = vmatprep.subr.bf16.mxu1 %v7177_v3  ;;  %6134 = vmatprep.subr.bf16.mxu0 %v7220_v24  ;;  %v7208_v3 = vld [vmem:[#allocation11 + $0x160] ss:$8 sps:$4 sm:$0xff]  }
 0x3ce   :  { %5144 = vmatpush1.bf16.msra.mxu1 %v7175_v4  ;;  %6135 = vmatpush3.bf16.msra.mxu0 %v7221_v26  ;;  %v7213_v4 = vld [vmem:[#allocation11 + $0x174] ss:$8 sps:$4 sm:$0xff]  }
 0x3cf   :  { %5145 = vmatprep.subr.bf16.mxu1 %v7180_v5  ;;  %6136 = vmatprep.subr.bf16.mxu0 %v7222_v28  ;;  %v7211_v5 = vld [vmem:[#allocation11 + $0x170] ss:$8 sps:$4 sm:$0xff]  }
 0x3d2   :  { %5146 = vmatpush1.bf16.msra.mxu1 %v7178_v6  ;;  %6137 = vmatpush3.bf16.msra.mxu0 %v7223_v29 }
 0x3d3   :  { %5147 = vmatprep.subr.bf16.mxu1 %v7183_v7  ;;  %6138 = vmatprep.subr.bf16.mxu0 %v7224_v19 }
 0x3d6   :  { %5148 = vmatpush1.bf16.msra.mxu1 %v7181_v8  ;;  %6139 = vmatpush3.bf16.msra.mxu0 %v7225_v30  ;;  %v7226_v8 = vld [vmem:[#allocation14 + $0x70] sm:$0xff]  }
 0x3d7   :  { %5149 = vmatprep.subr.bf16.mxu1 %v7186_v10  ;;  %v7227_v10 = vld [vmem:[#allocation14 + $0x30] sm:$0xff]   ;;  %6140 = vmatprep.subr.bf16.mxu0 %v7226_v8 }
 0x3da   :  { %5150 = vmatpush1.bf16.msra.mxu1 %v7184_v11  ;;  %6141 = vmatpush3.bf16.msra.mxu0 %v7227_v10  ;;  %v7228_v11 = vld [vmem:[#allocation14 + $0x78] sm:$0xff]  }
 0x3db   :  { %5151 = vmatprep.subr.bf16.mxu1 %v7189_v13  ;;  %v7229_v13 = vld [vmem:[#allocation14 + $0x38] sm:$0xff]   ;;  %6142 = vmatprep.subr.bf16.mxu0 %v7228_v11 }
 0x3de   :  { %5152 = vmatpush1.bf16.msra.mxu1 %v7187_v14  ;;  %6143 = vmatpush3.bf16.msra.mxu0 %v7229_v13  ;;  %v4869_v14 = vld [vmem:[#allocation13] sm:$0x3] }
 0x3df   :  { %5162 = vmatprep.subr.bf16.mxu1 %v7192_v15  ;;  %v4874_v15 = vrot.slane %v4869_v14, %v7715_v34  ;;  %v4878_v16 = vrot.slane %v4869_v14, %v7720_v37 }
 0x454   :  { %v6100_v31 = vpop.f32.mrb[4].mxu1 }
 0x455   :  { %v6101_v32 = vpop.f32.mrb[5].mxu1 }
 0x456   :  { %v6102_v33 = vadd.f32 %v6101_v32, %v6100_v31  ;;  %v6103_v35 = vpop.f32.mrb[6].mxu1  ;;  %v6067_v31 = vld [vmem:[#allocation16] ss:$0 sm:$0xff] }
 0x457   :  { %v6104_v38 = vpop.f32.mrb[7].mxu1 }
 0x458   :  { %v4770_v43 = vadd.f32 %v6102_v33, %v4137_v27 }
 0x474   :  { %v6122_v40 = vpop.f32.mrb[8].mxu1 }
 0x475   :  { %v6123_v41 = vpop.f32.mrb[9].mxu1 }
 0x476   :  { %v6124_v44 = vadd.f32 %v6123_v41, %v6122_v40  ;;  %v6125_v45 = vpop.f32.mrb[10].mxu1 }
 0x477   :  { %v6126_v46 = vpop.f32.mrb[11].mxu1 }
 0x478   :  { %v4810_v12 = vadd.f32 %v6124_v44, %v4770_v43 }
 0x47a   :  { %v4817_v6 = vmax.f32 %v4810_v12, 0.0 }
 0x47c   :  { %v4820_v7 = vpack.c.bf16 %v4817_v6, %v4817_v6 }
 0x494   :  { %v4728_v51 = vpop.f32.mrb[4].mxu0 }
 0x495   :  { %v6154_v22 = vadd.f32 %v4728_v51, %v4129_v48  ;;  %v4730_v52 = vpop.f32.mrb[5].mxu0 }
 0x496   :  { %v6155_v49 = vadd.f32 %v4730_v52, %v4133_v50  ;;  %v4732_v53 = vpop.f32.mrb[6].mxu0 }
 0x497   :  { %v4815_v54 = vmax.f32 %v6154_v22, 0.0  ;;  %v4733_v36 = vpop.f32.mrb[7].mxu0 }
 0x498   :  { %v4816_v42 = vmax.f32 %v6155_v49, 0.0 }
 0x499   :  { %v4818_v56 = vpack.c.bf16 %v4815_v54, %v4815_v54 }
 0x49a   :  { %v4819_v9 = vpack.c.bf16 %v4816_v42, %v4816_v42 }
 0x49c   :  { %5153 = vmatprep.mubr.bf16.mxu1 %v4819_v9 }
 0x49d   :  { %5154 = vmatmul.mubr.bf16.vlgmr.msra.gmra.mrb[12].mxu1 %v4818_v56 }
 0x49e   :  { %5163 = vmatpush1.bf16.msra.mxu1 %v7190_v55  ;;  %5194 = vmatprep.mubr.bf16.mxu1 %v7484_v58 }
 0x49f   :  { %5164 = vmatprep.subr.bf16.mxu1 %v7195_v57 }
 0x4a2   :  { %5165 = vmatpush1.bf16.msra.mxu1 %v7193_v25 }
 0x4a3   :  { %5166 = vmatprep.subr.bf16.mxu1 %v7198_v59 }
 0x4a6   :  { %5167 = vmatpush1.bf16.msra.mxu1 %v7196_v47 }
 0x4a7   :  { %5168 = vmatprep.subr.bf16.mxu1 %v7201_v60 }
 0x4aa   :  { %5169 = vmatpush1.bf16.msra.mxu1 %v7199_v61 }
 0x4ab   :  { %5170 = vmatprep.subr.bf16.mxu1 %v7204_v62 }
 0x4ae   :  { %5171 = vmatpush1.bf16.msra.mxu1 %v7202_v63 }
 0x4af   :  { %5172 = vmatprep.subr.bf16.mxu1 %v7207_v0 }
 0x4b2   :  { %5173 = vmatpush1.bf16.msra.mxu1 %v7205_v1 }
 0x4b3   :  { %5174 = vmatprep.subr.bf16.mxu1 %v7210_v2 }
 0x4b6   :  { %5175 = vmatpush1.bf16.msra.mxu1 %v7208_v3 }
 0x4b7   :  { %5176 = vmatprep.subr.bf16.mxu1 %v7213_v4 }
 0x4ba   :  { %5177 = vmatpush1.bf16.msra.mxu1 %v7211_v5 }
 0x4bd   :  { %5195 = vmatmul.mubr.bf16.vlgmr.msra.gmra.mrb[12].mxu1 %v4820_v7 }
 0x590   :  { %v5196_v17 = vpop.f32.mrb[12].mxu1 }
 0x591   :  { %v6156_v18 = vadd.f32 %v5196_v17, %v4874_v15  ;;  %v5198_v20 = vpop.f32.mrb[13].mxu1 }
 0x592   :  { %v6157_v21 = vadd.f32 %v5198_v20, %v4878_v16  ;;  %v5200_v23 = vpop.f32.mrb[14].mxu1 }
 0x593   :  { %v5203_v24 = vmax.f32 %v6156_v18, 0.0  ;;  %v5201_v26 = vpop.f32.mrb[15].mxu1 }
 0x594   :  { %v5204_v28 = vmax.f32 %v6157_v21, 0.0 }
 0x595   :  { %v5205_v19 = vpack.c.bf16 %v5203_v24, %v5203_v24 }
 0x596   :  { %v5206_v29 = vpack.c.bf16 %v5204_v28, %v5204_v28 }
 0x598   :  { %5374 = vmatprep.mubr.bf16.mxu0 %v5206_v29 }
 0x599   :  { %5375 = vmatmul.mubr.bf16.vlgmr.msra.gmra.mrb[8].mxu0 %v5205_v19 }
 0x66c   :  { %v6144_v30 = vpop.f32.mrb[8].mxu0 }
 0x66d   :  { %v6145_v32 = vpop.f32.mrb[9].mxu0 }
 0x66e   :  { %v6146_v33 = vadd.f32 %v6145_v32, %v6144_v30  ;;  %v6147_v35 = vpop.f32.mrb[10].mxu0 }
 0x66f   :  { %v6148_v34 = vpop.f32.mrb[11].mxu0 }
 0x670   :  { %v5377_v38 = vadd.f32 %v6146_v33, %v6067_v31 }
 0x672   :  { %v5383_v37 = vand.u32 2147483647, %v5377_v38  ;;  %v5382_v44 = vmax.f32 %v5377_v38, 0.0 }
 0x674   :  { %v5384_v39 = vsub.f32 0.0, %v5383_v37 }
 0x676   :  { %v5385_v27 = vmul.f32 1.442695, %v5384_v39 }
 0x678   :  { %7230 = vpow2.f32 %v5385_v27 }
 0x682   :  { %v7231_v40 = vpop.eup %7230 }
 0x683   :  { %v5387_v41 = vadd.f32 1.0, %v7231_v40 }
 0x685   :  { %7232 = vlog2.f32 %v5387_v41 }
 0x68f   :  { %v7233_v43 = vpop.eup %7232 }
 0x690   :  { %v5389_v45 = vmul.f32 0.6931472, %v7233_v43 }
 0x692   :  { %v5390_v46 = vadd.f32 %v5389_v45, %v5382_v44 }
 0x694   :  { %5391 = vst [vmem:[#allocation17] sm:$0xf] %v5390_v46 }
 0x695   :  { %7443 = shalt.err (!%p7440_p6)
}
 0x696   :  { %s7444_s28 = scalar_lea.hbm %s7762_s9, 64 }
 0x697   :  { %p7445_p7 = scmp.ne.s32.totalorder %s7762_s9, %s7444_s28  ;;  %p7448_p8 = scmp.lt.u32.totalorder %s7444_s28, %s7762_s9 }
 0x699   :  { %p7450_p9 = pnand %p7448_p8, %p7445_p7 }
 0x69b   :  { %7453 = shalt.err (!%p7450_p9)
}
 0x69c   :  { %5401 = dma.vmem_to_hbm [thread:$0]  %s5399_s26, 64, %s7762_s9, [#allocation4]  }
 0x69d   :  { %7464 = dma.done.wait [#allocation4], 64  }
 0x69e   :  { %7465 = vsyncadd [#allocation4], 4294967232 }
 0x69f   :  { %5405 = vsyncpa [#allocation3], 1 }
 0x6a0   :  { %5406 = vsyncpa [#allocation6], 1 }
 0x6a1   :  { %5407 = vsyncpa [#allocation9], 1 }
 0x6a2   :  { %5408 = vsyncpa [#allocation12], 1 }
 0x6a3   :  { %5409 = vsyncpa [#allocation15], 1 }
 0x6a4   :  { %5410 = vsyncpa [#allocation4], 1 }

</bundles_post_ra>
